<compile_context>
chip_gen: v7x
topology: tpu7x:2x2x1
jax: 0.10.0
libtpu: 0.0.40
codegen_flags: <defaults>
</compile_context>

<pallas_src>
import functools

import jax
import jax.numpy as jnp
from jax import lax
from jax.experimental import pallas as pl
from jax.experimental.pallas import tpu as pltpu


# ----------------------------------------------------------------------------
# Pallas kernels
# ----------------------------------------------------------------------------
def _gconv_matmul_kernel(x_ref, w_ref, b_ref, o_ref):
    # x_ref: (G, K, tm)       bf16   im2col patches (K on sublanes, M on lanes)
    # w_ref: (G, Cout_g, K)   bf16   per-group weights (resident across M tiles)
    # b_ref: (G, Cout_g, 1)   f32    per-group bias
    # o_ref: (G, Cout_g, tm)  out dtype (bf16 or f32)
    G = x_ref.shape[0]
    for g in range(G):                                   # static, G <= 8
        acc = jnp.dot(w_ref[g], x_ref[g], preferred_element_type=jnp.float32)
        o_ref[g] = (acc + b_ref[g]).astype(o_ref.dtype)


def _pick_tm(G, K, Cout_g, M):
    """Largest lane-tile (multiple of 128, <=2048) that keeps double-buffered
    blocks well under VMEM on every generation (v7x has only 64 MiB)."""
    if M <= 1024:
        return M
    per_col = 2 * (G * K * 2) + 2 * (G * Cout_g * 2)     # x + out, double-buffered, bf16
    budget = 24 * 1024 * 1024
    tm = (budget // max(per_col, 1)) // 128 * 128
    return int(max(128, min(2048, tm)))


def grouped_matmul_bias_t(x, w, b, out_dtype=jnp.bfloat16):
    """x: (G, K, M) bf16, w: (G, Cout_g, K) bf16, b: (G, Cout_g, 1) f32.

    Returns (G, Cout_g, M) out_dtype with
        out[g, o, m] = sum_k w[g, o, k] * x[g, k, m] + b[g, o].
    The long M axis is lane-dense on both input patches and output.
    """
    G, K, M = x.shape
    _, Cout_g, _ = w.shape
    tm = _pick_tm(G, K, Cout_g, M)
    grid = (pl.cdiv(M, tm),)

    cost = pl.CostEstimate(
        flops=2 * G * M * K * Cout_g,
        transcendentals=0,
        bytes_accessed=(G * M * K * 2                      # bf16 patches
                        + G * Cout_g * K * 2                # bf16 weights
                        + G * Cout_g * 4                    # f32 bias
                        + G * Cout_g * M * jnp.dtype(out_dtype).itemsize),
    )

    return pl.pallas_call(
        _gconv_matmul_kernel,
        out_shape=jax.ShapeDtypeStruct((G, Cout_g, M), out_dtype),
        grid=grid,
        in_specs=[
            pl.BlockSpec((G, K, tm), lambda i: (0, 0, i)),
            pl.BlockSpec((G, Cout_g, K), lambda i: (0, 0, 0)),
            pl.BlockSpec((G, Cout_g, 1), lambda i: (0, 0, 0)),
        ],
        out_specs=pl.BlockSpec((G, Cout_g, tm), lambda i: (0, 0, i)),
        compiler_params=pltpu.CompilerParams(
            dimension_semantics=("parallel",),
            vmem_limit_bytes=64 * 1024 * 1024),
        cost_estimate=cost,
    )(x, w, b)


def _gn_lrelu_kernel(x_ref, g_ref, b_ref, o_ref, *, eps, slope):
    # x_ref: (Cg, N, HW) bf16 -- one GroupNorm group, all samples
    # g_ref/b_ref: (Cg, 1, 1) f32
    x = x_ref[...].astype(jnp.float32)
    cnt = x.shape[0] * x.shape[2]
    s = jnp.sum(x, axis=(0, 2), keepdims=True)             # per-sample stats
    ss = jnp.sum(x * x, axis=(0, 2), keepdims=True)
    mean = s * (1.0 / cnt)
    var = ss * (1.0 / cnt) - mean * mean                   # single pass
    y = (x - mean) * lax.rsqrt(var + eps) * g_ref[...] + b_ref[...]
    o_ref[...] = jnp.where(y > 0.0, y, slope * y).astype(o_ref.dtype)


def group_norm_lrelu(x, gamma, beta, groups, eps=1e-5, slope=0.2):
    """Fused GroupNorm + LeakyReLU(0.2) on channel-major activations.

    x: (C, N, HW) bf16 (the conv kernel's native layout -- no HBM transpose).
    Stats/affine in f32, output bf16.
    """
    C, N, HW = x.shape
    Cg = C // groups
    gr = gamma.reshape(C, 1, 1).astype(jnp.float32)
    br = beta.reshape(C, 1, 1).astype(jnp.float32)
    return pl.pallas_call(
        functools.partial(_gn_lrelu_kernel, eps=eps, slope=slope),
        out_shape=jax.ShapeDtypeStruct((C, N, HW), jnp.bfloat16),
        grid=(groups,),
        in_specs=[
            pl.BlockSpec((Cg, N, HW), lambda g: (g, 0, 0)),
            pl.BlockSpec((Cg, 1, 1), lambda g: (g, 0, 0)),
            pl.BlockSpec((Cg, 1, 1), lambda g: (g, 0, 0)),
        ],
        out_specs=pl.BlockSpec((Cg, N, HW), lambda g: (g, 0, 0)),
        compiler_params=pltpu.CompilerParams(
            dimension_semantics=("parallel",)),
    )(x, gr, br)


# ----------------------------------------------------------------------------
# Conv ops built on the Pallas grouped matmul kernel (im2col is plain-JAX glue)
# Activations are channel-major: (C, N, H, W).
# ----------------------------------------------------------------------------
def _im2col_grouped(x, kh, kw, stride, pad, groups):
    """x: (C, N, H, W) -> patches (groups, (C//groups)*kh*kw, N*Ho*Wo) bf16."""
    C, N, H, W = x.shape
    Cg = C // groups
    Ho = (H + 2 * pad - kh) // stride + 1
    Wo = (W + 2 * pad - kw) // stride + 1
    xp = jnp.pad(x, ((0, 0), (0, 0), (pad, pad), (pad, pad)))
    cols = []
    for di in range(kh):
        for dj in range(kw):
            cols.append(
                xp[:, :, di:di + stride * Ho:stride, dj:dj + stride * Wo:stride])
    # (kh*kw, C, N, Ho, Wo) -> (G, Cg, kh*kw, N, Ho, Wo) -> (G, K, M)
    p = jnp.stack(cols, axis=0).reshape(kh * kw, groups, Cg, N, Ho, Wo)
    p = p.transpose(1, 2, 0, 3, 4, 5).reshape(groups, Cg * kh * kw, N * Ho * Wo)
    return p, Ho, Wo


def conv2d(x, weight, bias, stride=1, padding=0, groups=1,
           out_dtype=jnp.bfloat16):
    """x: (Cin, N, H, W); weight: (Cout, Cin//groups, kh, kw) (PyTorch layout).

    Returns channel-major (Cout, N, Ho, Wo).
    """
    Cout, Cg_in, kh, kw = weight.shape
    N = x.shape[1]
    Cout_g = Cout // groups
    patches, Ho, Wo = _im2col_grouped(
        x.astype(jnp.bfloat16), kh, kw, stride, padding, groups)
    wm = weight.reshape(groups, Cout_g, Cg_in * kh * kw).astype(jnp.bfloat16)
    bm = bias.reshape(groups, Cout_g, 1).astype(jnp.float32)
    y = grouped_matmul_bias_t(patches, wm, bm, out_dtype)  # (G, Cout_g, N*Ho*Wo)
    return y.reshape(Cout, N, Ho, Wo)                      # pure reshape


def conv_transpose2d(x, weight, bias, stride, padding, output_padding,
                     out_dtype=jnp.bfloat16):
    """x: (Cin, N, H, W); weight: (Cin, Cout, kh, kw) (PyTorch ConvTranspose2d)."""
    # TODO(synk): sub-pixel decomposition would avoid stride^2 zero-stuffed MACs.
    Cin, N, H, W = x.shape
    _, Cout, kh, kw = weight.shape
    Hd = (H - 1) * stride + 1
    Wd = (W - 1) * stride + 1
    xd = jnp.zeros((Cin, N, Hd, Wd), x.dtype).at[:, :, ::stride, ::stride].set(x)
    plo = kh - 1 - padding
    phi = kh - 1 - padding + output_padding
    xp = jnp.pad(xd, ((0, 0), (0, 0), (plo, phi), (plo, phi)))
    w_eq = jnp.flip(weight, axis=(2, 3)).transpose(1, 0, 2, 3)  # (Cout, Cin, kh, kw)
    return conv2d(xp, w_eq, bias, stride=1, padding=0, groups=1,
                  out_dtype=out_dtype)


# ----------------------------------------------------------------------------
# Model definition: static cfg (Python) + params (arrays only), mirroring
# the SimVP_aug modules.  Only params is traced by jit.
# ----------------------------------------------------------------------------
def stride_generator(N, reverse=False):
    strides = [1, 2] * 10
    return list(reversed(strides[:N])) if reverse else strides[:N]


class KeyGen:
    def __init__(self, key):
        self.key = key

    def __call__(self):
        self.key, sub = jax.random.split(self.key)
        return sub


def _init(key, shape, scale=0.1):
    return scale * jax.random.normal(key, shape, jnp.float32)


# ---- ConvSC (Conv/ConvTranspose 3x3 + GroupNorm(2,.) + LeakyReLU(0.2)) ----
def init_convsc(kg, cin, cout, stride, transpose):
    if stride == 1:
        transpose = False
    cfg = {"stride": int(stride), "transpose": bool(transpose)}
    params = {}
    if transpose:
        params["w"] = _init(kg(), (cin, cout, 3, 3))
    else:
        params["w"] = _init(kg(), (cout, cin, 3, 3))
    params["b"] = _init(kg(), (cout,))
    params["gamma"] = jnp.ones((cout,), jnp.float32)
    params["beta"] = jnp.zeros((cout,), jnp.float32)
    return cfg, params


def apply_convsc(cfg, p, x):
    # x: (Cin, N, H, W) -> (Cout, N, Ho, Wo) bf16
    if cfg["transpose"]:
        y = conv_transpose2d(x, p["w"], p["b"], stride=cfg["stride"], padding=1,
                             output_padding=cfg["stride"] // 2)
    else:
        y = conv2d(x, p["w"], p["b"], stride=cfg["stride"], padding=1, groups=1)
    Cout, N, Ho, Wo = y.shape
    y = group_norm_lrelu(y.reshape(Cout, N, Ho * Wo),
                         p["gamma"], p["beta"], groups=2)
    return y.reshape(Cout, N, Ho, Wo)


# ---- Inception (1x1 conv + sum of grouped convs, GN(groups)+LReLU) ----
def init_inception(kg, cin, chid, cout, incep_ker, groups):
    g = groups if chid % groups == 0 else 1
    cfg = {"incep_ker": [int(k) for k in incep_ker], "groups": int(g)}
    params = {
        "conv1_w": _init(kg(), (chid, cin, 1, 1)),
        "conv1_b": _init(kg(), (chid,)),
        "branches": [],
    }
    for ker in incep_ker:
        params["branches"].append({
            "w": _init(kg(), (cout, chid // g, ker, ker)),
            "b": _init(kg(), (cout,)),
            "gamma": jnp.ones((cout,), jnp.float32),
            "beta": jnp.zeros((cout,), jnp.float32),
        })
    return cfg, params


def apply_inception(cfg, p, x):
    # TODO(synk): fuse the four branches (conv+GN+LReLU+sum) into one kernel.
    x = conv2d(x, p["conv1_w"], p["conv1_b"], stride=1, padding=0, groups=1)
    g = cfg["groups"]
    y = None
    for ker, br in zip(cfg["incep_ker"], p["branches"]):
        z = conv2d(x, br["w"], br["b"], stride=1, padding=ker // 2, groups=g)
        Cout, N, Ho, Wo = z.shape
        z = group_norm_lrelu(z.reshape(Cout, N, Ho * Wo),
                             br["gamma"], br["beta"], groups=g)
        z = z.reshape(Cout, N, Ho, Wo)
        y = z if y is None else y + z
    return y


# ---- Encoder / Decoder / Mid_Xnet ----
def init_encoder(kg, C_in, C_hid, N_S):
    strides = stride_generator(N_S)
    cfgs, ps = [], []
    c, p = init_convsc(kg, C_in, C_hid, strides[0], False)
    cfgs.append(c); ps.append(p)
    for s in strides[1:]:
        c, p = init_convsc(kg, C_hid, C_hid, s, False)
        cfgs.append(c); ps.append(p)
    return cfgs, ps


def apply_encoder(cfgs, ps, x):
    enc1 = apply_convsc(cfgs[0], ps[0], x)
    latent = enc1
    for c, p in zip(cfgs[1:], ps[1:]):
        latent = apply_convsc(c, p, latent)
    return latent, enc1


def init_decoder(kg, C_hid, C_out, N_S):
    strides = stride_generator(N_S, reverse=True)
    cfgs, ps = [], []
    for s in strides[:-1]:
        c, p = init_convsc(kg, C_hid, C_hid, s, True)
        cfgs.append(c); ps.append(p)
    c, p = init_convsc(kg, 2 * C_hid, C_hid, strides[-1], True)
    cfgs.append(c); ps.append(p)
    readout = {"w": _init(kg(), (C_out, C_hid, 1, 1)), "b": _init(kg(), (C_out,))}
    return cfgs, {"dec": ps, "readout": readout}


def apply_decoder(cfgs, p, hid, enc1):
    for c, layer in zip(cfgs[:-1], p["dec"][:-1]):
        hid = apply_convsc(c, layer, hid)
    Y = apply_convsc(cfgs[-1], p["dec"][-1],
                     jnp.concatenate([hid, enc1], axis=0))   # channel axis 0
    Y = conv2d(Y, p["readout"]["w"], p["readout"]["b"], stride=1, padding=0,
               groups=1, out_dtype=jnp.float32)
    return Y


def init_midxnet(kg, channel_in, channel_hid, N_T, incep_ker, groups):
    enc_c, enc_p = [], []
    c, p = init_inception(kg, channel_in, channel_hid // 2, channel_hid,
                          incep_ker, groups)
    enc_c.append(c); enc_p.append(p)
    for _ in range(1, N_T - 1):
        c, p = init_inception(kg, channel_hid, channel_hid // 2, channel_hid,
                              incep_ker, groups)
        enc_c.append(c); enc_p.append(p)
    c, p = init_inception(kg, channel_hid, channel_hid // 2, channel_hid,
                          incep_ker, groups)
    enc_c.append(c); enc_p.append(p)

    dec_c, dec_p = [], []
    c, p = init_inception(kg, channel_hid, channel_hid // 2, channel_hid,
                          incep_ker, groups)
    dec_c.append(c); dec_p.append(p)
    for _ in range(1, N_T - 1):
        c, p = init_inception(kg, 2 * channel_hid, channel_hid // 2, channel_hid,
                              incep_ker, groups)
        dec_c.append(c); dec_p.append(p)
    c, p = init_inception(kg, 2 * channel_hid, channel_hid // 2, channel_in,
                          incep_ker, groups)
    dec_c.append(c); dec_p.append(p)
    cfg = {"enc": enc_c, "dec": dec_c, "N_T": int(N_T)}
    return cfg, {"enc": enc_p, "dec": dec_p}


def apply_midxnet(cfg, p, z):
    # z: (T*C, B, H, W) channel-major; channel ordered (t, c) to match
    # PyTorch's (B, T, C, H, W) -> (B, T*C, H, W) view.
    N_T = cfg["N_T"]
    skips = []
    for i in range(N_T):
        z = apply_inception(cfg["enc"][i], p["enc"][i], z)
        if i < N_T - 1:
            skips.append(z)
    z = apply_inception(cfg["dec"][0], p["dec"][0], z)
    for i in range(1, N_T):
        z = apply_inception(cfg["dec"][i], p["dec"][i],
                            jnp.concatenate([z, skips[-i]], axis=0))
    return z


# ---- SimVP_aug ----
def init_simvp_aug(key, shape_in, hid_S, hid_T, N_S, N_T, incep_ker, groups):
    T, C, H, W = shape_in
    kg = KeyGen(key)
    enc_c, enc_p = init_encoder(kg, C, hid_S, N_S)
    hid_c, hid_p = init_midxnet(kg, T * hid_S, hid_T, N_T, incep_ker, groups)
    dec_c, dec_p = init_decoder(kg, hid_S, C, N_S)
    cfg = {"enc": enc_c, "hid": hid_c, "dec": dec_c}
    params = {"enc": enc_p, "hid": hid_p, "dec": dec_p}
    return cfg, params


def simvp_aug_forward(cfg, params, x_raw, mode="valid"):
    # TODO(synk): 'train' mode (grid augmentation + Branch/space_update) not implemented.
    assert mode in ("valid", "test"), "only valid/test path implemented"
    B, T, C, H, W = x_raw.shape
    # NCHW -> channel-major (C, N, H, W) activation layout (one transpose in,
    # one out; removes the per-layer conv->GN HBM transposes).
    x = x_raw.reshape(B * T, C, H, W).transpose(1, 0, 2, 3)
    embed, skip = apply_encoder(cfg["enc"], params["enc"], x)   # (C_, B*T, H_, W_)
    C_, _, H_, W_ = embed.shape
    z = (embed.reshape(C_, B, T, H_, W_)
              .transpose(2, 0, 1, 3, 4)
              .reshape(T * C_, B, H_, W_))
    hid = apply_midxnet(cfg["hid"], params["hid"], z)           # (T*C_, B, H_, W_)
    hid = (hid.reshape(T, C_, B, H_, W_)
              .transpose(1, 2, 0, 3, 4)
              .reshape(C_, B * T, H_, W_))
    Y = apply_decoder(cfg["dec"], params["dec"], hid, skip)     # (C, B*T, H, W) f32
    Y = Y.transpose(1, 0, 2, 3).reshape(B, T, C, H, W)
    return Y


# ----------------------------------------------------------------------------
if __name__ == "__main__":
    # Small shapes consistent with the module's forward.
    B, T, C, H, W = 1, 2, 1, 16, 16
    hid_S, hid_T, N_S, N_T = 8, 16, 4, 2
    incep_ker, groups = [3, 5, 7, 11], 8

    key = jax.random.PRNGKey(0)
    kparams, kx = jax.random.split(key)
    cfg, params = init_simvp_aug(kparams, (T, C, H, W), hid_S, hid_T, N_S, N_T,
                                 incep_ker, groups)
    x_raw = jax.random.normal(kx, (B, T, C, H, W), jnp.float32)

    fwd = jax.jit(functools.partial(simvp_aug_forward, cfg, mode="valid"))
    Y = fwd(params, x_raw)
    Y = jax.block_until_ready(Y)
    assert Y.shape == (B, T, C, H, W), Y.shape
    assert bool(jnp.all(jnp.isfinite(Y)))
    print("KERNEL_OK")
</pallas_src>

<mosaic_0001>
module attributes {stable_mosaic.version = 11 : i64} {
  func.func @_gconv_matmul_kernel(%arg0: i32, %arg1: memref<1x9x512xbf16, #tpu.memory_space<vmem>>, %arg2: memref<1x8x9xbf16, #tpu.memory_space<vmem>>, %arg3: memref<1x8x1xf32, #tpu.memory_space<vmem>>, %arg4: memref<1x8x512xbf16, #tpu.memory_space<vmem>>) attributes {dimension_semantics = [#tpu.dimension_semantics<parallel>], iteration_bounds = array<i64: 1>, scalar_prefetch = 0 : i64, scratch_operands = 0 : i64, tpu.core_type = #tpu.core_type<tc>, window_params = [{transform_indices = @transform_0, window_bounds = array<i64: 1, 9, 512>}, {pipeline_mode = #tpu.pipeline_mode<synchronous>, transform_indices = @transform_1, window_bounds = array<i64: 1, 8, 9>}, {pipeline_mode = #tpu.pipeline_mode<synchronous>, transform_indices = @transform_2, window_bounds = array<i64: 1, 8, 1>}, {transform_indices = @transform_3, window_bounds = array<i64: 1, 8, 512>}]} {
    %c0 = arith.constant 0 : index
    %c0_0 = arith.constant 0 : index
    %c0_1 = arith.constant 0 : index
    %0 = vector.load %arg2[%c0, %c0_0, %c0_1] : memref<1x8x9xbf16, #tpu.memory_space<vmem>>, vector<1x8x9xbf16>
    %1 = vector.shape_cast %0 : vector<1x8x9xbf16> to vector<8x9xbf16>
    %c0_2 = arith.constant 0 : index
    %c0_3 = arith.constant 0 : index
    %c0_4 = arith.constant 0 : index
    %2 = vector.load %arg1[%c0_2, %c0_3, %c0_4] : memref<1x9x512xbf16, #tpu.memory_space<vmem>>, vector<1x9x512xbf16>
    %3 = vector.shape_cast %2 : vector<1x9x512xbf16> to vector<9x512xbf16>
    %cst = arith.constant dense<0.000000e+00> : vector<8x512xf32>
    %4 = tpu.matmul %1, %3, %cst {dimension_numbers = #tpu.dot_dimension_numbers<[1], [0], [0], [1], [0, 0, 1, 1], [], []>} : vector<8x9xbf16>, vector<9x512xbf16>, vector<8x512xf32> -> vector<8x512xf32>
    %c0_5 = arith.constant 0 : index
    %c0_6 = arith.constant 0 : index
    %c0_7 = arith.constant 0 : index
    %5 = vector.load %arg3[%c0_5, %c0_6, %c0_7] : memref<1x8x1xf32, #tpu.memory_space<vmem>>, vector<1x8x1xf32>
    %6 = vector.shape_cast %5 : vector<1x8x1xf32> to vector<8x1xf32>
    %7 = vector.broadcast %6 : vector<8x1xf32> to vector<8x512xf32>
    %8 = arith.addf %4, %7 : vector<8x512xf32>
    %9 = arith.truncf %8 : vector<8x512xf32> to vector<8x512xbf16>
    %c0_8 = arith.constant 0 : index
    %c0_9 = arith.constant 0 : index
    %c0_10 = arith.constant 0 : index
    %10 = vector.load %arg4[%c0_8, %c0_9, %c0_10] : memref<1x8x512xbf16, #tpu.memory_space<vmem>>, vector<1x8x512xbf16>
    %11 = vector.shape_cast %10 : vector<1x8x512xbf16> to vector<8x512xbf16>
    %12 = vector.shape_cast %9 : vector<8x512xbf16> to vector<1x8x512xbf16>
    tpu.vector_store %arg4[%c0_8, %c0_9, %c0_10], %12 {strides = array<i32>} : memref<1x8x512xbf16, #tpu.memory_space<vmem>>, vector<1x8x512xbf16>,
    return
  }
  func.func @transform_0(%arg0: i32) -> (i32, i32, i32) {
    %c0_i32 = arith.constant 0 : i32
    %c0_i32_0 = arith.constant 0 : i32
    %c0_i32_1 = arith.constant 0 : i32
    return %c0_i32, %c0_i32_0, %arg0 : i32, i32, i32
  }
  func.func @transform_1(%arg0: i32) -> (i32, i32, i32) {
    %c0_i32 = arith.constant 0 : i32
    %c0_i32_0 = arith.constant 0 : i32
    %c0_i32_1 = arith.constant 0 : i32
    %c0_i32_2 = arith.constant 0 : i32
    return %c0_i32, %c0_i32_0, %c0_i32_1 : i32, i32, i32
  }
  func.func @transform_2(%arg0: i32) -> (i32, i32, i32) {
    %c0_i32 = arith.constant 0 : i32
    %c0_i32_0 = arith.constant 0 : i32
    %c0_i32_1 = arith.constant 0 : i32
    %c0_i32_2 = arith.constant 0 : i32
    return %c0_i32, %c0_i32_0, %c0_i32_1 : i32, i32, i32
  }
  func.func @transform_3(%arg0: i32) -> (i32, i32, i32) {
    %c0_i32 = arith.constant 0 : i32
    %c0_i32_0 = arith.constant 0 : i32
    %c0_i32_1 = arith.constant 0 : i32
    return %c0_i32, %c0_i32_0, %arg0 : i32, i32, i32
  }
}

module attributes {stable_mosaic.version = 11 : i64} {
  func.func @_gn_lrelu_kernel(%arg0: i32, %arg1: memref<4x2x256xbf16, #tpu.memory_space<vmem>>, %arg2: memref<4x1x1xf32, #tpu.memory_space<vmem>>, %arg3: memref<4x1x1xf32, #tpu.memory_space<vmem>>, %arg4: memref<4x2x256xbf16, #tpu.memory_space<vmem>>) attributes {dimension_semantics = [#tpu.dimension_semantics<parallel>], iteration_bounds = array<i64: 2>, scalar_prefetch = 0 : i64, scratch_operands = 0 : i64, tpu.core_type = #tpu.core_type<tc>, window_params = [{transform_indices = @transform_0, window_bounds = array<i64: 4, 2, 256>}, {transform_indices = @transform_1, window_bounds = array<i64: 4, 1, 1>}, {transform_indices = @transform_2, window_bounds = array<i64: 4, 1, 1>}, {transform_indices = @transform_3, window_bounds = array<i64: 4, 2, 256>}]} {
    %c0 = arith.constant 0 : index
    %c0_0 = arith.constant 0 : index
    %c0_1 = arith.constant 0 : index
    %0 = vector.load %arg1[%c0, %c0_0, %c0_1] : memref<4x2x256xbf16, #tpu.memory_space<vmem>>, vector<4x2x256xbf16>
    %1 = arith.extf %0 : vector<4x2x256xbf16> to vector<4x2x256xf32>
    %cst = arith.constant dense<0.000000e+00> : vector<2xf32>
    %2 = vector.multi_reduction <add>, %1, %cst [0, 2] : vector<4x2x256xf32> to vector<2xf32>
    %3 = vector.shape_cast %2 : vector<2xf32> to vector<1x2x1xf32>
    %4 = arith.mulf %1, %1 : vector<4x2x256xf32>
    %cst_2 = arith.constant dense<0.000000e+00> : vector<2xf32>
    %5 = vector.multi_reduction <add>, %4, %cst_2 [0, 2] : vector<4x2x256xf32> to vector<2xf32>
    %6 = vector.shape_cast %5 : vector<2xf32> to vector<1x2x1xf32>
    %cst_3 = arith.constant 9.765625E-4 : f32
    %7 = vector.broadcast %cst_3 : f32 to vector<1x2x1xf32>
    %8 = arith.mulf %3, %7 : vector<1x2x1xf32>
    %cst_4 = arith.constant 9.765625E-4 : f32
    %9 = vector.broadcast %cst_4 : f32 to vector<1x2x1xf32>
    %10 = arith.mulf %6, %9 : vector<1x2x1xf32>
    %11 = arith.mulf %8, %8 : vector<1x2x1xf32>
    %12 = arith.subf %10, %11 : vector<1x2x1xf32>
    %13 = vector.broadcast %8 : vector<1x2x1xf32> to vector<4x2x256xf32>
    %14 = arith.subf %1, %13 : vector<4x2x256xf32>
    %cst_5 = arith.constant 9.99999974E-6 : f32
    %15 = vector.broadcast %cst_5 : f32 to vector<1x2x1xf32>
    %16 = arith.addf %12, %15 : vector<1x2x1xf32>
    %17 = math.rsqrt %16 : vector<1x2x1xf32>
    %18 = vector.broadcast %17 : vector<1x2x1xf32> to vector<4x2x256xf32>
    %19 = arith.mulf %14, %18 : vector<4x2x256xf32>
    %c0_6 = arith.constant 0 : index
    %c0_7 = arith.constant 0 : index
    %c0_8 = arith.constant 0 : index
    %20 = vector.load %arg2[%c0_6, %c0_7, %c0_8] : memref<4x1x1xf32, #tpu.memory_space<vmem>>, vector<4x1x1xf32>
    %21 = vector.broadcast %20 : vector<4x1x1xf32> to vector<4x2x256xf32>
    %22 = arith.mulf %19, %21 : vector<4x2x256xf32>
    %c0_9 = arith.constant 0 : index
    %c0_10 = arith.constant 0 : index
    %c0_11 = arith.constant 0 : index
    %23 = vector.load %arg3[%c0_9, %c0_10, %c0_11] : memref<4x1x1xf32, #tpu.memory_space<vmem>>, vector<4x1x1xf32>
    %24 = vector.broadcast %23 : vector<4x1x1xf32> to vector<4x2x256xf32>
    %25 = arith.addf %22, %24 : vector<4x2x256xf32>
    %cst_12 = arith.constant 0.000000e+00 : f32
    %26 = vector.broadcast %cst_12 : f32 to vector<4x2x256xf32>
    %27 = arith.cmpf ogt, %25, %26 : vector<4x2x256xf32>
    %cst_13 = arith.constant 2.000000e-01 : f32
    %28 = vector.broadcast %cst_13 : f32 to vector<4x2x256xf32>
    %29 = arith.mulf %28, %25 : vector<4x2x256xf32>
    %30 = arith.select %27, %25, %29 : vector<4x2x256xi1>, vector<4x2x256xf32>
    %31 = arith.truncf %30 : vector<4x2x256xf32> to vector<4x2x256xbf16>
    %c0_14 = arith.constant 0 : index
    %c0_15 = arith.constant 0 : index
    %c0_16 = arith.constant 0 : index
    %32 = vector.load %arg4[%c0_14, %c0_15, %c0_16] : memref<4x2x256xbf16, #tpu.memory_space<vmem>>, vector<4x2x256xbf16>
    tpu.vector_store %arg4[%c0_14, %c0_15, %c0_16], %31 {strides = array<i32>} : memref<4x2x256xbf16, #tpu.memory_space<vmem>>, vector<4x2x256xbf16>,
    return
  }
  func.func @transform_0(%arg0: i32) -> (i32, i32, i32) {
    %c0_i32 = arith.constant 0 : i32
    %c0_i32_0 = arith.constant 0 : i32
    %c0_i32_1 = arith.constant 0 : i32
    return %arg0, %c0_i32, %c0_i32_0 : i32, i32, i32
  }
  func.func @transform_1(%arg0: i32) -> (i32, i32, i32) {
    %c0_i32 = arith.constant 0 : i32
    %c0_i32_0 = arith.constant 0 : i32
    %c0_i32_1 = arith.constant 0 : i32
    return %arg0, %c0_i32, %c0_i32_0 : i32, i32, i32
  }
  func.func @transform_2(%arg0: i32) -> (i32, i32, i32) {
    %c0_i32 = arith.constant 0 : i32
    %c0_i32_0 = arith.constant 0 : i32
    %c0_i32_1 = arith.constant 0 : i32
    return %arg0, %c0_i32, %c0_i32_0 : i32, i32, i32
  }
  func.func @transform_3(%arg0: i32) -> (i32, i32, i32) {
    %c0_i32 = arith.constant 0 : i32
    %c0_i32_0 = arith.constant 0 : i32
    %c0_i32_1 = arith.constant 0 : i32
    return %arg0, %c0_i32, %c0_i32_0 : i32, i32, i32
  }
}

module attributes {stable_mosaic.version = 11 : i64} {
  func.func @_gconv_matmul_kernel(%arg0: i32, %arg1: memref<1x72x128xbf16, #tpu.memory_space<vmem>>, %arg2: memref<1x8x72xbf16, #tpu.memory_space<vmem>>, %arg3: memref<1x8x1xf32, #tpu.memory_space<vmem>>, %arg4: memref<1x8x128xbf16, #tpu.memory_space<vmem>>) attributes {dimension_semantics = [#tpu.dimension_semantics<parallel>], iteration_bounds = array<i64: 1>, scalar_prefetch = 0 : i64, scratch_operands = 0 : i64, tpu.core_type = #tpu.core_type<tc>, window_params = [{transform_indices = @transform_0, window_bounds = array<i64: 1, 72, 128>}, {pipeline_mode = #tpu.pipeline_mode<synchronous>, transform_indices = @transform_1, window_bounds = array<i64: 1, 8, 72>}, {pipeline_mode = #tpu.pipeline_mode<synchronous>, transform_indices = @transform_2, window_bounds = array<i64: 1, 8, 1>}, {transform_indices = @transform_3, window_bounds = array<i64: 1, 8, 128>}]} {
    %c0 = arith.constant 0 : index
    %c0_0 = arith.constant 0 : index
    %c0_1 = arith.constant 0 : index
    %0 = vector.load %arg2[%c0, %c0_0, %c0_1] : memref<1x8x72xbf16, #tpu.memory_space<vmem>>, vector<1x8x72xbf16>
    %1 = vector.shape_cast %0 : vector<1x8x72xbf16> to vector<8x72xbf16>
    %c0_2 = arith.constant 0 : index
    %c0_3 = arith.constant 0 : index
    %c0_4 = arith.constant 0 : index
    %2 = vector.load %arg1[%c0_2, %c0_3, %c0_4] : memref<1x72x128xbf16, #tpu.memory_space<vmem>>, vector<1x72x128xbf16>
    %3 = vector.shape_cast %2 : vector<1x72x128xbf16> to vector<72x128xbf16>
    %cst = arith.constant dense<0.000000e+00> : vector<8x128xf32>
    %4 = tpu.matmul %1, %3, %cst {dimension_numbers = #tpu.dot_dimension_numbers<[1], [0], [0], [1], [0, 0, 1, 1], [], []>} : vector<8x72xbf16>, vector<72x128xbf16>, vector<8x128xf32> -> vector<8x128xf32>
    %c0_5 = arith.constant 0 : index
    %c0_6 = arith.constant 0 : index
    %c0_7 = arith.constant 0 : index
    %5 = vector.load %arg3[%c0_5, %c0_6, %c0_7] : memref<1x8x1xf32, #tpu.memory_space<vmem>>, vector<1x8x1xf32>
    %6 = vector.shape_cast %5 : vector<1x8x1xf32> to vector<8x1xf32>
    %7 = vector.broadcast %6 : vector<8x1xf32> to vector<8x128xf32>
    %8 = arith.addf %4, %7 : vector<8x128xf32>
    %9 = arith.truncf %8 : vector<8x128xf32> to vector<8x128xbf16>
    %c0_8 = arith.constant 0 : index
    %c0_9 = arith.constant 0 : index
    %c0_10 = arith.constant 0 : index
    %10 = vector.load %arg4[%c0_8, %c0_9, %c0_10] : memref<1x8x128xbf16, #tpu.memory_space<vmem>>, vector<1x8x128xbf16>
    %11 = vector.shape_cast %10 : vector<1x8x128xbf16> to vector<8x128xbf16>
    %12 = vector.shape_cast %9 : vector<8x128xbf16> to vector<1x8x128xbf16>
    tpu.vector_store %arg4[%c0_8, %c0_9, %c0_10], %12 {strides = array<i32>} : memref<1x8x128xbf16, #tpu.memory_space<vmem>>, vector<1x8x128xbf16>,
    return
  }
  func.func @transform_0(%arg0: i32) -> (i32, i32, i32) {
    %c0_i32 = arith.constant 0 : i32
    %c0_i32_0 = arith.constant 0 : i32
    %c0_i32_1 = arith.constant 0 : i32
    return %c0_i32, %c0_i32_0, %arg0 : i32, i32, i32
  }
  func.func @transform_1(%arg0: i32) -> (i32, i32, i32) {
    %c0_i32 = arith.constant 0 : i32
    %c0_i32_0 = arith.constant 0 : i32
    %c0_i32_1 = arith.constant 0 : i32
    %c0_i32_2 = arith.constant 0 : i32
    return %c0_i32, %c0_i32_0, %c0_i32_1 : i32, i32, i32
  }
  func.func @transform_2(%arg0: i32) -> (i32, i32, i32) {
    %c0_i32 = arith.constant 0 : i32
    %c0_i32_0 = arith.constant 0 : i32
    %c0_i32_1 = arith.constant 0 : i32
    %c0_i32_2 = arith.constant 0 : i32
    return %c0_i32, %c0_i32_0, %c0_i32_1 : i32, i32, i32
  }
  func.func @transform_3(%arg0: i32) -> (i32, i32, i32) {
    %c0_i32 = arith.constant 0 : i32
    %c0_i32_0 = arith.constant 0 : i32
    %c0_i32_1 = arith.constant 0 : i32
    return %c0_i32, %c0_i32_0, %arg0 : i32, i32, i32
  }
}

module attributes {stable_mosaic.version = 11 : i64} {
  func.func @_gn_lrelu_kernel(%arg0: i32, %arg1: memref<4x2x64xbf16, #tpu.memory_space<vmem>>, %arg2: memref<4x1x1xf32, #tpu.memory_space<vmem>>, %arg3: memref<4x1x1xf32, #tpu.memory_space<vmem>>, %arg4: memref<4x2x64xbf16, #tpu.memory_space<vmem>>) attributes {dimension_semantics = [#tpu.dimension_semantics<parallel>], iteration_bounds = array<i64: 2>, scalar_prefetch = 0 : i64, scratch_operands = 0 : i64, tpu.core_type = #tpu.core_type<tc>, window_params = [{transform_indices = @transform_0, window_bounds = array<i64: 4, 2, 64>}, {transform_indices = @transform_1, window_bounds = array<i64: 4, 1, 1>}, {transform_indices = @transform_2, window_bounds = array<i64: 4, 1, 1>}, {transform_indices = @transform_3, window_bounds = array<i64: 4, 2, 64>}]} {
    %c0 = arith.constant 0 : index
    %c0_0 = arith.constant 0 : index
    %c0_1 = arith.constant 0 : index
    %0 = vector.load %arg1[%c0, %c0_0, %c0_1] : memref<4x2x64xbf16, #tpu.memory_space<vmem>>, vector<4x2x64xbf16>
    %1 = arith.extf %0 : vector<4x2x64xbf16> to vector<4x2x64xf32>
    %cst = arith.constant dense<0.000000e+00> : vector<2xf32>
    %2 = vector.multi_reduction <add>, %1, %cst [0, 2] : vector<4x2x64xf32> to vector<2xf32>
    %3 = vector.shape_cast %2 : vector<2xf32> to vector<1x2x1xf32>
    %4 = arith.mulf %1, %1 : vector<4x2x64xf32>
    %cst_2 = arith.constant dense<0.000000e+00> : vector<2xf32>
    %5 = vector.multi_reduction <add>, %4, %cst_2 [0, 2] : vector<4x2x64xf32> to vector<2xf32>
    %6 = vector.shape_cast %5 : vector<2xf32> to vector<1x2x1xf32>
    %cst_3 = arith.constant 3.906250e-03 : f32
    %7 = vector.broadcast %cst_3 : f32 to vector<1x2x1xf32>
    %8 = arith.mulf %3, %7 : vector<1x2x1xf32>
    %cst_4 = arith.constant 3.906250e-03 : f32
    %9 = vector.broadcast %cst_4 : f32 to vector<1x2x1xf32>
    %10 = arith.mulf %6, %9 : vector<1x2x1xf32>
    %11 = arith.mulf %8, %8 : vector<1x2x1xf32>
    %12 = arith.subf %10, %11 : vector<1x2x1xf32>
    %13 = vector.broadcast %8 : vector<1x2x1xf32> to vector<4x2x64xf32>
    %14 = arith.subf %1, %13 : vector<4x2x64xf32>
    %cst_5 = arith.constant 9.99999974E-6 : f32
    %15 = vector.broadcast %cst_5 : f32 to vector<1x2x1xf32>
    %16 = arith.addf %12, %15 : vector<1x2x1xf32>
    %17 = math.rsqrt %16 : vector<1x2x1xf32>
    %18 = vector.broadcast %17 : vector<1x2x1xf32> to vector<4x2x64xf32>
    %19 = arith.mulf %14, %18 : vector<4x2x64xf32>
    %c0_6 = arith.constant 0 : index
    %c0_7 = arith.constant 0 : index
    %c0_8 = arith.constant 0 : index
    %20 = vector.load %arg2[%c0_6, %c0_7, %c0_8] : memref<4x1x1xf32, #tpu.memory_space<vmem>>, vector<4x1x1xf32>
    %21 = vector.broadcast %20 : vector<4x1x1xf32> to vector<4x2x64xf32>
    %22 = arith.mulf %19, %21 : vector<4x2x64xf32>
    %c0_9 = arith.constant 0 : index
    %c0_10 = arith.constant 0 : index
    %c0_11 = arith.constant 0 : index
    %23 = vector.load %arg3[%c0_9, %c0_10, %c0_11] : memref<4x1x1xf32, #tpu.memory_space<vmem>>, vector<4x1x1xf32>
    %24 = vector.broadcast %23 : vector<4x1x1xf32> to vector<4x2x64xf32>
    %25 = arith.addf %22, %24 : vector<4x2x64xf32>
    %cst_12 = arith.constant 0.000000e+00 : f32
    %26 = vector.broadcast %cst_12 : f32 to vector<4x2x64xf32>
    %27 = arith.cmpf ogt, %25, %26 : vector<4x2x64xf32>
    %cst_13 = arith.constant 2.000000e-01 : f32
    %28 = vector.broadcast %cst_13 : f32 to vector<4x2x64xf32>
    %29 = arith.mulf %28, %25 : vector<4x2x64xf32>
    %30 = arith.select %27, %25, %29 : vector<4x2x64xi1>, vector<4x2x64xf32>
    %31 = arith.truncf %30 : vector<4x2x64xf32> to vector<4x2x64xbf16>
    %c0_14 = arith.constant 0 : index
    %c0_15 = arith.constant 0 : index
    %c0_16 = arith.constant 0 : index
    %32 = vector.load %arg4[%c0_14, %c0_15, %c0_16] : memref<4x2x64xbf16, #tpu.memory_space<vmem>>, vector<4x2x64xbf16>
    tpu.vector_store %arg4[%c0_14, %c0_15, %c0_16], %31 {strides = array<i32>} : memref<4x2x64xbf16, #tpu.memory_space<vmem>>, vector<4x2x64xbf16>,
    return
  }
  func.func @transform_0(%arg0: i32) -> (i32, i32, i32) {
    %c0_i32 = arith.constant 0 : i32
    %c0_i32_0 = arith.constant 0 : i32
    %c0_i32_1 = arith.constant 0 : i32
    return %arg0, %c0_i32, %c0_i32_0 : i32, i32, i32
  }
  func.func @transform_1(%arg0: i32) -> (i32, i32, i32) {
    %c0_i32 = arith.constant 0 : i32
    %c0_i32_0 = arith.constant 0 : i32
    %c0_i32_1 = arith.constant 0 : i32
    return %arg0, %c0_i32, %c0_i32_0 : i32, i32, i32
  }
  func.func @transform_2(%arg0: i32) -> (i32, i32, i32) {
    %c0_i32 = arith.constant 0 : i32
    %c0_i32_0 = arith.constant 0 : i32
    %c0_i32_1 = arith.constant 0 : i32
    return %arg0, %c0_i32, %c0_i32_0 : i32, i32, i32
  }
  func.func @transform_3(%arg0: i32) -> (i32, i32, i32) {
    %c0_i32 = arith.constant 0 : i32
    %c0_i32_0 = arith.constant 0 : i32
    %c0_i32_1 = arith.constant 0 : i32
    return %arg0, %c0_i32, %c0_i32_0 : i32, i32, i32
  }
}

module attributes {stable_mosaic.version = 11 : i64} {
  func.func @_gconv_matmul_kernel(%arg0: i32, %arg1: memref<1x72x32xbf16, #tpu.memory_space<vmem>>, %arg2: memref<1x8x72xbf16, #tpu.memory_space<vmem>>, %arg3: memref<1x8x1xf32, #tpu.memory_space<vmem>>, %arg4: memref<1x8x32xbf16, #tpu.memory_space<vmem>>) attributes {dimension_semantics = [#tpu.dimension_semantics<parallel>], iteration_bounds = array<i64: 1>, scalar_prefetch = 0 : i64, scratch_operands = 0 : i64, tpu.core_type = #tpu.core_type<tc>, window_params = [{transform_indices = @transform_0, window_bounds = array<i64: 1, 72, 32>}, {pipeline_mode = #tpu.pipeline_mode<synchronous>, transform_indices = @transform_1, window_bounds = array<i64: 1, 8, 72>}, {pipeline_mode = #tpu.pipeline_mode<synchronous>, transform_indices = @transform_2, window_bounds = array<i64: 1, 8, 1>}, {transform_indices = @transform_3, window_bounds = array<i64: 1, 8, 32>}]} {
    %c0 = arith.constant 0 : index
    %c0_0 = arith.constant 0 : index
    %c0_1 = arith.constant 0 : index
    %0 = vector.load %arg2[%c0, %c0_0, %c0_1] : memref<1x8x72xbf16, #tpu.memory_space<vmem>>, vector<1x8x72xbf16>
    %1 = vector.shape_cast %0 : vector<1x8x72xbf16> to vector<8x72xbf16>
    %c0_2 = arith.constant 0 : index
    %c0_3 = arith.constant 0 : index
    %c0_4 = arith.constant 0 : index
    %2 = vector.load %arg1[%c0_2, %c0_3, %c0_4] : memref<1x72x32xbf16, #tpu.memory_space<vmem>>, vector<1x72x32xbf16>
    %3 = vector.shape_cast %2 : vector<1x72x32xbf16> to vector<72x32xbf16>
    %cst = arith.constant dense<0.000000e+00> : vector<8x32xf32>
    %4 = tpu.matmul %1, %3, %cst {dimension_numbers = #tpu.dot_dimension_numbers<[1], [0], [0], [1], [0, 0, 1, 1], [], []>} : vector<8x72xbf16>, vector<72x32xbf16>, vector<8x32xf32> -> vector<8x32xf32>
    %c0_5 = arith.constant 0 : index
    %c0_6 = arith.constant 0 : index
    %c0_7 = arith.constant 0 : index
    %5 = vector.load %arg3[%c0_5, %c0_6, %c0_7] : memref<1x8x1xf32, #tpu.memory_space<vmem>>, vector<1x8x1xf32>
    %6 = vector.shape_cast %5 : vector<1x8x1xf32> to vector<8x1xf32>
    %7 = vector.broadcast %6 : vector<8x1xf32> to vector<8x32xf32>
    %8 = arith.addf %4, %7 : vector<8x32xf32>
    %9 = arith.truncf %8 : vector<8x32xf32> to vector<8x32xbf16>
    %c0_8 = arith.constant 0 : index
    %c0_9 = arith.constant 0 : index
    %c0_10 = arith.constant 0 : index
    %10 = vector.load %arg4[%c0_8, %c0_9, %c0_10] : memref<1x8x32xbf16, #tpu.memory_space<vmem>>, vector<1x8x32xbf16>
    %11 = vector.shape_cast %10 : vector<1x8x32xbf16> to vector<8x32xbf16>
    %12 = vector.shape_cast %9 : vector<8x32xbf16> to vector<1x8x32xbf16>
    tpu.vector_store %arg4[%c0_8, %c0_9, %c0_10], %12 {strides = array<i32>} : memref<1x8x32xbf16, #tpu.memory_space<vmem>>, vector<1x8x32xbf16>,
    return
  }
  func.func @transform_0(%arg0: i32) -> (i32, i32, i32) {
    %c0_i32 = arith.constant 0 : i32
    %c0_i32_0 = arith.constant 0 : i32
    %c0_i32_1 = arith.constant 0 : i32
    return %c0_i32, %c0_i32_0, %arg0 : i32, i32, i32
  }
  func.func @transform_1(%arg0: i32) -> (i32, i32, i32) {
    %c0_i32 = arith.constant 0 : i32
    %c0_i32_0 = arith.constant 0 : i32
    %c0_i32_1 = arith.constant 0 : i32
    %c0_i32_2 = arith.constant 0 : i32
    return %c0_i32, %c0_i32_0, %c0_i32_1 : i32, i32, i32
  }
  func.func @transform_2(%arg0: i32) -> (i32, i32, i32) {
    %c0_i32 = arith.constant 0 : i32
    %c0_i32_0 = arith.constant 0 : i32
    %c0_i32_1 = arith.constant 0 : i32
    %c0_i32_2 = arith.constant 0 : i32
    return %c0_i32, %c0_i32_0, %c0_i32_1 : i32, i32, i32
  }
  func.func @transform_3(%arg0: i32) -> (i32, i32, i32) {
    %c0_i32 = arith.constant 0 : i32
    %c0_i32_0 = arith.constant 0 : i32
    %c0_i32_1 = arith.constant 0 : i32
    return %c0_i32, %c0_i32_0, %arg0 : i32, i32, i32
  }
}

module attributes {stable_mosaic.version = 11 : i64} {
  func.func @_gn_lrelu_kernel(%arg0: i32, %arg1: memref<4x2x16xbf16, #tpu.memory_space<vmem>>, %arg2: memref<4x1x1xf32, #tpu.memory_space<vmem>>, %arg3: memref<4x1x1xf32, #tpu.memory_space<vmem>>, %arg4: memref<4x2x16xbf16, #tpu.memory_space<vmem>>) attributes {dimension_semantics = [#tpu.dimension_semantics<parallel>], iteration_bounds = array<i64: 2>, scalar_prefetch = 0 : i64, scratch_operands = 0 : i64, tpu.core_type = #tpu.core_type<tc>, window_params = [{transform_indices = @transform_0, window_bounds = array<i64: 4, 2, 16>}, {transform_indices = @transform_1, window_bounds = array<i64: 4, 1, 1>}, {transform_indices = @transform_2, window_bounds = array<i64: 4, 1, 1>}, {transform_indices = @transform_3, window_bounds = array<i64: 4, 2, 16>}]} {
    %c0 = arith.constant 0 : index
    %c0_0 = arith.constant 0 : index
    %c0_1 = arith.constant 0 : index
    %0 = vector.load %arg1[%c0, %c0_0, %c0_1] : memref<4x2x16xbf16, #tpu.memory_space<vmem>>, vector<4x2x16xbf16>
    %1 = arith.extf %0 : vector<4x2x16xbf16> to vector<4x2x16xf32>
    %cst = arith.constant dense<0.000000e+00> : vector<2xf32>
    %2 = vector.multi_reduction <add>, %1, %cst [0, 2] : vector<4x2x16xf32> to vector<2xf32>
    %3 = vector.shape_cast %2 : vector<2xf32> to vector<1x2x1xf32>
    %4 = arith.mulf %1, %1 : vector<4x2x16xf32>
    %cst_2 = arith.constant dense<0.000000e+00> : vector<2xf32>
    %5 = vector.multi_reduction <add>, %4, %cst_2 [0, 2] : vector<4x2x16xf32> to vector<2xf32>
    %6 = vector.shape_cast %5 : vector<2xf32> to vector<1x2x1xf32>
    %cst_3 = arith.constant 1.562500e-02 : f32
    %7 = vector.broadcast %cst_3 : f32 to vector<1x2x1xf32>
    %8 = arith.mulf %3, %7 : vector<1x2x1xf32>
    %cst_4 = arith.constant 1.562500e-02 : f32
    %9 = vector.broadcast %cst_4 : f32 to vector<1x2x1xf32>
    %10 = arith.mulf %6, %9 : vector<1x2x1xf32>
    %11 = arith.mulf %8, %8 : vector<1x2x1xf32>
    %12 = arith.subf %10, %11 : vector<1x2x1xf32>
    %13 = vector.broadcast %8 : vector<1x2x1xf32> to vector<4x2x16xf32>
    %14 = arith.subf %1, %13 : vector<4x2x16xf32>
    %cst_5 = arith.constant 9.99999974E-6 : f32
    %15 = vector.broadcast %cst_5 : f32 to vector<1x2x1xf32>
    %16 = arith.addf %12, %15 : vector<1x2x1xf32>
    %17 = math.rsqrt %16 : vector<1x2x1xf32>
    %18 = vector.broadcast %17 : vector<1x2x1xf32> to vector<4x2x16xf32>
    %19 = arith.mulf %14, %18 : vector<4x2x16xf32>
    %c0_6 = arith.constant 0 : index
    %c0_7 = arith.constant 0 : index
    %c0_8 = arith.constant 0 : index
    %20 = vector.load %arg2[%c0_6, %c0_7, %c0_8] : memref<4x1x1xf32, #tpu.memory_space<vmem>>, vector<4x1x1xf32>
    %21 = vector.broadcast %20 : vector<4x1x1xf32> to vector<4x2x16xf32>
    %22 = arith.mulf %19, %21 : vector<4x2x16xf32>
    %c0_9 = arith.constant 0 : index
    %c0_10 = arith.constant 0 : index
    %c0_11 = arith.constant 0 : index
    %23 = vector.load %arg3[%c0_9, %c0_10, %c0_11] : memref<4x1x1xf32, #tpu.memory_space<vmem>>, vector<4x1x1xf32>
    %24 = vector.broadcast %23 : vector<4x1x1xf32> to vector<4x2x16xf32>
    %25 = arith.addf %22, %24 : vector<4x2x16xf32>
    %cst_12 = arith.constant 0.000000e+00 : f32
    %26 = vector.broadcast %cst_12 : f32 to vector<4x2x16xf32>
    %27 = arith.cmpf ogt, %25, %26 : vector<4x2x16xf32>
    %cst_13 = arith.constant 2.000000e-01 : f32
    %28 = vector.broadcast %cst_13 : f32 to vector<4x2x16xf32>
    %29 = arith.mulf %28, %25 : vector<4x2x16xf32>
    %30 = arith.select %27, %25, %29 : vector<4x2x16xi1>, vector<4x2x16xf32>
    %31 = arith.truncf %30 : vector<4x2x16xf32> to vector<4x2x16xbf16>
    %c0_14 = arith.constant 0 : index
    %c0_15 = arith.constant 0 : index
    %c0_16 = arith.constant 0 : index
    %32 = vector.load %arg4[%c0_14, %c0_15, %c0_16] : memref<4x2x16xbf16, #tpu.memory_space<vmem>>, vector<4x2x16xbf16>
    tpu.vector_store %arg4[%c0_14, %c0_15, %c0_16], %31 {strides = array<i32>} : memref<4x2x16xbf16, #tpu.memory_space<vmem>>, vector<4x2x16xbf16>,
    return
  }
  func.func @transform_0(%arg0: i32) -> (i32, i32, i32) {
    %c0_i32 = arith.constant 0 : i32
    %c0_i32_0 = arith.constant 0 : i32
    %c0_i32_1 = arith.constant 0 : i32
    return %arg0, %c0_i32, %c0_i32_0 : i32, i32, i32
  }
  func.func @transform_1(%arg0: i32) -> (i32, i32, i32) {
    %c0_i32 = arith.constant 0 : i32
    %c0_i32_0 = arith.constant 0 : i32
    %c0_i32_1 = arith.constant 0 : i32
    return %arg0, %c0_i32, %c0_i32_0 : i32, i32, i32
  }
  func.func @transform_2(%arg0: i32) -> (i32, i32, i32) {
    %c0_i32 = arith.constant 0 : i32
    %c0_i32_0 = arith.constant 0 : i32
    %c0_i32_1 = arith.constant 0 : i32
    return %arg0, %c0_i32, %c0_i32_0 : i32, i32, i32
  }
  func.func @transform_3(%arg0: i32) -> (i32, i32, i32) {
    %c0_i32 = arith.constant 0 : i32
    %c0_i32_0 = arith.constant 0 : i32
    %c0_i32_1 = arith.constant 0 : i32
    return %arg0, %c0_i32, %c0_i32_0 : i32, i32, i32
  }
}

module attributes {stable_mosaic.version = 11 : i64} {
  func.func @_gconv_matmul_kernel(%arg0: i32, %arg1: memref<1x16x16xbf16, #tpu.memory_space<vmem>>, %arg2: memref<1x8x16xbf16, #tpu.memory_space<vmem>>, %arg3: memref<1x8x1xf32, #tpu.memory_space<vmem>>, %arg4: memref<1x8x16xbf16, #tpu.memory_space<vmem>>) attributes {dimension_semantics = [#tpu.dimension_semantics<parallel>], iteration_bounds = array<i64: 1>, scalar_prefetch = 0 : i64, scratch_operands = 0 : i64, tpu.core_type = #tpu.core_type<tc>, window_params = [{transform_indices = @transform_0, window_bounds = array<i64: 1, 16, 16>}, {pipeline_mode = #tpu.pipeline_mode<synchronous>, transform_indices = @transform_1, window_bounds = array<i64: 1, 8, 16>}, {pipeline_mode = #tpu.pipeline_mode<synchronous>, transform_indices = @transform_2, window_bounds = array<i64: 1, 8, 1>}, {transform_indices = @transform_3, window_bounds = array<i64: 1, 8, 16>}]} {
    %c0 = arith.constant 0 : index
    %c0_0 = arith.constant 0 : index
    %c0_1 = arith.constant 0 : index
    %0 = vector.load %arg2[%c0, %c0_0, %c0_1] : memref<1x8x16xbf16, #tpu.memory_space<vmem>>, vector<1x8x16xbf16>
    %1 = vector.shape_cast %0 : vector<1x8x16xbf16> to vector<8x16xbf16>
    %c0_2 = arith.constant 0 : index
    %c0_3 = arith.constant 0 : index
    %c0_4 = arith.constant 0 : index
    %2 = vector.load %arg1[%c0_2, %c0_3, %c0_4] : memref<1x16x16xbf16, #tpu.memory_space<vmem>>, vector<1x16x16xbf16>
    %3 = vector.shape_cast %2 : vector<1x16x16xbf16> to vector<16x16xbf16>
    %cst = arith.constant dense<0.000000e+00> : vector<8x16xf32>
    %4 = tpu.matmul %1, %3, %cst {dimension_numbers = #tpu.dot_dimension_numbers<[1], [0], [0], [1], [0, 0, 1, 1], [], []>} : vector<8x16xbf16>, vector<16x16xbf16>, vector<8x16xf32> -> vector<8x16xf32>
    %c0_5 = arith.constant 0 : index
    %c0_6 = arith.constant 0 : index
    %c0_7 = arith.constant 0 : index
    %5 = vector.load %arg3[%c0_5, %c0_6, %c0_7] : memref<1x8x1xf32, #tpu.memory_space<vmem>>, vector<1x8x1xf32>
    %6 = vector.shape_cast %5 : vector<1x8x1xf32> to vector<8x1xf32>
    %7 = vector.broadcast %6 : vector<8x1xf32> to vector<8x16xf32>
    %8 = arith.addf %4, %7 : vector<8x16xf32>
    %9 = arith.truncf %8 : vector<8x16xf32> to vector<8x16xbf16>
    %c0_8 = arith.constant 0 : index
    %c0_9 = arith.constant 0 : index
    %c0_10 = arith.constant 0 : index
    %10 = vector.load %arg4[%c0_8, %c0_9, %c0_10] : memref<1x8x16xbf16, #tpu.memory_space<vmem>>, vector<1x8x16xbf16>
    %11 = vector.shape_cast %10 : vector<1x8x16xbf16> to vector<8x16xbf16>
    %12 = vector.shape_cast %9 : vector<8x16xbf16> to vector<1x8x16xbf16>
    tpu.vector_store %arg4[%c0_8, %c0_9, %c0_10], %12 {strides = array<i32>} : memref<1x8x16xbf16, #tpu.memory_space<vmem>>, vector<1x8x16xbf16>,
    return
  }
  func.func @transform_0(%arg0: i32) -> (i32, i32, i32) {
    %c0_i32 = arith.constant 0 : i32
    %c0_i32_0 = arith.constant 0 : i32
    %c0_i32_1 = arith.constant 0 : i32
    return %c0_i32, %c0_i32_0, %arg0 : i32, i32, i32
  }
  func.func @transform_1(%arg0: i32) -> (i32, i32, i32) {
    %c0_i32 = arith.constant 0 : i32
    %c0_i32_0 = arith.constant 0 : i32
    %c0_i32_1 = arith.constant 0 : i32
    %c0_i32_2 = arith.constant 0 : i32
    return %c0_i32, %c0_i32_0, %c0_i32_1 : i32, i32, i32
  }
  func.func @transform_2(%arg0: i32) -> (i32, i32, i32) {
    %c0_i32 = arith.constant 0 : i32
    %c0_i32_0 = arith.constant 0 : i32
    %c0_i32_1 = arith.constant 0 : i32
    %c0_i32_2 = arith.constant 0 : i32
    return %c0_i32, %c0_i32_0, %c0_i32_1 : i32, i32, i32
  }
  func.func @transform_3(%arg0: i32) -> (i32, i32, i32) {
    %c0_i32 = arith.constant 0 : i32
    %c0_i32_0 = arith.constant 0 : i32
    %c0_i32_1 = arith.constant 0 : i32
    return %c0_i32, %c0_i32_0, %arg0 : i32, i32, i32
  }
}

module attributes {stable_mosaic.version = 11 : i64} {
  func.func @_gconv_matmul_kernel(%arg0: i32, %arg1: memref<8x9x16xbf16, #tpu.memory_space<vmem>>, %arg2: memref<8x2x9xbf16, #tpu.memory_space<vmem>>, %arg3: memref<8x2x1xf32, #tpu.memory_space<vmem>>, %arg4: memref<8x2x16xbf16, #tpu.memory_space<vmem>>) attributes {dimension_semantics = [#tpu.dimension_semantics<parallel>], iteration_bounds = array<i64: 1>, scalar_prefetch = 0 : i64, scratch_operands = 0 : i64, tpu.core_type = #tpu.core_type<tc>, window_params = [{transform_indices = @transform_0, window_bounds = array<i64: 8, 9, 16>}, {pipeline_mode = #tpu.pipeline_mode<synchronous>, transform_indices = @transform_1, window_bounds = array<i64: 8, 2, 9>}, {pipeline_mode = #tpu.pipeline_mode<synchronous>, transform_indices = @transform_2, window_bounds = array<i64: 8, 2, 1>}, {transform_indices = @transform_3, window_bounds = array<i64: 8, 2, 16>}]} {
    %c0 = arith.constant 0 : index
    %c0_0 = arith.constant 0 : index
    %c0_1 = arith.constant 0 : index
    %0 = vector.load %arg2[%c0, %c0_0, %c0_1] : memref<8x2x9xbf16, #tpu.memory_space<vmem>>, vector<1x2x9xbf16>
    %1 = vector.shape_cast %0 : vector<1x2x9xbf16> to vector<2x9xbf16>
    %c0_2 = arith.constant 0 : index
    %c0_3 = arith.constant 0 : index
    %c0_4 = arith.constant 0 : index
    %2 = vector.load %arg1[%c0_2, %c0_3, %c0_4] : memref<8x9x16xbf16, #tpu.memory_space<vmem>>, vector<1x9x16xbf16>
    %3 = vector.shape_cast %2 : vector<1x9x16xbf16> to vector<9x16xbf16>
    %cst = arith.constant dense<0.000000e+00> : vector<2x16xf32>
    %4 = tpu.matmul %1, %3, %cst {dimension_numbers = #tpu.dot_dimension_numbers<[1], [0], [0], [1], [0, 0, 1, 1], [], []>} : vector<2x9xbf16>, vector<9x16xbf16>, vector<2x16xf32> -> vector<2x16xf32>
    %c0_5 = arith.constant 0 : index
    %c0_6 = arith.constant 0 : index
    %c0_7 = arith.constant 0 : index
    %5 = vector.load %arg3[%c0_5, %c0_6, %c0_7] : memref<8x2x1xf32, #tpu.memory_space<vmem>>, vector<1x2x1xf32>
    %6 = vector.shape_cast %5 : vector<1x2x1xf32> to vector<2x1xf32>
    %7 = vector.broadcast %6 : vector<2x1xf32> to vector<2x16xf32>
    %8 = arith.addf %4, %7 : vector<2x16xf32>
    %9 = arith.truncf %8 : vector<2x16xf32> to vector<2x16xbf16>
    %c0_8 = arith.constant 0 : index
    %c0_9 = arith.constant 0 : index
    %c0_10 = arith.constant 0 : index
    %10 = vector.load %arg4[%c0_8, %c0_9, %c0_10] : memref<8x2x16xbf16, #tpu.memory_space<vmem>>, vector<1x2x16xbf16>
    %11 = vector.shape_cast %10 : vector<1x2x16xbf16> to vector<2x16xbf16>
    %12 = vector.shape_cast %9 : vector<2x16xbf16> to vector<1x2x16xbf16>
    tpu.vector_store %arg4[%c0_8, %c0_9, %c0_10], %12 {strides = array<i32>} : memref<8x2x16xbf16, #tpu.memory_space<vmem>>, vector<1x2x16xbf16>,
    %c1 = arith.constant 1 : index
    %c0_11 = arith.constant 0 : index
    %c0_12 = arith.constant 0 : index
    %13 = vector.load %arg2[%c1, %c0_11, %c0_12] : memref<8x2x9xbf16, #tpu.memory_space<vmem>>, vector<1x2x9xbf16>
    %14 = vector.shape_cast %13 : vector<1x2x9xbf16> to vector<2x9xbf16>
    %c1_13 = arith.constant 1 : index
    %c0_14 = arith.constant 0 : index
    %c0_15 = arith.constant 0 : index
    %15 = vector.load %arg1[%c1_13, %c0_14, %c0_15] : memref<8x9x16xbf16, #tpu.memory_space<vmem>>, vector<1x9x16xbf16>
    %16 = vector.shape_cast %15 : vector<1x9x16xbf16> to vector<9x16xbf16>
    %cst_16 = arith.constant dense<0.000000e+00> : vector<2x16xf32>
    %17 = tpu.matmul %14, %16, %cst_16 {dimension_numbers = #tpu.dot_dimension_numbers<[1], [0], [0], [1], [0, 0, 1, 1], [], []>} : vector<2x9xbf16>, vector<9x16xbf16>, vector<2x16xf32> -> vector<2x16xf32>
    %c1_17 = arith.constant 1 : index
    %c0_18 = arith.constant 0 : index
    %c0_19 = arith.constant 0 : index
    %18 = vector.load %arg3[%c1_17, %c0_18, %c0_19] : memref<8x2x1xf32, #tpu.memory_space<vmem>>, vector<1x2x1xf32>
    %19 = vector.shape_cast %18 : vector<1x2x1xf32> to vector<2x1xf32>
    %20 = vector.broadcast %19 : vector<2x1xf32> to vector<2x16xf32>
    %21 = arith.addf %17, %20 : vector<2x16xf32>
    %22 = arith.truncf %21 : vector<2x16xf32> to vector<2x16xbf16>
    %c1_20 = arith.constant 1 : index
    %c0_21 = arith.constant 0 : index
    %c0_22 = arith.constant 0 : index
    %23 = vector.load %arg4[%c1_20, %c0_21, %c0_22] : memref<8x2x16xbf16, #tpu.memory_space<vmem>>, vector<1x2x16xbf16>
    %24 = vector.shape_cast %23 : vector<1x2x16xbf16> to vector<2x16xbf16>
    %25 = vector.shape_cast %22 : vector<2x16xbf16> to vector<1x2x16xbf16>
    tpu.vector_store %arg4[%c1_20, %c0_21, %c0_22], %25 {strides = array<i32>} : memref<8x2x16xbf16, #tpu.memory_space<vmem>>, vector<1x2x16xbf16>,
    %c2 = arith.constant 2 : index
    %c0_23 = arith.constant 0 : index
    %c0_24 = arith.constant 0 : index
    %26 = vector.load %arg2[%c2, %c0_23, %c0_24] : memref<8x2x9xbf16, #tpu.memory_space<vmem>>, vector<1x2x9xbf16>
    %27 = vector.shape_cast %26 : vector<1x2x9xbf16> to vector<2x9xbf16>
    %c2_25 = arith.constant 2 : index
    %c0_26 = arith.constant 0 : index
    %c0_27 = arith.constant 0 : index
    %28 = vector.load %arg1[%c2_25, %c0_26, %c0_27] : memref<8x9x16xbf16, #tpu.memory_space<vmem>>, vector<1x9x16xbf16>
    %29 = vector.shape_cast %28 : vector<1x9x16xbf16> to vector<9x16xbf16>
    %cst_28 = arith.constant dense<0.000000e+00> : vector<2x16xf32>
    %30 = tpu.matmul %27, %29, %cst_28 {dimension_numbers = #tpu.dot_dimension_numbers<[1], [0], [0], [1], [0, 0, 1, 1], [], []>} : vector<2x9xbf16>, vector<9x16xbf16>, vector<2x16xf32> -> vector<2x16xf32>
    %c2_29 = arith.constant 2 : index
    %c0_30 = arith.constant 0 : index
    %c0_31 = arith.constant 0 : index
    %31 = vector.load %arg3[%c2_29, %c0_30, %c0_31] : memref<8x2x1xf32, #tpu.memory_space<vmem>>, vector<1x2x1xf32>
    %32 = vector.shape_cast %31 : vector<1x2x1xf32> to vector<2x1xf32>
    %33 = vector.broadcast %32 : vector<2x1xf32> to vector<2x16xf32>
    %34 = arith.addf %30, %33 : vector<2x16xf32>
    %35 = arith.truncf %34 : vector<2x16xf32> to vector<2x16xbf16>
    %c2_32 = arith.constant 2 : index
    %c0_33 = arith.constant 0 : index
    %c0_34 = arith.constant 0 : index
    %36 = vector.load %arg4[%c2_32, %c0_33, %c0_34] : memref<8x2x16xbf16, #tpu.memory_space<vmem>>, vector<1x2x16xbf16>
    %37 = vector.shape_cast %36 : vector<1x2x16xbf16> to vector<2x16xbf16>
    %38 = vector.shape_cast %35 : vector<2x16xbf16> to vector<1x2x16xbf16>
    tpu.vector_store %arg4[%c2_32, %c0_33, %c0_34], %38 {strides = array<i32>} : memref<8x2x16xbf16, #tpu.memory_space<vmem>>, vector<1x2x16xbf16>,
    %c3 = arith.constant 3 : index
    %c0_35 = arith.constant 0 : index
    %c0_36 = arith.constant 0 : index
    %39 = vector.load %arg2[%c3, %c0_35, %c0_36] : memref<8x2x9xbf16, #tpu.memory_space<vmem>>, vector<1x2x9xbf16>
    %40 = vector.shape_cast %39 : vector<1x2x9xbf16> to vector<2x9xbf16>
    %c3_37 = arith.constant 3 : index
    %c0_38 = arith.constant 0 : index
    %c0_39 = arith.constant 0 : index
    %41 = vector.load %arg1[%c3_37, %c0_38, %c0_39] : memref<8x9x16xbf16, #tpu.memory_space<vmem>>, vector<1x9x16xbf16>
    %42 = vector.shape_cast %41 : vector<1x9x16xbf16> to vector<9x16xbf16>
    %cst_40 = arith.constant dense<0.000000e+00> : vector<2x16xf32>
    %43 = tpu.matmul %40, %42, %cst_40 {dimension_numbers = #tpu.dot_dimension_numbers<[1], [0], [0], [1], [0, 0, 1, 1], [], []>} : vector<2x9xbf16>, vector<9x16xbf16>, vector<2x16xf32> -> vector<2x16xf32>
    %c3_41 = arith.constant 3 : index
    %c0_42 = arith.constant 0 : index
    %c0_43 = arith.constant 0 : index
    %44 = vector.load %arg3[%c3_41, %c0_42, %c0_43] : memref<8x2x1xf32, #tpu.memory_space<vmem>>, vector<1x2x1xf32>
    %45 = vector.shape_cast %44 : vector<1x2x1xf32> to vector<2x1xf32>
    %46 = vector.broadcast %45 : vector<2x1xf32> to vector<2x16xf32>
    %47 = arith.addf %43, %46 : vector<2x16xf32>
    %48 = arith.truncf %47 : vector<2x16xf32> to vector<2x16xbf16>
    %c3_44 = arith.constant 3 : index
    %c0_45 = arith.constant 0 : index
    %c0_46 = arith.constant 0 : index
    %49 = vector.load %arg4[%c3_44, %c0_45, %c0_46] : memref<8x2x16xbf16, #tpu.memory_space<vmem>>, vector<1x2x16xbf16>
    %50 = vector.shape_cast %49 : vector<1x2x16xbf16> to vector<2x16xbf16>
    %51 = vector.shape_cast %48 : vector<2x16xbf16> to vector<1x2x16xbf16>
    tpu.vector_store %arg4[%c3_44, %c0_45, %c0_46], %51 {strides = array<i32>} : memref<8x2x16xbf16, #tpu.memory_space<vmem>>, vector<1x2x16xbf16>,
    %c4 = arith.constant 4 : index
    %c0_47 = arith.constant 0 : index
    %c0_48 = arith.constant 0 : index
    %52 = vector.load %arg2[%c4, %c0_47, %c0_48] : memref<8x2x9xbf16, #tpu.memory_space<vmem>>, vector<1x2x9xbf16>
    %53 = vector.shape_cast %52 : vector<1x2x9xbf16> to vector<2x9xbf16>
    %c4_49 = arith.constant 4 : index
    %c0_50 = arith.constant 0 : index
    %c0_51 = arith.constant 0 : index
    %54 = vector.load %arg1[%c4_49, %c0_50, %c0_51] : memref<8x9x16xbf16, #tpu.memory_space<vmem>>, vector<1x9x16xbf16>
    %55 = vector.shape_cast %54 : vector<1x9x16xbf16> to vector<9x16xbf16>
    %cst_52 = arith.constant dense<0.000000e+00> : vector<2x16xf32>
    %56 = tpu.matmul %53, %55, %cst_52 {dimension_numbers = #tpu.dot_dimension_numbers<[1], [0], [0], [1], [0, 0, 1, 1], [], []>} : vector<2x9xbf16>, vector<9x16xbf16>, vector<2x16xf32> -> vector<2x16xf32>
    %c4_53 = arith.constant 4 : index
    %c0_54 = arith.constant 0 : index
    %c0_55 = arith.constant 0 : index
    %57 = vector.load %arg3[%c4_53, %c0_54, %c0_55] : memref<8x2x1xf32, #tpu.memory_space<vmem>>, vector<1x2x1xf32>
    %58 = vector.shape_cast %57 : vector<1x2x1xf32> to vector<2x1xf32>
    %59 = vector.broadcast %58 : vector<2x1xf32> to vector<2x16xf32>
    %60 = arith.addf %56, %59 : vector<2x16xf32>
    %61 = arith.truncf %60 : vector<2x16xf32> to vector<2x16xbf16>
    %c4_56 = arith.constant 4 : index
    %c0_57 = arith.constant 0 : index
    %c0_58 = arith.constant 0 : index
    %62 = vector.load %arg4[%c4_56, %c0_57, %c0_58] : memref<8x2x16xbf16, #tpu.memory_space<vmem>>, vector<1x2x16xbf16>
    %63 = vector.shape_cast %62 : vector<1x2x16xbf16> to vector<2x16xbf16>
    %64 = vector.shape_cast %61 : vector<2x16xbf16> to vector<1x2x16xbf16>
    tpu.vector_store %arg4[%c4_56, %c0_57, %c0_58], %64 {strides = array<i32>} : memref<8x2x16xbf16, #tpu.memory_space<vmem>>, vector<1x2x16xbf16>,
    %c5 = arith.constant 5 : index
    %c0_59 = arith.constant 0 : index
    %c0_60 = arith.constant 0 : index
    %65 = vector.load %arg2[%c5, %c0_59, %c0_60] : memref<8x2x9xbf16, #tpu.memory_space<vmem>>, vector<1x2x9xbf16>
    %66 = vector.shape_cast %65 : vector<1x2x9xbf16> to vector<2x9xbf16>
    %c5_61 = arith.constant 5 : index
    %c0_62 = arith.constant 0 : index
    %c0_63 = arith.constant 0 : index
    %67 = vector.load %arg1[%c5_61, %c0_62, %c0_63] : memref<8x9x16xbf16, #tpu.memory_space<vmem>>, vector<1x9x16xbf16>
    %68 = vector.shape_cast %67 : vector<1x9x16xbf16> to vector<9x16xbf16>
    %cst_64 = arith.constant dense<0.000000e+00> : vector<2x16xf32>
    %69 = tpu.matmul %66, %68, %cst_64 {dimension_numbers = #tpu.dot_dimension_numbers<[1], [0], [0], [1], [0, 0, 1, 1], [], []>} : vector<2x9xbf16>, vector<9x16xbf16>, vector<2x16xf32> -> vector<2x16xf32>
    %c5_65 = arith.constant 5 : index
    %c0_66 = arith.constant 0 : index
    %c0_67 = arith.constant 0 : index
    %70 = vector.load %arg3[%c5_65, %c0_66, %c0_67] : memref<8x2x1xf32, #tpu.memory_space<vmem>>, vector<1x2x1xf32>
    %71 = vector.shape_cast %70 : vector<1x2x1xf32> to vector<2x1xf32>
    %72 = vector.broadcast %71 : vector<2x1xf32> to vector<2x16xf32>
    %73 = arith.addf %69, %72 : vector<2x16xf32>
    %74 = arith.truncf %73 : vector<2x16xf32> to vector<2x16xbf16>
    %c5_68 = arith.constant 5 : index
    %c0_69 = arith.constant 0 : index
    %c0_70 = arith.constant 0 : index
    %75 = vector.load %arg4[%c5_68, %c0_69, %c0_70] : memref<8x2x16xbf16, #tpu.memory_space<vmem>>, vector<1x2x16xbf16>
    %76 = vector.shape_cast %75 : vector<1x2x16xbf16> to vector<2x16xbf16>
    %77 = vector.shape_cast %74 : vector<2x16xbf16> to vector<1x2x16xbf16>
    tpu.vector_store %arg4[%c5_68, %c0_69, %c0_70], %77 {strides = array<i32>} : memref<8x2x16xbf16, #tpu.memory_space<vmem>>, vector<1x2x16xbf16>,
    %c6 = arith.constant 6 : index
    %c0_71 = arith.constant 0 : index
    %c0_72 = arith.constant 0 : index
    %78 = vector.load %arg2[%c6, %c0_71, %c0_72] : memref<8x2x9xbf16, #tpu.memory_space<vmem>>, vector<1x2x9xbf16>
    %79 = vector.shape_cast %78 : vector<1x2x9xbf16> to vector<2x9xbf16>
    %c6_73 = arith.constant 6 : index
    %c0_74 = arith.constant 0 : index
    %c0_75 = arith.constant 0 : index
    %80 = vector.load %arg1[%c6_73, %c0_74, %c0_75] : memref<8x9x16xbf16, #tpu.memory_space<vmem>>, vector<1x9x16xbf16>
    %81 = vector.shape_cast %80 : vector<1x9x16xbf16> to vector<9x16xbf16>
    %cst_76 = arith.constant dense<0.000000e+00> : vector<2x16xf32>
    %82 = tpu.matmul %79, %81, %cst_76 {dimension_numbers = #tpu.dot_dimension_numbers<[1], [0], [0], [1], [0, 0, 1, 1], [], []>} : vector<2x9xbf16>, vector<9x16xbf16>, vector<2x16xf32> -> vector<2x16xf32>
    %c6_77 = arith.constant 6 : index
    %c0_78 = arith.constant 0 : index
    %c0_79 = arith.constant 0 : index
    %83 = vector.load %arg3[%c6_77, %c0_78, %c0_79] : memref<8x2x1xf32, #tpu.memory_space<vmem>>, vector<1x2x1xf32>
    %84 = vector.shape_cast %83 : vector<1x2x1xf32> to vector<2x1xf32>
    %85 = vector.broadcast %84 : vector<2x1xf32> to vector<2x16xf32>
    %86 = arith.addf %82, %85 : vector<2x16xf32>
    %87 = arith.truncf %86 : vector<2x16xf32> to vector<2x16xbf16>
    %c6_80 = arith.constant 6 : index
    %c0_81 = arith.constant 0 : index
    %c0_82 = arith.constant 0 : index
    %88 = vector.load %arg4[%c6_80, %c0_81, %c0_82] : memref<8x2x16xbf16, #tpu.memory_space<vmem>>, vector<1x2x16xbf16>
    %89 = vector.shape_cast %88 : vector<1x2x16xbf16> to vector<2x16xbf16>
    %90 = vector.shape_cast %87 : vector<2x16xbf16> to vector<1x2x16xbf16>
    tpu.vector_store %arg4[%c6_80, %c0_81, %c0_82], %90 {strides = array<i32>} : memref<8x2x16xbf16, #tpu.memory_space<vmem>>, vector<1x2x16xbf16>,
    %c7 = arith.constant 7 : index
    %c0_83 = arith.constant 0 : index
    %c0_84 = arith.constant 0 : index
    %91 = vector.load %arg2[%c7, %c0_83, %c0_84] : memref<8x2x9xbf16, #tpu.memory_space<vmem>>, vector<1x2x9xbf16>
    %92 = vector.shape_cast %91 : vector<1x2x9xbf16> to vector<2x9xbf16>
    %c7_85 = arith.constant 7 : index
    %c0_86 = arith.constant 0 : index
    %c0_87 = arith.constant 0 : index
    %93 = vector.load %arg1[%c7_85, %c0_86, %c0_87] : memref<8x9x16xbf16, #tpu.memory_space<vmem>>, vector<1x9x16xbf16>
    %94 = vector.shape_cast %93 : vector<1x9x16xbf16> to vector<9x16xbf16>
    %cst_88 = arith.constant dense<0.000000e+00> : vector<2x16xf32>
    %95 = tpu.matmul %92, %94, %cst_88 {dimension_numbers = #tpu.dot_dimension_numbers<[1], [0], [0], [1], [0, 0, 1, 1], [], []>} : vector<2x9xbf16>, vector<9x16xbf16>, vector<2x16xf32> -> vector<2x16xf32>
    %c7_89 = arith.constant 7 : index
    %c0_90 = arith.constant 0 : index
    %c0_91 = arith.constant 0 : index
    %96 = vector.load %arg3[%c7_89, %c0_90, %c0_91] : memref<8x2x1xf32, #tpu.memory_space<vmem>>, vector<1x2x1xf32>
    %97 = vector.shape_cast %96 : vector<1x2x1xf32> to vector<2x1xf32>
    %98 = vector.broadcast %97 : vector<2x1xf32> to vector<2x16xf32>
    %99 = arith.addf %95, %98 : vector<2x16xf32>
    %100 = arith.truncf %99 : vector<2x16xf32> to vector<2x16xbf16>
    %c7_92 = arith.constant 7 : index
    %c0_93 = arith.constant 0 : index
    %c0_94 = arith.constant 0 : index
    %101 = vector.load %arg4[%c7_92, %c0_93, %c0_94] : memref<8x2x16xbf16, #tpu.memory_space<vmem>>, vector<1x2x16xbf16>
    %102 = vector.shape_cast %101 : vector<1x2x16xbf16> to vector<2x16xbf16>
    %103 = vector.shape_cast %100 : vector<2x16xbf16> to vector<1x2x16xbf16>
    tpu.vector_store %arg4[%c7_92, %c0_93, %c0_94], %103 {strides = array<i32>} : memref<8x2x16xbf16, #tpu.memory_space<vmem>>, vector<1x2x16xbf16>,
    return
  }
  func.func @transform_0(%arg0: i32) -> (i32, i32, i32) {
    %c0_i32 = arith.constant 0 : i32
    %c0_i32_0 = arith.constant 0 : i32
    %c0_i32_1 = arith.constant 0 : i32
    return %c0_i32, %c0_i32_0, %arg0 : i32, i32, i32
  }
  func.func @transform_1(%arg0: i32) -> (i32, i32, i32) {
    %c0_i32 = arith.constant 0 : i32
    %c0_i32_0 = arith.constant 0 : i32
    %c0_i32_1 = arith.constant 0 : i32
    %c0_i32_2 = arith.constant 0 : i32
    return %c0_i32, %c0_i32_0, %c0_i32_1 : i32, i32, i32
  }
  func.func @transform_2(%arg0: i32) -> (i32, i32, i32) {
    %c0_i32 = arith.constant 0 : i32
    %c0_i32_0 = arith.constant 0 : i32
    %c0_i32_1 = arith.constant 0 : i32
    %c0_i32_2 = arith.constant 0 : i32
    return %c0_i32, %c0_i32_0, %c0_i32_1 : i32, i32, i32
  }
  func.func @transform_3(%arg0: i32) -> (i32, i32, i32) {
    %c0_i32 = arith.constant 0 : i32
    %c0_i32_0 = arith.constant 0 : i32
    %c0_i32_1 = arith.constant 0 : i32
    return %c0_i32, %c0_i32_0, %arg0 : i32, i32, i32
  }
}

module attributes {stable_mosaic.version = 11 : i64} {
  func.func @_gn_lrelu_kernel(%arg0: i32, %arg1: memref<2x1x16xbf16, #tpu.memory_space<vmem>>, %arg2: memref<2x1x1xf32, #tpu.memory_space<vmem>>, %arg3: memref<2x1x1xf32, #tpu.memory_space<vmem>>, %arg4: memref<2x1x16xbf16, #tpu.memory_space<vmem>>) attributes {dimension_semantics = [#tpu.dimension_semantics<parallel>], iteration_bounds = array<i64: 8>, scalar_prefetch = 0 : i64, scratch_operands = 0 : i64, tpu.core_type = #tpu.core_type<tc>, window_params = [{transform_indices = @transform_0, window_bounds = array<i64: 2, 1, 16>}, {transform_indices = @transform_1, window_bounds = array<i64: 2, 1, 1>}, {transform_indices = @transform_2, window_bounds = array<i64: 2, 1, 1>}, {transform_indices = @transform_3, window_bounds = array<i64: 2, 1, 16>}]} {
    %c0 = arith.constant 0 : index
    %c0_0 = arith.constant 0 : index
    %c0_1 = arith.constant 0 : index
    %0 = vector.load %arg1[%c0, %c0_0, %c0_1] : memref<2x1x16xbf16, #tpu.memory_space<vmem>>, vector<2x1x16xbf16>
    %1 = arith.extf %0 : vector<2x1x16xbf16> to vector<2x1x16xf32>
    %cst = arith.constant dense<0.000000e+00> : vector<1xf32>
    %2 = vector.multi_reduction <add>, %1, %cst [0, 2] : vector<2x1x16xf32> to vector<1xf32>
    %3 = vector.shape_cast %2 : vector<1xf32> to vector<1x1x1xf32>
    %4 = arith.mulf %1, %1 : vector<2x1x16xf32>
    %cst_2 = arith.constant dense<0.000000e+00> : vector<1xf32>
    %5 = vector.multi_reduction <add>, %4, %cst_2 [0, 2] : vector<2x1x16xf32> to vector<1xf32>
    %6 = vector.shape_cast %5 : vector<1xf32> to vector<1x1x1xf32>
    %cst_3 = arith.constant 3.125000e-02 : f32
    %7 = vector.broadcast %cst_3 : f32 to vector<1x1x1xf32>
    %8 = arith.mulf %3, %7 : vector<1x1x1xf32>
    %cst_4 = arith.constant 3.125000e-02 : f32
    %9 = vector.broadcast %cst_4 : f32 to vector<1x1x1xf32>
    %10 = arith.mulf %6, %9 : vector<1x1x1xf32>
    %11 = arith.mulf %8, %8 : vector<1x1x1xf32>
    %12 = arith.subf %10, %11 : vector<1x1x1xf32>
    %13 = vector.broadcast %8 : vector<1x1x1xf32> to vector<2x1x16xf32>
    %14 = arith.subf %1, %13 : vector<2x1x16xf32>
    %cst_5 = arith.constant 9.99999974E-6 : f32
    %15 = vector.broadcast %cst_5 : f32 to vector<1x1x1xf32>
    %16 = arith.addf %12, %15 : vector<1x1x1xf32>
    %17 = math.rsqrt %16 : vector<1x1x1xf32>
    %18 = vector.broadcast %17 : vector<1x1x1xf32> to vector<2x1x16xf32>
    %19 = arith.mulf %14, %18 : vector<2x1x16xf32>
    %c0_6 = arith.constant 0 : index
    %c0_7 = arith.constant 0 : index
    %c0_8 = arith.constant 0 : index
    %20 = vector.load %arg2[%c0_6, %c0_7, %c0_8] : memref<2x1x1xf32, #tpu.memory_space<vmem>>, vector<2x1x1xf32>
    %21 = vector.broadcast %20 : vector<2x1x1xf32> to vector<2x1x16xf32>
    %22 = arith.mulf %19, %21 : vector<2x1x16xf32>
    %c0_9 = arith.constant 0 : index
    %c0_10 = arith.constant 0 : index
    %c0_11 = arith.constant 0 : index
    %23 = vector.load %arg3[%c0_9, %c0_10, %c0_11] : memref<2x1x1xf32, #tpu.memory_space<vmem>>, vector<2x1x1xf32>
    %24 = vector.broadcast %23 : vector<2x1x1xf32> to vector<2x1x16xf32>
    %25 = arith.addf %22, %24 : vector<2x1x16xf32>
    %cst_12 = arith.constant 0.000000e+00 : f32
    %26 = vector.broadcast %cst_12 : f32 to vector<2x1x16xf32>
    %27 = arith.cmpf ogt, %25, %26 : vector<2x1x16xf32>
    %cst_13 = arith.constant 2.000000e-01 : f32
    %28 = vector.broadcast %cst_13 : f32 to vector<2x1x16xf32>
    %29 = arith.mulf %28, %25 : vector<2x1x16xf32>
    %30 = arith.select %27, %25, %29 : vector<2x1x16xi1>, vector<2x1x16xf32>
    %31 = arith.truncf %30 : vector<2x1x16xf32> to vector<2x1x16xbf16>
    %c0_14 = arith.constant 0 : index
    %c0_15 = arith.constant 0 : index
    %c0_16 = arith.constant 0 : index
    %32 = vector.load %arg4[%c0_14, %c0_15, %c0_16] : memref<2x1x16xbf16, #tpu.memory_space<vmem>>, vector<2x1x16xbf16>
    tpu.vector_store %arg4[%c0_14, %c0_15, %c0_16], %31 {strides = array<i32>} : memref<2x1x16xbf16, #tpu.memory_space<vmem>>, vector<2x1x16xbf16>,
    return
  }
  func.func @transform_0(%arg0: i32) -> (i32, i32, i32) {
    %c0_i32 = arith.constant 0 : i32
    %c0_i32_0 = arith.constant 0 : i32
    %c0_i32_1 = arith.constant 0 : i32
    return %arg0, %c0_i32, %c0_i32_0 : i32, i32, i32
  }
  func.func @transform_1(%arg0: i32) -> (i32, i32, i32) {
    %c0_i32 = arith.constant 0 : i32
    %c0_i32_0 = arith.constant 0 : i32
    %c0_i32_1 = arith.constant 0 : i32
    return %arg0, %c0_i32, %c0_i32_0 : i32, i32, i32
  }
  func.func @transform_2(%arg0: i32) -> (i32, i32, i32) {
    %c0_i32 = arith.constant 0 : i32
    %c0_i32_0 = arith.constant 0 : i32
    %c0_i32_1 = arith.constant 0 : i32
    return %arg0, %c0_i32, %c0_i32_0 : i32, i32, i32
  }
  func.func @transform_3(%arg0: i32) -> (i32, i32, i32) {
    %c0_i32 = arith.constant 0 : i32
    %c0_i32_0 = arith.constant 0 : i32
    %c0_i32_1 = arith.constant 0 : i32
    return %arg0, %c0_i32, %c0_i32_0 : i32, i32, i32
  }
}

module attributes {stable_mosaic.version = 11 : i64} {
  func.func @_gconv_matmul_kernel(%arg0: i32, %arg1: memref<8x25x16xbf16, #tpu.memory_space<vmem>>, %arg2: memref<8x2x25xbf16, #tpu.memory_space<vmem>>, %arg3: memref<8x2x1xf32, #tpu.memory_space<vmem>>, %arg4: memref<8x2x16xbf16, #tpu.memory_space<vmem>>) attributes {dimension_semantics = [#tpu.dimension_semantics<parallel>], iteration_bounds = array<i64: 1>, scalar_prefetch = 0 : i64, scratch_operands = 0 : i64, tpu.core_type = #tpu.core_type<tc>, window_params = [{transform_indices = @transform_0, window_bounds = array<i64: 8, 25, 16>}, {pipeline_mode = #tpu.pipeline_mode<synchronous>, transform_indices = @transform_1, window_bounds = array<i64: 8, 2, 25>}, {pipeline_mode = #tpu.pipeline_mode<synchronous>, transform_indices = @transform_2, window_bounds = array<i64: 8, 2, 1>}, {transform_indices = @transform_3, window_bounds = array<i64: 8, 2, 16>}]} {
    %c0 = arith.constant 0 : index
    %c0_0 = arith.constant 0 : index
    %c0_1 = arith.constant 0 : index
    %0 = vector.load %arg2[%c0, %c0_0, %c0_1] : memref<8x2x25xbf16, #tpu.memory_space<vmem>>, vector<1x2x25xbf16>
    %1 = vector.shape_cast %0 : vector<1x2x25xbf16> to vector<2x25xbf16>
    %c0_2 = arith.constant 0 : index
    %c0_3 = arith.constant 0 : index
    %c0_4 = arith.constant 0 : index
    %2 = vector.load %arg1[%c0_2, %c0_3, %c0_4] : memref<8x25x16xbf16, #tpu.memory_space<vmem>>, vector<1x25x16xbf16>
    %3 = vector.shape_cast %2 : vector<1x25x16xbf16> to vector<25x16xbf16>
    %cst = arith.constant dense<0.000000e+00> : vector<2x16xf32>
    %4 = tpu.matmul %1, %3, %cst {dimension_numbers = #tpu.dot_dimension_numbers<[1], [0], [0], [1], [0, 0, 1, 1], [], []>} : vector<2x25xbf16>, vector<25x16xbf16>, vector<2x16xf32> -> vector<2x16xf32>
    %c0_5 = arith.constant 0 : index
    %c0_6 = arith.constant 0 : index
    %c0_7 = arith.constant 0 : index
    %5 = vector.load %arg3[%c0_5, %c0_6, %c0_7] : memref<8x2x1xf32, #tpu.memory_space<vmem>>, vector<1x2x1xf32>
    %6 = vector.shape_cast %5 : vector<1x2x1xf32> to vector<2x1xf32>
    %7 = vector.broadcast %6 : vector<2x1xf32> to vector<2x16xf32>
    %8 = arith.addf %4, %7 : vector<2x16xf32>
    %9 = arith.truncf %8 : vector<2x16xf32> to vector<2x16xbf16>
    %c0_8 = arith.constant 0 : index
    %c0_9 = arith.constant 0 : index
    %c0_10 = arith.constant 0 : index
    %10 = vector.load %arg4[%c0_8, %c0_9, %c0_10] : memref<8x2x16xbf16, #tpu.memory_space<vmem>>, vector<1x2x16xbf16>
    %11 = vector.shape_cast %10 : vector<1x2x16xbf16> to vector<2x16xbf16>
    %12 = vector.shape_cast %9 : vector<2x16xbf16> to vector<1x2x16xbf16>
    tpu.vector_store %arg4[%c0_8, %c0_9, %c0_10], %12 {strides = array<i32>} : memref<8x2x16xbf16, #tpu.memory_space<vmem>>, vector<1x2x16xbf16>,
    %c1 = arith.constant 1 : index
    %c0_11 = arith.constant 0 : index
    %c0_12 = arith.constant 0 : index
    %13 = vector.load %arg2[%c1, %c0_11, %c0_12] : memref<8x2x25xbf16, #tpu.memory_space<vmem>>, vector<1x2x25xbf16>
    %14 = vector.shape_cast %13 : vector<1x2x25xbf16> to vector<2x25xbf16>
    %c1_13 = arith.constant 1 : index
    %c0_14 = arith.constant 0 : index
    %c0_15 = arith.constant 0 : index
    %15 = vector.load %arg1[%c1_13, %c0_14, %c0_15] : memref<8x25x16xbf16, #tpu.memory_space<vmem>>, vector<1x25x16xbf16>
    %16 = vector.shape_cast %15 : vector<1x25x16xbf16> to vector<25x16xbf16>
    %cst_16 = arith.constant dense<0.000000e+00> : vector<2x16xf32>
    %17 = tpu.matmul %14, %16, %cst_16 {dimension_numbers = #tpu.dot_dimension_numbers<[1], [0], [0], [1], [0, 0, 1, 1], [], []>} : vector<2x25xbf16>, vector<25x16xbf16>, vector<2x16xf32> -> vector<2x16xf32>
    %c1_17 = arith.constant 1 : index
    %c0_18 = arith.constant 0 : index
    %c0_19 = arith.constant 0 : index
    %18 = vector.load %arg3[%c1_17, %c0_18, %c0_19] : memref<8x2x1xf32, #tpu.memory_space<vmem>>, vector<1x2x1xf32>
    %19 = vector.shape_cast %18 : vector<1x2x1xf32> to vector<2x1xf32>
    %20 = vector.broadcast %19 : vector<2x1xf32> to vector<2x16xf32>
    %21 = arith.addf %17, %20 : vector<2x16xf32>
    %22 = arith.truncf %21 : vector<2x16xf32> to vector<2x16xbf16>
    %c1_20 = arith.constant 1 : index
    %c0_21 = arith.constant 0 : index
    %c0_22 = arith.constant 0 : index
    %23 = vector.load %arg4[%c1_20, %c0_21, %c0_22] : memref<8x2x16xbf16, #tpu.memory_space<vmem>>, vector<1x2x16xbf16>
    %24 = vector.shape_cast %23 : vector<1x2x16xbf16> to vector<2x16xbf16>
    %25 = vector.shape_cast %22 : vector<2x16xbf16> to vector<1x2x16xbf16>
    tpu.vector_store %arg4[%c1_20, %c0_21, %c0_22], %25 {strides = array<i32>} : memref<8x2x16xbf16, #tpu.memory_space<vmem>>, vector<1x2x16xbf16>,
    %c2 = arith.constant 2 : index
    %c0_23 = arith.constant 0 : index
    %c0_24 = arith.constant 0 : index
    %26 = vector.load %arg2[%c2, %c0_23, %c0_24] : memref<8x2x25xbf16, #tpu.memory_space<vmem>>, vector<1x2x25xbf16>
    %27 = vector.shape_cast %26 : vector<1x2x25xbf16> to vector<2x25xbf16>
    %c2_25 = arith.constant 2 : index
    %c0_26 = arith.constant 0 : index
    %c0_27 = arith.constant 0 : index
    %28 = vector.load %arg1[%c2_25, %c0_26, %c0_27] : memref<8x25x16xbf16, #tpu.memory_space<vmem>>, vector<1x25x16xbf16>
    %29 = vector.shape_cast %28 : vector<1x25x16xbf16> to vector<25x16xbf16>
    %cst_28 = arith.constant dense<0.000000e+00> : vector<2x16xf32>
    %30 = tpu.matmul %27, %29, %cst_28 {dimension_numbers = #tpu.dot_dimension_numbers<[1], [0], [0], [1], [0, 0, 1, 1], [], []>} : vector<2x25xbf16>, vector<25x16xbf16>, vector<2x16xf32> -> vector<2x16xf32>
    %c2_29 = arith.constant 2 : index
    %c0_30 = arith.constant 0 : index
    %c0_31 = arith.constant 0 : index
    %31 = vector.load %arg3[%c2_29, %c0_30, %c0_31] : memref<8x2x1xf32, #tpu.memory_space<vmem>>, vector<1x2x1xf32>
    %32 = vector.shape_cast %31 : vector<1x2x1xf32> to vector<2x1xf32>
    %33 = vector.broadcast %32 : vector<2x1xf32> to vector<2x16xf32>
    %34 = arith.addf %30, %33 : vector<2x16xf32>
    %35 = arith.truncf %34 : vector<2x16xf32> to vector<2x16xbf16>
    %c2_32 = arith.constant 2 : index
    %c0_33 = arith.constant 0 : index
    %c0_34 = arith.constant 0 : index
    %36 = vector.load %arg4[%c2_32, %c0_33, %c0_34] : memref<8x2x16xbf16, #tpu.memory_space<vmem>>, vector<1x2x16xbf16>
    %37 = vector.shape_cast %36 : vector<1x2x16xbf16> to vector<2x16xbf16>
    %38 = vector.shape_cast %35 : vector<2x16xbf16> to vector<1x2x16xbf16>
    tpu.vector_store %arg4[%c2_32, %c0_33, %c0_34], %38 {strides = array<i32>} : memref<8x2x16xbf16, #tpu.memory_space<vmem>>, vector<1x2x16xbf16>,
    %c3 = arith.constant 3 : index
    %c0_35 = arith.constant 0 : index
    %c0_36 = arith.constant 0 : index
    %39 = vector.load %arg2[%c3, %c0_35, %c0_36] : memref<8x2x25xbf16, #tpu.memory_space<vmem>>, vector<1x2x25xbf16>
    %40 = vector.shape_cast %39 : vector<1x2x25xbf16> to vector<2x25xbf16>
    %c3_37 = arith.constant 3 : index
    %c0_38 = arith.constant 0 : index
    %c0_39 = arith.constant 0 : index
    %41 = vector.load %arg1[%c3_37, %c0_38, %c0_39] : memref<8x25x16xbf16, #tpu.memory_space<vmem>>, vector<1x25x16xbf16>
    %42 = vector.shape_cast %41 : vector<1x25x16xbf16> to vector<25x16xbf16>
    %cst_40 = arith.constant dense<0.000000e+00> : vector<2x16xf32>
    %43 = tpu.matmul %40, %42, %cst_40 {dimension_numbers = #tpu.dot_dimension_numbers<[1], [0], [0], [1], [0, 0, 1, 1], [], []>} : vector<2x25xbf16>, vector<25x16xbf16>, vector<2x16xf32> -> vector<2x16xf32>
    %c3_41 = arith.constant 3 : index
    %c0_42 = arith.constant 0 : index
    %c0_43 = arith.constant 0 : index
    %44 = vector.load %arg3[%c3_41, %c0_42, %c0_43] : memref<8x2x1xf32, #tpu.memory_space<vmem>>, vector<1x2x1xf32>
    %45 = vector.shape_cast %44 : vector<1x2x1xf32> to vector<2x1xf32>
    %46 = vector.broadcast %45 : vector<2x1xf32> to vector<2x16xf32>
    %47 = arith.addf %43, %46 : vector<2x16xf32>
    %48 = arith.truncf %47 : vector<2x16xf32> to vector<2x16xbf16>
    %c3_44 = arith.constant 3 : index
    %c0_45 = arith.constant 0 : index
    %c0_46 = arith.constant 0 : index
    %49 = vector.load %arg4[%c3_44, %c0_45, %c0_46] : memref<8x2x16xbf16, #tpu.memory_space<vmem>>, vector<1x2x16xbf16>
    %50 = vector.shape_cast %49 : vector<1x2x16xbf16> to vector<2x16xbf16>
    %51 = vector.shape_cast %48 : vector<2x16xbf16> to vector<1x2x16xbf16>
    tpu.vector_store %arg4[%c3_44, %c0_45, %c0_46], %51 {strides = array<i32>} : memref<8x2x16xbf16, #tpu.memory_space<vmem>>, vector<1x2x16xbf16>,
    %c4 = arith.constant 4 : index
    %c0_47 = arith.constant 0 : index
    %c0_48 = arith.constant 0 : index
    %52 = vector.load %arg2[%c4, %c0_47, %c0_48] : memref<8x2x25xbf16, #tpu.memory_space<vmem>>, vector<1x2x25xbf16>
    %53 = vector.shape_cast %52 : vector<1x2x25xbf16> to vector<2x25xbf16>
    %c4_49 = arith.constant 4 : index
    %c0_50 = arith.constant 0 : index
    %c0_51 = arith.constant 0 : index
    %54 = vector.load %arg1[%c4_49, %c0_50, %c0_51] : memref<8x25x16xbf16, #tpu.memory_space<vmem>>, vector<1x25x16xbf16>
    %55 = vector.shape_cast %54 : vector<1x25x16xbf16> to vector<25x16xbf16>
    %cst_52 = arith.constant dense<0.000000e+00> : vector<2x16xf32>
    %56 = tpu.matmul %53, %55, %cst_52 {dimension_numbers = #tpu.dot_dimension_numbers<[1], [0], [0], [1], [0, 0, 1, 1], [], []>} : vector<2x25xbf16>, vector<25x16xbf16>, vector<2x16xf32> -> vector<2x16xf32>
    %c4_53 = arith.constant 4 : index
    %c0_54 = arith.constant 0 : index
    %c0_55 = arith.constant 0 : index
    %57 = vector.load %arg3[%c4_53, %c0_54, %c0_55] : memref<8x2x1xf32, #tpu.memory_space<vmem>>, vector<1x2x1xf32>
    %58 = vector.shape_cast %57 : vector<1x2x1xf32> to vector<2x1xf32>
    %59 = vector.broadcast %58 : vector<2x1xf32> to vector<2x16xf32>
    %60 = arith.addf %56, %59 : vector<2x16xf32>
    %61 = arith.truncf %60 : vector<2x16xf32> to vector<2x16xbf16>
    %c4_56 = arith.constant 4 : index
    %c0_57 = arith.constant 0 : index
    %c0_58 = arith.constant 0 : index
    %62 = vector.load %arg4[%c4_56, %c0_57, %c0_58] : memref<8x2x16xbf16, #tpu.memory_space<vmem>>, vector<1x2x16xbf16>
    %63 = vector.shape_cast %62 : vector<1x2x16xbf16> to vector<2x16xbf16>
    %64 = vector.shape_cast %61 : vector<2x16xbf16> to vector<1x2x16xbf16>
    tpu.vector_store %arg4[%c4_56, %c0_57, %c0_58], %64 {strides = array<i32>} : memref<8x2x16xbf16, #tpu.memory_space<vmem>>, vector<1x2x16xbf16>,
    %c5 = arith.constant 5 : index
    %c0_59 = arith.constant 0 : index
    %c0_60 = arith.constant 0 : index
    %65 = vector.load %arg2[%c5, %c0_59, %c0_60] : memref<8x2x25xbf16, #tpu.memory_space<vmem>>, vector<1x2x25xbf16>
    %66 = vector.shape_cast %65 : vector<1x2x25xbf16> to vector<2x25xbf16>
    %c5_61 = arith.constant 5 : index
    %c0_62 = arith.constant 0 : index
    %c0_63 = arith.constant 0 : index
    %67 = vector.load %arg1[%c5_61, %c0_62, %c0_63] : memref<8x25x16xbf16, #tpu.memory_space<vmem>>, vector<1x25x16xbf16>
    %68 = vector.shape_cast %67 : vector<1x25x16xbf16> to vector<25x16xbf16>
    %cst_64 = arith.constant dense<0.000000e+00> : vector<2x16xf32>
    %69 = tpu.matmul %66, %68, %cst_64 {dimension_numbers = #tpu.dot_dimension_numbers<[1], [0], [0], [1], [0, 0, 1, 1], [], []>} : vector<2x25xbf16>, vector<25x16xbf16>, vector<2x16xf32> -> vector<2x16xf32>
    %c5_65 = arith.constant 5 : index
    %c0_66 = arith.constant 0 : index
    %c0_67 = arith.constant 0 : index
    %70 = vector.load %arg3[%c5_65, %c0_66, %c0_67] : memref<8x2x1xf32, #tpu.memory_space<vmem>>, vector<1x2x1xf32>
    %71 = vector.shape_cast %70 : vector<1x2x1xf32> to vector<2x1xf32>
    %72 = vector.broadcast %71 : vector<2x1xf32> to vector<2x16xf32>
    %73 = arith.addf %69, %72 : vector<2x16xf32>
    %74 = arith.truncf %73 : vector<2x16xf32> to vector<2x16xbf16>
    %c5_68 = arith.constant 5 : index
    %c0_69 = arith.constant 0 : index
    %c0_70 = arith.constant 0 : index
    %75 = vector.load %arg4[%c5_68, %c0_69, %c0_70] : memref<8x2x16xbf16, #tpu.memory_space<vmem>>, vector<1x2x16xbf16>
    %76 = vector.shape_cast %75 : vector<1x2x16xbf16> to vector<2x16xbf16>
    %77 = vector.shape_cast %74 : vector<2x16xbf16> to vector<1x2x16xbf16>
    tpu.vector_store %arg4[%c5_68, %c0_69, %c0_70], %77 {strides = array<i32>} : memref<8x2x16xbf16, #tpu.memory_space<vmem>>, vector<1x2x16xbf16>,
    %c6 = arith.constant 6 : index
    %c0_71 = arith.constant 0 : index
    %c0_72 = arith.constant 0 : index
    %78 = vector.load %arg2[%c6, %c0_71, %c0_72] : memref<8x2x25xbf16, #tpu.memory_space<vmem>>, vector<1x2x25xbf16>
    %79 = vector.shape_cast %78 : vector<1x2x25xbf16> to vector<2x25xbf16>
    %c6_73 = arith.constant 6 : index
    %c0_74 = arith.constant 0 : index
    %c0_75 = arith.constant 0 : index
    %80 = vector.load %arg1[%c6_73, %c0_74, %c0_75] : memref<8x25x16xbf16, #tpu.memory_space<vmem>>, vector<1x25x16xbf16>
    %81 = vector.shape_cast %80 : vector<1x25x16xbf16> to vector<25x16xbf16>
    %cst_76 = arith.constant dense<0.000000e+00> : vector<2x16xf32>
    %82 = tpu.matmul %79, %81, %cst_76 {dimension_numbers = #tpu.dot_dimension_numbers<[1], [0], [0], [1], [0, 0, 1, 1], [], []>} : vector<2x25xbf16>, vector<25x16xbf16>, vector<2x16xf32> -> vector<2x16xf32>
    %c6_77 = arith.constant 6 : index
    %c0_78 = arith.constant 0 : index
    %c0_79 = arith.constant 0 : index
    %83 = vector.load %arg3[%c6_77, %c0_78, %c0_79] : memref<8x2x1xf32, #tpu.memory_space<vmem>>, vector<1x2x1xf32>
    %84 = vector.shape_cast %83 : vector<1x2x1xf32> to vector<2x1xf32>
    %85 = vector.broadcast %84 : vector<2x1xf32> to vector<2x16xf32>
    %86 = arith.addf %82, %85 : vector<2x16xf32>
    %87 = arith.truncf %86 : vector<2x16xf32> to vector<2x16xbf16>
    %c6_80 = arith.constant 6 : index
    %c0_81 = arith.constant 0 : index
    %c0_82 = arith.constant 0 : index
    %88 = vector.load %arg4[%c6_80, %c0_81, %c0_82] : memref<8x2x16xbf16, #tpu.memory_space<vmem>>, vector<1x2x16xbf16>
    %89 = vector.shape_cast %88 : vector<1x2x16xbf16> to vector<2x16xbf16>
    %90 = vector.shape_cast %87 : vector<2x16xbf16> to vector<1x2x16xbf16>
    tpu.vector_store %arg4[%c6_80, %c0_81, %c0_82], %90 {strides = array<i32>} : memref<8x2x16xbf16, #tpu.memory_space<vmem>>, vector<1x2x16xbf16>,
    %c7 = arith.constant 7 : index
    %c0_83 = arith.constant 0 : index
    %c0_84 = arith.constant 0 : index
    %91 = vector.load %arg2[%c7, %c0_83, %c0_84] : memref<8x2x25xbf16, #tpu.memory_space<vmem>>, vector<1x2x25xbf16>
    %92 = vector.shape_cast %91 : vector<1x2x25xbf16> to vector<2x25xbf16>
    %c7_85 = arith.constant 7 : index
    %c0_86 = arith.constant 0 : index
    %c0_87 = arith.constant 0 : index
    %93 = vector.load %arg1[%c7_85, %c0_86, %c0_87] : memref<8x25x16xbf16, #tpu.memory_space<vmem>>, vector<1x25x16xbf16>
    %94 = vector.shape_cast %93 : vector<1x25x16xbf16> to vector<25x16xbf16>
    %cst_88 = arith.constant dense<0.000000e+00> : vector<2x16xf32>
    %95 = tpu.matmul %92, %94, %cst_88 {dimension_numbers = #tpu.dot_dimension_numbers<[1], [0], [0], [1], [0, 0, 1, 1], [], []>} : vector<2x25xbf16>, vector<25x16xbf16>, vector<2x16xf32> -> vector<2x16xf32>
    %c7_89 = arith.constant 7 : index
    %c0_90 = arith.constant 0 : index
    %c0_91 = arith.constant 0 : index
    %96 = vector.load %arg3[%c7_89, %c0_90, %c0_91] : memref<8x2x1xf32, #tpu.memory_space<vmem>>, vector<1x2x1xf32>
    %97 = vector.shape_cast %96 : vector<1x2x1xf32> to vector<2x1xf32>
    %98 = vector.broadcast %97 : vector<2x1xf32> to vector<2x16xf32>
    %99 = arith.addf %95, %98 : vector<2x16xf32>
    %100 = arith.truncf %99 : vector<2x16xf32> to vector<2x16xbf16>
    %c7_92 = arith.constant 7 : index
    %c0_93 = arith.constant 0 : index
    %c0_94 = arith.constant 0 : index
    %101 = vector.load %arg4[%c7_92, %c0_93, %c0_94] : memref<8x2x16xbf16, #tpu.memory_space<vmem>>, vector<1x2x16xbf16>
    %102 = vector.shape_cast %101 : vector<1x2x16xbf16> to vector<2x16xbf16>
    %103 = vector.shape_cast %100 : vector<2x16xbf16> to vector<1x2x16xbf16>
    tpu.vector_store %arg4[%c7_92, %c0_93, %c0_94], %103 {strides = array<i32>} : memref<8x2x16xbf16, #tpu.memory_space<vmem>>, vector<1x2x16xbf16>,
    return
  }
  func.func @transform_0(%arg0: i32) -> (i32, i32, i32) {
    %c0_i32 = arith.constant 0 : i32
    %c0_i32_0 = arith.constant 0 : i32
    %c0_i32_1 = arith.constant 0 : i32
    return %c0_i32, %c0_i32_0, %arg0 : i32, i32, i32
  }
  func.func @transform_1(%arg0: i32) -> (i32, i32, i32) {
    %c0_i32 = arith.constant 0 : i32
    %c0_i32_0 = arith.constant 0 : i32
    %c0_i32_1 = arith.constant 0 : i32
    %c0_i32_2 = arith.constant 0 : i32
    return %c0_i32, %c0_i32_0, %c0_i32_1 : i32, i32, i32
  }
  func.func @transform_2(%arg0: i32) -> (i32, i32, i32) {
    %c0_i32 = arith.constant 0 : i32
    %c0_i32_0 = arith.constant 0 : i32
    %c0_i32_1 = arith.constant 0 : i32
    %c0_i32_2 = arith.constant 0 : i32
    return %c0_i32, %c0_i32_0, %c0_i32_1 : i32, i32, i32
  }
  func.func @transform_3(%arg0: i32) -> (i32, i32, i32) {
    %c0_i32 = arith.constant 0 : i32
    %c0_i32_0 = arith.constant 0 : i32
    %c0_i32_1 = arith.constant 0 : i32
    return %c0_i32, %c0_i32_0, %arg0 : i32, i32, i32
  }
}

module attributes {stable_mosaic.version = 11 : i64} {
  func.func @_gconv_matmul_kernel(%arg0: i32, %arg1: memref<8x49x16xbf16, #tpu.memory_space<vmem>>, %arg2: memref<8x2x49xbf16, #tpu.memory_space<vmem>>, %arg3: memref<8x2x1xf32, #tpu.memory_space<vmem>>, %arg4: memref<8x2x16xbf16, #tpu.memory_space<vmem>>) attributes {dimension_semantics = [#tpu.dimension_semantics<parallel>], iteration_bounds = array<i64: 1>, scalar_prefetch = 0 : i64, scratch_operands = 0 : i64, tpu.core_type = #tpu.core_type<tc>, window_params = [{transform_indices = @transform_0, window_bounds = array<i64: 8, 49, 16>}, {pipeline_mode = #tpu.pipeline_mode<synchronous>, transform_indices = @transform_1, window_bounds = array<i64: 8, 2, 49>}, {pipeline_mode = #tpu.pipeline_mode<synchronous>, transform_indices = @transform_2, window_bounds = array<i64: 8, 2, 1>}, {transform_indices = @transform_3, window_bounds = array<i64: 8, 2, 16>}]} {
    %c0 = arith.constant 0 : index
    %c0_0 = arith.constant 0 : index
    %c0_1 = arith.constant 0 : index
    %0 = vector.load %arg2[%c0, %c0_0, %c0_1] : memref<8x2x49xbf16, #tpu.memory_space<vmem>>, vector<1x2x49xbf16>
    %1 = vector.shape_cast %0 : vector<1x2x49xbf16> to vector<2x49xbf16>
    %c0_2 = arith.constant 0 : index
    %c0_3 = arith.constant 0 : index
    %c0_4 = arith.constant 0 : index
    %2 = vector.load %arg1[%c0_2, %c0_3, %c0_4] : memref<8x49x16xbf16, #tpu.memory_space<vmem>>, vector<1x49x16xbf16>
    %3 = vector.shape_cast %2 : vector<1x49x16xbf16> to vector<49x16xbf16>
    %cst = arith.constant dense<0.000000e+00> : vector<2x16xf32>
    %4 = tpu.matmul %1, %3, %cst {dimension_numbers = #tpu.dot_dimension_numbers<[1], [0], [0], [1], [0, 0, 1, 1], [], []>} : vector<2x49xbf16>, vector<49x16xbf16>, vector<2x16xf32> -> vector<2x16xf32>
    %c0_5 = arith.constant 0 : index
    %c0_6 = arith.constant 0 : index
    %c0_7 = arith.constant 0 : index
    %5 = vector.load %arg3[%c0_5, %c0_6, %c0_7] : memref<8x2x1xf32, #tpu.memory_space<vmem>>, vector<1x2x1xf32>
    %6 = vector.shape_cast %5 : vector<1x2x1xf32> to vector<2x1xf32>
    %7 = vector.broadcast %6 : vector<2x1xf32> to vector<2x16xf32>
    %8 = arith.addf %4, %7 : vector<2x16xf32>
    %9 = arith.truncf %8 : vector<2x16xf32> to vector<2x16xbf16>
    %c0_8 = arith.constant 0 : index
    %c0_9 = arith.constant 0 : index
    %c0_10 = arith.constant 0 : index
    %10 = vector.load %arg4[%c0_8, %c0_9, %c0_10] : memref<8x2x16xbf16, #tpu.memory_space<vmem>>, vector<1x2x16xbf16>
    %11 = vector.shape_cast %10 : vector<1x2x16xbf16> to vector<2x16xbf16>
    %12 = vector.shape_cast %9 : vector<2x16xbf16> to vector<1x2x16xbf16>
    tpu.vector_store %arg4[%c0_8, %c0_9, %c0_10], %12 {strides = array<i32>} : memref<8x2x16xbf16, #tpu.memory_space<vmem>>, vector<1x2x16xbf16>,
    %c1 = arith.constant 1 : index
    %c0_11 = arith.constant 0 : index
    %c0_12 = arith.constant 0 : index
    %13 = vector.load %arg2[%c1, %c0_11, %c0_12] : memref<8x2x49xbf16, #tpu.memory_space<vmem>>, vector<1x2x49xbf16>
    %14 = vector.shape_cast %13 : vector<1x2x49xbf16> to vector<2x49xbf16>
    %c1_13 = arith.constant 1 : index
    %c0_14 = arith.constant 0 : index
    %c0_15 = arith.constant 0 : index
    %15 = vector.load %arg1[%c1_13, %c0_14, %c0_15] : memref<8x49x16xbf16, #tpu.memory_space<vmem>>, vector<1x49x16xbf16>
    %16 = vector.shape_cast %15 : vector<1x49x16xbf16> to vector<49x16xbf16>
    %cst_16 = arith.constant dense<0.000000e+00> : vector<2x16xf32>
    %17 = tpu.matmul %14, %16, %cst_16 {dimension_numbers = #tpu.dot_dimension_numbers<[1], [0], [0], [1], [0, 0, 1, 1], [], []>} : vector<2x49xbf16>, vector<49x16xbf16>, vector<2x16xf32> -> vector<2x16xf32>
    %c1_17 = arith.constant 1 : index
    %c0_18 = arith.constant 0 : index
    %c0_19 = arith.constant 0 : index
    %18 = vector.load %arg3[%c1_17, %c0_18, %c0_19] : memref<8x2x1xf32, #tpu.memory_space<vmem>>, vector<1x2x1xf32>
    %19 = vector.shape_cast %18 : vector<1x2x1xf32> to vector<2x1xf32>
    %20 = vector.broadcast %19 : vector<2x1xf32> to vector<2x16xf32>
    %21 = arith.addf %17, %20 : vector<2x16xf32>
    %22 = arith.truncf %21 : vector<2x16xf32> to vector<2x16xbf16>
    %c1_20 = arith.constant 1 : index
    %c0_21 = arith.constant 0 : index
    %c0_22 = arith.constant 0 : index
    %23 = vector.load %arg4[%c1_20, %c0_21, %c0_22] : memref<8x2x16xbf16, #tpu.memory_space<vmem>>, vector<1x2x16xbf16>
    %24 = vector.shape_cast %23 : vector<1x2x16xbf16> to vector<2x16xbf16>
    %25 = vector.shape_cast %22 : vector<2x16xbf16> to vector<1x2x16xbf16>
    tpu.vector_store %arg4[%c1_20, %c0_21, %c0_22], %25 {strides = array<i32>} : memref<8x2x16xbf16, #tpu.memory_space<vmem>>, vector<1x2x16xbf16>,
    %c2 = arith.constant 2 : index
    %c0_23 = arith.constant 0 : index
    %c0_24 = arith.constant 0 : index
    %26 = vector.load %arg2[%c2, %c0_23, %c0_24] : memref<8x2x49xbf16, #tpu.memory_space<vmem>>, vector<1x2x49xbf16>
    %27 = vector.shape_cast %26 : vector<1x2x49xbf16> to vector<2x49xbf16>
    %c2_25 = arith.constant 2 : index
    %c0_26 = arith.constant 0 : index
    %c0_27 = arith.constant 0 : index
    %28 = vector.load %arg1[%c2_25, %c0_26, %c0_27] : memref<8x49x16xbf16, #tpu.memory_space<vmem>>, vector<1x49x16xbf16>
    %29 = vector.shape_cast %28 : vector<1x49x16xbf16> to vector<49x16xbf16>
    %cst_28 = arith.constant dense<0.000000e+00> : vector<2x16xf32>
    %30 = tpu.matmul %27, %29, %cst_28 {dimension_numbers = #tpu.dot_dimension_numbers<[1], [0], [0], [1], [0, 0, 1, 1], [], []>} : vector<2x49xbf16>, vector<49x16xbf16>, vector<2x16xf32> -> vector<2x16xf32>
    %c2_29 = arith.constant 2 : index
    %c0_30 = arith.constant 0 : index
    %c0_31 = arith.constant 0 : index
    %31 = vector.load %arg3[%c2_29, %c0_30, %c0_31] : memref<8x2x1xf32, #tpu.memory_space<vmem>>, vector<1x2x1xf32>
    %32 = vector.shape_cast %31 : vector<1x2x1xf32> to vector<2x1xf32>
    %33 = vector.broadcast %32 : vector<2x1xf32> to vector<2x16xf32>
    %34 = arith.addf %30, %33 : vector<2x16xf32>
    %35 = arith.truncf %34 : vector<2x16xf32> to vector<2x16xbf16>
    %c2_32 = arith.constant 2 : index
    %c0_33 = arith.constant 0 : index
    %c0_34 = arith.constant 0 : index
    %36 = vector.load %arg4[%c2_32, %c0_33, %c0_34] : memref<8x2x16xbf16, #tpu.memory_space<vmem>>, vector<1x2x16xbf16>
    %37 = vector.shape_cast %36 : vector<1x2x16xbf16> to vector<2x16xbf16>
    %38 = vector.shape_cast %35 : vector<2x16xbf16> to vector<1x2x16xbf16>
    tpu.vector_store %arg4[%c2_32, %c0_33, %c0_34], %38 {strides = array<i32>} : memref<8x2x16xbf16, #tpu.memory_space<vmem>>, vector<1x2x16xbf16>,
    %c3 = arith.constant 3 : index
    %c0_35 = arith.constant 0 : index
    %c0_36 = arith.constant 0 : index
    %39 = vector.load %arg2[%c3, %c0_35, %c0_36] : memref<8x2x49xbf16, #tpu.memory_space<vmem>>, vector<1x2x49xbf16>
    %40 = vector.shape_cast %39 : vector<1x2x49xbf16> to vector<2x49xbf16>
    %c3_37 = arith.constant 3 : index
    %c0_38 = arith.constant 0 : index
    %c0_39 = arith.constant 0 : index
    %41 = vector.load %arg1[%c3_37, %c0_38, %c0_39] : memref<8x49x16xbf16, #tpu.memory_space<vmem>>, vector<1x49x16xbf16>
    %42 = vector.shape_cast %41 : vector<1x49x16xbf16> to vector<49x16xbf16>
    %cst_40 = arith.constant dense<0.000000e+00> : vector<2x16xf32>
    %43 = tpu.matmul %40, %42, %cst_40 {dimension_numbers = #tpu.dot_dimension_numbers<[1], [0], [0], [1], [0, 0, 1, 1], [], []>} : vector<2x49xbf16>, vector<49x16xbf16>, vector<2x16xf32> -> vector<2x16xf32>
    %c3_41 = arith.constant 3 : index
    %c0_42 = arith.constant 0 : index
    %c0_43 = arith.constant 0 : index
    %44 = vector.load %arg3[%c3_41, %c0_42, %c0_43] : memref<8x2x1xf32, #tpu.memory_space<vmem>>, vector<1x2x1xf32>
    %45 = vector.shape_cast %44 : vector<1x2x1xf32> to vector<2x1xf32>
    %46 = vector.broadcast %45 : vector<2x1xf32> to vector<2x16xf32>
    %47 = arith.addf %43, %46 : vector<2x16xf32>
    %48 = arith.truncf %47 : vector<2x16xf32> to vector<2x16xbf16>
    %c3_44 = arith.constant 3 : index
    %c0_45 = arith.constant 0 : index
    %c0_46 = arith.constant 0 : index
    %49 = vector.load %arg4[%c3_44, %c0_45, %c0_46] : memref<8x2x16xbf16, #tpu.memory_space<vmem>>, vector<1x2x16xbf16>
    %50 = vector.shape_cast %49 : vector<1x2x16xbf16> to vector<2x16xbf16>
    %51 = vector.shape_cast %48 : vector<2x16xbf16> to vector<1x2x16xbf16>
    tpu.vector_store %arg4[%c3_44, %c0_45, %c0_46], %51 {strides = array<i32>} : memref<8x2x16xbf16, #tpu.memory_space<vmem>>, vector<1x2x16xbf16>,
    %c4 = arith.constant 4 : index
    %c0_47 = arith.constant 0 : index
    %c0_48 = arith.constant 0 : index
    %52 = vector.load %arg2[%c4, %c0_47, %c0_48] : memref<8x2x49xbf16, #tpu.memory_space<vmem>>, vector<1x2x49xbf16>
    %53 = vector.shape_cast %52 : vector<1x2x49xbf16> to vector<2x49xbf16>
    %c4_49 = arith.constant 4 : index
    %c0_50 = arith.constant 0 : index
    %c0_51 = arith.constant 0 : index
    %54 = vector.load %arg1[%c4_49, %c0_50, %c0_51] : memref<8x49x16xbf16, #tpu.memory_space<vmem>>, vector<1x49x16xbf16>
    %55 = vector.shape_cast %54 : vector<1x49x16xbf16> to vector<49x16xbf16>
    %cst_52 = arith.constant dense<0.000000e+00> : vector<2x16xf32>
    %56 = tpu.matmul %53, %55, %cst_52 {dimension_numbers = #tpu.dot_dimension_numbers<[1], [0], [0], [1], [0, 0, 1, 1], [], []>} : vector<2x49xbf16>, vector<49x16xbf16>, vector<2x16xf32> -> vector<2x16xf32>
    %c4_53 = arith.constant 4 : index
    %c0_54 = arith.constant 0 : index
    %c0_55 = arith.constant 0 : index
    %57 = vector.load %arg3[%c4_53, %c0_54, %c0_55] : memref<8x2x1xf32, #tpu.memory_space<vmem>>, vector<1x2x1xf32>
    %58 = vector.shape_cast %57 : vector<1x2x1xf32> to vector<2x1xf32>
    %59 = vector.broadcast %58 : vector<2x1xf32> to vector<2x16xf32>
    %60 = arith.addf %56, %59 : vector<2x16xf32>
    %61 = arith.truncf %60 : vector<2x16xf32> to vector<2x16xbf16>
    %c4_56 = arith.constant 4 : index
    %c0_57 = arith.constant 0 : index
    %c0_58 = arith.constant 0 : index
    %62 = vector.load %arg4[%c4_56, %c0_57, %c0_58] : memref<8x2x16xbf16, #tpu.memory_space<vmem>>, vector<1x2x16xbf16>
    %63 = vector.shape_cast %62 : vector<1x2x16xbf16> to vector<2x16xbf16>
    %64 = vector.shape_cast %61 : vector<2x16xbf16> to vector<1x2x16xbf16>
    tpu.vector_store %arg4[%c4_56, %c0_57, %c0_58], %64 {strides = array<i32>} : memref<8x2x16xbf16, #tpu.memory_space<vmem>>, vector<1x2x16xbf16>,
    %c5 = arith.constant 5 : index
    %c0_59 = arith.constant 0 : index
    %c0_60 = arith.constant 0 : index
    %65 = vector.load %arg2[%c5, %c0_59, %c0_60] : memref<8x2x49xbf16, #tpu.memory_space<vmem>>, vector<1x2x49xbf16>
    %66 = vector.shape_cast %65 : vector<1x2x49xbf16> to vector<2x49xbf16>
    %c5_61 = arith.constant 5 : index
    %c0_62 = arith.constant 0 : index
    %c0_63 = arith.constant 0 : index
    %67 = vector.load %arg1[%c5_61, %c0_62, %c0_63] : memref<8x49x16xbf16, #tpu.memory_space<vmem>>, vector<1x49x16xbf16>
    %68 = vector.shape_cast %67 : vector<1x49x16xbf16> to vector<49x16xbf16>
    %cst_64 = arith.constant dense<0.000000e+00> : vector<2x16xf32>
    %69 = tpu.matmul %66, %68, %cst_64 {dimension_numbers = #tpu.dot_dimension_numbers<[1], [0], [0], [1], [0, 0, 1, 1], [], []>} : vector<2x49xbf16>, vector<49x16xbf16>, vector<2x16xf32> -> vector<2x16xf32>
    %c5_65 = arith.constant 5 : index
    %c0_66 = arith.constant 0 : index
    %c0_67 = arith.constant 0 : index
    %70 = vector.load %arg3[%c5_65, %c0_66, %c0_67] : memref<8x2x1xf32, #tpu.memory_space<vmem>>, vector<1x2x1xf32>
    %71 = vector.shape_cast %70 : vector<1x2x1xf32> to vector<2x1xf32>
    %72 = vector.broadcast %71 : vector<2x1xf32> to vector<2x16xf32>
    %73 = arith.addf %69, %72 : vector<2x16xf32>
    %74 = arith.truncf %73 : vector<2x16xf32> to vector<2x16xbf16>
    %c5_68 = arith.constant 5 : index
    %c0_69 = arith.constant 0 : index
    %c0_70 = arith.constant 0 : index
    %75 = vector.load %arg4[%c5_68, %c0_69, %c0_70] : memref<8x2x16xbf16, #tpu.memory_space<vmem>>, vector<1x2x16xbf16>
    %76 = vector.shape_cast %75 : vector<1x2x16xbf16> to vector<2x16xbf16>
    %77 = vector.shape_cast %74 : vector<2x16xbf16> to vector<1x2x16xbf16>
    tpu.vector_store %arg4[%c5_68, %c0_69, %c0_70], %77 {strides = array<i32>} : memref<8x2x16xbf16, #tpu.memory_space<vmem>>, vector<1x2x16xbf16>,
    %c6 = arith.constant 6 : index
    %c0_71 = arith.constant 0 : index
    %c0_72 = arith.constant 0 : index
    %78 = vector.load %arg2[%c6, %c0_71, %c0_72] : memref<8x2x49xbf16, #tpu.memory_space<vmem>>, vector<1x2x49xbf16>
    %79 = vector.shape_cast %78 : vector<1x2x49xbf16> to vector<2x49xbf16>
    %c6_73 = arith.constant 6 : index
    %c0_74 = arith.constant 0 : index
    %c0_75 = arith.constant 0 : index
    %80 = vector.load %arg1[%c6_73, %c0_74, %c0_75] : memref<8x49x16xbf16, #tpu.memory_space<vmem>>, vector<1x49x16xbf16>
    %81 = vector.shape_cast %80 : vector<1x49x16xbf16> to vector<49x16xbf16>
    %cst_76 = arith.constant dense<0.000000e+00> : vector<2x16xf32>
    %82 = tpu.matmul %79, %81, %cst_76 {dimension_numbers = #tpu.dot_dimension_numbers<[1], [0], [0], [1], [0, 0, 1, 1], [], []>} : vector<2x49xbf16>, vector<49x16xbf16>, vector<2x16xf32> -> vector<2x16xf32>
    %c6_77 = arith.constant 6 : index
    %c0_78 = arith.constant 0 : index
    %c0_79 = arith.constant 0 : index
    %83 = vector.load %arg3[%c6_77, %c0_78, %c0_79] : memref<8x2x1xf32, #tpu.memory_space<vmem>>, vector<1x2x1xf32>
    %84 = vector.shape_cast %83 : vector<1x2x1xf32> to vector<2x1xf32>
    %85 = vector.broadcast %84 : vector<2x1xf32> to vector<2x16xf32>
    %86 = arith.addf %82, %85 : vector<2x16xf32>
    %87 = arith.truncf %86 : vector<2x16xf32> to vector<2x16xbf16>
    %c6_80 = arith.constant 6 : index
    %c0_81 = arith.constant 0 : index
    %c0_82 = arith.constant 0 : index
    %88 = vector.load %arg4[%c6_80, %c0_81, %c0_82] : memref<8x2x16xbf16, #tpu.memory_space<vmem>>, vector<1x2x16xbf16>
    %89 = vector.shape_cast %88 : vector<1x2x16xbf16> to vector<2x16xbf16>
    %90 = vector.shape_cast %87 : vector<2x16xbf16> to vector<1x2x16xbf16>
    tpu.vector_store %arg4[%c6_80, %c0_81, %c0_82], %90 {strides = array<i32>} : memref<8x2x16xbf16, #tpu.memory_space<vmem>>, vector<1x2x16xbf16>,
    %c7 = arith.constant 7 : index
    %c0_83 = arith.constant 0 : index
    %c0_84 = arith.constant 0 : index
    %91 = vector.load %arg2[%c7, %c0_83, %c0_84] : memref<8x2x49xbf16, #tpu.memory_space<vmem>>, vector<1x2x49xbf16>
    %92 = vector.shape_cast %91 : vector<1x2x49xbf16> to vector<2x49xbf16>
    %c7_85 = arith.constant 7 : index
    %c0_86 = arith.constant 0 : index
    %c0_87 = arith.constant 0 : index
    %93 = vector.load %arg1[%c7_85, %c0_86, %c0_87] : memref<8x49x16xbf16, #tpu.memory_space<vmem>>, vector<1x49x16xbf16>
    %94 = vector.shape_cast %93 : vector<1x49x16xbf16> to vector<49x16xbf16>
    %cst_88 = arith.constant dense<0.000000e+00> : vector<2x16xf32>
    %95 = tpu.matmul %92, %94, %cst_88 {dimension_numbers = #tpu.dot_dimension_numbers<[1], [0], [0], [1], [0, 0, 1, 1], [], []>} : vector<2x49xbf16>, vector<49x16xbf16>, vector<2x16xf32> -> vector<2x16xf32>
    %c7_89 = arith.constant 7 : index
    %c0_90 = arith.constant 0 : index
    %c0_91 = arith.constant 0 : index
    %96 = vector.load %arg3[%c7_89, %c0_90, %c0_91] : memref<8x2x1xf32, #tpu.memory_space<vmem>>, vector<1x2x1xf32>
    %97 = vector.shape_cast %96 : vector<1x2x1xf32> to vector<2x1xf32>
    %98 = vector.broadcast %97 : vector<2x1xf32> to vector<2x16xf32>
    %99 = arith.addf %95, %98 : vector<2x16xf32>
    %100 = arith.truncf %99 : vector<2x16xf32> to vector<2x16xbf16>
    %c7_92 = arith.constant 7 : index
    %c0_93 = arith.constant 0 : index
    %c0_94 = arith.constant 0 : index
    %101 = vector.load %arg4[%c7_92, %c0_93, %c0_94] : memref<8x2x16xbf16, #tpu.memory_space<vmem>>, vector<1x2x16xbf16>
    %102 = vector.shape_cast %101 : vector<1x2x16xbf16> to vector<2x16xbf16>
    %103 = vector.shape_cast %100 : vector<2x16xbf16> to vector<1x2x16xbf16>
    tpu.vector_store %arg4[%c7_92, %c0_93, %c0_94], %103 {strides = array<i32>} : memref<8x2x16xbf16, #tpu.memory_space<vmem>>, vector<1x2x16xbf16>,
    return
  }
  func.func @transform_0(%arg0: i32) -> (i32, i32, i32) {
    %c0_i32 = arith.constant 0 : i32
    %c0_i32_0 = arith.constant 0 : i32
    %c0_i32_1 = arith.constant 0 : i32
    return %c0_i32, %c0_i32_0, %arg0 : i32, i32, i32
  }
  func.func @transform_1(%arg0: i32) -> (i32, i32, i32) {
    %c0_i32 = arith.constant 0 : i32
    %c0_i32_0 = arith.constant 0 : i32
    %c0_i32_1 = arith.constant 0 : i32
    %c0_i32_2 = arith.constant 0 : i32
    return %c0_i32, %c0_i32_0, %c0_i32_1 : i32, i32, i32
  }
  func.func @transform_2(%arg0: i32) -> (i32, i32, i32) {
    %c0_i32 = arith.constant 0 : i32
    %c0_i32_0 = arith.constant 0 : i32
    %c0_i32_1 = arith.constant 0 : i32
    %c0_i32_2 = arith.constant 0 : i32
    return %c0_i32, %c0_i32_0, %c0_i32_1 : i32, i32, i32
  }
  func.func @transform_3(%arg0: i32) -> (i32, i32, i32) {
    %c0_i32 = arith.constant 0 : i32
    %c0_i32_0 = arith.constant 0 : i32
    %c0_i32_1 = arith.constant 0 : i32
    return %c0_i32, %c0_i32_0, %arg0 : i32, i32, i32
  }
}

module attributes {stable_mosaic.version = 11 : i64} {
  func.func @_gn_lrelu_kernel(%arg0: i32, %arg1: memref<2x1x16xbf16, #tpu.memory_space<vmem>>, %arg2: memref<2x1x1xf32, #tpu.memory_space<vmem>>, %arg3: memref<2x1x1xf32, #tpu.memory_space<vmem>>, %arg4: memref<2x1x16xbf16, #tpu.memory_space<vmem>>) attributes {dimension_semantics = [#tpu.dimension_semantics<parallel>], iteration_bounds = array<i64: 8>, scalar_prefetch = 0 : i64, scratch_operands = 0 : i64, tpu.core_type = #tpu.core_type<tc>, window_params = [{transform_indices = @transform_0, window_bounds = array<i64: 2, 1, 16>}, {transform_indices = @transform_1, window_bounds = array<i64: 2, 1, 1>}, {transform_indices = @transform_2, window_bounds = array<i64: 2, 1, 1>}, {transform_indices = @transform_3, window_bounds = array<i64: 2, 1, 16>}]} {
    %c0 = arith.constant 0 : index
    %c0_0 = arith.constant 0 : index
    %c0_1 = arith.constant 0 : index
    %0 = vector.load %arg1[%c0, %c0_0, %c0_1] : memref<2x1x16xbf16, #tpu.memory_space<vmem>>, vector<2x1x16xbf16>
    %1 = arith.extf %0 : vector<2x1x16xbf16> to vector<2x1x16xf32>
    %cst = arith.constant dense<0.000000e+00> : vector<1xf32>
    %2 = vector.multi_reduction <add>, %1, %cst [0, 2] : vector<2x1x16xf32> to vector<1xf32>
    %3 = vector.shape_cast %2 : vector<1xf32> to vector<1x1x1xf32>
    %4 = arith.mulf %1, %1 : vector<2x1x16xf32>
    %cst_2 = arith.constant dense<0.000000e+00> : vector<1xf32>
    %5 = vector.multi_reduction <add>, %4, %cst_2 [0, 2] : vector<2x1x16xf32> to vector<1xf32>
    %6 = vector.shape_cast %5 : vector<1xf32> to vector<1x1x1xf32>
    %cst_3 = arith.constant 3.125000e-02 : f32
    %7 = vector.broadcast %cst_3 : f32 to vector<1x1x1xf32>
    %8 = arith.mulf %3, %7 : vector<1x1x1xf32>
    %cst_4 = arith.constant 3.125000e-02 : f32
    %9 = vector.broadcast %cst_4 : f32 to vector<1x1x1xf32>
    %10 = arith.mulf %6, %9 : vector<1x1x1xf32>
    %11 = arith.mulf %8, %8 : vector<1x1x1xf32>
    %12 = arith.subf %10, %11 : vector<1x1x1xf32>
    %13 = vector.broadcast %8 : vector<1x1x1xf32> to vector<2x1x16xf32>
    %14 = arith.subf %1, %13 : vector<2x1x16xf32>
    %cst_5 = arith.constant 9.99999974E-6 : f32
    %15 = vector.broadcast %cst_5 : f32 to vector<1x1x1xf32>
    %16 = arith.addf %12, %15 : vector<1x1x1xf32>
    %17 = math.rsqrt %16 : vector<1x1x1xf32>
    %18 = vector.broadcast %17 : vector<1x1x1xf32> to vector<2x1x16xf32>
    %19 = arith.mulf %14, %18 : vector<2x1x16xf32>
    %c0_6 = arith.constant 0 : index
    %c0_7 = arith.constant 0 : index
    %c0_8 = arith.constant 0 : index
    %20 = vector.load %arg2[%c0_6, %c0_7, %c0_8] : memref<2x1x1xf32, #tpu.memory_space<vmem>>, vector<2x1x1xf32>
    %21 = vector.broadcast %20 : vector<2x1x1xf32> to vector<2x1x16xf32>
    %22 = arith.mulf %19, %21 : vector<2x1x16xf32>
    %c0_9 = arith.constant 0 : index
    %c0_10 = arith.constant 0 : index
    %c0_11 = arith.constant 0 : index
    %23 = vector.load %arg3[%c0_9, %c0_10, %c0_11] : memref<2x1x1xf32, #tpu.memory_space<vmem>>, vector<2x1x1xf32>
    %24 = vector.broadcast %23 : vector<2x1x1xf32> to vector<2x1x16xf32>
    %25 = arith.addf %22, %24 : vector<2x1x16xf32>
    %cst_12 = arith.constant 0.000000e+00 : f32
    %26 = vector.broadcast %cst_12 : f32 to vector<2x1x16xf32>
    %27 = arith.cmpf ogt, %25, %26 : vector<2x1x16xf32>
    %cst_13 = arith.constant 2.000000e-01 : f32
    %28 = vector.broadcast %cst_13 : f32 to vector<2x1x16xf32>
    %29 = arith.mulf %28, %25 : vector<2x1x16xf32>
    %30 = arith.select %27, %25, %29 : vector<2x1x16xi1>, vector<2x1x16xf32>
    %31 = arith.truncf %30 : vector<2x1x16xf32> to vector<2x1x16xbf16>
    %c0_14 = arith.constant 0 : index
    %c0_15 = arith.constant 0 : index
    %c0_16 = arith.constant 0 : index
    %32 = vector.load %arg4[%c0_14, %c0_15, %c0_16] : memref<2x1x16xbf16, #tpu.memory_space<vmem>>, vector<2x1x16xbf16>
    tpu.vector_store %arg4[%c0_14, %c0_15, %c0_16], %31 {strides = array<i32>} : memref<2x1x16xbf16, #tpu.memory_space<vmem>>, vector<2x1x16xbf16>,
    return
  }
  func.func @transform_0(%arg0: i32) -> (i32, i32, i32) {
    %c0_i32 = arith.constant 0 : i32
    %c0_i32_0 = arith.constant 0 : i32
    %c0_i32_1 = arith.constant 0 : i32
    return %arg0, %c0_i32, %c0_i32_0 : i32, i32, i32
  }
  func.func @transform_1(%arg0: i32) -> (i32, i32, i32) {
    %c0_i32 = arith.constant 0 : i32
    %c0_i32_0 = arith.constant 0 : i32
    %c0_i32_1 = arith.constant 0 : i32
    return %arg0, %c0_i32, %c0_i32_0 : i32, i32, i32
  }
  func.func @transform_2(%arg0: i32) -> (i32, i32, i32) {
    %c0_i32 = arith.constant 0 : i32
    %c0_i32_0 = arith.constant 0 : i32
    %c0_i32_1 = arith.constant 0 : i32
    return %arg0, %c0_i32, %c0_i32_0 : i32, i32, i32
  }
  func.func @transform_3(%arg0: i32) -> (i32, i32, i32) {
    %c0_i32 = arith.constant 0 : i32
    %c0_i32_0 = arith.constant 0 : i32
    %c0_i32_1 = arith.constant 0 : i32
    return %arg0, %c0_i32, %c0_i32_0 : i32, i32, i32
  }
}

module attributes {stable_mosaic.version = 11 : i64} {
  func.func @_gconv_matmul_kernel(%arg0: i32, %arg1: memref<8x121x16xbf16, #tpu.memory_space<vmem>>, %arg2: memref<8x2x121xbf16, #tpu.memory_space<vmem>>, %arg3: memref<8x2x1xf32, #tpu.memory_space<vmem>>, %arg4: memref<8x2x16xbf16, #tpu.memory_space<vmem>>) attributes {dimension_semantics = [#tpu.dimension_semantics<parallel>], iteration_bounds = array<i64: 1>, scalar_prefetch = 0 : i64, scratch_operands = 0 : i64, tpu.core_type = #tpu.core_type<tc>, window_params = [{transform_indices = @transform_0, window_bounds = array<i64: 8, 121, 16>}, {pipeline_mode = #tpu.pipeline_mode<synchronous>, transform_indices = @transform_1, window_bounds = array<i64: 8, 2, 121>}, {pipeline_mode = #tpu.pipeline_mode<synchronous>, transform_indices = @transform_2, window_bounds = array<i64: 8, 2, 1>}, {transform_indices = @transform_3, window_bounds = array<i64: 8, 2, 16>}]} {
    %c0 = arith.constant 0 : index
    %c0_0 = arith.constant 0 : index
    %c0_1 = arith.constant 0 : index
    %0 = vector.load %arg2[%c0, %c0_0, %c0_1] : memref<8x2x121xbf16, #tpu.memory_space<vmem>>, vector<1x2x121xbf16>
    %1 = vector.shape_cast %0 : vector<1x2x121xbf16> to vector<2x121xbf16>
    %c0_2 = arith.constant 0 : index
    %c0_3 = arith.constant 0 : index
    %c0_4 = arith.constant 0 : index
    %2 = vector.load %arg1[%c0_2, %c0_3, %c0_4] : memref<8x121x16xbf16, #tpu.memory_space<vmem>>, vector<1x121x16xbf16>
    %3 = vector.shape_cast %2 : vector<1x121x16xbf16> to vector<121x16xbf16>
    %cst = arith.constant dense<0.000000e+00> : vector<2x16xf32>
    %4 = tpu.matmul %1, %3, %cst {dimension_numbers = #tpu.dot_dimension_numbers<[1], [0], [0], [1], [0, 0, 1, 1], [], []>} : vector<2x121xbf16>, vector<121x16xbf16>, vector<2x16xf32> -> vector<2x16xf32>
    %c0_5 = arith.constant 0 : index
    %c0_6 = arith.constant 0 : index
    %c0_7 = arith.constant 0 : index
    %5 = vector.load %arg3[%c0_5, %c0_6, %c0_7] : memref<8x2x1xf32, #tpu.memory_space<vmem>>, vector<1x2x1xf32>
    %6 = vector.shape_cast %5 : vector<1x2x1xf32> to vector<2x1xf32>
    %7 = vector.broadcast %6 : vector<2x1xf32> to vector<2x16xf32>
    %8 = arith.addf %4, %7 : vector<2x16xf32>
    %9 = arith.truncf %8 : vector<2x16xf32> to vector<2x16xbf16>
    %c0_8 = arith.constant 0 : index
    %c0_9 = arith.constant 0 : index
    %c0_10 = arith.constant 0 : index
    %10 = vector.load %arg4[%c0_8, %c0_9, %c0_10] : memref<8x2x16xbf16, #tpu.memory_space<vmem>>, vector<1x2x16xbf16>
    %11 = vector.shape_cast %10 : vector<1x2x16xbf16> to vector<2x16xbf16>
    %12 = vector.shape_cast %9 : vector<2x16xbf16> to vector<1x2x16xbf16>
    tpu.vector_store %arg4[%c0_8, %c0_9, %c0_10], %12 {strides = array<i32>} : memref<8x2x16xbf16, #tpu.memory_space<vmem>>, vector<1x2x16xbf16>,
    %c1 = arith.constant 1 : index
    %c0_11 = arith.constant 0 : index
    %c0_12 = arith.constant 0 : index
    %13 = vector.load %arg2[%c1, %c0_11, %c0_12] : memref<8x2x121xbf16, #tpu.memory_space<vmem>>, vector<1x2x121xbf16>
    %14 = vector.shape_cast %13 : vector<1x2x121xbf16> to vector<2x121xbf16>
    %c1_13 = arith.constant 1 : index
    %c0_14 = arith.constant 0 : index
    %c0_15 = arith.constant 0 : index
    %15 = vector.load %arg1[%c1_13, %c0_14, %c0_15] : memref<8x121x16xbf16, #tpu.memory_space<vmem>>, vector<1x121x16xbf16>
    %16 = vector.shape_cast %15 : vector<1x121x16xbf16> to vector<121x16xbf16>
    %cst_16 = arith.constant dense<0.000000e+00> : vector<2x16xf32>
    %17 = tpu.matmul %14, %16, %cst_16 {dimension_numbers = #tpu.dot_dimension_numbers<[1], [0], [0], [1], [0, 0, 1, 1], [], []>} : vector<2x121xbf16>, vector<121x16xbf16>, vector<2x16xf32> -> vector<2x16xf32>
    %c1_17 = arith.constant 1 : index
    %c0_18 = arith.constant 0 : index
    %c0_19 = arith.constant 0 : index
    %18 = vector.load %arg3[%c1_17, %c0_18, %c0_19] : memref<8x2x1xf32, #tpu.memory_space<vmem>>, vector<1x2x1xf32>
    %19 = vector.shape_cast %18 : vector<1x2x1xf32> to vector<2x1xf32>
    %20 = vector.broadcast %19 : vector<2x1xf32> to vector<2x16xf32>
    %21 = arith.addf %17, %20 : vector<2x16xf32>
    %22 = arith.truncf %21 : vector<2x16xf32> to vector<2x16xbf16>
    %c1_20 = arith.constant 1 : index
    %c0_21 = arith.constant 0 : index
    %c0_22 = arith.constant 0 : index
    %23 = vector.load %arg4[%c1_20, %c0_21, %c0_22] : memref<8x2x16xbf16, #tpu.memory_space<vmem>>, vector<1x2x16xbf16>
    %24 = vector.shape_cast %23 : vector<1x2x16xbf16> to vector<2x16xbf16>
    %25 = vector.shape_cast %22 : vector<2x16xbf16> to vector<1x2x16xbf16>
    tpu.vector_store %arg4[%c1_20, %c0_21, %c0_22], %25 {strides = array<i32>} : memref<8x2x16xbf16, #tpu.memory_space<vmem>>, vector<1x2x16xbf16>,
    %c2 = arith.constant 2 : index
    %c0_23 = arith.constant 0 : index
    %c0_24 = arith.constant 0 : index
    %26 = vector.load %arg2[%c2, %c0_23, %c0_24] : memref<8x2x121xbf16, #tpu.memory_space<vmem>>, vector<1x2x121xbf16>
    %27 = vector.shape_cast %26 : vector<1x2x121xbf16> to vector<2x121xbf16>
    %c2_25 = arith.constant 2 : index
    %c0_26 = arith.constant 0 : index
    %c0_27 = arith.constant 0 : index
    %28 = vector.load %arg1[%c2_25, %c0_26, %c0_27] : memref<8x121x16xbf16, #tpu.memory_space<vmem>>, vector<1x121x16xbf16>
    %29 = vector.shape_cast %28 : vector<1x121x16xbf16> to vector<121x16xbf16>
    %cst_28 = arith.constant dense<0.000000e+00> : vector<2x16xf32>
    %30 = tpu.matmul %27, %29, %cst_28 {dimension_numbers = #tpu.dot_dimension_numbers<[1], [0], [0], [1], [0, 0, 1, 1], [], []>} : vector<2x121xbf16>, vector<121x16xbf16>, vector<2x16xf32> -> vector<2x16xf32>
    %c2_29 = arith.constant 2 : index
    %c0_30 = arith.constant 0 : index
    %c0_31 = arith.constant 0 : index
    %31 = vector.load %arg3[%c2_29, %c0_30, %c0_31] : memref<8x2x1xf32, #tpu.memory_space<vmem>>, vector<1x2x1xf32>
    %32 = vector.shape_cast %31 : vector<1x2x1xf32> to vector<2x1xf32>
    %33 = vector.broadcast %32 : vector<2x1xf32> to vector<2x16xf32>
    %34 = arith.addf %30, %33 : vector<2x16xf32>
    %35 = arith.truncf %34 : vector<2x16xf32> to vector<2x16xbf16>
    %c2_32 = arith.constant 2 : index
    %c0_33 = arith.constant 0 : index
    %c0_34 = arith.constant 0 : index
    %36 = vector.load %arg4[%c2_32, %c0_33, %c0_34] : memref<8x2x16xbf16, #tpu.memory_space<vmem>>, vector<1x2x16xbf16>
    %37 = vector.shape_cast %36 : vector<1x2x16xbf16> to vector<2x16xbf16>
    %38 = vector.shape_cast %35 : vector<2x16xbf16> to vector<1x2x16xbf16>
    tpu.vector_store %arg4[%c2_32, %c0_33, %c0_34], %38 {strides = array<i32>} : memref<8x2x16xbf16, #tpu.memory_space<vmem>>, vector<1x2x16xbf16>,
    %c3 = arith.constant 3 : index
    %c0_35 = arith.constant 0 : index
    %c0_36 = arith.constant 0 : index
    %39 = vector.load %arg2[%c3, %c0_35, %c0_36] : memref<8x2x121xbf16, #tpu.memory_space<vmem>>, vector<1x2x121xbf16>
    %40 = vector.shape_cast %39 : vector<1x2x121xbf16> to vector<2x121xbf16>
    %c3_37 = arith.constant 3 : index
    %c0_38 = arith.constant 0 : index
    %c0_39 = arith.constant 0 : index
    %41 = vector.load %arg1[%c3_37, %c0_38, %c0_39] : memref<8x121x16xbf16, #tpu.memory_space<vmem>>, vector<1x121x16xbf16>
    %42 = vector.shape_cast %41 : vector<1x121x16xbf16> to vector<121x16xbf16>
    %cst_40 = arith.constant dense<0.000000e+00> : vector<2x16xf32>
    %43 = tpu.matmul %40, %42, %cst_40 {dimension_numbers = #tpu.dot_dimension_numbers<[1], [0], [0], [1], [0, 0, 1, 1], [], []>} : vector<2x121xbf16>, vector<121x16xbf16>, vector<2x16xf32> -> vector<2x16xf32>
    %c3_41 = arith.constant 3 : index
    %c0_42 = arith.constant 0 : index
    %c0_43 = arith.constant 0 : index
    %44 = vector.load %arg3[%c3_41, %c0_42, %c0_43] : memref<8x2x1xf32, #tpu.memory_space<vmem>>, vector<1x2x1xf32>
    %45 = vector.shape_cast %44 : vector<1x2x1xf32> to vector<2x1xf32>
    %46 = vector.broadcast %45 : vector<2x1xf32> to vector<2x16xf32>
    %47 = arith.addf %43, %46 : vector<2x16xf32>
    %48 = arith.truncf %47 : vector<2x16xf32> to vector<2x16xbf16>
    %c3_44 = arith.constant 3 : index
    %c0_45 = arith.constant 0 : index
    %c0_46 = arith.constant 0 : index
    %49 = vector.load %arg4[%c3_44, %c0_45, %c0_46] : memref<8x2x16xbf16, #tpu.memory_space<vmem>>, vector<1x2x16xbf16>
    %50 = vector.shape_cast %49 : vector<1x2x16xbf16> to vector<2x16xbf16>
    %51 = vector.shape_cast %48 : vector<2x16xbf16> to vector<1x2x16xbf16>
    tpu.vector_store %arg4[%c3_44, %c0_45, %c0_46], %51 {strides = array<i32>} : memref<8x2x16xbf16, #tpu.memory_space<vmem>>, vector<1x2x16xbf16>,
    %c4 = arith.constant 4 : index
    %c0_47 = arith.constant 0 : index
    %c0_48 = arith.constant 0 : index
    %52 = vector.load %arg2[%c4, %c0_47, %c0_48] : memref<8x2x121xbf16, #tpu.memory_space<vmem>>, vector<1x2x121xbf16>
    %53 = vector.shape_cast %52 : vector<1x2x121xbf16> to vector<2x121xbf16>
    %c4_49 = arith.constant 4 : index
    %c0_50 = arith.constant 0 : index
    %c0_51 = arith.constant 0 : index
    %54 = vector.load %arg1[%c4_49, %c0_50, %c0_51] : memref<8x121x16xbf16, #tpu.memory_space<vmem>>, vector<1x121x16xbf16>
    %55 = vector.shape_cast %54 : vector<1x121x16xbf16> to vector<121x16xbf16>
    %cst_52 = arith.constant dense<0.000000e+00> : vector<2x16xf32>
    %56 = tpu.matmul %53, %55, %cst_52 {dimension_numbers = #tpu.dot_dimension_numbers<[1], [0], [0], [1], [0, 0, 1, 1], [], []>} : vector<2x121xbf16>, vector<121x16xbf16>, vector<2x16xf32> -> vector<2x16xf32>
    %c4_53 = arith.constant 4 : index
    %c0_54 = arith.constant 0 : index
    %c0_55 = arith.constant 0 : index
    %57 = vector.load %arg3[%c4_53, %c0_54, %c0_55] : memref<8x2x1xf32, #tpu.memory_space<vmem>>, vector<1x2x1xf32>
    %58 = vector.shape_cast %57 : vector<1x2x1xf32> to vector<2x1xf32>
    %59 = vector.broadcast %58 : vector<2x1xf32> to vector<2x16xf32>
    %60 = arith.addf %56, %59 : vector<2x16xf32>
    %61 = arith.truncf %60 : vector<2x16xf32> to vector<2x16xbf16>
    %c4_56 = arith.constant 4 : index
    %c0_57 = arith.constant 0 : index
    %c0_58 = arith.constant 0 : index
    %62 = vector.load %arg4[%c4_56, %c0_57, %c0_58] : memref<8x2x16xbf16, #tpu.memory_space<vmem>>, vector<1x2x16xbf16>
    %63 = vector.shape_cast %62 : vector<1x2x16xbf16> to vector<2x16xbf16>
    %64 = vector.shape_cast %61 : vector<2x16xbf16> to vector<1x2x16xbf16>
    tpu.vector_store %arg4[%c4_56, %c0_57, %c0_58], %64 {strides = array<i32>} : memref<8x2x16xbf16, #tpu.memory_space<vmem>>, vector<1x2x16xbf16>,
    %c5 = arith.constant 5 : index
    %c0_59 = arith.constant 0 : index
    %c0_60 = arith.constant 0 : index
    %65 = vector.load %arg2[%c5, %c0_59, %c0_60] : memref<8x2x121xbf16, #tpu.memory_space<vmem>>, vector<1x2x121xbf16>
    %66 = vector.shape_cast %65 : vector<1x2x121xbf16> to vector<2x121xbf16>
    %c5_61 = arith.constant 5 : index
    %c0_62 = arith.constant 0 : index
    %c0_63 = arith.constant 0 : index
    %67 = vector.load %arg1[%c5_61, %c0_62, %c0_63] : memref<8x121x16xbf16, #tpu.memory_space<vmem>>, vector<1x121x16xbf16>
    %68 = vector.shape_cast %67 : vector<1x121x16xbf16> to vector<121x16xbf16>
    %cst_64 = arith.constant dense<0.000000e+00> : vector<2x16xf32>
    %69 = tpu.matmul %66, %68, %cst_64 {dimension_numbers = #tpu.dot_dimension_numbers<[1], [0], [0], [1], [0, 0, 1, 1], [], []>} : vector<2x121xbf16>, vector<121x16xbf16>, vector<2x16xf32> -> vector<2x16xf32>
    %c5_65 = arith.constant 5 : index
    %c0_66 = arith.constant 0 : index
    %c0_67 = arith.constant 0 : index
    %70 = vector.load %arg3[%c5_65, %c0_66, %c0_67] : memref<8x2x1xf32, #tpu.memory_space<vmem>>, vector<1x2x1xf32>
    %71 = vector.shape_cast %70 : vector<1x2x1xf32> to vector<2x1xf32>
    %72 = vector.broadcast %71 : vector<2x1xf32> to vector<2x16xf32>
    %73 = arith.addf %69, %72 : vector<2x16xf32>
    %74 = arith.truncf %73 : vector<2x16xf32> to vector<2x16xbf16>
    %c5_68 = arith.constant 5 : index
    %c0_69 = arith.constant 0 : index
    %c0_70 = arith.constant 0 : index
    %75 = vector.load %arg4[%c5_68, %c0_69, %c0_70] : memref<8x2x16xbf16, #tpu.memory_space<vmem>>, vector<1x2x16xbf16>
    %76 = vector.shape_cast %75 : vector<1x2x16xbf16> to vector<2x16xbf16>
    %77 = vector.shape_cast %74 : vector<2x16xbf16> to vector<1x2x16xbf16>
    tpu.vector_store %arg4[%c5_68, %c0_69, %c0_70], %77 {strides = array<i32>} : memref<8x2x16xbf16, #tpu.memory_space<vmem>>, vector<1x2x16xbf16>,
    %c6 = arith.constant 6 : index
    %c0_71 = arith.constant 0 : index
    %c0_72 = arith.constant 0 : index
    %78 = vector.load %arg2[%c6, %c0_71, %c0_72] : memref<8x2x121xbf16, #tpu.memory_space<vmem>>, vector<1x2x121xbf16>
    %79 = vector.shape_cast %78 : vector<1x2x121xbf16> to vector<2x121xbf16>
    %c6_73 = arith.constant 6 : index
    %c0_74 = arith.constant 0 : index
    %c0_75 = arith.constant 0 : index
    %80 = vector.load %arg1[%c6_73, %c0_74, %c0_75] : memref<8x121x16xbf16, #tpu.memory_space<vmem>>, vector<1x121x16xbf16>
    %81 = vector.shape_cast %80 : vector<1x121x16xbf16> to vector<121x16xbf16>
    %cst_76 = arith.constant dense<0.000000e+00> : vector<2x16xf32>
    %82 = tpu.matmul %79, %81, %cst_76 {dimension_numbers = #tpu.dot_dimension_numbers<[1], [0], [0], [1], [0, 0, 1, 1], [], []>} : vector<2x121xbf16>, vector<121x16xbf16>, vector<2x16xf32> -> vector<2x16xf32>
    %c6_77 = arith.constant 6 : index
    %c0_78 = arith.constant 0 : index
    %c0_79 = arith.constant 0 : index
    %83 = vector.load %arg3[%c6_77, %c0_78, %c0_79] : memref<8x2x1xf32, #tpu.memory_space<vmem>>, vector<1x2x1xf32>
    %84 = vector.shape_cast %83 : vector<1x2x1xf32> to vector<2x1xf32>
    %85 = vector.broadcast %84 : vector<2x1xf32> to vector<2x16xf32>
    %86 = arith.addf %82, %85 : vector<2x16xf32>
    %87 = arith.truncf %86 : vector<2x16xf32> to vector<2x16xbf16>
    %c6_80 = arith.constant 6 : index
    %c0_81 = arith.constant 0 : index
    %c0_82 = arith.constant 0 : index
    %88 = vector.load %arg4[%c6_80, %c0_81, %c0_82] : memref<8x2x16xbf16, #tpu.memory_space<vmem>>, vector<1x2x16xbf16>
    %89 = vector.shape_cast %88 : vector<1x2x16xbf16> to vector<2x16xbf16>
    %90 = vector.shape_cast %87 : vector<2x16xbf16> to vector<1x2x16xbf16>
    tpu.vector_store %arg4[%c6_80, %c0_81, %c0_82], %90 {strides = array<i32>} : memref<8x2x16xbf16, #tpu.memory_space<vmem>>, vector<1x2x16xbf16>,
    %c7 = arith.constant 7 : index
    %c0_83 = arith.constant 0 : index
    %c0_84 = arith.constant 0 : index
    %91 = vector.load %arg2[%c7, %c0_83, %c0_84] : memref<8x2x121xbf16, #tpu.memory_space<vmem>>, vector<1x2x121xbf16>
    %92 = vector.shape_cast %91 : vector<1x2x121xbf16> to vector<2x121xbf16>
    %c7_85 = arith.constant 7 : index
    %c0_86 = arith.constant 0 : index
    %c0_87 = arith.constant 0 : index
    %93 = vector.load %arg1[%c7_85, %c0_86, %c0_87] : memref<8x121x16xbf16, #tpu.memory_space<vmem>>, vector<1x121x16xbf16>
    %94 = vector.shape_cast %93 : vector<1x121x16xbf16> to vector<121x16xbf16>
    %cst_88 = arith.constant dense<0.000000e+00> : vector<2x16xf32>
    %95 = tpu.matmul %92, %94, %cst_88 {dimension_numbers = #tpu.dot_dimension_numbers<[1], [0], [0], [1], [0, 0, 1, 1], [], []>} : vector<2x121xbf16>, vector<121x16xbf16>, vector<2x16xf32> -> vector<2x16xf32>
    %c7_89 = arith.constant 7 : index
    %c0_90 = arith.constant 0 : index
    %c0_91 = arith.constant 0 : index
    %96 = vector.load %arg3[%c7_89, %c0_90, %c0_91] : memref<8x2x1xf32, #tpu.memory_space<vmem>>, vector<1x2x1xf32>
    %97 = vector.shape_cast %96 : vector<1x2x1xf32> to vector<2x1xf32>
    %98 = vector.broadcast %97 : vector<2x1xf32> to vector<2x16xf32>
    %99 = arith.addf %95, %98 : vector<2x16xf32>
    %100 = arith.truncf %99 : vector<2x16xf32> to vector<2x16xbf16>
    %c7_92 = arith.constant 7 : index
    %c0_93 = arith.constant 0 : index
    %c0_94 = arith.constant 0 : index
    %101 = vector.load %arg4[%c7_92, %c0_93, %c0_94] : memref<8x2x16xbf16, #tpu.memory_space<vmem>>, vector<1x2x16xbf16>
    %102 = vector.shape_cast %101 : vector<1x2x16xbf16> to vector<2x16xbf16>
    %103 = vector.shape_cast %100 : vector<2x16xbf16> to vector<1x2x16xbf16>
    tpu.vector_store %arg4[%c7_92, %c0_93, %c0_94], %103 {strides = array<i32>} : memref<8x2x16xbf16, #tpu.memory_space<vmem>>, vector<1x2x16xbf16>,
    return
  }
  func.func @transform_0(%arg0: i32) -> (i32, i32, i32) {
    %c0_i32 = arith.constant 0 : i32
    %c0_i32_0 = arith.constant 0 : i32
    %c0_i32_1 = arith.constant 0 : i32
    return %c0_i32, %c0_i32_0, %arg0 : i32, i32, i32
  }
  func.func @transform_1(%arg0: i32) -> (i32, i32, i32) {
    %c0_i32 = arith.constant 0 : i32
    %c0_i32_0 = arith.constant 0 : i32
    %c0_i32_1 = arith.constant 0 : i32
    %c0_i32_2 = arith.constant 0 : i32
    return %c0_i32, %c0_i32_0, %c0_i32_1 : i32, i32, i32
  }
  func.func @transform_2(%arg0: i32) -> (i32, i32, i32) {
    %c0_i32 = arith.constant 0 : i32
    %c0_i32_0 = arith.constant 0 : i32
    %c0_i32_1 = arith.constant 0 : i32
    %c0_i32_2 = arith.constant 0 : i32
    return %c0_i32, %c0_i32_0, %c0_i32_1 : i32, i32, i32
  }
  func.func @transform_3(%arg0: i32) -> (i32, i32, i32) {
    %c0_i32 = arith.constant 0 : i32
    %c0_i32_0 = arith.constant 0 : i32
    %c0_i32_1 = arith.constant 0 : i32
    return %c0_i32, %c0_i32_0, %arg0 : i32, i32, i32
  }
}

module attributes {stable_mosaic.version = 11 : i64} {
  func.func @_gconv_matmul_kernel(%arg0: i32, %arg1: memref<1x32x16xbf16, #tpu.memory_space<vmem>>, %arg2: memref<1x8x32xbf16, #tpu.memory_space<vmem>>, %arg3: memref<1x8x1xf32, #tpu.memory_space<vmem>>, %arg4: memref<1x8x16xbf16, #tpu.memory_space<vmem>>) attributes {dimension_semantics = [#tpu.dimension_semantics<parallel>], iteration_bounds = array<i64: 1>, scalar_prefetch = 0 : i64, scratch_operands = 0 : i64, tpu.core_type = #tpu.core_type<tc>, window_params = [{transform_indices = @transform_0, window_bounds = array<i64: 1, 32, 16>}, {pipeline_mode = #tpu.pipeline_mode<synchronous>, transform_indices = @transform_1, window_bounds = array<i64: 1, 8, 32>}, {pipeline_mode = #tpu.pipeline_mode<synchronous>, transform_indices = @transform_2, window_bounds = array<i64: 1, 8, 1>}, {transform_indices = @transform_3, window_bounds = array<i64: 1, 8, 16>}]} {
    %c0 = arith.constant 0 : index
    %c0_0 = arith.constant 0 : index
    %c0_1 = arith.constant 0 : index
    %0 = vector.load %arg2[%c0, %c0_0, %c0_1] : memref<1x8x32xbf16, #tpu.memory_space<vmem>>, vector<1x8x32xbf16>
    %1 = vector.shape_cast %0 : vector<1x8x32xbf16> to vector<8x32xbf16>
    %c0_2 = arith.constant 0 : index
    %c0_3 = arith.constant 0 : index
    %c0_4 = arith.constant 0 : index
    %2 = vector.load %arg1[%c0_2, %c0_3, %c0_4] : memref<1x32x16xbf16, #tpu.memory_space<vmem>>, vector<1x32x16xbf16>
    %3 = vector.shape_cast %2 : vector<1x32x16xbf16> to vector<32x16xbf16>
    %cst = arith.constant dense<0.000000e+00> : vector<8x16xf32>
    %4 = tpu.matmul %1, %3, %cst {dimension_numbers = #tpu.dot_dimension_numbers<[1], [0], [0], [1], [0, 0, 1, 1], [], []>} : vector<8x32xbf16>, vector<32x16xbf16>, vector<8x16xf32> -> vector<8x16xf32>
    %c0_5 = arith.constant 0 : index
    %c0_6 = arith.constant 0 : index
    %c0_7 = arith.constant 0 : index
    %5 = vector.load %arg3[%c0_5, %c0_6, %c0_7] : memref<1x8x1xf32, #tpu.memory_space<vmem>>, vector<1x8x1xf32>
    %6 = vector.shape_cast %5 : vector<1x8x1xf32> to vector<8x1xf32>
    %7 = vector.broadcast %6 : vector<8x1xf32> to vector<8x16xf32>
    %8 = arith.addf %4, %7 : vector<8x16xf32>
    %9 = arith.truncf %8 : vector<8x16xf32> to vector<8x16xbf16>
    %c0_8 = arith.constant 0 : index
    %c0_9 = arith.constant 0 : index
    %c0_10 = arith.constant 0 : index
    %10 = vector.load %arg4[%c0_8, %c0_9, %c0_10] : memref<1x8x16xbf16, #tpu.memory_space<vmem>>, vector<1x8x16xbf16>
    %11 = vector.shape_cast %10 : vector<1x8x16xbf16> to vector<8x16xbf16>
    %12 = vector.shape_cast %9 : vector<8x16xbf16> to vector<1x8x16xbf16>
    tpu.vector_store %arg4[%c0_8, %c0_9, %c0_10], %12 {strides = array<i32>} : memref<1x8x16xbf16, #tpu.memory_space<vmem>>, vector<1x8x16xbf16>,
    return
  }
  func.func @transform_0(%arg0: i32) -> (i32, i32, i32) {
    %c0_i32 = arith.constant 0 : i32
    %c0_i32_0 = arith.constant 0 : i32
    %c0_i32_1 = arith.constant 0 : i32
    return %c0_i32, %c0_i32_0, %arg0 : i32, i32, i32
  }
  func.func @transform_1(%arg0: i32) -> (i32, i32, i32) {
    %c0_i32 = arith.constant 0 : i32
    %c0_i32_0 = arith.constant 0 : i32
    %c0_i32_1 = arith.constant 0 : i32
    %c0_i32_2 = arith.constant 0 : i32
    return %c0_i32, %c0_i32_0, %c0_i32_1 : i32, i32, i32
  }
  func.func @transform_2(%arg0: i32) -> (i32, i32, i32) {
    %c0_i32 = arith.constant 0 : i32
    %c0_i32_0 = arith.constant 0 : i32
    %c0_i32_1 = arith.constant 0 : i32
    %c0_i32_2 = arith.constant 0 : i32
    return %c0_i32, %c0_i32_0, %c0_i32_1 : i32, i32, i32
  }
  func.func @transform_3(%arg0: i32) -> (i32, i32, i32) {
    %c0_i32 = arith.constant 0 : i32
    %c0_i32_0 = arith.constant 0 : i32
    %c0_i32_1 = arith.constant 0 : i32
    return %c0_i32, %c0_i32_0, %arg0 : i32, i32, i32
  }
}

module attributes {stable_mosaic.version = 11 : i64} {
  func.func @_gconv_matmul_kernel(%arg0: i32, %arg1: memref<1x72x512xbf16, #tpu.memory_space<vmem>>, %arg2: memref<1x8x72xbf16, #tpu.memory_space<vmem>>, %arg3: memref<1x8x1xf32, #tpu.memory_space<vmem>>, %arg4: memref<1x8x512xbf16, #tpu.memory_space<vmem>>) attributes {dimension_semantics = [#tpu.dimension_semantics<parallel>], iteration_bounds = array<i64: 1>, scalar_prefetch = 0 : i64, scratch_operands = 0 : i64, tpu.core_type = #tpu.core_type<tc>, window_params = [{transform_indices = @transform_0, window_bounds = array<i64: 1, 72, 512>}, {pipeline_mode = #tpu.pipeline_mode<synchronous>, transform_indices = @transform_1, window_bounds = array<i64: 1, 8, 72>}, {pipeline_mode = #tpu.pipeline_mode<synchronous>, transform_indices = @transform_2, window_bounds = array<i64: 1, 8, 1>}, {transform_indices = @transform_3, window_bounds = array<i64: 1, 8, 512>}]} {
    %c0 = arith.constant 0 : index
    %c0_0 = arith.constant 0 : index
    %c0_1 = arith.constant 0 : index
    %0 = vector.load %arg2[%c0, %c0_0, %c0_1] : memref<1x8x72xbf16, #tpu.memory_space<vmem>>, vector<1x8x72xbf16>
    %1 = vector.shape_cast %0 : vector<1x8x72xbf16> to vector<8x72xbf16>
    %c0_2 = arith.constant 0 : index
    %c0_3 = arith.constant 0 : index
    %c0_4 = arith.constant 0 : index
    %2 = vector.load %arg1[%c0_2, %c0_3, %c0_4] : memref<1x72x512xbf16, #tpu.memory_space<vmem>>, vector<1x72x512xbf16>
    %3 = vector.shape_cast %2 : vector<1x72x512xbf16> to vector<72x512xbf16>
    %cst = arith.constant dense<0.000000e+00> : vector<8x512xf32>
    %4 = tpu.matmul %1, %3, %cst {dimension_numbers = #tpu.dot_dimension_numbers<[1], [0], [0], [1], [0, 0, 1, 1], [], []>} : vector<8x72xbf16>, vector<72x512xbf16>, vector<8x512xf32> -> vector<8x512xf32>
    %c0_5 = arith.constant 0 : index
    %c0_6 = arith.constant 0 : index
    %c0_7 = arith.constant 0 : index
    %5 = vector.load %arg3[%c0_5, %c0_6, %c0_7] : memref<1x8x1xf32, #tpu.memory_space<vmem>>, vector<1x8x1xf32>
    %6 = vector.shape_cast %5 : vector<1x8x1xf32> to vector<8x1xf32>
    %7 = vector.broadcast %6 : vector<8x1xf32> to vector<8x512xf32>
    %8 = arith.addf %4, %7 : vector<8x512xf32>
    %9 = arith.truncf %8 : vector<8x512xf32> to vector<8x512xbf16>
    %c0_8 = arith.constant 0 : index
    %c0_9 = arith.constant 0 : index
    %c0_10 = arith.constant 0 : index
    %10 = vector.load %arg4[%c0_8, %c0_9, %c0_10] : memref<1x8x512xbf16, #tpu.memory_space<vmem>>, vector<1x8x512xbf16>
    %11 = vector.shape_cast %10 : vector<1x8x512xbf16> to vector<8x512xbf16>
    %12 = vector.shape_cast %9 : vector<8x512xbf16> to vector<1x8x512xbf16>
    tpu.vector_store %arg4[%c0_8, %c0_9, %c0_10], %12 {strides = array<i32>} : memref<1x8x512xbf16, #tpu.memory_space<vmem>>, vector<1x8x512xbf16>,
    return
  }
  func.func @transform_0(%arg0: i32) -> (i32, i32, i32) {
    %c0_i32 = arith.constant 0 : i32
    %c0_i32_0 = arith.constant 0 : i32
    %c0_i32_1 = arith.constant 0 : i32
    return %c0_i32, %c0_i32_0, %arg0 : i32, i32, i32
  }
  func.func @transform_1(%arg0: i32) -> (i32, i32, i32) {
    %c0_i32 = arith.constant 0 : i32
    %c0_i32_0 = arith.constant 0 : i32
    %c0_i32_1 = arith.constant 0 : i32
    %c0_i32_2 = arith.constant 0 : i32
    return %c0_i32, %c0_i32_0, %c0_i32_1 : i32, i32, i32
  }
  func.func @transform_2(%arg0: i32) -> (i32, i32, i32) {
    %c0_i32 = arith.constant 0 : i32
    %c0_i32_0 = arith.constant 0 : i32
    %c0_i32_1 = arith.constant 0 : i32
    %c0_i32_2 = arith.constant 0 : i32
    return %c0_i32, %c0_i32_0, %c0_i32_1 : i32, i32, i32
  }
  func.func @transform_3(%arg0: i32) -> (i32, i32, i32) {
    %c0_i32 = arith.constant 0 : i32
    %c0_i32_0 = arith.constant 0 : i32
    %c0_i32_1 = arith.constant 0 : i32
    return %c0_i32, %c0_i32_0, %arg0 : i32, i32, i32
  }
}

module attributes {stable_mosaic.version = 11 : i64} {
  func.func @_gconv_matmul_kernel(%arg0: i32, %arg1: memref<1x8x512xbf16, #tpu.memory_space<vmem>>, %arg2: memref<1x1x8xbf16, #tpu.memory_space<vmem>>, %arg3: memref<1x1x1xf32, #tpu.memory_space<vmem>>, %arg4: memref<1x1x512xf32, #tpu.memory_space<vmem>>) attributes {dimension_semantics = [#tpu.dimension_semantics<parallel>], iteration_bounds = array<i64: 1>, scalar_prefetch = 0 : i64, scratch_operands = 0 : i64, tpu.core_type = #tpu.core_type<tc>, window_params = [{transform_indices = @transform_0, window_bounds = array<i64: 1, 8, 512>}, {pipeline_mode = #tpu.pipeline_mode<synchronous>, transform_indices = @transform_1, window_bounds = array<i64: 1, 1, 8>}, {pipeline_mode = #tpu.pipeline_mode<synchronous>, transform_indices = @transform_2, window_bounds = array<i64: 1, 1, 1>}, {transform_indices = @transform_3, window_bounds = array<i64: 1, 1, 512>}]} {
    %c0 = arith.constant 0 : index
    %c0_0 = arith.constant 0 : index
    %c0_1 = arith.constant 0 : index
    %0 = vector.load %arg2[%c0, %c0_0, %c0_1] : memref<1x1x8xbf16, #tpu.memory_space<vmem>>, vector<1x1x8xbf16>
    %1 = vector.shape_cast %0 : vector<1x1x8xbf16> to vector<1x8xbf16>
    %c0_2 = arith.constant 0 : index
    %c0_3 = arith.constant 0 : index
    %c0_4 = arith.constant 0 : index
    %2 = vector.load %arg1[%c0_2, %c0_3, %c0_4] : memref<1x8x512xbf16, #tpu.memory_space<vmem>>, vector<1x8x512xbf16>
    %3 = vector.shape_cast %2 : vector<1x8x512xbf16> to vector<8x512xbf16>
    %cst = arith.constant dense<0.000000e+00> : vector<1x512xf32>
    %4 = tpu.matmul %1, %3, %cst {dimension_numbers = #tpu.dot_dimension_numbers<[1], [0], [0], [1], [0, 0, 1, 1], [], []>} : vector<1x8xbf16>, vector<8x512xbf16>, vector<1x512xf32> -> vector<1x512xf32>
    %c0_5 = arith.constant 0 : index
    %c0_6 = arith.constant 0 : index
    %c0_7 = arith.constant 0 : index
    %5 = vector.load %arg3[%c0_5, %c0_6, %c0_7] : memref<1x1x1xf32, #tpu.memory_space<vmem>>, vector<1x1x1xf32>
    %6 = vector.shape_cast %5 : vector<1x1x1xf32> to vector<1x1xf32>
    %7 = vector.broadcast %6 : vector<1x1xf32> to vector<1x512xf32>
    %8 = arith.addf %4, %7 : vector<1x512xf32>
    %c0_8 = arith.constant 0 : index
    %c0_9 = arith.constant 0 : index
    %c0_10 = arith.constant 0 : index
    %9 = vector.load %arg4[%c0_8, %c0_9, %c0_10] : memref<1x1x512xf32, #tpu.memory_space<vmem>>, vector<1x1x512xf32>
    %10 = vector.shape_cast %9 : vector<1x1x512xf32> to vector<1x512xf32>
    %11 = vector.shape_cast %8 : vector<1x512xf32> to vector<1x1x512xf32>
    tpu.vector_store %arg4[%c0_8, %c0_9, %c0_10], %11 {strides = array<i32>} : memref<1x1x512xf32, #tpu.memory_space<vmem>>, vector<1x1x512xf32>,
    return
  }
  func.func @transform_0(%arg0: i32) -> (i32, i32, i32) {
    %c0_i32 = arith.constant 0 : i32
    %c0_i32_0 = arith.constant 0 : i32
    %c0_i32_1 = arith.constant 0 : i32
    return %c0_i32, %c0_i32_0, %arg0 : i32, i32, i32
  }
  func.func @transform_1(%arg0: i32) -> (i32, i32, i32) {
    %c0_i32 = arith.constant 0 : i32
    %c0_i32_0 = arith.constant 0 : i32
    %c0_i32_1 = arith.constant 0 : i32
    %c0_i32_2 = arith.constant 0 : i32
    return %c0_i32, %c0_i32_0, %c0_i32_1 : i32, i32, i32
  }
  func.func @transform_2(%arg0: i32) -> (i32, i32, i32) {
    %c0_i32 = arith.constant 0 : i32
    %c0_i32_0 = arith.constant 0 : i32
    %c0_i32_1 = arith.constant 0 : i32
    %c0_i32_2 = arith.constant 0 : i32
    return %c0_i32, %c0_i32_0, %c0_i32_1 : i32, i32, i32
  }
  func.func @transform_3(%arg0: i32) -> (i32, i32, i32) {
    %c0_i32 = arith.constant 0 : i32
    %c0_i32_0 = arith.constant 0 : i32
    %c0_i32_1 = arith.constant 0 : i32
    return %c0_i32, %c0_i32_0, %arg0 : i32, i32, i32
  }
}

module attributes {stable_mosaic.version = 11 : i64} {
  func.func @_gconv_matmul_kernel(%arg0: i32, %arg1: memref<1x144x512xbf16, #tpu.memory_space<vmem>>, %arg2: memref<1x8x144xbf16, #tpu.memory_space<vmem>>, %arg3: memref<1x8x1xf32, #tpu.memory_space<vmem>>, %arg4: memref<1x8x512xbf16, #tpu.memory_space<vmem>>) attributes {dimension_semantics = [#tpu.dimension_semantics<parallel>], iteration_bounds = array<i64: 1>, scalar_prefetch = 0 : i64, scratch_operands = 0 : i64, tpu.core_type = #tpu.core_type<tc>, window_params = [{transform_indices = @transform_0, window_bounds = array<i64: 1, 144, 512>}, {pipeline_mode = #tpu.pipeline_mode<synchronous>, transform_indices = @transform_1, window_bounds = array<i64: 1, 8, 144>}, {pipeline_mode = #tpu.pipeline_mode<synchronous>, transform_indices = @transform_2, window_bounds = array<i64: 1, 8, 1>}, {transform_indices = @transform_3, window_bounds = array<i64: 1, 8, 512>}]} {
    %c0 = arith.constant 0 : index
    %c0_0 = arith.constant 0 : index
    %c0_1 = arith.constant 0 : index
    %0 = vector.load %arg2[%c0, %c0_0, %c0_1] : memref<1x8x144xbf16, #tpu.memory_space<vmem>>, vector<1x8x144xbf16>
    %1 = vector.shape_cast %0 : vector<1x8x144xbf16> to vector<8x144xbf16>
    %c0_2 = arith.constant 0 : index
    %c0_3 = arith.constant 0 : index
    %c0_4 = arith.constant 0 : index
    %2 = vector.load %arg1[%c0_2, %c0_3, %c0_4] : memref<1x144x512xbf16, #tpu.memory_space<vmem>>, vector<1x144x512xbf16>
    %3 = vector.shape_cast %2 : vector<1x144x512xbf16> to vector<144x512xbf16>
    %cst = arith.constant dense<0.000000e+00> : vector<8x512xf32>
    %4 = tpu.matmul %1, %3, %cst {dimension_numbers = #tpu.dot_dimension_numbers<[1], [0], [0], [1], [0, 0, 1, 1], [], []>} : vector<8x144xbf16>, vector<144x512xbf16>, vector<8x512xf32> -> vector<8x512xf32>
    %c0_5 = arith.constant 0 : index
    %c0_6 = arith.constant 0 : index
    %c0_7 = arith.constant 0 : index
    %5 = vector.load %arg3[%c0_5, %c0_6, %c0_7] : memref<1x8x1xf32, #tpu.memory_space<vmem>>, vector<1x8x1xf32>
    %6 = vector.shape_cast %5 : vector<1x8x1xf32> to vector<8x1xf32>
    %7 = vector.broadcast %6 : vector<8x1xf32> to vector<8x512xf32>
    %8 = arith.addf %4, %7 : vector<8x512xf32>
    %9 = arith.truncf %8 : vector<8x512xf32> to vector<8x512xbf16>
    %c0_8 = arith.constant 0 : index
    %c0_9 = arith.constant 0 : index
    %c0_10 = arith.constant 0 : index
    %10 = vector.load %arg4[%c0_8, %c0_9, %c0_10] : memref<1x8x512xbf16, #tpu.memory_space<vmem>>, vector<1x8x512xbf16>
    %11 = vector.shape_cast %10 : vector<1x8x512xbf16> to vector<8x512xbf16>
    %12 = vector.shape_cast %9 : vector<8x512xbf16> to vector<1x8x512xbf16>
    tpu.vector_store %arg4[%c0_8, %c0_9, %c0_10], %12 {strides = array<i32>} : memref<1x8x512xbf16, #tpu.memory_space<vmem>>, vector<1x8x512xbf16>,
    return
  }
  func.func @transform_0(%arg0: i32) -> (i32, i32, i32) {
    %c0_i32 = arith.constant 0 : i32
    %c0_i32_0 = arith.constant 0 : i32
    %c0_i32_1 = arith.constant 0 : i32
    return %c0_i32, %c0_i32_0, %arg0 : i32, i32, i32
  }
  func.func @transform_1(%arg0: i32) -> (i32, i32, i32) {
    %c0_i32 = arith.constant 0 : i32
    %c0_i32_0 = arith.constant 0 : i32
    %c0_i32_1 = arith.constant 0 : i32
    %c0_i32_2 = arith.constant 0 : i32
    return %c0_i32, %c0_i32_0, %c0_i32_1 : i32, i32, i32
  }
  func.func @transform_2(%arg0: i32) -> (i32, i32, i32) {
    %c0_i32 = arith.constant 0 : i32
    %c0_i32_0 = arith.constant 0 : i32
    %c0_i32_1 = arith.constant 0 : i32
    %c0_i32_2 = arith.constant 0 : i32
    return %c0_i32, %c0_i32_0, %c0_i32_1 : i32, i32, i32
  }
  func.func @transform_3(%arg0: i32) -> (i32, i32, i32) {
    %c0_i32 = arith.constant 0 : i32
    %c0_i32_0 = arith.constant 0 : i32
    %c0_i32_1 = arith.constant 0 : i32
    return %c0_i32, %c0_i32_0, %arg0 : i32, i32, i32
  }
}

</mosaic_0001>

<bundles_post_ra>
// kernel: simvp_aug_forward.53
= control target key start
LH: loop header
LB: loop body
LE: loop exit
PB: predicated region body
PF: predicated region fallthrough
CT: control target
= control target key end

     0   :  { %8 = vsyncpa [#allocation3], 0  ;;  %s418_s0 = inlined_call_operand.hbm [shape: bf16[1,9,512], index: 0, kind: input, shape index: {}]   ;;  %s419_s1 = inlined_call_operand.hbm [shape: bf16[1,8,9], index: 1, kind: input, shape index: {}]   ;;  %s420_s2 = inlined_call_operand.hbm [shape: f32[1,8,1], index: 2, kind: input, shape index: {}]   ;;  %s421_s3 = inlined_call_operand.hbm [shape: bf16[1,8,512], index: 3, kind: output, shape index: {}]  }
   0x1   :  { %9 = vsyncpa [#allocation6], 0 }
   0x2   :  { %10 = vsyncpa [#allocation4], 0  ;;  %s335_s12 = smov [#allocation5]   ;;  %s336_s14 = smov [#allocation2]  }
   0x3   :  { %s29_s13 = sshll.u32 %s335_s12, 4  ;;  %s16_s15 = sshll.u32 %s336_s14, 4  ;;  %s30_s13 = int_to_ptr.vmem [resolvable:$true] %s29_s13  ;;  %s363_s15 = int_to_ptr.vmem [resolvable:$true] %s16_s15 }
   0x4   :  { %s241_s18 = scalar_lea.hbm %s419_s1, 64 }
   0x5   :  { %p242_p0 = scmp.ne.s32.totalorder %s419_s1, %s241_s18  ;;  %p245_p1 = scmp.lt.u32.totalorder %s241_s18, %s419_s1 }
   0x7   :  { %p247_p2 = pnand %p245_p1, %p242_p0 }
   0x9   :  { %250 = shalt.err (!%p247_p2)
}
   0xa   :  { %s251_s23 = scalar_lea.vmem %s30_s13, 64  ;;  %p256_p4 = scmp.lt.s32.totalorder %s30_s13, %s30_s13 }
   0xb   :  { %p252_p3 = scmp.ne.s32.totalorder %s30_s13, %s251_s23  ;;  %p257_p5 = scmp.lt.s32.totalorder %s251_s23, %s251_s23 }
   0xd   :  { %p258_p6 = por %p257_p5, %p256_p4 }
   0xf   :  { %p259_p7 = pnand %p258_p6, %p252_p3 }
  0x11   :  { %262 = shalt.err (!%p259_p7)
}
  0x12   :  { %32 = dma.hbm_to_vmem [thread:$0]  %s419_s1, 64, %s30_s13, [#allocation6]  }
  0x13   :  { %s263_s28 = scalar_lea.hbm %s418_s0, 512 }
  0x14   :  { %p264_p8 = scmp.ne.s32.totalorder %s418_s0, %s263_s28  ;;  %p267_p9 = scmp.lt.u32.totalorder %s263_s28, %s418_s0 }
  0x16   :  { %p269_p10 = pnand %p267_p9, %p264_p8 }
  0x18   :  { %272 = shalt.err (!%p269_p10)
}
  0x19   :  { %s273_s6 = scalar_lea.vmem %s363_s15, 512  ;;  %p278_p12 = scmp.lt.s32.totalorder %s363_s15, %s363_s15 }
  0x1a   :  { %p274_p11 = scmp.ne.s32.totalorder %s363_s15, %s273_s6  ;;  %p279_p13 = scmp.lt.s32.totalorder %s273_s6, %s273_s6 }
  0x1c   :  { %p280_p0 = por %p279_p13, %p278_p12 }
  0x1e   :  { %p281_p1 = pnand %p280_p0, %p274_p11 }
  0x20   :  { %284 = shalt.err (!%p281_p1)
}
  0x21   :  { %s337_s1 = smov 256   ;;  %s338_s7 = smov 16  }
  0x22   :  { %22 = dma.hbm_to_vmem [thread:$0]  %s418_s0, 512, %s363_s15, [#allocation3], %s337_s1, %s337_s1, %s338_s7  }
  0x23   :  { %s339_s10 = smov [#allocation7]   ;;  %s285_s14 = scalar_lea.hbm %s420_s2, 128 }
  0x24   :  { %s39_s11 = sshll.u32 %s339_s10, 4  ;;  %p286_p2 = scmp.ne.s32.totalorder %s420_s2, %s285_s14  ;;  %s40_s11 = int_to_ptr.vmem [resolvable:$true] %s39_s11 }
  0x25   :  { %p289_p3 = scmp.lt.u32.totalorder %s285_s14, %s420_s2 }
  0x27   :  { %p291_p4 = pnand %p289_p3, %p286_p2 }
  0x29   :  { %294 = shalt.err (!%p291_p4)
}
  0x2a   :  { %s295_s20 = scalar_lea.vmem %s40_s11, 128  ;;  %p300_p6 = scmp.lt.s32.totalorder %s40_s11, %s40_s11 }
  0x2b   :  { %p296_p5 = scmp.ne.s32.totalorder %s40_s11, %s295_s20  ;;  %p301_p7 = scmp.lt.s32.totalorder %s295_s20, %s295_s20 }
  0x2d   :  { %p302_p8 = por %p301_p7, %p300_p6 }
  0x2f   :  { %p303_p9 = pnand %p302_p8, %p296_p5 }
  0x31   :  { %306 = shalt.err (!%p303_p9)
}
  0x32   :  { %42 = dma.hbm_to_vmem [thread:$0]  %s420_s2, 128, %s40_s11, [#allocation6]  }
  0x33   :  { %329 = dma.done.wait [#allocation3], 512  }
  0x34   :  { %330 = vsyncadd [#allocation3], 4294966784 }
  0x35   :  { %331 = dma.done.wait [#allocation6], 192  }
  0x36   :  { %332 = vsyncadd [#allocation6], 4294967104  ;;  %vm84_vm0 = vcmask 1043456   ;;  %v340_v0 = vmov 0   ;;  %vm85_vm1 = vcmask 1044480   ;;  %v341_v1 = vmov 65535  }
  0x37   :  { %132 = vmatprep.mubr.bf16.mxu0 %v340_v0  ;;  %173 = vmatprep.mubr.bf16.mxu1 %v340_v0  ;;  %v86_v2 = vsel %vm84_vm0, 4294967295, %v341_v1  ;;  %v235_v4 = vld [vmem:[#allocation2 + $0x4] ss:$16 sps:$4 sm:$0x1f]   ;;  %v53_v13 = vld [vmem:[#allocation5] sm:$0xf] }
  0x38   :  { %234 = vset.pattern.permute.xlu0 %v340_v0  ;;  %v87_v3 = vsel %vm85_vm1, %v86_v2, 0  ;;  %v237_v5 = vld [vmem:[#allocation2 + $0xc] ss:$16 sps:$4 sm:$0x1f]   ;;  %v58_v10 = vld [vmem:[#allocation7] sm:$0xff]  ;;  %vm80_vm2 = vcmask 72704  }
  0x39   :  { %v92_v6 = vand.u32 %v235_v4, %v87_v3  ;;  %v239_v7 = vld [vmem:[#allocation2] ss:$16 sps:$4 sm:$0x1f]   ;;  %v240_v8 = vld [vmem:[#allocation2 + $0x8] ss:$16 sps:$4 sm:$0x1f]   ;;  %v98_v9 = vand.u32 %v237_v5, %v87_v3  ;;  %61 = vperm.xlu0 %234, %v58_v10  }
  0x3a   :  { %v89_v11 = vand.u32 %v239_v7, %v87_v3  ;;  %v95_v12 = vand.u32 %v240_v8, %v87_v3  ;;  %s342_s2 = smov [#allocation8]  }
  0x3b   :  { %100 = vmatprep.subr.bf16.mxu0 %v92_v6  ;;  %141 = vmatprep.subr.bf16.mxu1 %v98_v9  ;;  %s206_s21 = sshll.u32 %s342_s2, 4  ;;  %s207_s21 = int_to_ptr.vmem [resolvable:$true] %s206_s21 }
  0x3c   :  { %101 = vmatpush1.bf16.msra.mxu0 %v89_v11  ;;  %142 = vmatpush1.bf16.msra.mxu1 %v95_v12  ;;  %s307_s22 = scalar_lea.vmem %s207_s21, 256  ;;  %p312_p11 = scmp.lt.s32.totalorder %s207_s21, %s207_s21 }
  0x3d   :  { %p308_p10 = scmp.ne.s32.totalorder %s207_s21, %s307_s22  ;;  %p313_p12 = scmp.lt.s32.totalorder %s307_s22, %s307_s22 }
  0x3f   :  { %220 = vmatmul.mubr.msk.bf16.vlgmr.msra.gmra.mrb[0].mxu0 %vm80_vm2, %v53_v13  ;;  %221 = vmatmul.mubr.msk.bf16.vlgmr.msra.gmra.mrb[0].mxu1 %vm80_vm2, %v53_v13  ;;  %p314_p13 = por %p313_p12, %p312_p11 }
  0x41   :  { %p315_p0 = pnand %p314_p13, %p308_p10 }
  0xb8   :  { %v62_v14 = vpop.permute.xlu0 %61 }
 0x112   :  { %v134_v15 = vpop.f32.mrb[0].mxu0  ;;  %v175_v16 = vpop.f32.mrb[0].mxu1 }
 0x113   :  { %v135_v17 = vadd.f32 %v134_v15, %v62_v14  ;;  %v176_v18 = vadd.f32 %v175_v16, %v62_v14  ;;  %v136_v19 = vpop.f32.mrb[1].mxu0  ;;  %v177_v20 = vpop.f32.mrb[1].mxu1 }
 0x114   :  { %v137_v21 = vadd.f32 %v136_v19, %v62_v14  ;;  %v178_v22 = vadd.f32 %v177_v20, %v62_v14  ;;  %v138_v23 = vpop.f32.mrb[2].mxu0  ;;  %v179_v24 = vpop.f32.mrb[2].mxu1 }
 0x115   :  { %v139_v25 = vpop.f32.mrb[3].mxu0  ;;  %v180_v26 = vpop.f32.mrb[3].mxu1 }
 0x116   :  { %v224_v27 = vpack.c.bf16 %v137_v21, %v135_v17  ;;  %v225_v28 = vpack.c.bf16 %v178_v22, %v176_v18 }
 0x118   :  { %198 = vst [vmem:[#allocation8] sm:$0xff] %v224_v27  ;;  %199 = vst [vmem:[#allocation8 + $0x8] sm:$0xff] %v225_v28 }
 0x119   :  { %318 = shalt.err (!%p315_p0)
}
 0x11a   :  { %s319_s25 = scalar_lea.hbm %s421_s3, 256 }
 0x11b   :  { %p320_p1 = scmp.ne.s32.totalorder %s421_s3, %s319_s25  ;;  %p323_p2 = scmp.lt.u32.totalorder %s319_s25, %s421_s3 }
 0x11d   :  { %p325_p3 = pnand %p323_p2, %p320_p1 }
 0x11f   :  { %328 = shalt.err (!%p325_p3)
}
 0x120   :  { %209 = dma.vmem_to_hbm [thread:$0]  %s207_s21, 256, %s421_s3, [#allocation4]  }
 0x121   :  { %333 = dma.done.wait [#allocation4], 256  }
 0x122   :  { %334 = vsyncadd [#allocation4], 4294967040 }
 0x123   :  { %213 = vsyncpa [#allocation3], 1 }
 0x124   :  { %214 = vsyncpa [#allocation6], 1 }
 0x125   :  { %215 = vsyncpa [#allocation4], 1 }

// kernel: simvp_aug_forward.54
= control target key start
LH: loop header
LB: loop body
LE: loop exit
PB: predicated region body
PF: predicated region fallthrough
CT: control target
= control target key end

     0   :  { %s758_s12 = smov 0   ;;  %s861_s0 = inlined_call_operand.vmem [shape: bf16[8,2,256], index: 0, kind: input, shape index: {}]   ;;  %s862_s1 = inlined_call_operand.vmem [shape: f32[8,1,1], index: 1, kind: input, shape index: {}]   ;;  %s863_s2 = inlined_call_operand.vmem [shape: f32[8,1,1], index: 2, kind: input, shape index: {}]   ;;  %s864_s3 = inlined_call_operand.vmem [shape: bf16[8,2,256], index: 3, kind: output, shape index: {}]  }
   0x1 LB: > { %s681_s13 = sadd.s32 4294967295, %s732_s12   ;;  %p685_p0 = scmp.ge.s32.totalorder %s732_s12, 1  ;;  %s732_s12 = sphi %s758_s12, %s13_s12  }
   0x2   : > { %p158_p1 = scmp.lt.s32.totalorder %s732_s12, 3 }
   0x4   : > { %p159_p2 = pnand %p685_p0, %p158_p1 }
   0x5   : > { %s686_s14 = sshll.u32 (!%p159_p2), %s681_s13, 2  ;;  %v227_v0 = vlaneseq (!%p159_p2)  ;;  %v734_v1 = vmov (!%p159_p2), 0   ;;  %v735_v2 = vmov (!%p159_p2), 1983009808   ;;  %vm264_vm0 = vcmask (!%p159_p2), 1041408  }
   0x6   : > { %162 = sbr.rel (%p159_p2) target bundleno = 224 (0xe0), region = 32  ;;  %722 = vset.pattern.permute.xlu1 (!%p159_p2), %v734_v1  ;;  %p191_p3 = scmp.lt.s32.totalorder (!%p159_p2), %s686_s14, 7  ;;  %v225_v3 = vunpack.c.l.s4 (!%p159_p2), %v735_v2  ;;  %723 = vset.pattern.permute.xlu0 (!%p159_p2), %v734_v1 }
   0x7   : > { %v766_v4 = vshrl.u32 (!%p159_p2), %v227_v0, 7 }
   0x8   : > { %v226_v5 = vunpack.c.0.s8 (!%p159_p2), %v225_v3 }
   0xa   : > { %v784_v7 = vsub.s32 (!%p159_p2), %v226_v5, %v766_v4 }
   0xd   : > { %s866_s14 = smov (!%p191_p3, %s686_s14), 7 }
   0xe   : > { %s774_s17 = scalar_lea.vmem %s862_s1, %s866_s14  ;;  %s687_s18 = sshll.u32 %s866_s14, 1 }
   0xf   : > { %v692_v6 = vld [vmem:[%s774_s17] ss:$0 sm:$0xff]  ;;  %s194_s21 = scalar_lea.vmem %s861_s0, %s687_s18  ;;  %v693_v11 = vld [vmem:[%s774_s17 + $0x1] ss:$0 sm:$0xff]  ;;  %s797_s24 = scalar_lea.vmem %s863_s2, %s866_s14  ;;  %v695_v39 = vld [vmem:[%s774_s17 + $0x3] ss:$0 sm:$0xff] }
  0x10   : > { %404 = vperm.xlu1 %722, %v692_v6   ;;  %v212_v8 = vld [vmem:[%s194_s21] sm:$0x3]  ;;  %v213_v9 = vld [vmem:[%s194_s21 + $0x2] sm:$0x3]  ;;  %v214_v10 = vld [vmem:[%s194_s21 + $0x4] sm:$0x3]  ;;  %s210_s27 = scalar_lea.vmem %s864_s3, %s687_s18 }
  0x11   : > { %v215_v12 = vld [vmem:[%s194_s21 + $0x6] sm:$0x3]  ;;  %v787_v13 = vunpack.c.l.bf16 %v212_v8  ;;  %v789_v14 = vunpack.c.l.bf16 %v213_v9  ;;  %v791_v15 = vunpack.c.l.bf16 %v214_v10  ;;  %v696_v25 = vld [vmem:[%s797_s24] ss:$0 sm:$0xff]  ;;  %v697_v52 = vld [vmem:[%s797_s24 + $0x1] ss:$0 sm:$0xff] }
  0x12   : > { %v799_v16 = vunpack.c.l.bf16 %v215_v12  ;;  %v698_v62 = vld [vmem:[%s797_s24 + $0x2] ss:$0 sm:$0xff]  ;;  %v699_v6 = vld [vmem:[%s797_s24 + $0x3] ss:$0 sm:$0xff] }
  0x13   : > { %v230_v17 = vrot.slane %v787_v13, %v784_v7  ;;  %v238_v18 = vrot.slane %v789_v14, %v784_v7  ;;  %v282_v19 = vmul.f32 %v787_v13, %v787_v13  ;;  %v246_v20 = vrot.slane %v791_v15, %v784_v7  ;;  %v694_v10 = vld [vmem:[%s774_s17 + $0x2] ss:$0 sm:$0xff] }
  0x14   : > { %408 = vperm.xlu1 %722, %v693_v11   ;;  %v283_v21 = vmul.f32 %v789_v14, %v789_v14  ;;  %v284_v26 = vmul.f32 %v791_v15, %v791_v15  ;;  %v254_v27 = vrot.slane %v799_v16, %v784_v7  ;;  %v285_v33 = vmul.f32 %v799_v16, %v799_v16 }
  0x15   : > { %v231_v22 = vcombine.high %v230_v17, %v230_v17  ;;  %v239_v23 = vcombine.high %v238_v18, %v238_v18  ;;  %v265_v24 = vsel %vm264_vm0, %v230_v17, 0.0  ;;  %v268_v29 = vsel %vm264_vm0, %v238_v18, 0.0 }
  0x16   : > { %v296_v30 = vrot.slane %v282_v19, %v784_v7  ;;  %v247_v31 = vcombine.high %v246_v20, %v246_v20  ;;  %v304_v34 = vrot.slane %v283_v21, %v784_v7  ;;  %v312_v37 = vrot.slane %v284_v26, %v784_v7 }
  0x17   : > { %v266_v28 = vsel %vm264_vm0, %v231_v22, 0.0  ;;  %v270_v35 = vsel %vm264_vm0, %v239_v23, 0.0  ;;  %v272_v42 = vsel %vm264_vm0, %v246_v20, 0.0  ;;  %v255_v45 = vcombine.high %v254_v27, %v254_v27 }
  0x18   : > { %v267_v32 = vadd.f32 %v266_v28, %v265_v24  ;;  %448 = vperm.xlu1 %722, %v696_v25   ;;  %v297_v36 = vcombine.high %v296_v30, %v296_v30  ;;  %v330_v38 = vsel %vm264_vm0, %v296_v30, 0.0  ;;  %v305_v41 = vcombine.high %v304_v34, %v304_v34 }
  0x19   : > { %v333_v44 = vsel %vm264_vm0, %v304_v34, 0.0  ;;  %v274_v48 = vsel %vm264_vm0, %v247_v31, 0.0  ;;  %v313_v49 = vcombine.high %v312_v37, %v312_v37  ;;  %v320_v50 = vrot.slane %v285_v33, %v784_v7 }
  0x1a   : > { %v269_v40 = vadd.f32 %v268_v29, %v267_v32  ;;  %v331_v43 = vsel %vm264_vm0, %v297_v36, 0.0  ;;  %v335_v51 = vsel %vm264_vm0, %v305_v41, 0.0  ;;  %v276_v55 = vsel %vm264_vm0, %v254_v27, 0.0 }
  0x1b   : > { %v332_v47 = vadd.f32 %v331_v43, %v330_v38  ;;  %v337_v56 = vsel %vm264_vm0, %v312_v37, 0.0  ;;  %v278_v59 = vsel %vm264_vm0, %v255_v45, 0.0  ;;  %v321_v60 = vcombine.high %v320_v50, %v320_v50 }
  0x1c   : > { %v271_v46 = vadd.f32 %v270_v35, %v269_v40  ;;  %416 = vperm.xlu1 %722, %v695_v39   ;;  %v339_v61 = vsel %vm264_vm0, %v313_v49, 0.0  ;;  %v341_v1 = vsel %vm264_vm0, %v320_v50, 0.0  ;;  %v736_v21 = vmov 269488144  }
  0x1d   : > { %v334_v54 = vadd.f32 %v333_v44, %v332_v47  ;;  %v343_v5 = vsel %vm264_vm0, %v321_v60, 0.0  ;;  %v353_v22 = vunpack.c.l.s4 %v736_v21 }
  0x1e   : > { %v273_v53 = vadd.f32 %v272_v42, %v271_v46 }
  0x1f   : > { %v336_v58 = vadd.f32 %v335_v51, %v334_v54  ;;  %v354_v27 = vunpack.c.0.s8 %v353_v22 }
  0x20   : > { %v275_v57 = vadd.f32 %v274_v48, %v273_v53  ;;  %452 = vperm.xlu1 %722, %v697_v52   ;;  %v737_v48 = vmov 1966171168  }
  0x21   : > { %v338_v0 = vadd.f32 %v337_v56, %v336_v58  ;;  %v357_v29 = vsub.s32 %v354_v27, %v766_v4  ;;  %v541_v49 = vunpack.c.l.s4 %v737_v48 }
  0x22   : > { %v277_v63 = vadd.f32 %v276_v55, %v275_v57 }
  0x23   : > { %v340_v3 = vadd.f32 %v339_v61, %v338_v0 }
  0x24   : > { %v279_v2 = vadd.f32 %v278_v59, %v277_v63  ;;  %456 = vperm.xlu1 %722, %v698_v62  }
  0x25   : > { %v342_v8 = vadd.f32 %v341_v1, %v340_v3 }
  0x26   : > { %280 = vadd.xlane.f32.xlu0 %v279_v2 }
  0x27   : > { %v344_v9 = vadd.f32 %v343_v5, %v342_v8 }
  0x28   : > { %460 = vperm.xlu1 %722, %v699_v6  }
  0x2a   : > { %345 = vadd.xlane.f32.xlu0 %v344_v9 }
  0x40   : > { %412 = vperm.xlu0 %723, %v694_v10  }
  0x8f   : > { %v405_v11 = vpop.permute.xlu1 %404 }
  0x93   : > { %v409_v12 = vpop.permute.xlu1 %408 }
  0x97   : > { %v449_v19 = vpop.permute.xlu1 %448 }
  0x9b   : > { %v417_v26 = vpop.permute.xlu1 %416 }
  0x9f   : > { %v453_v30 = vpop.permute.xlu1 %452 }
  0xa3   : > { %v457_v34 = vpop.permute.xlu1 %456 }
  0xb3   : > { %v281_v17 = vpop.xlane.xlu0 %280 }
  0xb4   : > { %v347_v18 = vmul.f32 0.0009765625, %v281_v17 }
  0xb6   : > { %v349_v23 = vmul.f32 %v347_v18, %v347_v18  ;;  %v358_v31 = vrot.slane %v347_v18, %v357_v29 }
  0xb7   : > { %v346_v20 = vpop.xlane.xlu0 %345 }
  0xb8   : > { %v348_v24 = vmul.f32 0.0009765625, %v346_v20  ;;  %v360_v33 = vsub.f32 %v787_v13, %v358_v31  ;;  %v361_v35 = vsub.f32 %v789_v14, %v358_v31  ;;  %v363_v36 = vsub.f32 %v799_v16, %v358_v31  ;;  %v461_v13 = vpop.permute.xlu1 %460 }
  0xb9   : > { %v362_v38 = vsub.f32 %v791_v15, %v358_v31  ;;  %v542_v16 = vunpack.c.0.s8 %v541_v49 }
  0xba   : > { %v350_v25 = vsub.f32 %v348_v24, %v349_v23 }
  0xbb   : > { %v545_v63 = vsub.s32 %v542_v16, %v766_v4 }
  0xbc   : > { %v364_v28 = vadd.f32 1e-05, %v350_v25 }
  0xbe   : > { %724 = vrsqrt.f32 %v364_v28 }
  0xbf   : > { %v413_v39 = vpop.permute.xlu0 %412 }
  0xc8   : > { %v725_v32 = vpop.eup %724 }
  0xc9   : > { %v373_v37 = vrot.slane %v725_v32, %v357_v29 }
  0xcb   : > { %v375_v40 = vmul.f32 %v373_v37, %v360_v33  ;;  %v376_v41 = vmul.f32 %v373_v37, %v361_v35  ;;  %v378_v42 = vmul.f32 %v373_v37, %v363_v36  ;;  %v377_v43 = vmul.f32 %v373_v37, %v362_v38 }
  0xcd   : > { %v419_v44 = vmul.f32 %v405_v11, %v375_v40  ;;  %v420_v45 = vmul.f32 %v409_v12, %v376_v41  ;;  %v422_v46 = vmul.f32 %v417_v26, %v378_v42  ;;  %v421_v47 = vmul.f32 %v413_v39, %v377_v43 }
  0xcf   : > { %v463_v50 = vadd.f32 %v449_v19, %v419_v44  ;;  %v464_v51 = vadd.f32 %v453_v30, %v420_v45  ;;  %v466_v14 = vadd.f32 %v461_v13, %v422_v46  ;;  %v465_v52 = vadd.f32 %v457_v34, %v421_v47 }
  0xd1   : > { %vm467_vm1 = vcmp.gt.f32.partialorder %v463_v50, 0.0  ;;  %vm468_vm2 = vcmp.gt.f32.partialorder %v464_v51, 0.0  ;;  %vm470_vm3 = vcmp.gt.f32.partialorder %v466_v14, 0.0  ;;  %v471_v15 = vmul.f32 0.2, %v463_v50 }
  0xd2   : > { %v472_v53 = vmul.f32 0.2, %v464_v51  ;;  %v474_v54 = vmul.f32 0.2, %v466_v14  ;;  %vm469_vm4 = vcmp.gt.f32.partialorder %v465_v52, 0.0 }
  0xd3   : > { %v475_v55 = vsel %vm467_vm1, %v463_v50, %v471_v15  ;;  %v473_v56 = vmul.f32 0.2, %v465_v52 }
  0xd4   : > { %v478_v57 = vsel %vm470_vm3, %v466_v14, %v474_v54  ;;  %v476_v58 = vsel %vm468_vm2, %v464_v51, %v472_v53  ;;  %v489_v59 = vrot.slane %v475_v55, %v784_v7 }
  0xd5   : > { %v513_v60 = vrot.slane %v478_v57, %v784_v7  ;;  %v497_v61 = vrot.slane %v476_v58, %v784_v7  ;;  %v477_v62 = vsel %vm469_vm4, %v465_v52, %v473_v56 }
  0xd6   : > { %v490_v0 = vcombine.high %v489_v59, %v489_v59  ;;  %v505_v1 = vrot.slane %v477_v62, %v784_v7 }
  0xd7   : > { %v514_v2 = vcombine.high %v513_v60, %v513_v60  ;;  %v498_v3 = vcombine.high %v497_v61, %v497_v61 }
  0xd8   : > { %v700_v5 = vpack.c.bf16 %v490_v0, %v489_v59  ;;  %v506_v6 = vcombine.high %v505_v1, %v505_v1 }
  0xd9   : > { %v703_v8 = vpack.c.bf16 %v514_v2, %v513_v60  ;;  %v701_v9 = vpack.c.bf16 %v498_v3, %v497_v61 }
  0xda   : > { %v546_v10 = vrot.slane %v700_v5, %v545_v63  ;;  %v702_v11 = vpack.c.bf16 %v506_v6, %v505_v1 }
  0xdb   : > { %v561_v12 = vrot.slane %v701_v9, %v545_v63  ;;  %v591_v4 = vrot.slane %v703_v8, %v545_v63 }
  0xdc   : > { %704 = vst.sshfl [vmem:[%s210_s27] sm:$0x5 pattern:$0x73625140] %v546_v10  ;;  %v576_v17 = vrot.slane %v702_v11, %v545_v63 }
  0xdd   : > { %705 = vst.sshfl [vmem:[%s210_s27 + $0x2] sm:$0x5 pattern:$0x73625140] %v561_v12 }
  0xde   : > { %706 = vst.sshfl [vmem:[%s210_s27 + $0x4] sm:$0x5 pattern:$0x73625140] %v576_v17 }
  0xdf   : > { %707 = vst.sshfl [vmem:[%s210_s27 + $0x6] sm:$0x5 pattern:$0x73625140] %v591_v4 }
  0xe0 PF: > { %s13_s12 = sadd.s32 1, %s732_s12  }
  0xe1   : > { %p10_p4 = scmp.ge.s32.totalorder %s13_s12, 4  }
  0xe3   :  { %12 = sbr.rel (!%p10_p4) target bundleno = 1 (0x1), region = 68 }

// kernel: simvp_aug_forward.55
= control target key start
LH: loop header
LB: loop body
LE: loop exit
PB: predicated region body
PF: predicated region fallthrough
CT: control target
= control target key end

     0   :  { %8 = vsyncpa [#allocation3], 0  ;;  %s381_s0 = inlined_call_operand.hbm [shape: bf16[1,72,128], index: 0, kind: input, shape index: {}]   ;;  %s382_s1 = inlined_call_operand.hbm [shape: bf16[1,8,72], index: 1, kind: input, shape index: {}]   ;;  %s383_s2 = inlined_call_operand.hbm [shape: f32[1,8,1], index: 2, kind: input, shape index: {}]   ;;  %s384_s3 = inlined_call_operand.hbm [shape: bf16[1,8,128], index: 3, kind: output, shape index: {}]  }
   0x1   :  { %9 = vsyncpa [#allocation6], 0 }
   0x2   :  { %10 = vsyncpa [#allocation4], 0  ;;  %s297_s12 = smov [#allocation5]   ;;  %s298_s14 = smov [#allocation2]  }
   0x3   :  { %s29_s13 = sshll.u32 %s297_s12, 4  ;;  %s16_s15 = sshll.u32 %s298_s14, 4  ;;  %s30_s13 = int_to_ptr.vmem [resolvable:$true] %s29_s13  ;;  %s326_s15 = int_to_ptr.vmem [resolvable:$true] %s16_s15 }
   0x4   :  { %s203_s18 = scalar_lea.hbm %s382_s1, 64 }
   0x5   :  { %p204_p0 = scmp.ne.s32.totalorder %s382_s1, %s203_s18  ;;  %p207_p1 = scmp.lt.u32.totalorder %s203_s18, %s382_s1 }
   0x7   :  { %p209_p2 = pnand %p207_p1, %p204_p0 }
   0x9   :  { %212 = shalt.err (!%p209_p2)
}
   0xa   :  { %s213_s23 = scalar_lea.vmem %s30_s13, 64  ;;  %p218_p4 = scmp.lt.s32.totalorder %s30_s13, %s30_s13 }
   0xb   :  { %p214_p3 = scmp.ne.s32.totalorder %s30_s13, %s213_s23  ;;  %p219_p5 = scmp.lt.s32.totalorder %s213_s23, %s213_s23 }
   0xd   :  { %p220_p6 = por %p219_p5, %p218_p4 }
   0xf   :  { %p221_p7 = pnand %p220_p6, %p214_p3 }
  0x11   :  { %224 = shalt.err (!%p221_p7)
}
  0x12   :  { %32 = dma.hbm_to_vmem [thread:$0]  %s382_s1, 64, %s30_s13, [#allocation6]  }
  0x13   :  { %s225_s28 = scalar_lea.hbm %s381_s0, 576 }
  0x14   :  { %p226_p8 = scmp.ne.s32.totalorder %s381_s0, %s225_s28  ;;  %p229_p9 = scmp.lt.u32.totalorder %s225_s28, %s381_s0 }
  0x16   :  { %p231_p10 = pnand %p229_p9, %p226_p8 }
  0x18   :  { %234 = shalt.err (!%p231_p10)
}
  0x19   :  { %s235_s6 = scalar_lea.vmem %s326_s15, 576  ;;  %p240_p12 = scmp.lt.s32.totalorder %s326_s15, %s326_s15 }
  0x1a   :  { %p236_p11 = scmp.ne.s32.totalorder %s326_s15, %s235_s6  ;;  %p241_p13 = scmp.lt.s32.totalorder %s235_s6, %s235_s6 }
  0x1c   :  { %p242_p0 = por %p241_p13, %p240_p12 }
  0x1e   :  { %p243_p1 = pnand %p242_p0, %p236_p11 }
  0x20   :  { %246 = shalt.err (!%p243_p1)
}
  0x21   :  { %s299_s1 = smov 64   ;;  %s300_s7 = smov 4  }
  0x22   :  { %22 = dma.hbm_to_vmem [thread:$0]  %s381_s0, 576, %s326_s15, [#allocation3], %s299_s1, %s299_s1, %s300_s7  }
  0x23   :  { %s301_s10 = smov [#allocation7]   ;;  %s247_s14 = scalar_lea.hbm %s383_s2, 128 }
  0x24   :  { %s39_s11 = sshll.u32 %s301_s10, 4  ;;  %p248_p2 = scmp.ne.s32.totalorder %s383_s2, %s247_s14  ;;  %s40_s11 = int_to_ptr.vmem [resolvable:$true] %s39_s11 }
  0x25   :  { %p251_p3 = scmp.lt.u32.totalorder %s247_s14, %s383_s2 }
  0x27   :  { %p253_p4 = pnand %p251_p3, %p248_p2 }
  0x29   :  { %256 = shalt.err (!%p253_p4)
}
  0x2a   :  { %s257_s20 = scalar_lea.vmem %s40_s11, 128  ;;  %p262_p6 = scmp.lt.s32.totalorder %s40_s11, %s40_s11 }
  0x2b   :  { %p258_p5 = scmp.ne.s32.totalorder %s40_s11, %s257_s20  ;;  %p263_p7 = scmp.lt.s32.totalorder %s257_s20, %s257_s20 }
  0x2d   :  { %p264_p8 = por %p263_p7, %p262_p6 }
  0x2f   :  { %p265_p9 = pnand %p264_p8, %p258_p5 }
  0x31   :  { %268 = shalt.err (!%p265_p9)
}
  0x32   :  { %42 = dma.hbm_to_vmem [thread:$0]  %s383_s2, 128, %s40_s11, [#allocation6]  }
  0x33   :  { %291 = dma.done.wait [#allocation3], 576  }
  0x34   :  { %292 = vsyncadd [#allocation3], 4294966720 }
  0x35   :  { %293 = dma.done.wait [#allocation6], 192  }
  0x36   :  { %294 = vsyncadd [#allocation6], 4294967104  ;;  %v302_v0 = vmov 0.0   ;;  %vm303_vm0 = vmmov 0   ;;  %v304_v1 = vmov 0   ;;  %v198_v2 = vld [vmem:[#allocation2] sm:$0xff]  }
  0x37   :  { %174 = vmatprep.subr.bf16.mxu0 %v302_v0  ;;  %184 = vmatprep.mubr.msk.bf16.mxu0 %vm303_vm0, %v302_v0  ;;  %v199_v3 = vld [vmem:[#allocation2 + $0x8] sm:$0xff]   ;;  %v200_v5 = vld [vmem:[#allocation2 + $0x10] sm:$0xff]   ;;  %v201_v6 = vld [vmem:[#allocation2 + $0x18] sm:$0xff]   ;;  %vm100_vm1 = vcmask 1043456   ;;  %vm96_vm2 = vcmask 588800   ;;  %s305_s2 = smov [#allocation8]  }
  0x38   :  { %197 = vset.pattern.permute.xlu0 %v304_v1  ;;  %175 = vmatpush3.bf16.msra.mxu0 %v198_v2  ;;  %v63_v4 = vld [vmem:[#allocation7] sm:$0xff]  ;;  %v202_v7 = vld [vmem:[#allocation2 + $0x20] ss:$0 sps:$4 sm:$0xff]   ;;  %v53_v9 = vld [vmem:[#allocation5] sm:$0xf]  ;;  %s152_s21 = sshll.u32 %s305_s2, 4  ;;  %s153_s21 = int_to_ptr.vmem [resolvable:$true] %s152_s21 }
  0x39   :  { %176 = vmatprep.subr.bf16.mxu0 %v302_v0  ;;  %66 = vperm.xlu0 %197, %v63_v4   ;;  %v102_v8 = vsel %vm100_vm1, %v202_v7, 0  ;;  %s269_s22 = scalar_lea.vmem %s153_s21, 64  ;;  %p274_p11 = scmp.lt.s32.totalorder %s153_s21, %s153_s21 }
  0x3a   :  { %p270_p10 = scmp.ne.s32.totalorder %s153_s21, %s269_s22  ;;  %p275_p12 = scmp.lt.s32.totalorder %s269_s22, %s269_s22 }
  0x3c   :  { %177 = vmatpush3.bf16.msra.mxu0 %v199_v3  ;;  %p276_p13 = por %p275_p12, %p274_p11 }
  0x3d   :  { %178 = vmatprep.subr.bf16.mxu0 %v302_v0 }
  0x3e   :  { %p277_p0 = pnand %p276_p13, %p270_p10 }
  0x40   :  { %179 = vmatpush3.bf16.msra.mxu0 %v200_v5 }
  0x41   :  { %180 = vmatprep.subr.bf16.mxu0 %v302_v0 }
  0x44   :  { %181 = vmatpush3.bf16.msra.mxu0 %v201_v6 }
  0x45   :  { %182 = vmatprep.subr.bf16.mxu0 %v302_v0 }
  0x48   :  { %183 = vmatpush3.bf16.msra.mxu0 %v102_v8 }
  0x4b   :  { %185 = vmatmul.mubr.msk.bf16.vlgmr.msra.gmra.mrb[0].mxu0 %vm96_vm2, %v53_v9 }
  0xb8   :  { %v67_v10 = vpop.permute.xlu0 %66 }
 0x11e   :  { %v138_v11 = vpop.f32.mrb[0].mxu0 }
 0x11f   :  { %v139_v12 = vadd.f32 %v138_v11, %v67_v10  ;;  %v186_v13 = vpop.f32.mrb[1].mxu0 }
 0x120   :  { %v141_v14 = vpop.f32.mrb[2].mxu0 }
 0x121   :  { %v144_v15 = vpack.c.bf16 %v139_v12, %v139_v12  ;;  %v187_v16 = vpop.f32.mrb[3].mxu0 }
 0x123   :  { %145 = vst [vmem:[#allocation8] sm:$0xf] %v144_v15 }
 0x124   :  { %280 = shalt.err (!%p277_p0)
}
 0x125   :  { %s281_s25 = scalar_lea.hbm %s384_s3, 64 }
 0x126   :  { %p282_p1 = scmp.ne.s32.totalorder %s384_s3, %s281_s25  ;;  %p285_p2 = scmp.lt.u32.totalorder %s281_s25, %s384_s3 }
 0x128   :  { %p287_p3 = pnand %p285_p2, %p282_p1 }
 0x12a   :  { %290 = shalt.err (!%p287_p3)
}
 0x12b   :  { %155 = dma.vmem_to_hbm [thread:$0]  %s153_s21, 64, %s384_s3, [#allocation4]  }
 0x12c   :  { %295 = dma.done.wait [#allocation4], 64  }
 0x12d   :  { %296 = vsyncadd [#allocation4], 4294967232 }
 0x12e   :  { %159 = vsyncpa [#allocation3], 1 }
 0x12f   :  { %160 = vsyncpa [#allocation6], 1 }
 0x130   :  { %161 = vsyncpa [#allocation4], 1 }

// kernel: simvp_aug_forward.56
= control target key start
LH: loop header
LB: loop body
LE: loop exit
PB: predicated region body
PF: predicated region fallthrough
CT: control target
= control target key end

     0   :  { %s487_s12 = smov 0   ;;  %s530_s0 = inlined_call_operand.vmem [shape: bf16[8,2,64], index: 0, kind: input, shape index: {}]   ;;  %s531_s1 = inlined_call_operand.vmem [shape: f32[8,1,1], index: 1, kind: input, shape index: {}]   ;;  %s532_s2 = inlined_call_operand.vmem [shape: f32[8,1,1], index: 2, kind: input, shape index: {}]   ;;  %s533_s3 = inlined_call_operand.vmem [shape: bf16[8,2,64], index: 3, kind: output, shape index: {}]  }
   0x1 LB: > { %s426_s13 = sadd.s32 4294967295, %s464_s12   ;;  %p430_p0 = scmp.ge.s32.totalorder %s464_s12, 1  ;;  %s464_s12 = sphi %s487_s12, %s13_s12  }
   0x2   : > { %p157_p1 = scmp.lt.s32.totalorder %s464_s12, 3 }
   0x4   : > { %p158_p2 = pnand %p430_p0, %p157_p1 }
   0x5   : > { %s431_s14 = sshll.u32 (!%p158_p2), %s426_s13, 2  ;;  %v466_v0 = vmov (!%p158_p2), 0   ;;  %vm215_vm0 = vcmask (!%p158_p2), 517120   ;;  %vm356_vm5 = vcmask (!%p158_p2), 516096  }
   0x6   : > { %161 = sbr.rel (%p158_p2) target bundleno = 203 (0xcb), region = 32  ;;  %454 = vset.pattern.permute.xlu1 (!%p158_p2), %v466_v0  ;;  %p188_p3 = scmp.lt.s32.totalorder (!%p158_p2), %s431_s14, 7  ;;  %455 = vset.pattern.permute.xlu0 (!%p158_p2), %v466_v0 }
   0xd   : > { %s535_s14 = smov (!%p188_p3, %s431_s14), 7 }
   0xe   : > { %s501_s17 = scalar_lea.vmem %s531_s1, %s535_s14  ;;  %s190_s20 = scalar_lea.vmem %s530_s0, %s535_s14 }
   0xf   : > { %v435_v1 = vld [vmem:[%s501_s17] ss:$0 sm:$0xff]  ;;  %v208_v3 = vld [vmem:[%s190_s20 + $0x1] sm:$0x1]  ;;  %v209_v4 = vld [vmem:[%s190_s20 + $0x2] sm:$0x1]  ;;  %s200_s23 = scalar_lea.vmem %s532_s2, %s535_s14  ;;  %s205_s26 = scalar_lea.vmem %s533_s3, %s535_s14 }
  0x10   : > { %v207_v2 = vld [vmem:[%s190_s20] sm:$0x1]  ;;  %277 = vperm.xlu1 %454, %v435_v1   ;;  %v210_v5 = vld [vmem:[%s190_s20 + $0x3] sm:$0x1]  ;;  %v436_v7 = vld [vmem:[%s501_s17 + $0x1] ss:$0 sm:$0xff]  ;;  %v212_v8 = vunpack.c.l.bf16 %v208_v3  ;;  %v213_v9 = vunpack.c.l.bf16 %v209_v4 }
  0x11   : > { %v211_v6 = vunpack.c.l.bf16 %v207_v2  ;;  %v214_v10 = vunpack.c.l.bf16 %v210_v5  ;;  %v439_v21 = vld [vmem:[%s200_s23] ss:$0 sm:$0xff]  ;;  %v438_v29 = vld [vmem:[%s501_s17 + $0x3] ss:$0 sm:$0xff]  ;;  %v440_v31 = vld [vmem:[%s200_s23 + $0x1] ss:$0 sm:$0xff] }
  0x12   : > { %v217_v13 = vsel %vm215_vm0, %v212_v8, 0.0  ;;  %v219_v14 = vsel %vm215_vm0, %v213_v9, 0.0  ;;  %v226_v15 = vmul.f32 %v212_v8, %v212_v8  ;;  %v227_v17 = vmul.f32 %v213_v9, %v213_v9  ;;  %v441_v32 = vld [vmem:[%s200_s23 + $0x2] ss:$0 sm:$0xff]  ;;  %v442_v33 = vld [vmem:[%s200_s23 + $0x3] ss:$0 sm:$0xff] }
  0x13   : > { %v216_v11 = vsel %vm215_vm0, %v211_v6, 0.0  ;;  %v225_v12 = vmul.f32 %v211_v6, %v211_v6  ;;  %v228_v18 = vmul.f32 %v214_v10, %v214_v10  ;;  %v221_v20 = vsel %vm215_vm0, %v214_v10, 0.0  ;;  %v437_v34 = vld [vmem:[%s501_s17 + $0x2] ss:$0 sm:$0xff] }
  0x14   : > { %281 = vperm.xlu1 %454, %v436_v7   ;;  %v218_v16 = vadd.f32 %v217_v13, %v216_v11  ;;  %v230_v22 = vsel %vm215_vm0, %v226_v15, 0.0  ;;  %v232_v25 = vsel %vm215_vm0, %v227_v17, 0.0 }
  0x15   : > { %v229_v19 = vsel %vm215_vm0, %v225_v12, 0.0  ;;  %v234_v26 = vsel %vm215_vm0, %v228_v18, 0.0 }
  0x16   : > { %v220_v23 = vadd.f32 %v219_v14, %v218_v16  ;;  %v231_v24 = vadd.f32 %v230_v22, %v229_v19 }
  0x18   : > { %v222_v27 = vadd.f32 %v221_v20, %v220_v23  ;;  %321 = vperm.xlu1 %454, %v439_v21   ;;  %v233_v28 = vadd.f32 %v232_v25, %v231_v24 }
  0x1a   : > { %223 = vadd.xlane.f32.xlu0 %v222_v27  ;;  %v235_v30 = vadd.f32 %v234_v26, %v233_v28 }
  0x1c   : > { %289 = vperm.xlu1 %454, %v438_v29  }
  0x1e   : > { %236 = vadd.xlane.f32.xlu0 %v235_v30 }
  0x20   : > { %325 = vperm.xlu1 %454, %v440_v31  }
  0x24   : > { %329 = vperm.xlu1 %454, %v441_v32  }
  0x28   : > { %333 = vperm.xlu1 %454, %v442_v33  }
  0x34   : > { %285 = vperm.xlu0 %455, %v437_v34  }
  0x8f   : > { %v278_v35 = vpop.permute.xlu1 %277 }
  0x93   : > { %v282_v36 = vpop.permute.xlu1 %281 }
  0x97   : > { %v322_v38 = vpop.permute.xlu1 %321 }
  0x9b   : > { %v290_v43 = vpop.permute.xlu1 %289 }
  0x9f   : > { %v326_v46 = vpop.permute.xlu1 %325 }
  0xa3   : > { %v330_v47 = vpop.permute.xlu1 %329 }
  0xa7   : > { %v224_v37 = vpop.xlane.xlu0 %223  ;;  %v334_v62 = vpop.permute.xlu1 %333 }
  0xa8   : > { %v238_v39 = vmul.f32 0.00390625, %v224_v37 }
  0xaa   : > { %v240_v41 = vmul.f32 %v238_v39, %v238_v39  ;;  %v242_v48 = vsub.f32 %v211_v6, %v238_v39  ;;  %v243_v49 = vsub.f32 %v212_v8, %v238_v39  ;;  %v245_v50 = vsub.f32 %v214_v10, %v238_v39 }
  0xab   : > { %v237_v40 = vpop.xlane.xlu0 %236  ;;  %v244_v51 = vsub.f32 %v213_v9, %v238_v39 }
  0xac   : > { %v239_v42 = vmul.f32 0.00390625, %v237_v40 }
  0xae   : > { %v241_v44 = vsub.f32 %v239_v42, %v240_v41 }
  0xb0   : > { %v246_v45 = vadd.f32 1e-05, %v241_v44 }
  0xb2   : > { %456 = vrsqrt.f32 %v246_v45 }
  0xb3   : > { %v286_v53 = vpop.permute.xlu0 %285 }
  0xbc   : > { %v457_v52 = vpop.eup %456 }
  0xbd   : > { %v248_v54 = vmul.f32 %v457_v52, %v242_v48  ;;  %v249_v55 = vmul.f32 %v457_v52, %v243_v49  ;;  %v250_v56 = vmul.f32 %v457_v52, %v244_v51  ;;  %v251_v57 = vmul.f32 %v457_v52, %v245_v50 }
  0xbf   : > { %v292_v58 = vmul.f32 %v278_v35, %v248_v54  ;;  %v293_v59 = vmul.f32 %v282_v36, %v249_v55  ;;  %v295_v60 = vmul.f32 %v290_v43, %v251_v57  ;;  %v294_v61 = vmul.f32 %v286_v53, %v250_v56 }
  0xc1   : > { %v336_v63 = vadd.f32 %v322_v38, %v292_v58  ;;  %v337_v0 = vadd.f32 %v326_v46, %v293_v59  ;;  %v339_v1 = vadd.f32 %v334_v62, %v295_v60  ;;  %v338_v2 = vadd.f32 %v330_v47, %v294_v61 }
  0xc3   : > { %vm340_vm1 = vcmp.gt.f32.partialorder %v336_v63, 0.0  ;;  %vm341_vm2 = vcmp.gt.f32.partialorder %v337_v0, 0.0  ;;  %vm343_vm3 = vcmp.gt.f32.partialorder %v339_v1, 0.0  ;;  %v344_v3 = vmul.f32 0.2, %v336_v63 }
  0xc4   : > { %v345_v4 = vmul.f32 0.2, %v337_v0  ;;  %v347_v5 = vmul.f32 0.2, %v339_v1  ;;  %vm342_vm4 = vcmp.gt.f32.partialorder %v338_v2, 0.0 }
  0xc5   : > { %v348_v6 = vsel %vm340_vm1, %v336_v63, %v344_v3  ;;  %v346_v7 = vmul.f32 0.2, %v338_v2 }
  0xc6   : > { %v349_v8 = vsel %vm341_vm2, %v337_v0, %v345_v4  ;;  %v351_v9 = vsel %vm343_vm3, %v339_v1, %v347_v5  ;;  %v352_v10 = vpack.c.bf16 %v348_v6, %v348_v6 }
  0xc7   : > { %v353_v11 = vpack.c.bf16 %v349_v8, %v349_v8  ;;  %v350_v12 = vsel %vm342_vm4, %v338_v2, %v346_v7  ;;  %v355_v14 = vpack.c.bf16 %v351_v9, %v351_v9 }
  0xc8   : > { %357 = vst.msk [vmem:[%s205_s26] sm:$0x1] %vm356_vm5, %v352_v10  ;;  %v354_v13 = vpack.c.bf16 %v350_v12, %v350_v12 }
  0xc9   : > { %358 = vst.msk [vmem:[%s205_s26 + $0x1] sm:$0x1] %vm356_vm5, %v353_v11  ;;  %360 = vst.msk [vmem:[%s205_s26 + $0x3] sm:$0x1] %vm356_vm5, %v355_v14 }
  0xca   : > { %359 = vst.msk [vmem:[%s205_s26 + $0x2] sm:$0x1] %vm356_vm5, %v354_v13 }
  0xcb PF: > { %s13_s12 = sadd.s32 1, %s464_s12  }
  0xcc   : > { %p10_p4 = scmp.ge.s32.totalorder %s13_s12, 4  }
  0xce   :  { %12 = sbr.rel (!%p10_p4) target bundleno = 1 (0x1), region = 68 }

// kernel: simvp_aug_forward.59
= control target key start
LH: loop header
LB: loop body
LE: loop exit
PB: predicated region body
PF: predicated region fallthrough
CT: control target
= control target key end

     0   :  { %8 = vsyncpa [#allocation3], 0  ;;  %s382_s0 = inlined_call_operand.hbm [shape: bf16[1,72,32], index: 0, kind: input, shape index: {}]   ;;  %s383_s1 = inlined_call_operand.hbm [shape: bf16[1,8,72], index: 1, kind: input, shape index: {}]   ;;  %s384_s2 = inlined_call_operand.hbm [shape: f32[1,8,1], index: 2, kind: input, shape index: {}]   ;;  %s385_s3 = inlined_call_operand.hbm [shape: bf16[1,8,32], index: 3, kind: output, shape index: {}]  }
   0x1   :  { %9 = vsyncpa [#allocation6], 0 }
   0x2   :  { %10 = vsyncpa [#allocation4], 0  ;;  %s298_s12 = smov [#allocation5]   ;;  %s299_s14 = smov [#allocation2]  }
   0x3   :  { %s29_s13 = sshll.u32 %s298_s12, 4  ;;  %s16_s15 = sshll.u32 %s299_s14, 4  ;;  %s30_s13 = int_to_ptr.vmem [resolvable:$true] %s29_s13  ;;  %s327_s15 = int_to_ptr.vmem [resolvable:$true] %s16_s15 }
   0x4   :  { %s204_s18 = scalar_lea.hbm %s383_s1, 64 }
   0x5   :  { %p205_p0 = scmp.ne.s32.totalorder %s383_s1, %s204_s18  ;;  %p208_p1 = scmp.lt.u32.totalorder %s204_s18, %s383_s1 }
   0x7   :  { %p210_p2 = pnand %p208_p1, %p205_p0 }
   0x9   :  { %213 = shalt.err (!%p210_p2)
}
   0xa   :  { %s214_s23 = scalar_lea.vmem %s30_s13, 64  ;;  %p219_p4 = scmp.lt.s32.totalorder %s30_s13, %s30_s13 }
   0xb   :  { %p215_p3 = scmp.ne.s32.totalorder %s30_s13, %s214_s23  ;;  %p220_p5 = scmp.lt.s32.totalorder %s214_s23, %s214_s23 }
   0xd   :  { %p221_p6 = por %p220_p5, %p219_p4 }
   0xf   :  { %p222_p7 = pnand %p221_p6, %p215_p3 }
  0x11   :  { %225 = shalt.err (!%p222_p7)
}
  0x12   :  { %32 = dma.hbm_to_vmem [thread:$0]  %s383_s1, 64, %s30_s13, [#allocation6]  }
  0x13   :  { %s226_s28 = scalar_lea.hbm %s382_s0, 576 }
  0x14   :  { %p227_p8 = scmp.ne.s32.totalorder %s382_s0, %s226_s28  ;;  %p230_p9 = scmp.lt.u32.totalorder %s226_s28, %s382_s0 }
  0x16   :  { %p232_p10 = pnand %p230_p9, %p227_p8 }
  0x18   :  { %235 = shalt.err (!%p232_p10)
}
  0x19   :  { %s236_s6 = scalar_lea.vmem %s327_s15, 576  ;;  %p241_p12 = scmp.lt.s32.totalorder %s327_s15, %s327_s15 }
  0x1a   :  { %p237_p11 = scmp.ne.s32.totalorder %s327_s15, %s236_s6  ;;  %p242_p13 = scmp.lt.s32.totalorder %s236_s6, %s236_s6 }
  0x1c   :  { %p243_p0 = por %p242_p13, %p241_p12 }
  0x1e   :  { %p244_p1 = pnand %p243_p0, %p237_p11 }
  0x20   :  { %247 = shalt.err (!%p244_p1)
}
  0x21   :  { %s300_s1 = smov 64   ;;  %s301_s7 = smov 4  }
  0x22   :  { %22 = dma.hbm_to_vmem [thread:$0]  %s382_s0, 576, %s327_s15, [#allocation3], %s300_s1, %s300_s1, %s301_s7  }
  0x23   :  { %s302_s10 = smov [#allocation7]   ;;  %s248_s14 = scalar_lea.hbm %s384_s2, 128 }
  0x24   :  { %s39_s11 = sshll.u32 %s302_s10, 4  ;;  %p249_p2 = scmp.ne.s32.totalorder %s384_s2, %s248_s14  ;;  %s40_s11 = int_to_ptr.vmem [resolvable:$true] %s39_s11 }
  0x25   :  { %p252_p3 = scmp.lt.u32.totalorder %s248_s14, %s384_s2 }
  0x27   :  { %p254_p4 = pnand %p252_p3, %p249_p2 }
  0x29   :  { %257 = shalt.err (!%p254_p4)
}
  0x2a   :  { %s258_s20 = scalar_lea.vmem %s40_s11, 128  ;;  %p263_p6 = scmp.lt.s32.totalorder %s40_s11, %s40_s11 }
  0x2b   :  { %p259_p5 = scmp.ne.s32.totalorder %s40_s11, %s258_s20  ;;  %p264_p7 = scmp.lt.s32.totalorder %s258_s20, %s258_s20 }
  0x2d   :  { %p265_p8 = por %p264_p7, %p263_p6 }
  0x2f   :  { %p266_p9 = pnand %p265_p8, %p259_p5 }
  0x31   :  { %269 = shalt.err (!%p266_p9)
}
  0x32   :  { %42 = dma.hbm_to_vmem [thread:$0]  %s384_s2, 128, %s40_s11, [#allocation6]  }
  0x33   :  { %292 = dma.done.wait [#allocation3], 576  }
  0x34   :  { %293 = vsyncadd [#allocation3], 4294966720 }
  0x35   :  { %294 = dma.done.wait [#allocation6], 192  }
  0x36   :  { %295 = vsyncadd [#allocation6], 4294967104  ;;  %v303_v0 = vmov 0.0   ;;  %vm304_vm0 = vmmov 0   ;;  %v305_v1 = vmov 0   ;;  %v199_v2 = vld [vmem:[#allocation2] sm:$0xff]  }
  0x37   :  { %175 = vmatprep.subr.bf16.mxu0 %v303_v0  ;;  %185 = vmatprep.mubr.msk.bf16.mxu0 %vm304_vm0, %v303_v0  ;;  %v200_v3 = vld [vmem:[#allocation2 + $0x8] sm:$0xff]   ;;  %v201_v5 = vld [vmem:[#allocation2 + $0x10] sm:$0xff]   ;;  %v202_v6 = vld [vmem:[#allocation2 + $0x18] sm:$0xff]   ;;  %vm100_vm1 = vcmask 1043456   ;;  %vm96_vm2 = vcmask 588800   ;;  %s306_s2 = smov [#allocation8]  }
  0x38   :  { %198 = vset.pattern.permute.xlu0 %v305_v1  ;;  %176 = vmatpush3.bf16.msra.mxu0 %v199_v2  ;;  %v63_v4 = vld [vmem:[#allocation7] sm:$0xff]  ;;  %v203_v7 = vld [vmem:[#allocation2 + $0x20] ss:$0 sps:$4 sm:$0xff]   ;;  %v53_v9 = vld [vmem:[#allocation5] sm:$0xf]  ;;  %s153_s21 = sshll.u32 %s306_s2, 4  ;;  %s154_s21 = int_to_ptr.vmem [resolvable:$true] %s153_s21 }
  0x39   :  { %177 = vmatprep.subr.bf16.mxu0 %v303_v0  ;;  %66 = vperm.xlu0 %198, %v63_v4   ;;  %v102_v8 = vsel %vm100_vm1, %v203_v7, 0  ;;  %vm145_vm3 = vcmask 257024   ;;  %s270_s22 = scalar_lea.vmem %s154_s21, 64  ;;  %p275_p11 = scmp.lt.s32.totalorder %s154_s21, %s154_s21 }
  0x3a   :  { %p271_p10 = scmp.ne.s32.totalorder %s154_s21, %s270_s22  ;;  %p276_p12 = scmp.lt.s32.totalorder %s270_s22, %s270_s22 }
  0x3c   :  { %178 = vmatpush3.bf16.msra.mxu0 %v200_v3  ;;  %p277_p13 = por %p276_p12, %p275_p11 }
  0x3d   :  { %179 = vmatprep.subr.bf16.mxu0 %v303_v0 }
  0x3e   :  { %p278_p0 = pnand %p277_p13, %p271_p10 }
  0x40   :  { %180 = vmatpush3.bf16.msra.mxu0 %v201_v5 }
  0x41   :  { %181 = vmatprep.subr.bf16.mxu0 %v303_v0 }
  0x44   :  { %182 = vmatpush3.bf16.msra.mxu0 %v202_v6 }
  0x45   :  { %183 = vmatprep.subr.bf16.mxu0 %v303_v0 }
  0x48   :  { %184 = vmatpush3.bf16.msra.mxu0 %v102_v8 }
  0x4b   :  { %186 = vmatmul.mubr.msk.bf16.vlgmr.msra.gmra.mrb[0].mxu0 %vm96_vm2, %v53_v9 }
  0xb8   :  { %v67_v10 = vpop.permute.xlu0 %66 }
 0x11e   :  { %v138_v11 = vpop.f32.mrb[0].mxu0 }
 0x11f   :  { %v139_v12 = vadd.f32 %v138_v11, %v67_v10  ;;  %v187_v13 = vpop.f32.mrb[1].mxu0 }
 0x120   :  { %v141_v14 = vpop.f32.mrb[2].mxu0 }
 0x121   :  { %v144_v15 = vpack.c.bf16 %v139_v12, %v139_v12  ;;  %v188_v16 = vpop.f32.mrb[3].mxu0 }
 0x123   :  { %146 = vst.msk [vmem:[#allocation8] sm:$0xf] %vm145_vm3, %v144_v15 }
 0x124   :  { %281 = shalt.err (!%p278_p0)
}
 0x125   :  { %s282_s25 = scalar_lea.hbm %s385_s3, 64 }
 0x126   :  { %p283_p1 = scmp.ne.s32.totalorder %s385_s3, %s282_s25  ;;  %p286_p2 = scmp.lt.u32.totalorder %s282_s25, %s385_s3 }
 0x128   :  { %p288_p3 = pnand %p286_p2, %p283_p1 }
 0x12a   :  { %291 = shalt.err (!%p288_p3)
}
 0x12b   :  { %156 = dma.vmem_to_hbm [thread:$0]  %s154_s21, 64, %s385_s3, [#allocation4]  }
 0x12c   :  { %296 = dma.done.wait [#allocation4], 64  }
 0x12d   :  { %297 = vsyncadd [#allocation4], 4294967232 }
 0x12e   :  { %160 = vsyncpa [#allocation3], 1 }
 0x12f   :  { %161 = vsyncpa [#allocation6], 1 }
 0x130   :  { %162 = vsyncpa [#allocation4], 1 }

// kernel: simvp_aug_forward.61
= control target key start
LH: loop header
LB: loop body
LE: loop exit
PB: predicated region body
PF: predicated region fallthrough
CT: control target
= control target key end

     0   :  { %8 = vsyncpa [#allocation3], 0  ;;  %s330_s0 = inlined_call_operand.hbm [shape: bf16[1,16,16], index: 0, kind: input, shape index: {}]   ;;  %s331_s1 = inlined_call_operand.hbm [shape: bf16[1,8,16], index: 1, kind: input, shape index: {}]   ;;  %s332_s2 = inlined_call_operand.hbm [shape: f32[1,8,1], index: 2, kind: input, shape index: {}]   ;;  %s333_s3 = inlined_call_operand.hbm [shape: bf16[1,8,16], index: 3, kind: output, shape index: {}]  }
   0x1   :  { %9 = vsyncpa [#allocation6], 0 }
   0x2   :  { %10 = vsyncpa [#allocation4], 0  ;;  %s246_s12 = smov [#allocation5]   ;;  %s247_s14 = smov [#allocation2]  }
   0x3   :  { %s29_s13 = sshll.u32 %s246_s12, 4  ;;  %s16_s15 = sshll.u32 %s247_s14, 4  ;;  %s30_s13 = int_to_ptr.vmem [resolvable:$true] %s29_s13  ;;  %s275_s15 = int_to_ptr.vmem [resolvable:$true] %s16_s15 }
   0x4   :  { %s152_s18 = scalar_lea.hbm %s331_s1, 64 }
   0x5   :  { %p153_p0 = scmp.ne.s32.totalorder %s331_s1, %s152_s18  ;;  %p156_p1 = scmp.lt.u32.totalorder %s152_s18, %s331_s1 }
   0x7   :  { %p158_p2 = pnand %p156_p1, %p153_p0 }
   0x9   :  { %161 = shalt.err (!%p158_p2)
}
   0xa   :  { %s162_s23 = scalar_lea.vmem %s30_s13, 64  ;;  %p167_p4 = scmp.lt.s32.totalorder %s30_s13, %s30_s13 }
   0xb   :  { %p163_p3 = scmp.ne.s32.totalorder %s30_s13, %s162_s23  ;;  %p168_p5 = scmp.lt.s32.totalorder %s162_s23, %s162_s23 }
   0xd   :  { %p169_p6 = por %p168_p5, %p167_p4 }
   0xf   :  { %p170_p7 = pnand %p169_p6, %p163_p3 }
  0x11   :  { %173 = shalt.err (!%p170_p7)
}
  0x12   :  { %32 = dma.hbm_to_vmem [thread:$0]  %s331_s1, 64, %s30_s13, [#allocation6]  }
  0x13   :  { %s174_s28 = scalar_lea.hbm %s330_s0, 128 }
  0x14   :  { %p175_p8 = scmp.ne.s32.totalorder %s330_s0, %s174_s28  ;;  %p178_p9 = scmp.lt.u32.totalorder %s174_s28, %s330_s0 }
  0x16   :  { %p180_p10 = pnand %p178_p9, %p175_p8 }
  0x18   :  { %183 = shalt.err (!%p180_p10)
}
  0x19   :  { %s184_s6 = scalar_lea.vmem %s275_s15, 128  ;;  %p189_p12 = scmp.lt.s32.totalorder %s275_s15, %s275_s15 }
  0x1a   :  { %p185_p11 = scmp.ne.s32.totalorder %s275_s15, %s184_s6  ;;  %p190_p13 = scmp.lt.s32.totalorder %s184_s6, %s184_s6 }
  0x1c   :  { %p191_p0 = por %p190_p13, %p189_p12 }
  0x1e   :  { %p192_p1 = pnand %p191_p0, %p185_p11 }
  0x20   :  { %195 = shalt.err (!%p192_p1)
}
  0x21   :  { %s248_s1 = smov 64   ;;  %s249_s7 = smov 4  }
  0x22   :  { %22 = dma.hbm_to_vmem [thread:$0]  %s330_s0, 128, %s275_s15, [#allocation3], %s248_s1, %s248_s1, %s249_s7  }
  0x23   :  { %s250_s10 = smov [#allocation7]   ;;  %s196_s14 = scalar_lea.hbm %s332_s2, 128 }
  0x24   :  { %s39_s11 = sshll.u32 %s250_s10, 4  ;;  %p197_p2 = scmp.ne.s32.totalorder %s332_s2, %s196_s14  ;;  %s40_s11 = int_to_ptr.vmem [resolvable:$true] %s39_s11 }
  0x25   :  { %p200_p3 = scmp.lt.u32.totalorder %s196_s14, %s332_s2 }
  0x27   :  { %p202_p4 = pnand %p200_p3, %p197_p2 }
  0x29   :  { %205 = shalt.err (!%p202_p4)
}
  0x2a   :  { %s206_s20 = scalar_lea.vmem %s40_s11, 128  ;;  %p211_p6 = scmp.lt.s32.totalorder %s40_s11, %s40_s11 }
  0x2b   :  { %p207_p5 = scmp.ne.s32.totalorder %s40_s11, %s206_s20  ;;  %p212_p7 = scmp.lt.s32.totalorder %s206_s20, %s206_s20 }
  0x2d   :  { %p213_p8 = por %p212_p7, %p211_p6 }
  0x2f   :  { %p214_p9 = pnand %p213_p8, %p207_p5 }
  0x31   :  { %217 = shalt.err (!%p214_p9)
}
  0x32   :  { %42 = dma.hbm_to_vmem [thread:$0]  %s332_s2, 128, %s40_s11, [#allocation6]  }
  0x33   :  { %240 = dma.done.wait [#allocation3], 128  }
  0x34   :  { %241 = vsyncadd [#allocation3], 4294967168 }
  0x35   :  { %242 = dma.done.wait [#allocation6], 192  }
  0x36   :  { %243 = vsyncadd [#allocation6], 4294967104  ;;  %v251_v0 = vmov 0.0   ;;  %vm252_vm0 = vmmov 0   ;;  %v253_v1 = vmov 0   ;;  %v151_v2 = vld [vmem:[#allocation2] sm:$0xff]  }
  0x37   :  { %135 = vmatprep.subr.bf16.mxu0 %v251_v0  ;;  %137 = vmatprep.mubr.msk.bf16.mxu0 %vm252_vm0, %v251_v0  ;;  %v56_v3 = vld [vmem:[#allocation7] sm:$0xff]  ;;  %v53_v4 = vld [vmem:[#allocation5] sm:$0xf]  ;;  %vm68_vm1 = vcmask 130048   ;;  %s254_s2 = smov [#allocation8]   ;;  %vm113_vm2 = vcmask 125952  }
  0x38   :  { %150 = vset.pattern.permute.xlu0 %v253_v1  ;;  %136 = vmatpush3.bf16.msra.mxu0 %v151_v2  ;;  %s121_s21 = sshll.u32 %s254_s2, 4  ;;  %s122_s21 = int_to_ptr.vmem [resolvable:$true] %s121_s21 }
  0x39   :  { %59 = vperm.xlu0 %150, %v56_v3   ;;  %s218_s22 = scalar_lea.vmem %s122_s21, 64  ;;  %p223_p11 = scmp.lt.s32.totalorder %s122_s21, %s122_s21 }
  0x3a   :  { %p219_p10 = scmp.ne.s32.totalorder %s122_s21, %s218_s22  ;;  %p224_p12 = scmp.lt.s32.totalorder %s218_s22, %s218_s22 }
  0x3b   :  { %138 = vmatmul.mubr.msk.bf16.vlgmr.msra.gmra.mrb[0].mxu0 %vm68_vm1, %v53_v4 }
  0x3c   :  { %p225_p13 = por %p224_p12, %p223_p11 }
  0x3e   :  { %p226_p0 = pnand %p225_p13, %p219_p10 }
  0xb8   :  { %v60_v5 = vpop.permute.xlu0 %59 }
 0x10e   :  { %v106_v6 = vpop.f32.mrb[0].mxu0 }
 0x10f   :  { %v107_v7 = vadd.f32 %v106_v6, %v60_v5  ;;  %v139_v8 = vpop.f32.mrb[1].mxu0 }
 0x110   :  { %v109_v9 = vpop.f32.mrb[2].mxu0 }
 0x111   :  { %v112_v10 = vpack.c.bf16 %v107_v7, %v107_v7  ;;  %v140_v11 = vpop.f32.mrb[3].mxu0 }
 0x113   :  { %114 = vst.msk [vmem:[#allocation8] sm:$0xf] %vm113_vm2, %v112_v10 }
 0x114   :  { %229 = shalt.err (!%p226_p0)
}
 0x115   :  { %s230_s25 = scalar_lea.hbm %s333_s3, 64 }
 0x116   :  { %p231_p1 = scmp.ne.s32.totalorder %s333_s3, %s230_s25  ;;  %p234_p2 = scmp.lt.u32.totalorder %s230_s25, %s333_s3 }
 0x118   :  { %p236_p3 = pnand %p234_p2, %p231_p1 }
 0x11a   :  { %239 = shalt.err (!%p236_p3)
}
 0x11b   :  { %124 = dma.vmem_to_hbm [thread:$0]  %s122_s21, 64, %s333_s3, [#allocation4]  }
 0x11c   :  { %244 = dma.done.wait [#allocation4], 64  }
 0x11d   :  { %245 = vsyncadd [#allocation4], 4294967232 }
 0x11e   :  { %128 = vsyncpa [#allocation3], 1 }
 0x11f   :  { %129 = vsyncpa [#allocation6], 1 }
 0x120   :  { %130 = vsyncpa [#allocation4], 1 }

// kernel: simvp_aug_forward.60
= control target key start
LH: loop header
LB: loop body
LE: loop exit
PB: predicated region body
PF: predicated region fallthrough
CT: control target
= control target key end

     0   :  { %s487_s12 = smov 0   ;;  %s530_s0 = inlined_call_operand.vmem [shape: bf16[8,2,16], index: 0, kind: input, shape index: {}]   ;;  %s531_s1 = inlined_call_operand.vmem [shape: f32[8,1,1], index: 1, kind: input, shape index: {}]   ;;  %s532_s2 = inlined_call_operand.vmem [shape: f32[8,1,1], index: 2, kind: input, shape index: {}]   ;;  %s533_s3 = inlined_call_operand.vmem [shape: bf16[8,2,16], index: 3, kind: output, shape index: {}]  }
   0x1 LB: > { %s426_s13 = sadd.s32 4294967295, %s464_s12   ;;  %p430_p0 = scmp.ge.s32.totalorder %s464_s12, 1  ;;  %s464_s12 = sphi %s487_s12, %s13_s12  }
   0x2   : > { %p157_p1 = scmp.lt.s32.totalorder %s464_s12, 3 }
   0x4   : > { %p158_p2 = pnand %p430_p0, %p157_p1 }
   0x5   : > { %s431_s14 = sshll.u32 (!%p158_p2), %s426_s13, 2  ;;  %v466_v0 = vmov (!%p158_p2), 0   ;;  %vm215_vm0 = vcmask (!%p158_p2), 123904   ;;  %vm356_vm5 = vcmask (!%p158_p2), 122880  }
   0x6   : > { %161 = sbr.rel (%p158_p2) target bundleno = 203 (0xcb), region = 32  ;;  %454 = vset.pattern.permute.xlu1 (!%p158_p2), %v466_v0  ;;  %p188_p3 = scmp.lt.s32.totalorder (!%p158_p2), %s431_s14, 7  ;;  %455 = vset.pattern.permute.xlu0 (!%p158_p2), %v466_v0 }
   0xd   : > { %s535_s14 = smov (!%p188_p3, %s431_s14), 7 }
   0xe   : > { %s501_s17 = scalar_lea.vmem %s531_s1, %s535_s14  ;;  %s190_s20 = scalar_lea.vmem %s530_s0, %s535_s14 }
   0xf   : > { %v435_v1 = vld [vmem:[%s501_s17] ss:$0 sm:$0xff]  ;;  %v208_v3 = vld [vmem:[%s190_s20 + $0x1] sm:$0x1]  ;;  %v209_v4 = vld [vmem:[%s190_s20 + $0x2] sm:$0x1]  ;;  %s200_s23 = scalar_lea.vmem %s532_s2, %s535_s14  ;;  %s205_s26 = scalar_lea.vmem %s533_s3, %s535_s14 }
  0x10   : > { %v207_v2 = vld [vmem:[%s190_s20] sm:$0x1]  ;;  %277 = vperm.xlu1 %454, %v435_v1   ;;  %v210_v5 = vld [vmem:[%s190_s20 + $0x3] sm:$0x1]  ;;  %v436_v7 = vld [vmem:[%s501_s17 + $0x1] ss:$0 sm:$0xff]  ;;  %v212_v8 = vunpack.c.l.bf16 %v208_v3  ;;  %v213_v9 = vunpack.c.l.bf16 %v209_v4 }
  0x11   : > { %v211_v6 = vunpack.c.l.bf16 %v207_v2  ;;  %v214_v10 = vunpack.c.l.bf16 %v210_v5  ;;  %v439_v21 = vld [vmem:[%s200_s23] ss:$0 sm:$0xff]  ;;  %v438_v29 = vld [vmem:[%s501_s17 + $0x3] ss:$0 sm:$0xff]  ;;  %v440_v31 = vld [vmem:[%s200_s23 + $0x1] ss:$0 sm:$0xff] }
  0x12   : > { %v217_v13 = vsel %vm215_vm0, %v212_v8, 0.0  ;;  %v219_v14 = vsel %vm215_vm0, %v213_v9, 0.0  ;;  %v226_v15 = vmul.f32 %v212_v8, %v212_v8  ;;  %v227_v17 = vmul.f32 %v213_v9, %v213_v9  ;;  %v441_v32 = vld [vmem:[%s200_s23 + $0x2] ss:$0 sm:$0xff]  ;;  %v442_v33 = vld [vmem:[%s200_s23 + $0x3] ss:$0 sm:$0xff] }
  0x13   : > { %v216_v11 = vsel %vm215_vm0, %v211_v6, 0.0  ;;  %v225_v12 = vmul.f32 %v211_v6, %v211_v6  ;;  %v228_v18 = vmul.f32 %v214_v10, %v214_v10  ;;  %v221_v20 = vsel %vm215_vm0, %v214_v10, 0.0  ;;  %v437_v34 = vld [vmem:[%s501_s17 + $0x2] ss:$0 sm:$0xff] }
  0x14   : > { %281 = vperm.xlu1 %454, %v436_v7   ;;  %v218_v16 = vadd.f32 %v217_v13, %v216_v11  ;;  %v230_v22 = vsel %vm215_vm0, %v226_v15, 0.0  ;;  %v232_v25 = vsel %vm215_vm0, %v227_v17, 0.0 }
  0x15   : > { %v229_v19 = vsel %vm215_vm0, %v225_v12, 0.0  ;;  %v234_v26 = vsel %vm215_vm0, %v228_v18, 0.0 }
  0x16   : > { %v220_v23 = vadd.f32 %v219_v14, %v218_v16  ;;  %v231_v24 = vadd.f32 %v230_v22, %v229_v19 }
  0x18   : > { %v222_v27 = vadd.f32 %v221_v20, %v220_v23  ;;  %321 = vperm.xlu1 %454, %v439_v21   ;;  %v233_v28 = vadd.f32 %v232_v25, %v231_v24 }
  0x1a   : > { %223 = vadd.xlane.f32.xlu0 %v222_v27  ;;  %v235_v30 = vadd.f32 %v234_v26, %v233_v28 }
  0x1c   : > { %289 = vperm.xlu1 %454, %v438_v29  }
  0x1e   : > { %236 = vadd.xlane.f32.xlu0 %v235_v30 }
  0x20   : > { %325 = vperm.xlu1 %454, %v440_v31  }
  0x24   : > { %329 = vperm.xlu1 %454, %v441_v32  }
  0x28   : > { %333 = vperm.xlu1 %454, %v442_v33  }
  0x34   : > { %285 = vperm.xlu0 %455, %v437_v34  }
  0x8f   : > { %v278_v35 = vpop.permute.xlu1 %277 }
  0x93   : > { %v282_v36 = vpop.permute.xlu1 %281 }
  0x97   : > { %v322_v38 = vpop.permute.xlu1 %321 }
  0x9b   : > { %v290_v43 = vpop.permute.xlu1 %289 }
  0x9f   : > { %v326_v46 = vpop.permute.xlu1 %325 }
  0xa3   : > { %v330_v47 = vpop.permute.xlu1 %329 }
  0xa7   : > { %v224_v37 = vpop.xlane.xlu0 %223  ;;  %v334_v62 = vpop.permute.xlu1 %333 }
  0xa8   : > { %v238_v39 = vmul.f32 0.015625, %v224_v37 }
  0xaa   : > { %v240_v41 = vmul.f32 %v238_v39, %v238_v39  ;;  %v242_v48 = vsub.f32 %v211_v6, %v238_v39  ;;  %v243_v49 = vsub.f32 %v212_v8, %v238_v39  ;;  %v245_v50 = vsub.f32 %v214_v10, %v238_v39 }
  0xab   : > { %v237_v40 = vpop.xlane.xlu0 %236  ;;  %v244_v51 = vsub.f32 %v213_v9, %v238_v39 }
  0xac   : > { %v239_v42 = vmul.f32 0.015625, %v237_v40 }
  0xae   : > { %v241_v44 = vsub.f32 %v239_v42, %v240_v41 }
  0xb0   : > { %v246_v45 = vadd.f32 1e-05, %v241_v44 }
  0xb2   : > { %456 = vrsqrt.f32 %v246_v45 }
  0xb3   : > { %v286_v53 = vpop.permute.xlu0 %285 }
  0xbc   : > { %v457_v52 = vpop.eup %456 }
  0xbd   : > { %v248_v54 = vmul.f32 %v457_v52, %v242_v48  ;;  %v249_v55 = vmul.f32 %v457_v52, %v243_v49  ;;  %v250_v56 = vmul.f32 %v457_v52, %v244_v51  ;;  %v251_v57 = vmul.f32 %v457_v52, %v245_v50 }
  0xbf   : > { %v292_v58 = vmul.f32 %v278_v35, %v248_v54  ;;  %v293_v59 = vmul.f32 %v282_v36, %v249_v55  ;;  %v295_v60 = vmul.f32 %v290_v43, %v251_v57  ;;  %v294_v61 = vmul.f32 %v286_v53, %v250_v56 }
  0xc1   : > { %v336_v63 = vadd.f32 %v322_v38, %v292_v58  ;;  %v337_v0 = vadd.f32 %v326_v46, %v293_v59  ;;  %v339_v1 = vadd.f32 %v334_v62, %v295_v60  ;;  %v338_v2 = vadd.f32 %v330_v47, %v294_v61 }
  0xc3   : > { %vm340_vm1 = vcmp.gt.f32.partialorder %v336_v63, 0.0  ;;  %vm341_vm2 = vcmp.gt.f32.partialorder %v337_v0, 0.0  ;;  %vm343_vm3 = vcmp.gt.f32.partialorder %v339_v1, 0.0  ;;  %v344_v3 = vmul.f32 0.2, %v336_v63 }
  0xc4   : > { %v345_v4 = vmul.f32 0.2, %v337_v0  ;;  %v347_v5 = vmul.f32 0.2, %v339_v1  ;;  %vm342_vm4 = vcmp.gt.f32.partialorder %v338_v2, 0.0 }
  0xc5   : > { %v348_v6 = vsel %vm340_vm1, %v336_v63, %v344_v3  ;;  %v346_v7 = vmul.f32 0.2, %v338_v2 }
  0xc6   : > { %v349_v8 = vsel %vm341_vm2, %v337_v0, %v345_v4  ;;  %v351_v9 = vsel %vm343_vm3, %v339_v1, %v347_v5  ;;  %v352_v10 = vpack.c.bf16 %v348_v6, %v348_v6 }
  0xc7   : > { %v353_v11 = vpack.c.bf16 %v349_v8, %v349_v8  ;;  %v350_v12 = vsel %vm342_vm4, %v338_v2, %v346_v7  ;;  %v355_v14 = vpack.c.bf16 %v351_v9, %v351_v9 }
  0xc8   : > { %357 = vst.msk [vmem:[%s205_s26] sm:$0x1] %vm356_vm5, %v352_v10  ;;  %v354_v13 = vpack.c.bf16 %v350_v12, %v350_v12 }
  0xc9   : > { %358 = vst.msk [vmem:[%s205_s26 + $0x1] sm:$0x1] %vm356_vm5, %v353_v11  ;;  %360 = vst.msk [vmem:[%s205_s26 + $0x3] sm:$0x1] %vm356_vm5, %v355_v14 }
  0xca   : > { %359 = vst.msk [vmem:[%s205_s26 + $0x2] sm:$0x1] %vm356_vm5, %v354_v13 }
  0xcb PF: > { %s13_s12 = sadd.s32 1, %s464_s12  }
  0xcc   : > { %p10_p4 = scmp.ge.s32.totalorder %s13_s12, 4  }
  0xce   :  { %12 = sbr.rel (!%p10_p4) target bundleno = 1 (0x1), region = 68 }

// kernel: simvp_aug_forward.63
= control target key start
LH: loop header
LB: loop body
LE: loop exit
PB: predicated region body
PF: predicated region fallthrough
CT: control target
= control target key end

     0   :  { %8 = vsyncpa [#allocation3], 0  ;;  %s651_s0 = inlined_call_operand.vmem [shape: bf16[16,1,16], index: 0, kind: input, shape index: {}]   ;;  %s652_s1 = inlined_call_operand.vmem [shape: f32[16,1,1], index: 1, kind: input, shape index: {}]   ;;  %s653_s2 = inlined_call_operand.vmem [shape: f32[16,1,1], index: 2, kind: input, shape index: {}]   ;;  %s654_s3 = inlined_call_operand.hbm [shape: bf16[16,1,16], index: 3, kind: output, shape index: {}]  }
   0x1   :  { %10 = vsyncpa [#allocation3 + $0x1], 0  ;;  %s534_s12 = smov 0   ;;  %s536_s13 = smov 0  }
   0x2   :  { %s538_s14 = smov 0   ;;  %s540_s15 = smov 0  }
   0x3 LB: > { %s555_s16 = sadd.s32 4294967295, %s508_s15   ;;  %s386_s17 = sadd.s32 4294967294, %s508_s15   ;;  %s508_s15 = sphi %s540_s15, %s660_s15   ;;  %s504_s14 = sphi %s538_s14, %s659_s14   ;;  %s500_s13 = sphi %s536_s13, %s658_s13   ;;  %s496_s12 = sphi %s534_s12, %s657_s12  }
   0x4   : > { %s559_s18 = sadd.s32 1, %s508_s15   ;;  %s101_s19 = sadd.s32 1, %s504_s14 }
   0x5   : > { %s98_s20 = ssub.s32 %s508_s15, %s559_s18  ;;  %p111_p0 = scmp.ne.s32.totalorder %s504_s14, %s500_s13 }
   0x6   : > { %p99_p1 = scmp.eq.s32.totalorder %s98_s20, 0  ;;  %p112_p2 = scmp.eq.s32.totalorder %s555_s16, 7 }
   0x7   : > { %p117_p3 = scmp.ne.s32.totalorder %s500_s13, %s496_s12  ;;  %p118_p4 = scmp.eq.s32.totalorder %s386_s17, 7 }
   0x8   : > { %s570_s21 = scalar_select %p99_p1, %s504_s14, %s101_s19  }
   0x9   : > { %p572_p5 = por %p112_p2, %p111_p0  ;;  %p576_p6 = por %p118_p4, %p117_p3 }
   0xa   : > { %p389_p7 = scmp.ge.s32.totalorder %s508_s15, 1  ;;  %p160_p8 = scmp.lt.s32.totalorder %s508_s15, 9 }
   0xc   : > { %p161_p9 = pnand %p389_p7, %p160_p8 }
   0xd   : > { %s391_s24 = sshll.u32 (!%p161_p9), %s555_s16, 1  ;;  %v510_v0 = vmov (!%p161_p9), 0   ;;  %vm211_vm0 = vcmask (!%p161_p9), 122880   ;;  %v241_v24 = vlaneseq (!%p161_p9)  ;;  %s188_s7 = sand.u32 (!%p161_p9), 1, %s500_s13   ;;  %vm287_vm1 = vsmask.f32 (!%p161_p9), 256 }
   0xe   : > { %164 = sbr.rel (%p161_p9) target bundleno = 219 (0xdb), region = 32  ;;  %p192_p10 = scmp.lt.s32.totalorder (!%p161_p9), %s391_s24, 15  ;;  %442 = vset.pattern.permute.xlu1 (!%p161_p9), %v510_v0  ;;  %443 = vset.pattern.permute.xlu0 (!%p161_p9), %v510_v0  ;;  %vm288_vm4 = vmand (!%p161_p9), %vm211_vm0, %vm287_vm1 }
   0xf   : > { %v242_v26 = vshrl.u32 (!%p161_p9), %v241_v24, 7  ;;  %s390_s8 = sshll.u32 (!%p161_p9), %s188_s7, 1  ;;  %s399_s9 = sshll.u32 (!%p161_p9), %s555_s16, 5 }
  0x10   : > { %s190_s10 = scalar_lea.vmem (!%p161_p9), [#allocation2], %s390_s8  ;;  %s604_s16 = scalar_lea.hbm (!%p161_p9), %s654_s3, %s399_s9 }
  0x11   : > { %v243_v28 = vsub.s32 (!%p161_p9), 0, %v242_v26  ;;  %s309_s11 = sshll.u32 (!%p161_p9), %s190_s10, 4  ;;  %v292_v47 = vld [vmem:[%s190_s10 + $0x1] sm:$0x1] (!%p161_p9)  ;;  %v289_v49 = vld [vmem:[%s190_s10] sm:$0x1] (!%p161_p9)  ;;  %s606_s11 = int_to_ptr.vmem [resolvable:$true] %s309_s11 }
  0x12   : > { %s610_s20 = scalar_lea.sflag (!%p161_p9), [#allocation3], %s188_s7  ;;  %s511_s25 = smov (!%p161_p9), [#allocation2]  }
  0x13   : > { %s450_s26 = sshll.u32 (!%p161_p9), %s511_s25, 4  ;;  %s451_s26 = int_to_ptr.vmem [resolvable:$false] %s450_s26 }
  0x14   : > { %p453_p0 = scmp.lt.s32.totalorder (!%p161_p9), %s606_s11, %s451_s26 }
  0x15   : > { %s662_s24 = smov (!%p192_p10, %s391_s24), 15 }
  0x16   : > { %s194_s27 = scalar_lea.vmem %s651_s0, %s662_s24  ;;  %s199_s30 = scalar_lea.vmem %s652_s1, %s662_s24 }
  0x17   : > { %v207_v1 = vld [vmem:[%s194_s27] sm:$0x1]  ;;  %v208_v2 = vld [vmem:[%s194_s27 + $0x1] sm:$0x1]  ;;  %s204_s6 = scalar_lea.vmem %s653_s2, %s662_s24  ;;  %s446_s24 = scalar_lea.vmem %s606_s11, 32 }
  0x18   : > { %v234_v3 = vld [vmem:[%s199_s30] sm:$0x1]  ;;  %v209_v4 = vunpack.c.l.bf16 %v207_v1  ;;  %v210_v5 = vunpack.c.l.bf16 %v208_v2  ;;  %v235_v6 = vld [vmem:[%s199_s30 + $0x1] sm:$0x1]  ;;  %p447_p11 = scmp.ne.s32.totalorder %s606_s11, %s446_s24  ;;  %s452_s27 = scalar_lea.vmem %s451_s26, 64 }
  0x19   : > { %238 = vperm.xlu1 %442, %v234_v3   ;;  %v257_v15 = vld [vmem:[%s204_s6 + $0x1] sm:$0x1]  ;;  %v256_v16 = vld [vmem:[%s204_s6] sm:$0x1]  ;;  %p454_p1 = scmp.lt.s32.totalorder %s452_s27, %s446_s24 }
  0x1a   : > { %v212_v7 = vsel %vm211_vm0, %v209_v4, 0.0  ;;  %v213_v8 = vsel %vm211_vm0, %v210_v5, 0.0  ;;  %v217_v9 = vmul.f32 %v209_v4, %v209_v4  ;;  %v218_v10 = vmul.f32 %v210_v5, %v210_v5  ;;  %p448_p12 = pnand %p447_p11, %p572_p5 }
  0x1b   : > { %v214_v11 = vadd.f32 %v213_v8, %v212_v7  ;;  %p455_p2 = por %p454_p1, %p453_p0 }
  0x1c   : > { %v219_v12 = vsel %vm211_vm0, %v217_v9, 0.0  ;;  %v220_v13 = vsel %vm211_vm0, %v218_v10, 0.0  ;;  %p449_p13 = pneg %p448_p12 }
  0x1d   : > { %247 = vperm.xlu1 %442, %v235_v6   ;;  %215 = vadd.xlane.f32.xlu0 %v214_v11  ;;  %v221_v14 = vadd.f32 %v220_v13, %v219_v12 }
  0x1e   : > { %p456_p3 = pnand %p455_p2, %p449_p13 }
  0x21   : > { %269 = vperm.xlu1 %442, %v257_v15   ;;  %222 = vadd.xlane.f32.xlu0 %v221_v14 }
  0x37   : > { %260 = vperm.xlu0 %443, %v256_v16  }
  0x98   : > { %v239_v25 = vpop.permute.xlu1 %238 }
  0x99   : > { %v244_v33 = vrot.slane %v239_v25, %v243_v28 }
  0x9c   : > { %v248_v27 = vpop.permute.xlu1 %247 }
  0x9d   : > { %v253_v37 = vrot.slane %v248_v27, %v243_v28 }
  0xa0   : > { %v270_v34 = vpop.permute.xlu1 %269 }
  0xa1   : > { %v275_v41 = vrot.slane %v270_v34, %v243_v28 }
  0xaa   : > { %v216_v17 = vpop.xlane.xlu0 %215 }
  0xab   : > { %v224_v18 = vmul.f32 0.03125, %v216_v17 }
  0xad   : > { %v226_v20 = vmul.f32 %v224_v18, %v224_v18  ;;  %v228_v30 = vsub.f32 %v209_v4, %v224_v18  ;;  %v229_v31 = vsub.f32 %v210_v5, %v224_v18 }
  0xae   : > { %v223_v19 = vpop.xlane.xlu0 %222 }
  0xaf   : > { %v225_v21 = vmul.f32 0.03125, %v223_v19 }
  0xb1   : > { %v227_v22 = vsub.f32 %v225_v21, %v226_v20 }
  0xb3   : > { %v230_v23 = vadd.f32 1e-05, %v227_v22 }
  0xb5   : > { %444 = vrsqrt.f32 %v230_v23 }
  0xb6   : > { %v261_v29 = vpop.permute.xlu0 %260 }
  0xb7   : > { %v266_v38 = vrot.slane %v261_v29, %v243_v28 }
  0xbf   : > { %v445_v32 = vpop.eup %444 }
  0xc0   : > { %v232_v35 = vmul.f32 %v445_v32, %v228_v30  ;;  %v233_v36 = vmul.f32 %v445_v32, %v229_v31 }
  0xc2   : > { %v254_v39 = vmul.f32 %v244_v33, %v232_v35  ;;  %v255_v40 = vmul.f32 %v253_v37, %v233_v36 }
  0xc4   : > { %v277_v42 = vadd.f32 %v275_v41, %v255_v40  ;;  %v276_v43 = vadd.f32 %v266_v38, %v254_v39 }
  0xc6   : > { %vm279_vm2 = vcmp.gt.f32.partialorder %v277_v42, 0.0  ;;  %v281_v44 = vmul.f32 0.2, %v277_v42  ;;  %vm278_vm3 = vcmp.gt.f32.partialorder %v276_v43, 0.0  ;;  %v280_v45 = vmul.f32 0.2, %v276_v43 }
  0xc8   : > { %v283_v46 = vsel %vm279_vm2, %v277_v42, %v281_v44  ;;  %v282_v48 = vsel %vm278_vm3, %v276_v43, %v280_v45 }
  0xc9   : > { %v285_v50 = vpack.c.bf16 %v283_v46, %v283_v46  ;;  %v284_v51 = vpack.c.bf16 %v282_v48, %v282_v48 }
  0xcb   : > { %v293_v52 = vsel %vm288_vm4, %v285_v50, %v292_v47  ;;  %v290_v53 = vsel %vm288_vm4, %v284_v51, %v289_v49 }
  0xcc   : > { %294 = vst [vmem:[%s190_s10 + $0x1] sm:$0x1] %v293_v52  ;;  %291 = vst [vmem:[%s190_s10] sm:$0x1] %v290_v53 }
  0xcd   : > { %459 = shalt.err (!%p456_p3)
}
  0xce   : > { %s460_s28 = scalar_lea.hbm %s604_s16, 32  ;;  %s464_s4 = scalar_lea.hbm %s654_s3, 256 }
  0xcf   : > { %p461_p4 = scmp.ne.s32.totalorder %s604_s16, %s460_s28  ;;  %p465_p9 = scmp.lt.u32.totalorder %s604_s16, %s654_s3 }
  0xd0   : > { %p466_p10 = scmp.lt.u32.totalorder %s464_s4, %s460_s28  ;;  %p468_p12 = scmp.lt.u32.totalorder %s460_s28, %s604_s16 }
  0xd1   : > { %p462_p7 = pnand %p461_p4, %p572_p5 }
  0xd2   : > { %p467_p11 = por %p466_p10, %p465_p9 }
  0xd3   : > { %p463_p8 = pneg %p462_p7 }
  0xd4   : > { %p469_p13 = por %p468_p12, %p467_p11 }
  0xd6   : > { %p470_p0 = pnand %p469_p13, %p463_p8 }
  0xd8   : > { %473 = shalt.err (!%p470_p0)
}
  0xd9   : > { %s512_s7 = smov 16   ;;  %s513_s8 = smov 1  }
  0xda   : > { %400 = dma.vmem_to_hbm [thread:$0]  (%p572_p5), %s606_s11, 32, %s604_s16, %s610_s20, %s512_s7, %s512_s7, %s513_s8  }
  0xdb PF: > { %p406_p1 = scmp.ge.s32.totalorder %s508_s15, 2  ;;  %s324_s9 = sand.u32 1, %s496_s12  }
  0xdc   : > { %s325_s10 = scalar_lea.sflag [#allocation3], %s324_s9 }
  0xdd   : > { %p403_p2 = pnand %p406_p1, %p576_p6 }
  0xdf   : > { %491 = dma.done.wait (!%p403_p2), %s325_s10, 32  }
  0xe0   : > { %493 = vsyncadd (!%p403_p2), %s325_s10, 4294967264  ;;  %p13_p3 = scmp.ge.s32.totalorder %s559_s18, 10   ;;  %s657_s12 = smov %s500_s13 }
  0xe1   : > { %s658_s13 = smov %s504_s14  ;;  %s659_s14 = smov %s570_s21 }
  0xe2   : > { %s660_s15 = smov %s559_s18  ;;  %15 = sbr.rel (!%p13_p3) target bundleno = 3 (0x3), region = 73 }
  0xe9   :  { %330 = vsyncpa [#allocation3], 1 }
  0xea   :  { %332 = vsyncpa [#allocation3 + $0x1], 1 }

// kernel: simvp_aug_forward.62
= control target key start
LH: loop header
LB: loop body
LE: loop exit
PB: predicated region body
PF: predicated region fallthrough
CT: control target
= control target key end

     0   :  { %8 = vsyncpa [#allocation3], 0  ;;  %s931_s0 = inlined_call_operand.hbm [shape: bf16[8,9,16], index: 0, kind: input, shape index: {}]   ;;  %s932_s1 = inlined_call_operand.hbm [shape: bf16[8,2,9], index: 1, kind: input, shape index: {}]   ;;  %s933_s2 = inlined_call_operand.hbm [shape: f32[8,2,1], index: 2, kind: input, shape index: {}]   ;;  %s934_s3 = inlined_call_operand.hbm [shape: bf16[8,2,16], index: 3, kind: output, shape index: {}]  }
   0x1   :  { %9 = vsyncpa [#allocation6], 0 }
   0x2   :  { %10 = vsyncpa [#allocation4], 0  ;;  %s803_s12 = smov [#allocation5]   ;;  %s709_s16 = scalar_lea.hbm %s932_s1, 128 }
   0x3   :  { %s28_s13 = sshll.u32 %s803_s12, 4  ;;  %p710_p0 = scmp.ne.s32.totalorder %s932_s1, %s709_s16  ;;  %s29_s13 = int_to_ptr.vmem [resolvable:$true] %s28_s13 }
   0x4   :  { %p713_p1 = scmp.lt.u32.totalorder %s709_s16, %s932_s1 }
   0x6   :  { %p715_p2 = pnand %p713_p1, %p710_p0 }
   0x8   :  { %718 = shalt.err (!%p715_p2)
}
   0x9   :  { %s719_s21 = scalar_lea.vmem %s29_s13, 128  ;;  %p724_p4 = scmp.lt.s32.totalorder %s29_s13, %s29_s13 }
   0xa   :  { %p720_p3 = scmp.ne.s32.totalorder %s29_s13, %s719_s21  ;;  %p725_p5 = scmp.lt.s32.totalorder %s719_s21, %s719_s21 }
   0xc   :  { %p726_p6 = por %p725_p5, %p724_p4 }
   0xe   :  { %p727_p7 = pnand %p726_p6, %p720_p3 }
  0x10   :  { %730 = shalt.err (!%p727_p7)
}
  0x11   :  { %s804_s22 = smov 16   ;;  %s805_s23 = smov 1  }
  0x12   :  { %34 = dma.hbm_to_vmem [thread:$0]  %s932_s1, 128, %s29_s13, [#allocation6], %s804_s22, %s804_s22, %s805_s23  }
  0x13   :  { %s806_s26 = smov [#allocation2]   ;;  %s731_s30 = scalar_lea.hbm %s931_s0, 1024 }
  0x14   :  { %s16_s27 = sshll.u32 %s806_s26, 4  ;;  %p732_p8 = scmp.ne.s32.totalorder %s931_s0, %s731_s30  ;;  %s17_s27 = int_to_ptr.vmem [resolvable:$true] %s16_s27 }
  0x15   :  { %p735_p9 = scmp.lt.u32.totalorder %s731_s30, %s931_s0 }
  0x17   :  { %p737_p10 = pnand %p735_p9, %p732_p8 }
  0x19   :  { %740 = shalt.err (!%p737_p10)
}
  0x1a   :  { %s741_s8 = scalar_lea.vmem %s17_s27, 1024  ;;  %p746_p12 = scmp.lt.s32.totalorder %s17_s27, %s17_s27 }
  0x1b   :  { %p742_p11 = scmp.ne.s32.totalorder %s17_s27, %s741_s8  ;;  %p747_p13 = scmp.lt.s32.totalorder %s741_s8, %s741_s8 }
  0x1d   :  { %p748_p0 = por %p747_p13, %p746_p12 }
  0x1f   :  { %p749_p1 = pnand %p748_p0, %p742_p11 }
  0x21   :  { %752 = shalt.err (!%p749_p1)
}
  0x22   :  { %s807_s1 = smov 64   ;;  %s808_s9 = smov 4  }
  0x23   :  { %22 = dma.hbm_to_vmem [thread:$0]  %s931_s0, 1024, %s17_s27, [#allocation3], %s807_s1, %s807_s1, %s808_s9  }
  0x24   :  { %s809_s12 = smov [#allocation7]   ;;  %s753_s16 = scalar_lea.hbm %s933_s2, 256 }
  0x25   :  { %s40_s13 = sshll.u32 %s809_s12, 4  ;;  %p754_p2 = scmp.ne.s32.totalorder %s933_s2, %s753_s16  ;;  %s41_s13 = int_to_ptr.vmem [resolvable:$true] %s40_s13 }
  0x26   :  { %p757_p3 = scmp.lt.u32.totalorder %s753_s16, %s933_s2 }
  0x28   :  { %p759_p4 = pnand %p757_p3, %p754_p2 }
  0x2a   :  { %762 = shalt.err (!%p759_p4)
}
  0x2b   :  { %s763_s21 = scalar_lea.vmem %s41_s13, 256  ;;  %p768_p6 = scmp.lt.s32.totalorder %s41_s13, %s41_s13 }
  0x2c   :  { %p764_p5 = scmp.ne.s32.totalorder %s41_s13, %s763_s21  ;;  %p769_p7 = scmp.lt.s32.totalorder %s763_s21, %s763_s21 }
  0x2e   :  { %p770_p8 = por %p769_p7, %p768_p6 }
  0x30   :  { %p771_p9 = pnand %p770_p8, %p764_p5 }
  0x32   :  { %774 = shalt.err (!%p771_p9)
}
  0x33   :  { %s810_s0 = smov 32   ;;  %s811_s24 = smov 2  }
  0x34   :  { %46 = dma.hbm_to_vmem [thread:$0]  %s933_s2, 256, %s41_s13, [#allocation6], %s810_s0, %s810_s0, %s811_s24  }
  0x35   :  { %797 = dma.done.wait [#allocation3], 1024  }
  0x36   :  { %798 = vsyncadd [#allocation3], 4294966272 }
  0x37   :  { %799 = dma.done.wait [#allocation6], 384  }
  0x38   :  { %800 = vsyncadd [#allocation6], 4294966912  ;;  %vm75_vm0 = vcmask 1043456   ;;  %v812_v0 = vmov 0.0   ;;  %vm813_vm1 = vmmov 0   ;;  %vm76_vm2 = vcmask 1044480  }
  0x39   :  { %637 = vmatprep.subr.bf16.mxu0 %v812_v0  ;;  %643 = vmatprep.subr.bf16.mxu1 %v812_v0  ;;  %v814_v1 = vmov 65535   ;;  %v815_v3 = vmov 0   ;;  %v701_v5 = vld [vmem:[#allocation2] sm:$0x1f]   ;;  %v702_v6 = vld [vmem:[#allocation2 + $0x8] sm:$0x1f]  }
  0x3a   :  { %639 = vmatprep.mubr.msk.bf16.mxu0 %vm813_vm1, %v812_v0  ;;  %645 = vmatprep.mubr.msk.bf16.mxu1 %vm813_vm1, %v812_v0  ;;  %v77_v2 = vsel %vm75_vm0, 4294967295, %v814_v1  ;;  %vm71_vm3 = vcmask 72704   ;;  %v703_v9 = vld [vmem:[#allocation2 + $0x10] sm:$0x1f]   ;;  %v57_v10 = vld [vmem:[#allocation5] sm:$0x1] }
  0x3b   :  { %699 = vset.pattern.permute.xlu0 %v815_v3  ;;  %700 = vset.pattern.permute.xlu1 %v815_v3  ;;  %v78_v4 = vsel %vm76_vm2, %v77_v2, 0  ;;  %v704_v11 = vld [vmem:[#allocation2 + $0x18] sm:$0x1f]   ;;  %v126_v12 = vld [vmem:[#allocation5 + $0x1] sm:$0x1]  ;;  %vm123_vm4 = vcmask 122880  }
  0x3c   :  { %v80_v7 = vand.u32 %v701_v5, %v78_v4  ;;  %v146_v8 = vand.u32 %v702_v6, %v78_v4  ;;  %v212_v13 = vand.u32 %v703_v9, %v78_v4  ;;  %v278_v14 = vand.u32 %v704_v11, %v78_v4  ;;  %v705_v15 = vld [vmem:[#allocation2 + $0x20] sm:$0x1f]   ;;  %v706_v16 = vld [vmem:[#allocation2 + $0x28] sm:$0x1f]   ;;  %v707_v24 = vld [vmem:[#allocation2 + $0x30] sm:$0x1f]  }
  0x3d   :  { %v60_v17 = vld [vmem:[#allocation7] sm:$0x3]  ;;  %v197_v18 = vld [vmem:[#allocation7 + $0x4] sm:$0x3]  ;;  %v192_v19 = vld [vmem:[#allocation5 + $0x2] sm:$0x1]  ;;  %v344_v20 = vand.u32 %v705_v15, %v78_v4  ;;  %v410_v23 = vand.u32 %v706_v16, %v78_v4  ;;  %v476_v29 = vand.u32 %v707_v24, %v78_v4 }
  0x3e   :  { %638 = vmatpush3.bf16.msra.mxu0 %v80_v7  ;;  %644 = vmatpush3.bf16.msra.mxu1 %v146_v8  ;;  %v131_v21 = vld [vmem:[#allocation7 + $0x2] sm:$0x3]  ;;  %v258_v22 = vld [vmem:[#allocation5 + $0x3] sm:$0x1]  ;;  %v263_v25 = vld [vmem:[#allocation7 + $0x6] sm:$0x3] }
  0x3f   :  { %649 = vmatprep.subr.bf16.mxu0 %v812_v0  ;;  %655 = vmatprep.subr.bf16.mxu1 %v812_v0  ;;  %v708_v26 = vld [vmem:[#allocation2 + $0x38] sm:$0x1f]   ;;  %v329_v27 = vld [vmem:[#allocation7 + $0x8] sm:$0x3]  ;;  %v324_v28 = vld [vmem:[#allocation5 + $0x4] sm:$0x1] }
  0x40   :  { %63 = vperm.xlu0 %699, %v60_v17   ;;  %200 = vperm.xlu1 %700, %v197_v18   ;;  %v395_v30 = vld [vmem:[#allocation7 + $0xa] sm:$0x3]  ;;  %v390_v31 = vld [vmem:[#allocation5 + $0x5] sm:$0x1]  ;;  %v542_v32 = vand.u32 %v708_v26, %v78_v4  ;;  %v461_v33 = vld [vmem:[#allocation7 + $0xc] sm:$0x3] }
  0x41   :  { %640 = vmatmul.mubr.msk.bf16.vlgmr.msra.gmra.mrb[0].mxu0 %vm71_vm3, %v57_v10  ;;  %646 = vmatmul.mubr.msk.bf16.vlgmr.msra.gmra.mrb[0].mxu1 %vm71_vm3, %v126_v12  ;;  %v527_v34 = vld [vmem:[#allocation7 + $0xe] sm:$0x3]  ;;  %v456_v35 = vld [vmem:[#allocation5 + $0x6] sm:$0x1]  ;;  %v522_v36 = vld [vmem:[#allocation5 + $0x7] sm:$0x1] }
  0x42   :  { %650 = vmatpush3.bf16.msra.mxu0 %v212_v13  ;;  %656 = vmatpush3.bf16.msra.mxu1 %v278_v14  ;;  %s816_s2 = smov [#allocation8]  }
  0x43   :  { %651 = vmatprep.mubr.msk.bf16.mxu0 %vm813_vm1, %v812_v0  ;;  %657 = vmatprep.mubr.msk.bf16.mxu1 %vm813_vm1, %v812_v0  ;;  %s592_s27 = sshll.u32 %s816_s2, 4  ;;  %s593_s27 = int_to_ptr.vmem [resolvable:$true] %s592_s27 }
  0x44   :  { %661 = vmatprep.subr.bf16.mxu0 %v812_v0  ;;  %667 = vmatprep.subr.bf16.mxu1 %v812_v0  ;;  %s775_s28 = scalar_lea.vmem %s593_s27, 128  ;;  %p780_p11 = scmp.lt.s32.totalorder %s593_s27, %s593_s27 }
  0x45   :  { %134 = vperm.xlu0 %699, %v131_v21   ;;  %266 = vperm.xlu1 %700, %v263_v25   ;;  %p776_p10 = scmp.ne.s32.totalorder %s593_s27, %s775_s28  ;;  %p781_p12 = scmp.lt.s32.totalorder %s775_s28, %s775_s28 }
  0x47   :  { %p782_p13 = por %p781_p12, %p780_p11 }
  0x49   :  { %652 = vmatmul.mubr.msk.bf16.vlgmr.msra.gmra.mrb[4].mxu0 %vm71_vm3, %v192_v19  ;;  %658 = vmatmul.mubr.msk.bf16.vlgmr.msra.gmra.mrb[4].mxu1 %vm71_vm3, %v258_v22  ;;  %p783_p0 = pnand %p782_p13, %p776_p10 }
  0x4a   :  { %662 = vmatpush3.bf16.msra.mxu0 %v344_v20  ;;  %668 = vmatpush3.bf16.msra.mxu1 %v410_v23 }
  0x4b   :  { %663 = vmatprep.mubr.msk.bf16.mxu0 %vm813_vm1, %v812_v0  ;;  %669 = vmatprep.mubr.msk.bf16.mxu1 %vm813_vm1, %v812_v0 }
  0x4c   :  { %673 = vmatprep.subr.bf16.mxu0 %v812_v0  ;;  %679 = vmatprep.subr.bf16.mxu1 %v812_v0 }
  0x4d   :  { %332 = vperm.xlu0 %699, %v329_v27   ;;  %398 = vperm.xlu1 %700, %v395_v30  }
  0x51   :  { %664 = vmatmul.mubr.msk.bf16.vlgmr.msra.gmra.mrb[8].mxu0 %vm71_vm3, %v324_v28  ;;  %670 = vmatmul.mubr.msk.bf16.vlgmr.msra.gmra.mrb[8].mxu1 %vm71_vm3, %v390_v31 }
  0x52   :  { %674 = vmatpush3.bf16.msra.mxu0 %v476_v29  ;;  %680 = vmatpush3.bf16.msra.mxu1 %v542_v32 }
  0x53   :  { %675 = vmatprep.mubr.msk.bf16.mxu0 %vm813_vm1, %v812_v0  ;;  %681 = vmatprep.mubr.msk.bf16.mxu1 %vm813_vm1, %v812_v0 }
  0x54   :  { %464 = vperm.xlu0 %699, %v461_v33   ;;  %530 = vperm.xlu1 %700, %v527_v34  }
  0x59   :  { %676 = vmatmul.mubr.msk.bf16.vlgmr.msra.gmra.mrb[12].mxu0 %vm71_vm3, %v456_v35  ;;  %682 = vmatmul.mubr.msk.bf16.vlgmr.msra.gmra.mrb[12].mxu1 %vm71_vm3, %v522_v36 }
  0xbf   :  { %v64_v37 = vpop.permute.xlu0 %63  ;;  %v201_v40 = vpop.permute.xlu1 %200 }
  0xc4   :  { %v135_v38 = vpop.permute.xlu0 %134  ;;  %v267_v52 = vpop.permute.xlu1 %266 }
  0xcc   :  { %v333_v1 = vpop.permute.xlu0 %332  ;;  %v399_v2 = vpop.permute.xlu1 %398 }
  0xd3   :  { %v465_v15 = vpop.permute.xlu0 %464  ;;  %v531_v16 = vpop.permute.xlu1 %530 }
 0x114   :  { %v116_v39 = vpop.f32.mrb[0].mxu0  ;;  %v182_v42 = vpop.f32.mrb[0].mxu1 }
 0x115   :  { %v117_v41 = vadd.f32 %v116_v39, %v64_v37  ;;  %v641_v43 = vpop.f32.mrb[1].mxu0  ;;  %v647_v44 = vpop.f32.mrb[1].mxu1  ;;  %v183_v45 = vadd.f32 %v182_v42, %v135_v38 }
 0x116   :  { %v119_v46 = vpop.f32.mrb[2].mxu0  ;;  %v185_v48 = vpop.f32.mrb[2].mxu1 }
 0x117   :  { %v122_v47 = vpack.c.bf16 %v117_v41, %v117_v41  ;;  %v642_v49 = vpop.f32.mrb[3].mxu0  ;;  %v188_v50 = vpack.c.bf16 %v183_v45, %v183_v45  ;;  %v648_v51 = vpop.f32.mrb[3].mxu1 }
 0x119   :  { %124 = vst.msk [vmem:[#allocation8] sm:$0x1] %vm123_vm4, %v122_v47  ;;  %190 = vst.msk [vmem:[#allocation8 + $0x1] sm:$0x1] %vm123_vm4, %v188_v50 }
 0x11c   :  { %v248_v53 = vpop.f32.mrb[4].mxu0  ;;  %v314_v55 = vpop.f32.mrb[4].mxu1 }
 0x11d   :  { %v249_v54 = vadd.f32 %v248_v53, %v201_v40  ;;  %v653_v56 = vpop.f32.mrb[5].mxu0  ;;  %v315_v57 = vadd.f32 %v314_v55, %v267_v52  ;;  %v659_v58 = vpop.f32.mrb[5].mxu1 }
 0x11e   :  { %v251_v59 = vpop.f32.mrb[6].mxu0  ;;  %v317_v61 = vpop.f32.mrb[6].mxu1 }
 0x11f   :  { %v254_v60 = vpack.c.bf16 %v249_v54, %v249_v54  ;;  %v654_v62 = vpop.f32.mrb[7].mxu0  ;;  %v320_v63 = vpack.c.bf16 %v315_v57, %v315_v57  ;;  %v660_v0 = vpop.f32.mrb[7].mxu1 }
 0x121   :  { %256 = vst.msk [vmem:[#allocation8 + $0x2] sm:$0x1] %vm123_vm4, %v254_v60  ;;  %322 = vst.msk [vmem:[#allocation8 + $0x3] sm:$0x1] %vm123_vm4, %v320_v63 }
 0x124   :  { %v380_v3 = vpop.f32.mrb[8].mxu0  ;;  %v446_v5 = vpop.f32.mrb[8].mxu1 }
 0x125   :  { %v381_v4 = vadd.f32 %v380_v3, %v333_v1  ;;  %v665_v6 = vpop.f32.mrb[9].mxu0  ;;  %v447_v7 = vadd.f32 %v446_v5, %v399_v2  ;;  %v671_v8 = vpop.f32.mrb[9].mxu1 }
 0x126   :  { %v383_v9 = vpop.f32.mrb[10].mxu0  ;;  %v449_v11 = vpop.f32.mrb[10].mxu1 }
 0x127   :  { %v386_v10 = vpack.c.bf16 %v381_v4, %v381_v4  ;;  %v666_v12 = vpop.f32.mrb[11].mxu0  ;;  %v452_v13 = vpack.c.bf16 %v447_v7, %v447_v7  ;;  %v672_v14 = vpop.f32.mrb[11].mxu1 }
 0x129   :  { %388 = vst.msk [vmem:[#allocation8 + $0x4] sm:$0x1] %vm123_vm4, %v386_v10  ;;  %454 = vst.msk [vmem:[#allocation8 + $0x5] sm:$0x1] %vm123_vm4, %v452_v13 }
 0x12c   :  { %v512_v17 = vpop.f32.mrb[12].mxu0  ;;  %v578_v19 = vpop.f32.mrb[12].mxu1 }
 0x12d   :  { %v513_v18 = vadd.f32 %v512_v17, %v465_v15  ;;  %v677_v20 = vpop.f32.mrb[13].mxu0  ;;  %v579_v21 = vadd.f32 %v578_v19, %v531_v16  ;;  %v683_v22 = vpop.f32.mrb[13].mxu1 }
 0x12e   :  { %v515_v23 = vpop.f32.mrb[14].mxu0  ;;  %v581_v25 = vpop.f32.mrb[14].mxu1 }
 0x12f   :  { %v518_v24 = vpack.c.bf16 %v513_v18, %v513_v18  ;;  %v678_v26 = vpop.f32.mrb[15].mxu0  ;;  %v584_v27 = vpack.c.bf16 %v579_v21, %v579_v21  ;;  %v684_v28 = vpop.f32.mrb[15].mxu1 }
 0x131   :  { %520 = vst.msk [vmem:[#allocation8 + $0x6] sm:$0x1] %vm123_vm4, %v518_v24  ;;  %586 = vst.msk [vmem:[#allocation8 + $0x7] sm:$0x1] %vm123_vm4, %v584_v27 }
 0x132   :  { %786 = shalt.err (!%p783_p0)
}
 0x133   :  { %s787_s4 = scalar_lea.hbm %s934_s3, 128 }
 0x134   :  { %p788_p1 = scmp.ne.s32.totalorder %s934_s3, %s787_s4  ;;  %p791_p2 = scmp.lt.u32.totalorder %s787_s4, %s934_s3 }
 0x136   :  { %p793_p3 = pnand %p791_p2, %p788_p1 }
 0x138   :  { %796 = shalt.err (!%p793_p3)
}
 0x139   :  { %598 = dma.vmem_to_hbm [thread:$0]  %s593_s27, 128, %s934_s3, [#allocation4], %s804_s22, %s804_s22, %s805_s23  }
 0x13a   :  { %801 = dma.done.wait [#allocation4], 128  }
 0x13b   :  { %802 = vsyncadd [#allocation4], 4294967168 }
 0x13c   :  { %602 = vsyncpa [#allocation3], 1 }
 0x13d   :  { %603 = vsyncpa [#allocation6], 1 }
 0x13e   :  { %604 = vsyncpa [#allocation4], 1 }

// kernel: simvp_aug_forward.64
= control target key start
LH: loop header
LB: loop body
LE: loop exit
PB: predicated region body
PF: predicated region fallthrough
CT: control target
= control target key end

     0   :  { %8 = vsyncpa [#allocation3], 0  ;;  %s1053_s0 = inlined_call_operand.hbm [shape: bf16[8,25,16], index: 0, kind: input, shape index: {}]   ;;  %s1054_s1 = inlined_call_operand.hbm [shape: bf16[8,2,25], index: 1, kind: input, shape index: {}]   ;;  %s1055_s2 = inlined_call_operand.hbm [shape: f32[8,2,1], index: 2, kind: input, shape index: {}]   ;;  %s1056_s3 = inlined_call_operand.hbm [shape: bf16[8,2,16], index: 3, kind: output, shape index: {}]  }
   0x1   :  { %9 = vsyncpa [#allocation6], 0 }
   0x2   :  { %10 = vsyncpa [#allocation4], 0  ;;  %s907_s12 = smov [#allocation5]   ;;  %s813_s16 = scalar_lea.hbm %s1054_s1, 128 }
   0x3   :  { %s28_s13 = sshll.u32 %s907_s12, 4  ;;  %p814_p0 = scmp.ne.s32.totalorder %s1054_s1, %s813_s16  ;;  %s29_s13 = int_to_ptr.vmem [resolvable:$true] %s28_s13 }
   0x4   :  { %p817_p1 = scmp.lt.u32.totalorder %s813_s16, %s1054_s1 }
   0x6   :  { %p819_p2 = pnand %p817_p1, %p814_p0 }
   0x8   :  { %822 = shalt.err (!%p819_p2)
}
   0x9   :  { %s823_s21 = scalar_lea.vmem %s29_s13, 128  ;;  %p828_p4 = scmp.lt.s32.totalorder %s29_s13, %s29_s13 }
   0xa   :  { %p824_p3 = scmp.ne.s32.totalorder %s29_s13, %s823_s21  ;;  %p829_p5 = scmp.lt.s32.totalorder %s823_s21, %s823_s21 }
   0xc   :  { %p830_p6 = por %p829_p5, %p828_p4 }
   0xe   :  { %p831_p7 = pnand %p830_p6, %p824_p3 }
  0x10   :  { %834 = shalt.err (!%p831_p7)
}
  0x11   :  { %s908_s22 = smov 16   ;;  %s909_s23 = smov 1  }
  0x12   :  { %34 = dma.hbm_to_vmem [thread:$0]  %s1054_s1, 128, %s29_s13, [#allocation6], %s908_s22, %s908_s22, %s909_s23  }
  0x13   :  { %s910_s26 = smov [#allocation2]   ;;  %s835_s30 = scalar_lea.hbm %s1053_s0, 2048 }
  0x14   :  { %s16_s27 = sshll.u32 %s910_s26, 4  ;;  %p836_p8 = scmp.ne.s32.totalorder %s1053_s0, %s835_s30  ;;  %s17_s27 = int_to_ptr.vmem [resolvable:$true] %s16_s27 }
  0x15   :  { %p839_p9 = scmp.lt.u32.totalorder %s835_s30, %s1053_s0 }
  0x17   :  { %p841_p10 = pnand %p839_p9, %p836_p8 }
  0x19   :  { %844 = shalt.err (!%p841_p10)
}
  0x1a   :  { %s845_s8 = scalar_lea.vmem %s17_s27, 2048  ;;  %p850_p12 = scmp.lt.s32.totalorder %s17_s27, %s17_s27 }
  0x1b   :  { %p846_p11 = scmp.ne.s32.totalorder %s17_s27, %s845_s8  ;;  %p851_p13 = scmp.lt.s32.totalorder %s845_s8, %s845_s8 }
  0x1d   :  { %p852_p0 = por %p851_p13, %p850_p12 }
  0x1f   :  { %p853_p1 = pnand %p852_p0, %p846_p11 }
  0x21   :  { %856 = shalt.err (!%p853_p1)
}
  0x22   :  { %s911_s1 = smov 64   ;;  %s912_s9 = smov 4  }
  0x23   :  { %22 = dma.hbm_to_vmem [thread:$0]  %s1053_s0, 2048, %s17_s27, [#allocation3], %s911_s1, %s911_s1, %s912_s9  }
  0x24   :  { %s913_s12 = smov [#allocation7]   ;;  %s857_s16 = scalar_lea.hbm %s1055_s2, 256 }
  0x25   :  { %s40_s13 = sshll.u32 %s913_s12, 4  ;;  %p858_p2 = scmp.ne.s32.totalorder %s1055_s2, %s857_s16  ;;  %s41_s13 = int_to_ptr.vmem [resolvable:$true] %s40_s13 }
  0x26   :  { %p861_p3 = scmp.lt.u32.totalorder %s857_s16, %s1055_s2 }
  0x28   :  { %p863_p4 = pnand %p861_p3, %p858_p2 }
  0x2a   :  { %866 = shalt.err (!%p863_p4)
}
  0x2b   :  { %s867_s21 = scalar_lea.vmem %s41_s13, 256  ;;  %p872_p6 = scmp.lt.s32.totalorder %s41_s13, %s41_s13 }
  0x2c   :  { %p868_p5 = scmp.ne.s32.totalorder %s41_s13, %s867_s21  ;;  %p873_p7 = scmp.lt.s32.totalorder %s867_s21, %s867_s21 }
  0x2e   :  { %p874_p8 = por %p873_p7, %p872_p6 }
  0x30   :  { %p875_p9 = pnand %p874_p8, %p868_p5 }
  0x32   :  { %878 = shalt.err (!%p875_p9)
}
  0x33   :  { %s914_s0 = smov 32   ;;  %s915_s24 = smov 2  }
  0x34   :  { %46 = dma.hbm_to_vmem [thread:$0]  %s1055_s2, 256, %s41_s13, [#allocation6], %s914_s0, %s914_s0, %s915_s24  }
  0x35   :  { %901 = dma.done.wait [#allocation3], 2048  }
  0x36   :  { %902 = vsyncadd [#allocation3], 4294965248 }
  0x37   :  { %903 = dma.done.wait [#allocation6], 384  }
  0x38   :  { %904 = vsyncadd [#allocation6], 4294966912  ;;  %v916_v0 = vmov 0.0   ;;  %vm83_vm0 = vcmask 1043456   ;;  %vm917_vm1 = vmmov 0   ;;  %v918_v1 = vmov 0  }
  0x39   :  { %717 = vmatprep.subr.bf16.mxu0 %v916_v0  ;;  %725 = vmatprep.subr.bf16.mxu1 %v916_v0  ;;  %vm84_vm2 = vcmask 1044480   ;;  %v919_v2 = vmov 65535   ;;  %v797_v4 = vld [vmem:[#allocation2] sm:$0xff]   ;;  %v798_v5 = vld [vmem:[#allocation2 + $0x10] sm:$0xff]   ;;  %v799_v7 = vld [vmem:[#allocation2 + $0x8] sm:$0x1f]  }
  0x3a   :  { %721 = vmatprep.mubr.msk.bf16.mxu0 %vm917_vm1, %v916_v0  ;;  %729 = vmatprep.mubr.msk.bf16.mxu1 %vm917_vm1, %v916_v0  ;;  %v85_v3 = vsel %vm83_vm0, 4294967295, %v919_v2  ;;  %v800_v8 = vld [vmem:[#allocation2 + $0x18] sm:$0x1f]   ;;  %v57_v10 = vld [vmem:[#allocation5] sm:$0x1]  ;;  %vm79_vm3 = vcmask 203776  }
  0x3b   :  { %795 = vset.pattern.permute.xlu0 %v918_v1  ;;  %796 = vset.pattern.permute.xlu1 %v918_v1  ;;  %v986_v6 = vsel %vm84_vm2, %v85_v3, 0  ;;  %v134_v12 = vld [vmem:[#allocation5 + $0x1] sm:$0x1]  ;;  %v802_v14 = vld [vmem:[#allocation2 + $0x30] sm:$0xff]   ;;  %v803_v15 = vld [vmem:[#allocation2 + $0x28] sm:$0x1f]  }
  0x3c   :  { %718 = vmatpush3.bf16.msra.mxu0 %v797_v4  ;;  %726 = vmatpush3.bf16.msra.mxu1 %v798_v5  ;;  %v88_v9 = vand.u32 %v799_v7, %v986_v6  ;;  %v162_v11 = vand.u32 %v800_v8, %v986_v6  ;;  %v801_v13 = vld [vmem:[#allocation2 + $0x20] sm:$0xff]   ;;  %v804_v16 = vld [vmem:[#allocation2 + $0x38] sm:$0x1f]   ;;  %v236_v17 = vand.u32 %v803_v15, %v986_v6  ;;  %v806_v22 = vld [vmem:[#allocation2 + $0x50] sm:$0xff]   ;;  %vm131_vm4 = vcmask 122880   ;;  %s920_s2 = smov [#allocation8]  }
  0x3d   :  { %719 = vmatprep.subr.bf16.mxu0 %v916_v0  ;;  %727 = vmatprep.subr.bf16.mxu1 %v916_v0  ;;  %v310_v18 = vand.u32 %v804_v16, %v986_v6  ;;  %v208_v19 = vld [vmem:[#allocation5 + $0x2] sm:$0x1]  ;;  %v282_v20 = vld [vmem:[#allocation5 + $0x3] sm:$0x1]  ;;  %v807_v23 = vld [vmem:[#allocation2 + $0x48] sm:$0x1f]  }
  0x3e   :  { %v805_v21 = vld [vmem:[#allocation2 + $0x40] sm:$0xff]   ;;  %v808_v24 = vld [vmem:[#allocation2 + $0x58] sm:$0x1f]   ;;  %v384_v25 = vand.u32 %v807_v23, %v986_v6  ;;  %v62_v26 = vld [vmem:[#allocation7] sm:$0x3]  ;;  %s656_s27 = sshll.u32 %s920_s2, 4  ;;  %s657_s27 = int_to_ptr.vmem [resolvable:$true] %s656_s27 }
  0x3f   :  { %v458_v27 = vand.u32 %v808_v24, %v986_v6  ;;  %v215_v28 = vld [vmem:[#allocation7 + $0x4] sm:$0x3]  ;;  %v356_v29 = vld [vmem:[#allocation5 + $0x4] sm:$0x1]  ;;  %65 = vperm.xlu0 %795, %v62_v26   ;;  %v141_v32 = vld [vmem:[#allocation7 + $0x2] sm:$0x3]  ;;  %p884_p11 = scmp.lt.s32.totalorder %s657_s27, %s657_s27 }
  0x40   :  { %720 = vmatpush3.bf16.msra.mxu0 %v88_v9  ;;  %728 = vmatpush3.bf16.msra.mxu1 %v162_v11  ;;  %v809_v30 = vld [vmem:[#allocation2 + $0x60] sm:$0xff]   ;;  %v811_v31 = vld [vmem:[#allocation2 + $0x68] sm:$0x1f]   ;;  %v810_v34 = vld [vmem:[#allocation2 + $0x70] sm:$0xff]   ;;  %s879_s28 = scalar_lea.vmem %s657_s27, 128 }
  0x41   :  { %733 = vmatprep.subr.bf16.mxu0 %v916_v0  ;;  %741 = vmatprep.subr.bf16.mxu1 %v916_v0  ;;  %v430_v33 = vld [vmem:[#allocation5 + $0x5] sm:$0x1]  ;;  %v812_v35 = vld [vmem:[#allocation2 + $0x78] sm:$0x1f]   ;;  %v532_v36 = vand.u32 %v811_v31, %v986_v6  ;;  %v289_v37 = vld [vmem:[#allocation7 + $0x6] sm:$0x3]  ;;  %p880_p10 = scmp.ne.s32.totalorder %s657_s27, %s879_s28  ;;  %p885_p12 = scmp.lt.s32.totalorder %s879_s28, %s879_s28 }
  0x42   :  { %218 = vperm.xlu1 %796, %v215_v28   ;;  %v606_v38 = vand.u32 %v812_v35, %v986_v6  ;;  %v363_v39 = vld [vmem:[#allocation7 + $0x8] sm:$0x3]  ;;  %v504_v40 = vld [vmem:[#allocation5 + $0x6] sm:$0x1]  ;;  %v437_v41 = vld [vmem:[#allocation7 + $0xa] sm:$0x3] }
  0x43   :  { %722 = vmatmul.mubr.msk.bf16.vlgmr.msra.gmra.mrb[0].mxu0 %vm79_vm3, %v57_v10  ;;  %730 = vmatmul.mubr.msk.bf16.vlgmr.msra.gmra.mrb[0].mxu1 %vm79_vm3, %v134_v12  ;;  %v578_v42 = vld [vmem:[#allocation5 + $0x7] sm:$0x1]  ;;  %v511_v43 = vld [vmem:[#allocation7 + $0xc] sm:$0x3]  ;;  %v585_v44 = vld [vmem:[#allocation7 + $0xe] sm:$0x3]  ;;  %p886_p13 = por %p885_p12, %p884_p11 }
  0x44   :  { %734 = vmatpush3.bf16.msra.mxu0 %v801_v13  ;;  %742 = vmatpush3.bf16.msra.mxu1 %v802_v14 }
  0x45   :  { %735 = vmatprep.subr.bf16.mxu0 %v916_v0  ;;  %743 = vmatprep.subr.bf16.mxu1 %v916_v0  ;;  %p887_p0 = pnand %p886_p13, %p880_p10 }
  0x46   :  { %737 = vmatprep.mubr.msk.bf16.mxu0 %vm917_vm1, %v916_v0  ;;  %745 = vmatprep.mubr.msk.bf16.mxu1 %vm917_vm1, %v916_v0 }
  0x47   :  { %144 = vperm.xlu0 %795, %v141_v32   ;;  %292 = vperm.xlu1 %796, %v289_v37  }
  0x48   :  { %736 = vmatpush3.bf16.msra.mxu0 %v236_v17  ;;  %744 = vmatpush3.bf16.msra.mxu1 %v310_v18 }
  0x49   :  { %749 = vmatprep.subr.bf16.mxu0 %v916_v0  ;;  %757 = vmatprep.subr.bf16.mxu1 %v916_v0 }
  0x4b   :  { %738 = vmatmul.mubr.msk.bf16.vlgmr.msra.gmra.mrb[4].mxu0 %vm79_vm3, %v208_v19  ;;  %746 = vmatmul.mubr.msk.bf16.vlgmr.msra.gmra.mrb[4].mxu1 %vm79_vm3, %v282_v20 }
  0x4c   :  { %750 = vmatpush3.bf16.msra.mxu0 %v805_v21  ;;  %758 = vmatpush3.bf16.msra.mxu1 %v806_v22 }
  0x4d   :  { %751 = vmatprep.subr.bf16.mxu0 %v916_v0  ;;  %759 = vmatprep.subr.bf16.mxu1 %v916_v0 }
  0x4e   :  { %753 = vmatprep.mubr.msk.bf16.mxu0 %vm917_vm1, %v916_v0  ;;  %761 = vmatprep.mubr.msk.bf16.mxu1 %vm917_vm1, %v916_v0 }
  0x4f   :  { %366 = vperm.xlu0 %795, %v363_v39   ;;  %440 = vperm.xlu1 %796, %v437_v41  }
  0x50   :  { %752 = vmatpush3.bf16.msra.mxu0 %v384_v25  ;;  %760 = vmatpush3.bf16.msra.mxu1 %v458_v27 }
  0x51   :  { %765 = vmatprep.subr.bf16.mxu0 %v916_v0  ;;  %773 = vmatprep.subr.bf16.mxu1 %v916_v0 }
  0x53   :  { %754 = vmatmul.mubr.msk.bf16.vlgmr.msra.gmra.mrb[8].mxu0 %vm79_vm3, %v356_v29  ;;  %762 = vmatmul.mubr.msk.bf16.vlgmr.msra.gmra.mrb[8].mxu1 %vm79_vm3, %v430_v33 }
  0x54   :  { %766 = vmatpush3.bf16.msra.mxu0 %v809_v30  ;;  %774 = vmatpush3.bf16.msra.mxu1 %v810_v34 }
  0x55   :  { %767 = vmatprep.subr.bf16.mxu0 %v916_v0  ;;  %775 = vmatprep.subr.bf16.mxu1 %v916_v0 }
  0x56   :  { %769 = vmatprep.mubr.msk.bf16.mxu0 %vm917_vm1, %v916_v0  ;;  %777 = vmatprep.mubr.msk.bf16.mxu1 %vm917_vm1, %v916_v0 }
  0x57   :  { %514 = vperm.xlu0 %795, %v511_v43   ;;  %588 = vperm.xlu1 %796, %v585_v44  }
  0x58   :  { %768 = vmatpush3.bf16.msra.mxu0 %v532_v36  ;;  %776 = vmatpush3.bf16.msra.mxu1 %v606_v38 }
  0x5b   :  { %770 = vmatmul.mubr.msk.bf16.vlgmr.msra.gmra.mrb[12].mxu0 %vm79_vm3, %v504_v40  ;;  %778 = vmatmul.mubr.msk.bf16.vlgmr.msra.gmra.mrb[12].mxu1 %vm79_vm3, %v578_v42 }
  0xbe   :  { %v66_v45 = vpop.permute.xlu0 %65 }
  0xc1   :  { %v219_v48 = vpop.permute.xlu1 %218 }
  0xc6   :  { %v145_v46 = vpop.permute.xlu0 %144  ;;  %v293_v60 = vpop.permute.xlu1 %292 }
  0xce   :  { %v367_v9 = vpop.permute.xlu0 %366  ;;  %v441_v10 = vpop.permute.xlu1 %440 }
  0xd6   :  { %v515_v23 = vpop.permute.xlu0 %514  ;;  %v589_v24 = vpop.permute.xlu1 %588 }
 0x116   :  { %v124_v47 = vpop.f32.mrb[0].mxu0  ;;  %v198_v50 = vpop.f32.mrb[0].mxu1 }
 0x117   :  { %v125_v49 = vadd.f32 %v124_v47, %v66_v45  ;;  %v723_v51 = vpop.f32.mrb[1].mxu0  ;;  %v731_v52 = vpop.f32.mrb[1].mxu1  ;;  %v199_v53 = vadd.f32 %v198_v50, %v145_v46 }
 0x118   :  { %v127_v54 = vpop.f32.mrb[2].mxu0  ;;  %v201_v56 = vpop.f32.mrb[2].mxu1 }
 0x119   :  { %v130_v55 = vpack.c.bf16 %v125_v49, %v125_v49  ;;  %v724_v57 = vpop.f32.mrb[3].mxu0  ;;  %v204_v58 = vpack.c.bf16 %v199_v53, %v199_v53  ;;  %v732_v59 = vpop.f32.mrb[3].mxu1 }
 0x11b   :  { %132 = vst.msk [vmem:[#allocation8] sm:$0x1] %vm131_vm4, %v130_v55  ;;  %206 = vst.msk [vmem:[#allocation8 + $0x1] sm:$0x1] %vm131_vm4, %v204_v58 }
 0x11e   :  { %v272_v61 = vpop.f32.mrb[4].mxu0  ;;  %v346_v63 = vpop.f32.mrb[4].mxu1 }
 0x11f   :  { %v273_v62 = vadd.f32 %v272_v61, %v219_v48  ;;  %v739_v0 = vpop.f32.mrb[5].mxu0  ;;  %v347_v1 = vadd.f32 %v346_v63, %v293_v60  ;;  %v747_v2 = vpop.f32.mrb[5].mxu1 }
 0x120   :  { %v275_v3 = vpop.f32.mrb[6].mxu0  ;;  %v349_v5 = vpop.f32.mrb[6].mxu1 }
 0x121   :  { %v278_v4 = vpack.c.bf16 %v273_v62, %v273_v62  ;;  %v740_v6 = vpop.f32.mrb[7].mxu0  ;;  %v352_v7 = vpack.c.bf16 %v347_v1, %v347_v1  ;;  %v748_v8 = vpop.f32.mrb[7].mxu1 }
 0x123   :  { %280 = vst.msk [vmem:[#allocation8 + $0x2] sm:$0x1] %vm131_vm4, %v278_v4  ;;  %354 = vst.msk [vmem:[#allocation8 + $0x3] sm:$0x1] %vm131_vm4, %v352_v7 }
 0x126   :  { %v420_v11 = vpop.f32.mrb[8].mxu0  ;;  %v494_v13 = vpop.f32.mrb[8].mxu1 }
 0x127   :  { %v421_v12 = vadd.f32 %v420_v11, %v367_v9  ;;  %v755_v14 = vpop.f32.mrb[9].mxu0  ;;  %v495_v15 = vadd.f32 %v494_v13, %v441_v10  ;;  %v763_v16 = vpop.f32.mrb[9].mxu1 }
 0x128   :  { %v423_v17 = vpop.f32.mrb[10].mxu0  ;;  %v497_v19 = vpop.f32.mrb[10].mxu1 }
 0x129   :  { %v426_v18 = vpack.c.bf16 %v421_v12, %v421_v12  ;;  %v756_v20 = vpop.f32.mrb[11].mxu0  ;;  %v500_v21 = vpack.c.bf16 %v495_v15, %v495_v15  ;;  %v764_v22 = vpop.f32.mrb[11].mxu1 }
 0x12b   :  { %428 = vst.msk [vmem:[#allocation8 + $0x4] sm:$0x1] %vm131_vm4, %v426_v18  ;;  %502 = vst.msk [vmem:[#allocation8 + $0x5] sm:$0x1] %vm131_vm4, %v500_v21 }
 0x12e   :  { %v568_v25 = vpop.f32.mrb[12].mxu0  ;;  %v642_v27 = vpop.f32.mrb[12].mxu1 }
 0x12f   :  { %v569_v26 = vadd.f32 %v568_v25, %v515_v23  ;;  %v771_v28 = vpop.f32.mrb[13].mxu0  ;;  %v643_v29 = vadd.f32 %v642_v27, %v589_v24  ;;  %v779_v30 = vpop.f32.mrb[13].mxu1 }
 0x130   :  { %v571_v31 = vpop.f32.mrb[14].mxu0  ;;  %v645_v33 = vpop.f32.mrb[14].mxu1 }
 0x131   :  { %v574_v32 = vpack.c.bf16 %v569_v26, %v569_v26  ;;  %v772_v34 = vpop.f32.mrb[15].mxu0  ;;  %v648_v35 = vpack.c.bf16 %v643_v29, %v643_v29  ;;  %v780_v36 = vpop.f32.mrb[15].mxu1 }
 0x133   :  { %576 = vst.msk [vmem:[#allocation8 + $0x6] sm:$0x1] %vm131_vm4, %v574_v32  ;;  %650 = vst.msk [vmem:[#allocation8 + $0x7] sm:$0x1] %vm131_vm4, %v648_v35 }
 0x134   :  { %890 = shalt.err (!%p887_p0)
}
 0x135   :  { %s891_s4 = scalar_lea.hbm %s1056_s3, 128 }
 0x136   :  { %p892_p1 = scmp.ne.s32.totalorder %s1056_s3, %s891_s4  ;;  %p895_p2 = scmp.lt.u32.totalorder %s891_s4, %s1056_s3 }
 0x138   :  { %p897_p3 = pnand %p895_p2, %p892_p1 }
 0x13a   :  { %900 = shalt.err (!%p897_p3)
}
 0x13b   :  { %662 = dma.vmem_to_hbm [thread:$0]  %s657_s27, 128, %s1056_s3, [#allocation4], %s908_s22, %s908_s22, %s909_s23  }
 0x13c   :  { %905 = dma.done.wait [#allocation4], 128  }
 0x13d   :  { %906 = vsyncadd [#allocation4], 4294967168 }
 0x13e   :  { %666 = vsyncpa [#allocation3], 1 }
 0x13f   :  { %667 = vsyncpa [#allocation6], 1 }
 0x140   :  { %668 = vsyncpa [#allocation4], 1 }

// kernel: simvp_aug_forward.66
= control target key start
LH: loop header
LB: loop body
LE: loop exit
PB: predicated region body
PF: predicated region fallthrough
CT: control target
= control target key end

     0   :  { %8 = vsyncpa [#allocation3], 0  ;;  %s1250_s0 = inlined_call_operand.hbm [shape: bf16[8,49,16], index: 0, kind: input, shape index: {}]   ;;  %s1251_s1 = inlined_call_operand.hbm [shape: bf16[8,2,49], index: 1, kind: input, shape index: {}]   ;;  %s1252_s2 = inlined_call_operand.hbm [shape: f32[8,2,1], index: 2, kind: input, shape index: {}]   ;;  %s1253_s3 = inlined_call_operand.hbm [shape: bf16[8,2,16], index: 3, kind: output, shape index: {}]  }
   0x1   :  { %9 = vsyncpa [#allocation6], 0 }
   0x2   :  { %10 = vsyncpa [#allocation4], 0  ;;  %s1089_s12 = smov [#allocation5]   ;;  %s995_s16 = scalar_lea.hbm %s1251_s1, 128 }
   0x3   :  { %s28_s13 = sshll.u32 %s1089_s12, 4  ;;  %p996_p0 = scmp.ne.s32.totalorder %s1251_s1, %s995_s16  ;;  %s29_s13 = int_to_ptr.vmem [resolvable:$true] %s28_s13 }
   0x4   :  { %p999_p1 = scmp.lt.u32.totalorder %s995_s16, %s1251_s1 }
   0x6   :  { %p1001_p2 = pnand %p999_p1, %p996_p0 }
   0x8   :  { %1004 = shalt.err (!%p1001_p2)
}
   0x9   :  { %s1005_s21 = scalar_lea.vmem %s29_s13, 128  ;;  %p1010_p4 = scmp.lt.s32.totalorder %s29_s13, %s29_s13 }
   0xa   :  { %p1006_p3 = scmp.ne.s32.totalorder %s29_s13, %s1005_s21  ;;  %p1011_p5 = scmp.lt.s32.totalorder %s1005_s21, %s1005_s21 }
   0xc   :  { %p1012_p6 = por %p1011_p5, %p1010_p4 }
   0xe   :  { %p1013_p7 = pnand %p1012_p6, %p1006_p3 }
  0x10   :  { %1016 = shalt.err (!%p1013_p7)
}
  0x11   :  { %s1090_s22 = smov 16   ;;  %s1091_s23 = smov 1  }
  0x12   :  { %34 = dma.hbm_to_vmem [thread:$0]  %s1251_s1, 128, %s29_s13, [#allocation6], %s1090_s22, %s1090_s22, %s1091_s23  }
  0x13   :  { %s1092_s26 = smov [#allocation2]   ;;  %s1017_s30 = scalar_lea.hbm %s1250_s0, 3584 }
  0x14   :  { %s16_s27 = sshll.u32 %s1092_s26, 4  ;;  %p1018_p8 = scmp.ne.s32.totalorder %s1250_s0, %s1017_s30  ;;  %s17_s27 = int_to_ptr.vmem [resolvable:$true] %s16_s27 }
  0x15   :  { %p1021_p9 = scmp.lt.u32.totalorder %s1017_s30, %s1250_s0 }
  0x17   :  { %p1023_p10 = pnand %p1021_p9, %p1018_p8 }
  0x19   :  { %1026 = shalt.err (!%p1023_p10)
}
  0x1a   :  { %s1027_s8 = scalar_lea.vmem %s17_s27, 3584  ;;  %p1032_p12 = scmp.lt.s32.totalorder %s17_s27, %s17_s27 }
  0x1b   :  { %p1028_p11 = scmp.ne.s32.totalorder %s17_s27, %s1027_s8  ;;  %p1033_p13 = scmp.lt.s32.totalorder %s1027_s8, %s1027_s8 }
  0x1d   :  { %p1034_p0 = por %p1033_p13, %p1032_p12 }
  0x1f   :  { %p1035_p1 = pnand %p1034_p0, %p1028_p11 }
  0x21   :  { %1038 = shalt.err (!%p1035_p1)
}
  0x22   :  { %s1093_s1 = smov 64   ;;  %s1094_s9 = smov 4  }
  0x23   :  { %22 = dma.hbm_to_vmem [thread:$0]  %s1250_s0, 3584, %s17_s27, [#allocation3], %s1093_s1, %s1093_s1, %s1094_s9  }
  0x24   :  { %s1095_s12 = smov [#allocation7]   ;;  %s1039_s16 = scalar_lea.hbm %s1252_s2, 256 }
  0x25   :  { %s40_s13 = sshll.u32 %s1095_s12, 4  ;;  %p1040_p2 = scmp.ne.s32.totalorder %s1252_s2, %s1039_s16  ;;  %s41_s13 = int_to_ptr.vmem [resolvable:$true] %s40_s13 }
  0x26   :  { %p1043_p3 = scmp.lt.u32.totalorder %s1039_s16, %s1252_s2 }
  0x28   :  { %p1045_p4 = pnand %p1043_p3, %p1040_p2 }
  0x2a   :  { %1048 = shalt.err (!%p1045_p4)
}
  0x2b   :  { %s1049_s21 = scalar_lea.vmem %s41_s13, 256  ;;  %p1054_p6 = scmp.lt.s32.totalorder %s41_s13, %s41_s13 }
  0x2c   :  { %p1050_p5 = scmp.ne.s32.totalorder %s41_s13, %s1049_s21  ;;  %p1055_p7 = scmp.lt.s32.totalorder %s1049_s21, %s1049_s21 }
  0x2e   :  { %p1056_p8 = por %p1055_p7, %p1054_p6 }
  0x30   :  { %p1057_p9 = pnand %p1056_p8, %p1050_p5 }
  0x32   :  { %1060 = shalt.err (!%p1057_p9)
}
  0x33   :  { %s1096_s0 = smov 32   ;;  %s1097_s24 = smov 2  }
  0x34   :  { %46 = dma.hbm_to_vmem [thread:$0]  %s1252_s2, 256, %s41_s13, [#allocation6], %s1096_s0, %s1096_s0, %s1097_s24  }
  0x35   :  { %1083 = dma.done.wait [#allocation3], 3584  }
  0x36   :  { %1084 = vsyncadd [#allocation3], 4294963712 }
  0x37   :  { %1085 = dma.done.wait [#allocation6], 384  }
  0x38   :  { %1086 = vsyncadd [#allocation6], 4294966912  ;;  %v1098_v0 = vmov 0.0   ;;  %vm1099_vm0 = vmmov 0   ;;  %v1100_v1 = vmov 0   ;;  %v963_v2 = vld [vmem:[#allocation2] sm:$0xff]  }
  0x39   :  { %852 = vmatprep.subr.bf16.mxu0 %v1098_v0  ;;  %864 = vmatprep.subr.bf16.mxu1 %v1098_v0  ;;  %v964_v3 = vld [vmem:[#allocation2 + $0x1c] sm:$0xff]   ;;  %v965_v4 = vld [vmem:[#allocation2 + $0x8] sm:$0xff]   ;;  %vm96_vm1 = vcmask 1040384   ;;  %v967_v7 = vld [vmem:[#allocation2 + $0x10] sm:$0xff]   ;;  %vm92_vm2 = vcmask 400384   ;;  %vm143_vm3 = vcmask 122880  }
  0x3a   :  { %860 = vmatprep.mubr.msk.bf16.mxu0 %vm1099_vm0, %v1098_v0  ;;  %872 = vmatprep.mubr.msk.bf16.mxu1 %vm1099_vm0, %v1098_v0  ;;  %v966_v5 = vld [vmem:[#allocation2 + $0x24] sm:$0xff]   ;;  %v1169_v6 = vsel %vm96_vm1, 65535, %v1100_v1  ;;  %v969_v8 = vld [vmem:[#allocation2 + $0x18] ss:$0 sps:$4 sm:$0x11]   ;;  %v968_v9 = vld [vmem:[#allocation2 + $0x2c] sm:$0xff]  }
  0x3b   :  { %961 = vset.pattern.permute.xlu0 %v1100_v1  ;;  %962 = vset.pattern.permute.xlu1 %v1100_v1  ;;  %v970_v10 = vld [vmem:[#allocation2 + $0x34] ss:$0 sps:$4 sm:$0x11]   ;;  %v100_v11 = vand.u32 %v969_v8, %v1169_v6  ;;  %v57_v13 = vld [vmem:[#allocation5] sm:$0x1]  ;;  %v971_v14 = vld [vmem:[#allocation2 + $0x38] sm:$0xff]  }
  0x3c   :  { %853 = vmatpush3.bf16.msra.mxu0 %v963_v2  ;;  %865 = vmatpush3.bf16.msra.mxu1 %v964_v3  ;;  %v187_v12 = vand.u32 %v970_v10, %v1169_v6  ;;  %v146_v15 = vld [vmem:[#allocation5 + $0x1] sm:$0x1]  ;;  %v972_v16 = vld [vmem:[#allocation2 + $0x54] sm:$0xff]   ;;  %v975_v19 = vld [vmem:[#allocation2 + $0x48] sm:$0xff]   ;;  %s1101_s2 = smov [#allocation8]  }
  0x3d   :  { %854 = vmatprep.subr.bf16.mxu0 %v1098_v0  ;;  %866 = vmatprep.subr.bf16.mxu1 %v1098_v0  ;;  %v973_v17 = vld [vmem:[#allocation2 + $0x40] sm:$0xff]   ;;  %v977_v20 = vld [vmem:[#allocation2 + $0x50] ss:$0 sps:$4 sm:$0x11]   ;;  %v65_v29 = vld [vmem:[#allocation7] sm:$0x3] }
  0x3e   :  { %v974_v18 = vld [vmem:[#allocation2 + $0x5c] sm:$0xff]   ;;  %v976_v21 = vld [vmem:[#allocation2 + $0x64] sm:$0xff]   ;;  %v978_v22 = vld [vmem:[#allocation2 + $0x6c] ss:$0 sps:$4 sm:$0x11]   ;;  %v274_v23 = vand.u32 %v977_v20, %v1169_v6  ;;  %68 = vperm.xlu0 %961, %v65_v29   ;;  %s759_s27 = sshll.u32 %s1101_s2, 4  ;;  %s760_s27 = int_to_ptr.vmem [resolvable:$true] %s759_s27 }
  0x3f   :  { %v361_v24 = vand.u32 %v978_v22, %v1169_v6  ;;  %v233_v25 = vld [vmem:[#allocation5 + $0x2] sm:$0x1]  ;;  %v979_v26 = vld [vmem:[#allocation2 + $0x70] sm:$0xff]   ;;  %v320_v27 = vld [vmem:[#allocation5 + $0x3] sm:$0x1]  ;;  %s1061_s28 = scalar_lea.vmem %s760_s27, 128  ;;  %p1066_p11 = scmp.lt.s32.totalorder %s760_s27, %s760_s27 }
  0x40   :  { %855 = vmatpush3.bf16.msra.mxu0 %v965_v4  ;;  %867 = vmatpush3.bf16.msra.mxu1 %v966_v5  ;;  %v980_v28 = vld [vmem:[#allocation2 + $0x8c] sm:$0xff]   ;;  %v981_v30 = vld [vmem:[#allocation2 + $0x78] sm:$0xff]   ;;  %v156_v31 = vld [vmem:[#allocation7 + $0x2] sm:$0x3]  ;;  %p1062_p10 = scmp.ne.s32.totalorder %s760_s27, %s1061_s28  ;;  %p1067_p12 = scmp.lt.s32.totalorder %s1061_s28, %s1061_s28 }
  0x41   :  { %856 = vmatprep.subr.bf16.mxu0 %v1098_v0  ;;  %868 = vmatprep.subr.bf16.mxu1 %v1098_v0  ;;  %v982_v32 = vld [vmem:[#allocation2 + $0x94] sm:$0xff]   ;;  %v243_v33 = vld [vmem:[#allocation7 + $0x4] sm:$0x3]  ;;  %v983_v34 = vld [vmem:[#allocation2 + $0x80] sm:$0xff]  }
  0x42   :  { %159 = vperm.xlu0 %961, %v156_v31   ;;  %v985_v35 = vld [vmem:[#allocation2 + $0x88] ss:$0 sps:$4 sm:$0x11]   ;;  %246 = vperm.xlu1 %962, %v243_v33   ;;  %v417_v36 = vld [vmem:[#allocation7 + $0x8] sm:$0x3]  ;;  %v984_v37 = vld [vmem:[#allocation2 + $0x9c] sm:$0xff]   ;;  %p1068_p13 = por %p1067_p12, %p1066_p11 }
  0x43   :  { %v986_v38 = vld [vmem:[#allocation2 + $0xa4] ss:$0 sps:$4 sm:$0x11]   ;;  %v330_v39 = vld [vmem:[#allocation7 + $0x6] sm:$0x3]  ;;  %v448_v40 = vand.u32 %v985_v35, %v1169_v6  ;;  %v989_v48 = vld [vmem:[#allocation2 + $0xb0] sm:$0xff]  }
  0x44   :  { %857 = vmatpush3.bf16.msra.mxu0 %v967_v7  ;;  %869 = vmatpush3.bf16.msra.mxu1 %v968_v9  ;;  %v591_v41 = vld [vmem:[#allocation7 + $0xc] sm:$0x3]  ;;  %v535_v42 = vand.u32 %v986_v38, %v1169_v6  ;;  %v504_v43 = vld [vmem:[#allocation7 + $0xa] sm:$0x3]  ;;  %v407_v44 = vld [vmem:[#allocation5 + $0x4] sm:$0x1]  ;;  %p1069_p0 = pnand %p1068_p13, %p1062_p10 }
  0x45   :  { %858 = vmatprep.subr.bf16.mxu0 %v1098_v0  ;;  %870 = vmatprep.subr.bf16.mxu1 %v1098_v0  ;;  %v987_v45 = vld [vmem:[#allocation2 + $0xa8] sm:$0xff]   ;;  %v494_v46 = vld [vmem:[#allocation5 + $0x5] sm:$0x1]  ;;  %v678_v49 = vld [vmem:[#allocation7 + $0xe] sm:$0x3] }
  0x46   :  { %420 = vperm.xlu0 %961, %v417_v36   ;;  %333 = vperm.xlu1 %962, %v330_v39   ;;  %v988_v47 = vld [vmem:[#allocation2 + $0xc4] sm:$0xff]   ;;  %v990_v50 = vld [vmem:[#allocation2 + $0xcc] sm:$0xff]   ;;  %v991_v51 = vld [vmem:[#allocation2 + $0xb8] sm:$0xff]  }
  0x47   :  { %v993_v52 = vld [vmem:[#allocation2 + $0xc0] ss:$0 sps:$4 sm:$0x11]   ;;  %v992_v53 = vld [vmem:[#allocation2 + $0xd4] sm:$0xff]   ;;  %v581_v57 = vld [vmem:[#allocation5 + $0x6] sm:$0x1] }
  0x48   :  { %859 = vmatpush3.bf16.msra.mxu0 %v100_v11  ;;  %871 = vmatpush3.bf16.msra.mxu1 %v187_v12  ;;  %v994_v54 = vld [vmem:[#allocation2 + $0xdc] ss:$0 sps:$4 sm:$0x11]   ;;  %v622_v55 = vand.u32 %v993_v52, %v1169_v6  ;;  %v668_v58 = vld [vmem:[#allocation5 + $0x7] sm:$0x1] }
  0x49   :  { %876 = vmatprep.subr.bf16.mxu0 %v1098_v0  ;;  %888 = vmatprep.subr.bf16.mxu1 %v1098_v0  ;;  %v709_v56 = vand.u32 %v994_v54, %v1169_v6 }
  0x4a   :  { %594 = vperm.xlu0 %961, %v591_v41   ;;  %507 = vperm.xlu1 %962, %v504_v43  }
  0x4b   :  { %861 = vmatmul.mubr.msk.bf16.vlgmr.msra.gmra.mrb[0].mxu0 %vm92_vm2, %v57_v13  ;;  %873 = vmatmul.mubr.msk.bf16.vlgmr.msra.gmra.mrb[0].mxu1 %vm92_vm2, %v146_v15 }
  0x4c   :  { %877 = vmatpush3.bf16.msra.mxu0 %v971_v14  ;;  %889 = vmatpush3.bf16.msra.mxu1 %v972_v16 }
  0x4d   :  { %878 = vmatprep.subr.bf16.mxu0 %v1098_v0  ;;  %890 = vmatprep.subr.bf16.mxu1 %v1098_v0 }
  0x4e   :  { %884 = vmatprep.mubr.msk.bf16.mxu0 %vm1099_vm0, %v1098_v0  ;;  %896 = vmatprep.mubr.msk.bf16.mxu1 %vm1099_vm0, %v1098_v0 }
  0x4f   :  { %681 = vperm.xlu1 %962, %v678_v49  }
  0x50   :  { %879 = vmatpush3.bf16.msra.mxu0 %v973_v17  ;;  %891 = vmatpush3.bf16.msra.mxu1 %v974_v18 }
  0x51   :  { %880 = vmatprep.subr.bf16.mxu0 %v1098_v0  ;;  %892 = vmatprep.subr.bf16.mxu1 %v1098_v0 }
  0x54   :  { %881 = vmatpush3.bf16.msra.mxu0 %v975_v19  ;;  %893 = vmatpush3.bf16.msra.mxu1 %v976_v21 }
  0x55   :  { %882 = vmatprep.subr.bf16.mxu0 %v1098_v0  ;;  %894 = vmatprep.subr.bf16.mxu1 %v1098_v0 }
  0x58   :  { %883 = vmatpush3.bf16.msra.mxu0 %v274_v23  ;;  %895 = vmatpush3.bf16.msra.mxu1 %v361_v24 }
  0x59   :  { %900 = vmatprep.subr.bf16.mxu0 %v1098_v0  ;;  %912 = vmatprep.subr.bf16.mxu1 %v1098_v0 }
  0x5b   :  { %885 = vmatmul.mubr.msk.bf16.vlgmr.msra.gmra.mrb[4].mxu0 %vm92_vm2, %v233_v25  ;;  %897 = vmatmul.mubr.msk.bf16.vlgmr.msra.gmra.mrb[4].mxu1 %vm92_vm2, %v320_v27 }
  0x5c   :  { %901 = vmatpush3.bf16.msra.mxu0 %v979_v26  ;;  %913 = vmatpush3.bf16.msra.mxu1 %v980_v28 }
  0x5d   :  { %902 = vmatprep.subr.bf16.mxu0 %v1098_v0  ;;  %914 = vmatprep.subr.bf16.mxu1 %v1098_v0 }
  0x5e   :  { %908 = vmatprep.mubr.msk.bf16.mxu0 %vm1099_vm0, %v1098_v0  ;;  %920 = vmatprep.mubr.msk.bf16.mxu1 %vm1099_vm0, %v1098_v0 }
  0x60   :  { %903 = vmatpush3.bf16.msra.mxu0 %v981_v30  ;;  %915 = vmatpush3.bf16.msra.mxu1 %v982_v32 }
  0x61   :  { %904 = vmatprep.subr.bf16.mxu0 %v1098_v0  ;;  %916 = vmatprep.subr.bf16.mxu1 %v1098_v0 }
  0x64   :  { %905 = vmatpush3.bf16.msra.mxu0 %v983_v34  ;;  %917 = vmatpush3.bf16.msra.mxu1 %v984_v37 }
  0x65   :  { %906 = vmatprep.subr.bf16.mxu0 %v1098_v0  ;;  %918 = vmatprep.subr.bf16.mxu1 %v1098_v0 }
  0x68   :  { %907 = vmatpush3.bf16.msra.mxu0 %v448_v40  ;;  %919 = vmatpush3.bf16.msra.mxu1 %v535_v42 }
  0x69   :  { %924 = vmatprep.subr.bf16.mxu0 %v1098_v0  ;;  %936 = vmatprep.subr.bf16.mxu1 %v1098_v0 }
  0x6b   :  { %909 = vmatmul.mubr.msk.bf16.vlgmr.msra.gmra.mrb[8].mxu0 %vm92_vm2, %v407_v44  ;;  %921 = vmatmul.mubr.msk.bf16.vlgmr.msra.gmra.mrb[8].mxu1 %vm92_vm2, %v494_v46 }
  0x6c   :  { %925 = vmatpush3.bf16.msra.mxu0 %v987_v45  ;;  %937 = vmatpush3.bf16.msra.mxu1 %v988_v47 }
  0x6d   :  { %926 = vmatprep.subr.bf16.mxu0 %v1098_v0  ;;  %938 = vmatprep.subr.bf16.mxu1 %v1098_v0 }
  0x6e   :  { %932 = vmatprep.mubr.msk.bf16.mxu0 %vm1099_vm0, %v1098_v0  ;;  %944 = vmatprep.mubr.msk.bf16.mxu1 %vm1099_vm0, %v1098_v0 }
  0x70   :  { %927 = vmatpush3.bf16.msra.mxu0 %v989_v48  ;;  %939 = vmatpush3.bf16.msra.mxu1 %v990_v50 }
  0x71   :  { %928 = vmatprep.subr.bf16.mxu0 %v1098_v0  ;;  %940 = vmatprep.subr.bf16.mxu1 %v1098_v0 }
  0x74   :  { %929 = vmatpush3.bf16.msra.mxu0 %v991_v51  ;;  %941 = vmatpush3.bf16.msra.mxu1 %v992_v53 }
  0x75   :  { %930 = vmatprep.subr.bf16.mxu0 %v1098_v0  ;;  %942 = vmatprep.subr.bf16.mxu1 %v1098_v0 }
  0x78   :  { %931 = vmatpush3.bf16.msra.mxu0 %v622_v55  ;;  %943 = vmatpush3.bf16.msra.mxu1 %v709_v56 }
  0x7b   :  { %933 = vmatmul.mubr.msk.bf16.vlgmr.msra.gmra.mrb[12].mxu0 %vm92_vm2, %v581_v57  ;;  %945 = vmatmul.mubr.msk.bf16.vlgmr.msra.gmra.mrb[12].mxu1 %vm92_vm2, %v668_v58 }
  0xbd   :  { %v69_v59 = vpop.permute.xlu0 %68 }
  0xc1   :  { %v160_v60 = vpop.permute.xlu0 %159  ;;  %v247_v9 = vpop.permute.xlu1 %246 }
  0xc5   :  { %v334_v10 = vpop.permute.xlu1 %333  ;;  %v421_v23 = vpop.permute.xlu0 %420 }
  0xc9   :  { %v508_v24 = vpop.permute.xlu1 %507  ;;  %v595_v37 = vpop.permute.xlu0 %594 }
  0xce   :  { %v682_v38 = vpop.permute.xlu1 %681 }
 0x11e   :  { %v136_v61 = vpop.f32.mrb[0].mxu0  ;;  %v223_v63 = vpop.f32.mrb[0].mxu1 }
 0x11f   :  { %v137_v62 = vadd.f32 %v136_v61, %v69_v59  ;;  %v862_v1 = vpop.f32.mrb[1].mxu0  ;;  %v874_v2 = vpop.f32.mrb[1].mxu1  ;;  %v224_v3 = vadd.f32 %v223_v63, %v160_v60 }
 0x120   :  { %v139_v4 = vpop.f32.mrb[2].mxu0  ;;  %v226_v0 = vpop.f32.mrb[2].mxu1 }
 0x121   :  { %v142_v5 = vpack.c.bf16 %v137_v62, %v137_v62  ;;  %v863_v6 = vpop.f32.mrb[3].mxu0  ;;  %v229_v7 = vpack.c.bf16 %v224_v3, %v224_v3  ;;  %v875_v8 = vpop.f32.mrb[3].mxu1 }
 0x123   :  { %144 = vst.msk [vmem:[#allocation8] sm:$0x1] %vm143_vm3, %v142_v5  ;;  %231 = vst.msk [vmem:[#allocation8 + $0x1] sm:$0x1] %vm143_vm3, %v229_v7 }
 0x12e   :  { %v310_v11 = vpop.f32.mrb[4].mxu0  ;;  %v397_v13 = vpop.f32.mrb[4].mxu1 }
 0x12f   :  { %v311_v12 = vadd.f32 %v310_v11, %v247_v9  ;;  %v886_v14 = vpop.f32.mrb[5].mxu0  ;;  %v398_v15 = vadd.f32 %v397_v13, %v334_v10  ;;  %v898_v16 = vpop.f32.mrb[5].mxu1 }
 0x130   :  { %v313_v17 = vpop.f32.mrb[6].mxu0  ;;  %v400_v19 = vpop.f32.mrb[6].mxu1 }
 0x131   :  { %v316_v18 = vpack.c.bf16 %v311_v12, %v311_v12  ;;  %v887_v20 = vpop.f32.mrb[7].mxu0  ;;  %v403_v21 = vpack.c.bf16 %v398_v15, %v398_v15  ;;  %v899_v22 = vpop.f32.mrb[7].mxu1 }
 0x133   :  { %318 = vst.msk [vmem:[#allocation8 + $0x2] sm:$0x1] %vm143_vm3, %v316_v18  ;;  %405 = vst.msk [vmem:[#allocation8 + $0x3] sm:$0x1] %vm143_vm3, %v403_v21 }
 0x13e   :  { %v484_v25 = vpop.f32.mrb[8].mxu0  ;;  %v571_v26 = vpop.f32.mrb[8].mxu1 }
 0x13f   :  { %v485_v27 = vadd.f32 %v484_v25, %v421_v23  ;;  %v910_v28 = vpop.f32.mrb[9].mxu0  ;;  %v572_v29 = vadd.f32 %v571_v26, %v508_v24  ;;  %v922_v30 = vpop.f32.mrb[9].mxu1 }
 0x140   :  { %v487_v31 = vpop.f32.mrb[10].mxu0  ;;  %v574_v33 = vpop.f32.mrb[10].mxu1 }
 0x141   :  { %v490_v32 = vpack.c.bf16 %v485_v27, %v485_v27  ;;  %v911_v34 = vpop.f32.mrb[11].mxu0  ;;  %v577_v35 = vpack.c.bf16 %v572_v29, %v572_v29  ;;  %v923_v36 = vpop.f32.mrb[11].mxu1 }
 0x143   :  { %492 = vst.msk [vmem:[#allocation8 + $0x4] sm:$0x1] %vm143_vm3, %v490_v32  ;;  %579 = vst.msk [vmem:[#allocation8 + $0x5] sm:$0x1] %vm143_vm3, %v577_v35 }
 0x14e   :  { %v658_v39 = vpop.f32.mrb[12].mxu0  ;;  %v745_v41 = vpop.f32.mrb[12].mxu1 }
 0x14f   :  { %v659_v40 = vadd.f32 %v658_v39, %v595_v37  ;;  %v934_v42 = vpop.f32.mrb[13].mxu0  ;;  %v746_v43 = vadd.f32 %v745_v41, %v682_v38  ;;  %v946_v44 = vpop.f32.mrb[13].mxu1 }
 0x150   :  { %v661_v45 = vpop.f32.mrb[14].mxu0  ;;  %v748_v47 = vpop.f32.mrb[14].mxu1 }
 0x151   :  { %v664_v46 = vpack.c.bf16 %v659_v40, %v659_v40  ;;  %v935_v48 = vpop.f32.mrb[15].mxu0  ;;  %v751_v49 = vpack.c.bf16 %v746_v43, %v746_v43  ;;  %v947_v50 = vpop.f32.mrb[15].mxu1 }
 0x153   :  { %666 = vst.msk [vmem:[#allocation8 + $0x6] sm:$0x1] %vm143_vm3, %v664_v46  ;;  %753 = vst.msk [vmem:[#allocation8 + $0x7] sm:$0x1] %vm143_vm3, %v751_v49 }
 0x154   :  { %1072 = shalt.err (!%p1069_p0)
}
 0x155   :  { %s1073_s4 = scalar_lea.hbm %s1253_s3, 128 }
 0x156   :  { %p1074_p1 = scmp.ne.s32.totalorder %s1253_s3, %s1073_s4  ;;  %p1077_p2 = scmp.lt.u32.totalorder %s1073_s4, %s1253_s3 }
 0x158   :  { %p1079_p3 = pnand %p1077_p2, %p1074_p1 }
 0x15a   :  { %1082 = shalt.err (!%p1079_p3)
}
 0x15b   :  { %765 = dma.vmem_to_hbm [thread:$0]  %s760_s27, 128, %s1253_s3, [#allocation4], %s1090_s22, %s1090_s22, %s1091_s23  }
 0x15c   :  { %1087 = dma.done.wait [#allocation4], 128  }
 0x15d   :  { %1088 = vsyncadd [#allocation4], 4294967168 }
 0x15e   :  { %769 = vsyncpa [#allocation3], 1 }
 0x15f   :  { %770 = vsyncpa [#allocation6], 1 }
 0x160   :  { %771 = vsyncpa [#allocation4], 1 }

// kernel: simvp_aug_forward.69
= control target key start
LH: loop header
LB: loop body
LE: loop exit
PB: predicated region body
PF: predicated region fallthrough
CT: control target
= control target key end

     0   :  { %s413_s12 = smov 0   ;;  %s447_s0 = inlined_call_operand.vmem [shape: bf16[16,1,16], index: 0, kind: input, shape index: {}]   ;;  %s448_s1 = inlined_call_operand.vmem [shape: f32[16,1,1], index: 1, kind: input, shape index: {}]   ;;  %s449_s2 = inlined_call_operand.vmem [shape: f32[16,1,1], index: 2, kind: input, shape index: {}]   ;;  %s450_s3 = inlined_call_operand.vmem [shape: bf16[16,1,16], index: 3, kind: output, shape index: {}]  }
   0x1 LB: > { %s360_s13 = sadd.s32 4294967295, %s390_s12   ;;  %p364_p0 = scmp.ge.s32.totalorder %s390_s12, 1  ;;  %s390_s12 = sphi %s413_s12, %s13_s12  }
   0x2   : > { %p157_p1 = scmp.lt.s32.totalorder %s390_s12, 9 }
   0x4   : > { %p158_p2 = pnand %p364_p0, %p157_p1 }
   0x5   : > { %s365_s14 = sshll.u32 (!%p158_p2), %s360_s13, 1  ;;  %v392_v0 = vmov (!%p158_p2), 0   ;;  %vm211_vm0 = vcmask (!%p158_p2), 122880   ;;  %v241_v24 = vlaneseq (!%p158_p2)  ;;  %vm287_vm1 = vsmask.f32 (!%p158_p2), 256 }
   0x6   : > { %161 = sbr.rel (%p158_p2) target bundleno = 197 (0xc5), region = 32  ;;  %p188_p3 = scmp.lt.s32.totalorder (!%p158_p2), %s365_s14, 15  ;;  %380 = vset.pattern.permute.xlu1 (!%p158_p2), %v392_v0  ;;  %381 = vset.pattern.permute.xlu0 (!%p158_p2), %v392_v0  ;;  %vm288_vm4 = vmand (!%p158_p2), %vm211_vm0, %vm287_vm1 }
   0x7   : > { %v242_v26 = vshrl.u32 (!%p158_p2), %v241_v24, 7 }
   0x9   : > { %v243_v28 = vsub.s32 (!%p158_p2), 0, %v242_v26 }
   0xd   : > { %s452_s14 = smov (!%p188_p3, %s365_s14), 15 }
   0xe   : > { %s190_s17 = scalar_lea.vmem %s447_s0, %s452_s14  ;;  %s195_s20 = scalar_lea.vmem %s448_s1, %s452_s14 }
   0xf   : > { %v207_v1 = vld [vmem:[%s190_s17] sm:$0x1]  ;;  %v208_v2 = vld [vmem:[%s190_s17 + $0x1] sm:$0x1]  ;;  %s200_s23 = scalar_lea.vmem %s449_s2, %s452_s14  ;;  %s205_s26 = scalar_lea.vmem %s450_s3, %s452_s14 }
  0x10   : > { %v234_v3 = vld [vmem:[%s195_s20] sm:$0x1]  ;;  %v209_v4 = vunpack.c.l.bf16 %v207_v1  ;;  %v210_v5 = vunpack.c.l.bf16 %v208_v2  ;;  %v235_v6 = vld [vmem:[%s195_s20 + $0x1] sm:$0x1] }
  0x11   : > { %238 = vperm.xlu1 %380, %v234_v3   ;;  %v257_v15 = vld [vmem:[%s200_s23 + $0x1] sm:$0x1]  ;;  %v256_v16 = vld [vmem:[%s200_s23] sm:$0x1] }
  0x12   : > { %v212_v7 = vsel %vm211_vm0, %v209_v4, 0.0  ;;  %v213_v8 = vsel %vm211_vm0, %v210_v5, 0.0  ;;  %v217_v9 = vmul.f32 %v209_v4, %v209_v4  ;;  %v218_v10 = vmul.f32 %v210_v5, %v210_v5  ;;  %v292_v46 = vld [vmem:[%s205_s26 + $0x1] sm:$0x1]  ;;  %v289_v48 = vld [vmem:[%s205_s26] sm:$0x1] }
  0x13   : > { %v214_v11 = vadd.f32 %v213_v8, %v212_v7 }
  0x14   : > { %v219_v12 = vsel %vm211_vm0, %v217_v9, 0.0  ;;  %v220_v13 = vsel %vm211_vm0, %v218_v10, 0.0 }
  0x15   : > { %247 = vperm.xlu1 %380, %v235_v6   ;;  %215 = vadd.xlane.f32.xlu0 %v214_v11  ;;  %v221_v14 = vadd.f32 %v220_v13, %v219_v12 }
  0x19   : > { %269 = vperm.xlu1 %380, %v257_v15   ;;  %222 = vadd.xlane.f32.xlu0 %v221_v14 }
  0x2f   : > { %260 = vperm.xlu0 %381, %v256_v16  }
  0x90   : > { %v239_v25 = vpop.permute.xlu1 %238 }
  0x91   : > { %v244_v33 = vrot.slane %v239_v25, %v243_v28 }
  0x94   : > { %v248_v27 = vpop.permute.xlu1 %247 }
  0x95   : > { %v253_v37 = vrot.slane %v248_v27, %v243_v28 }
  0x98   : > { %v270_v34 = vpop.permute.xlu1 %269 }
  0x99   : > { %v275_v41 = vrot.slane %v270_v34, %v243_v28 }
  0xa2   : > { %v216_v17 = vpop.xlane.xlu0 %215 }
  0xa3   : > { %v224_v18 = vmul.f32 0.03125, %v216_v17 }
  0xa5   : > { %v226_v20 = vmul.f32 %v224_v18, %v224_v18  ;;  %v228_v30 = vsub.f32 %v209_v4, %v224_v18  ;;  %v229_v31 = vsub.f32 %v210_v5, %v224_v18 }
  0xa6   : > { %v223_v19 = vpop.xlane.xlu0 %222 }
  0xa7   : > { %v225_v21 = vmul.f32 0.03125, %v223_v19 }
  0xa9   : > { %v227_v22 = vsub.f32 %v225_v21, %v226_v20 }
  0xab   : > { %v230_v23 = vadd.f32 1e-05, %v227_v22 }
  0xad   : > { %382 = vrsqrt.f32 %v230_v23 }
  0xae   : > { %v261_v29 = vpop.permute.xlu0 %260 }
  0xaf   : > { %v266_v38 = vrot.slane %v261_v29, %v243_v28 }
  0xb7   : > { %v383_v32 = vpop.eup %382 }
  0xb8   : > { %v232_v35 = vmul.f32 %v383_v32, %v228_v30  ;;  %v233_v36 = vmul.f32 %v383_v32, %v229_v31 }
  0xba   : > { %v254_v39 = vmul.f32 %v244_v33, %v232_v35  ;;  %v255_v40 = vmul.f32 %v253_v37, %v233_v36 }
  0xbc   : > { %v277_v42 = vadd.f32 %v275_v41, %v255_v40  ;;  %v276_v43 = vadd.f32 %v266_v38, %v254_v39 }
  0xbe   : > { %vm279_vm2 = vcmp.gt.f32.partialorder %v277_v42, 0.0  ;;  %v281_v44 = vmul.f32 0.2, %v277_v42  ;;  %vm278_vm3 = vcmp.gt.f32.partialorder %v276_v43, 0.0  ;;  %v280_v45 = vmul.f32 0.2, %v276_v43 }
  0xc0   : > { %v283_v47 = vsel %vm279_vm2, %v277_v42, %v281_v44  ;;  %v282_v49 = vsel %vm278_vm3, %v276_v43, %v280_v45 }
  0xc1   : > { %v285_v50 = vpack.c.bf16 %v283_v47, %v283_v47  ;;  %v284_v51 = vpack.c.bf16 %v282_v49, %v282_v49 }
  0xc3   : > { %v293_v52 = vsel %vm288_vm4, %v285_v50, %v292_v46  ;;  %v290_v53 = vsel %vm288_vm4, %v284_v51, %v289_v48 }
  0xc4   : > { %294 = vst [vmem:[%s205_s26 + $0x1] sm:$0x1] %v293_v52  ;;  %291 = vst [vmem:[%s205_s26] sm:$0x1] %v290_v53 }
  0xc5 PF: > { %s13_s12 = sadd.s32 1, %s390_s12  }
  0xc6   : > { %p10_p4 = scmp.ge.s32.totalorder %s13_s12, 10  }
  0xc8   :  { %12 = sbr.rel (!%p10_p4) target bundleno = 1 (0x1), region = 68 }

// kernel: simvp_aug_forward.88
= control target key start
LH: loop header
LB: loop body
LE: loop exit
PB: predicated region body
PF: predicated region fallthrough
CT: control target
= control target key end

     0   :  { %8 = vsyncpa [#allocation3], 0  ;;  %s343_s0 = inlined_call_operand.hbm [shape: bf16[1,32,16], index: 0, kind: input, shape index: {}]   ;;  %s344_s1 = inlined_call_operand.hbm [shape: bf16[1,8,32], index: 1, kind: input, shape index: {}]   ;;  %s345_s2 = inlined_call_operand.hbm [shape: f32[1,8,1], index: 2, kind: input, shape index: {}]   ;;  %s346_s3 = inlined_call_operand.hbm [shape: bf16[1,8,16], index: 3, kind: output, shape index: {}]  }
   0x1   :  { %9 = vsyncpa [#allocation6], 0 }
   0x2   :  { %10 = vsyncpa [#allocation4], 0  ;;  %s259_s12 = smov [#allocation5]   ;;  %s260_s14 = smov [#allocation2]  }
   0x3   :  { %s29_s13 = sshll.u32 %s259_s12, 4  ;;  %s16_s15 = sshll.u32 %s260_s14, 4  ;;  %s30_s13 = int_to_ptr.vmem [resolvable:$true] %s29_s13  ;;  %s288_s15 = int_to_ptr.vmem [resolvable:$true] %s16_s15 }
   0x4   :  { %s165_s18 = scalar_lea.hbm %s344_s1, 64 }
   0x5   :  { %p166_p0 = scmp.ne.s32.totalorder %s344_s1, %s165_s18  ;;  %p169_p1 = scmp.lt.u32.totalorder %s165_s18, %s344_s1 }
   0x7   :  { %p171_p2 = pnand %p169_p1, %p166_p0 }
   0x9   :  { %174 = shalt.err (!%p171_p2)
}
   0xa   :  { %s175_s23 = scalar_lea.vmem %s30_s13, 64  ;;  %p180_p4 = scmp.lt.s32.totalorder %s30_s13, %s30_s13 }
   0xb   :  { %p176_p3 = scmp.ne.s32.totalorder %s30_s13, %s175_s23  ;;  %p181_p5 = scmp.lt.s32.totalorder %s175_s23, %s175_s23 }
   0xd   :  { %p182_p6 = por %p181_p5, %p180_p4 }
   0xf   :  { %p183_p7 = pnand %p182_p6, %p176_p3 }
  0x11   :  { %186 = shalt.err (!%p183_p7)
}
  0x12   :  { %32 = dma.hbm_to_vmem [thread:$0]  %s344_s1, 64, %s30_s13, [#allocation6]  }
  0x13   :  { %s187_s28 = scalar_lea.hbm %s343_s0, 256 }
  0x14   :  { %p188_p8 = scmp.ne.s32.totalorder %s343_s0, %s187_s28  ;;  %p191_p9 = scmp.lt.u32.totalorder %s187_s28, %s343_s0 }
  0x16   :  { %p193_p10 = pnand %p191_p9, %p188_p8 }
  0x18   :  { %196 = shalt.err (!%p193_p10)
}
  0x19   :  { %s197_s6 = scalar_lea.vmem %s288_s15, 256  ;;  %p202_p12 = scmp.lt.s32.totalorder %s288_s15, %s288_s15 }
  0x1a   :  { %p198_p11 = scmp.ne.s32.totalorder %s288_s15, %s197_s6  ;;  %p203_p13 = scmp.lt.s32.totalorder %s197_s6, %s197_s6 }
  0x1c   :  { %p204_p0 = por %p203_p13, %p202_p12 }
  0x1e   :  { %p205_p1 = pnand %p204_p0, %p198_p11 }
  0x20   :  { %208 = shalt.err (!%p205_p1)
}
  0x21   :  { %s261_s1 = smov 64   ;;  %s262_s7 = smov 4  }
  0x22   :  { %22 = dma.hbm_to_vmem [thread:$0]  %s343_s0, 256, %s288_s15, [#allocation3], %s261_s1, %s261_s1, %s262_s7  }
  0x23   :  { %s263_s10 = smov [#allocation7]   ;;  %s209_s14 = scalar_lea.hbm %s345_s2, 128 }
  0x24   :  { %s39_s11 = sshll.u32 %s263_s10, 4  ;;  %p210_p2 = scmp.ne.s32.totalorder %s345_s2, %s209_s14  ;;  %s40_s11 = int_to_ptr.vmem [resolvable:$true] %s39_s11 }
  0x25   :  { %p213_p3 = scmp.lt.u32.totalorder %s209_s14, %s345_s2 }
  0x27   :  { %p215_p4 = pnand %p213_p3, %p210_p2 }
  0x29   :  { %218 = shalt.err (!%p215_p4)
}
  0x2a   :  { %s219_s20 = scalar_lea.vmem %s40_s11, 128  ;;  %p224_p6 = scmp.lt.s32.totalorder %s40_s11, %s40_s11 }
  0x2b   :  { %p220_p5 = scmp.ne.s32.totalorder %s40_s11, %s219_s20  ;;  %p225_p7 = scmp.lt.s32.totalorder %s219_s20, %s219_s20 }
  0x2d   :  { %p226_p8 = por %p225_p7, %p224_p6 }
  0x2f   :  { %p227_p9 = pnand %p226_p8, %p220_p5 }
  0x31   :  { %230 = shalt.err (!%p227_p9)
}
  0x32   :  { %42 = dma.hbm_to_vmem [thread:$0]  %s345_s2, 128, %s40_s11, [#allocation6]  }
  0x33   :  { %253 = dma.done.wait [#allocation3], 256  }
  0x34   :  { %254 = vsyncadd [#allocation3], 4294967040 }
  0x35   :  { %255 = dma.done.wait [#allocation6], 192  }
  0x36   :  { %256 = vsyncadd [#allocation6], 4294967104  ;;  %v264_v0 = vmov 0.0   ;;  %vm265_vm0 = vmmov 0   ;;  %v266_v1 = vmov 0   ;;  %v163_v2 = vld [vmem:[#allocation2] sm:$0xff]  }
  0x37   :  { %145 = vmatprep.subr.bf16.mxu0 %v264_v0  ;;  %149 = vmatprep.mubr.msk.bf16.mxu0 %vm265_vm0, %v264_v0  ;;  %v164_v3 = vld [vmem:[#allocation2 + $0x8] sm:$0xff]   ;;  %v58_v4 = vld [vmem:[#allocation7] sm:$0xff]  ;;  %v53_v5 = vld [vmem:[#allocation5] sm:$0xf]  ;;  %vm76_vm1 = vcmask 261120   ;;  %s267_s2 = smov [#allocation8]  }
  0x38   :  { %162 = vset.pattern.permute.xlu0 %v266_v1  ;;  %146 = vmatpush3.bf16.msra.mxu0 %v163_v2  ;;  %s129_s21 = sshll.u32 %s267_s2, 4  ;;  %vm121_vm2 = vcmask 125952   ;;  %s130_s21 = int_to_ptr.vmem [resolvable:$true] %s129_s21 }
  0x39   :  { %147 = vmatprep.subr.bf16.mxu0 %v264_v0  ;;  %61 = vperm.xlu0 %162, %v58_v4   ;;  %s231_s22 = scalar_lea.vmem %s130_s21, 64  ;;  %p236_p11 = scmp.lt.s32.totalorder %s130_s21, %s130_s21 }
  0x3a   :  { %p232_p10 = scmp.ne.s32.totalorder %s130_s21, %s231_s22  ;;  %p237_p12 = scmp.lt.s32.totalorder %s231_s22, %s231_s22 }
  0x3c   :  { %148 = vmatpush3.bf16.msra.mxu0 %v164_v3  ;;  %p238_p13 = por %p237_p12, %p236_p11 }
  0x3e   :  { %p239_p0 = pnand %p238_p13, %p232_p10 }
  0x3f   :  { %150 = vmatmul.mubr.msk.bf16.vlgmr.msra.gmra.mrb[0].mxu0 %vm76_vm1, %v53_v5 }
  0xb8   :  { %v62_v6 = vpop.permute.xlu0 %61 }
 0x112   :  { %v114_v7 = vpop.f32.mrb[0].mxu0 }
 0x113   :  { %v115_v8 = vadd.f32 %v114_v7, %v62_v6  ;;  %v151_v9 = vpop.f32.mrb[1].mxu0 }
 0x114   :  { %v117_v10 = vpop.f32.mrb[2].mxu0 }
 0x115   :  { %v120_v11 = vpack.c.bf16 %v115_v8, %v115_v8  ;;  %v152_v12 = vpop.f32.mrb[3].mxu0 }
 0x117   :  { %122 = vst.msk [vmem:[#allocation8] sm:$0xf] %vm121_vm2, %v120_v11 }
 0x118   :  { %242 = shalt.err (!%p239_p0)
}
 0x119   :  { %s243_s25 = scalar_lea.hbm %s346_s3, 64 }
 0x11a   :  { %p244_p1 = scmp.ne.s32.totalorder %s346_s3, %s243_s25  ;;  %p247_p2 = scmp.lt.u32.totalorder %s243_s25, %s346_s3 }
 0x11c   :  { %p249_p3 = pnand %p247_p2, %p244_p1 }
 0x11e   :  { %252 = shalt.err (!%p249_p3)
}
 0x11f   :  { %132 = dma.vmem_to_hbm [thread:$0]  %s130_s21, 64, %s346_s3, [#allocation4]  }
 0x120   :  { %257 = dma.done.wait [#allocation4], 64  }
 0x121   :  { %258 = vsyncadd [#allocation4], 4294967232 }
 0x122   :  { %136 = vsyncpa [#allocation3], 1 }
 0x123   :  { %137 = vsyncpa [#allocation6], 1 }
 0x124   :  { %138 = vsyncpa [#allocation4], 1 }

// kernel: simvp_aug_forward.68
= control target key start
LH: loop header
LB: loop body
LE: loop exit
PB: predicated region body
PF: predicated region fallthrough
CT: control target
= control target key end

     0   :  { %8 = vsyncpa [#allocation3], 0  ;;  %s1725_s0 = inlined_call_operand.hbm [shape: bf16[8,121,16], index: 0, kind: input, shape index: {}]   ;;  %s1726_s1 = inlined_call_operand.hbm [shape: bf16[8,2,121], index: 1, kind: input, shape index: {}]   ;;  %s1727_s2 = inlined_call_operand.hbm [shape: f32[8,2,1], index: 2, kind: input, shape index: {}]   ;;  %s1728_s3 = inlined_call_operand.hbm [shape: bf16[8,2,16], index: 3, kind: output, shape index: {}]  }
   0x1   :  { %9 = vsyncpa [#allocation6], 0 }
   0x2   :  { %10 = vsyncpa [#allocation4], 0  ;;  %s1531_s12 = smov [#allocation5]   ;;  %s1437_s16 = scalar_lea.hbm %s1726_s1, 128 }
   0x3   :  { %s28_s13 = sshll.u32 %s1531_s12, 4  ;;  %p1438_p0 = scmp.ne.s32.totalorder %s1726_s1, %s1437_s16  ;;  %s29_s13 = int_to_ptr.vmem [resolvable:$true] %s28_s13 }
   0x4   :  { %p1441_p1 = scmp.lt.u32.totalorder %s1437_s16, %s1726_s1 }
   0x6   :  { %p1443_p2 = pnand %p1441_p1, %p1438_p0 }
   0x8   :  { %1446 = shalt.err (!%p1443_p2)
}
   0x9   :  { %s1447_s21 = scalar_lea.vmem %s29_s13, 128  ;;  %p1452_p4 = scmp.lt.s32.totalorder %s29_s13, %s29_s13 }
   0xa   :  { %p1448_p3 = scmp.ne.s32.totalorder %s29_s13, %s1447_s21  ;;  %p1453_p5 = scmp.lt.s32.totalorder %s1447_s21, %s1447_s21 }
   0xc   :  { %p1454_p6 = por %p1453_p5, %p1452_p4 }
   0xe   :  { %p1455_p7 = pnand %p1454_p6, %p1448_p3 }
  0x10   :  { %1458 = shalt.err (!%p1455_p7)
}
  0x11   :  { %s1532_s22 = smov 16   ;;  %s1533_s23 = smov 1  }
  0x12   :  { %34 = dma.hbm_to_vmem [thread:$0]  %s1726_s1, 128, %s29_s13, [#allocation6], %s1532_s22, %s1532_s22, %s1533_s23  }
  0x13   :  { %s1534_s26 = smov [#allocation2]   ;;  %s1459_s30 = scalar_lea.hbm %s1725_s0, 8192 }
  0x14   :  { %s16_s27 = sshll.u32 %s1534_s26, 4  ;;  %p1460_p8 = scmp.ne.s32.totalorder %s1725_s0, %s1459_s30  ;;  %s17_s27 = int_to_ptr.vmem [resolvable:$true] %s16_s27 }
  0x15   :  { %p1463_p9 = scmp.lt.u32.totalorder %s1459_s30, %s1725_s0 }
  0x17   :  { %p1465_p10 = pnand %p1463_p9, %p1460_p8 }
  0x19   :  { %1468 = shalt.err (!%p1465_p10)
}
  0x1a   :  { %s1469_s8 = scalar_lea.vmem %s17_s27, 8192  ;;  %p1474_p12 = scmp.lt.s32.totalorder %s17_s27, %s17_s27 }
  0x1b   :  { %p1470_p11 = scmp.ne.s32.totalorder %s17_s27, %s1469_s8  ;;  %p1475_p13 = scmp.lt.s32.totalorder %s1469_s8, %s1469_s8 }
  0x1d   :  { %p1476_p0 = por %p1475_p13, %p1474_p12 }
  0x1f   :  { %p1477_p1 = pnand %p1476_p0, %p1470_p11 }
  0x21   :  { %1480 = shalt.err (!%p1477_p1)
}
  0x22   :  { %s1535_s1 = smov 64   ;;  %s1536_s9 = smov 4  }
  0x23   :  { %22 = dma.hbm_to_vmem [thread:$0]  %s1725_s0, 8192, %s17_s27, [#allocation3], %s1535_s1, %s1535_s1, %s1536_s9  }
  0x24   :  { %s1537_s12 = smov [#allocation7]   ;;  %s1481_s16 = scalar_lea.hbm %s1727_s2, 256 }
  0x25   :  { %s40_s13 = sshll.u32 %s1537_s12, 4  ;;  %p1482_p2 = scmp.ne.s32.totalorder %s1727_s2, %s1481_s16  ;;  %s41_s13 = int_to_ptr.vmem [resolvable:$true] %s40_s13 }
  0x26   :  { %p1485_p3 = scmp.lt.u32.totalorder %s1481_s16, %s1727_s2 }
  0x28   :  { %p1487_p4 = pnand %p1485_p3, %p1482_p2 }
  0x2a   :  { %1490 = shalt.err (!%p1487_p4)
}
  0x2b   :  { %s1491_s21 = scalar_lea.vmem %s41_s13, 256  ;;  %p1496_p6 = scmp.lt.s32.totalorder %s41_s13, %s41_s13 }
  0x2c   :  { %p1492_p5 = scmp.ne.s32.totalorder %s41_s13, %s1491_s21  ;;  %p1497_p7 = scmp.lt.s32.totalorder %s1491_s21, %s1491_s21 }
  0x2e   :  { %p1498_p8 = por %p1497_p7, %p1496_p6 }
  0x30   :  { %p1499_p9 = pnand %p1498_p8, %p1492_p5 }
  0x32   :  { %1502 = shalt.err (!%p1499_p9)
}
  0x33   :  { %s1538_s0 = smov 32   ;;  %s1539_s24 = smov 2  }
  0x34   :  { %46 = dma.hbm_to_vmem [thread:$0]  %s1727_s2, 256, %s41_s13, [#allocation6], %s1538_s0, %s1538_s0, %s1539_s24  }
  0x35   :  { %1525 = dma.done.wait [#allocation3], 8192  }
  0x36   :  { %1526 = vsyncadd [#allocation3], 4294959104 }
  0x37   :  { %1527 = dma.done.wait [#allocation6], 384  }
  0x38   :  { %1528 = vsyncadd [#allocation6], 4294966912  ;;  %v1540_v0 = vmov 0.0   ;;  %vm1541_vm0 = vmmov 0   ;;  %v1542_v1 = vmov 0   ;;  %v1373_v2 = vld [vmem:[#allocation2] sm:$0xff]  }
  0x39   :  { %1197 = vmatprep.subr.bf16.mxu0 %v1540_v0  ;;  %1217 = vmatprep.subr.bf16.mxu1 %v1540_v0  ;;  %v1374_v3 = vld [vmem:[#allocation2 + $0x40] sm:$0xff]   ;;  %v1375_v4 = vld [vmem:[#allocation2 + $0x8] sm:$0xff]   ;;  %v1377_v6 = vld [vmem:[#allocation2 + $0x10] sm:$0xff]   ;;  %vm131_vm1 = vcmask 1043456   ;;  %vm132_vm2 = vcmask 1044480   ;;  %v1543_v13 = vmov 65535  }
  0x3a   :  { %1213 = vmatprep.mubr.msk.bf16.mxu0 %vm1541_vm0, %v1540_v0  ;;  %1233 = vmatprep.mubr.msk.bf16.mxu1 %vm1541_vm0, %v1540_v0  ;;  %v1376_v5 = vld [vmem:[#allocation2 + $0x48] sm:$0xff]   ;;  %v1378_v7 = vld [vmem:[#allocation2 + $0x50] sm:$0xff]   ;;  %v1379_v8 = vld [vmem:[#allocation2 + $0x18] sm:$0xff]   ;;  %v133_v14 = vsel %vm131_vm1, 4294967295, %v1543_v13  ;;  %vm127_vm3 = vcmask 990208   ;;  %vm179_vm4 = vcmask 122880  }
  0x3b   :  { %1371 = vset.pattern.permute.xlu0 %v1542_v1  ;;  %1372 = vset.pattern.permute.xlu1 %v1542_v1  ;;  %v1380_v9 = vld [vmem:[#allocation2 + $0x58] sm:$0xff]   ;;  %v1381_v10 = vld [vmem:[#allocation2 + $0x20] sm:$0xff]   ;;  %v1383_v12 = vld [vmem:[#allocation2 + $0x28] sm:$0xff]   ;;  %v1620_v18 = vsel %vm132_vm2, %v133_v14, 0  ;;  %s1544_s2 = smov [#allocation8]  }
  0x3c   :  { %1198 = vmatpush3.bf16.msra.mxu0 %v1373_v2  ;;  %1218 = vmatpush3.bf16.msra.mxu1 %v1374_v3  ;;  %v1382_v11 = vld [vmem:[#allocation2 + $0x60] sm:$0xff]   ;;  %v1384_v15 = vld [vmem:[#allocation2 + $0x68] sm:$0xff]   ;;  %v1385_v16 = vld [vmem:[#allocation2 + $0x30] sm:$0xff]   ;;  %s1040_s27 = sshll.u32 %s1544_s2, 4  ;;  %s1041_s27 = int_to_ptr.vmem [resolvable:$true] %s1040_s27 }
  0x3d   :  { %1199 = vmatprep.subr.bf16.mxu0 %v1540_v0  ;;  %1219 = vmatprep.subr.bf16.mxu1 %v1540_v0  ;;  %v1386_v17 = vld [vmem:[#allocation2 + $0x70] sm:$0xff]   ;;  %v1387_v19 = vld [vmem:[#allocation2 + $0x38] sm:$0x1f]   ;;  %v57_v23 = vld [vmem:[#allocation5] sm:$0x1]  ;;  %s1503_s28 = scalar_lea.vmem %s1041_s27, 128  ;;  %p1508_p11 = scmp.lt.s32.totalorder %s1041_s27, %s1041_s27 }
  0x3e   :  { %v1388_v20 = vld [vmem:[#allocation2 + $0x78] sm:$0x1f]   ;;  %v136_v21 = vand.u32 %v1387_v19, %v1620_v18  ;;  %v182_v24 = vld [vmem:[#allocation5 + $0x1] sm:$0x1]  ;;  %v1391_v27 = vld [vmem:[#allocation2 + $0x88] sm:$0xff]   ;;  %p1504_p10 = scmp.ne.s32.totalorder %s1041_s27, %s1503_s28  ;;  %p1509_p12 = scmp.lt.s32.totalorder %s1503_s28, %s1503_s28 }
  0x3f   :  { %v258_v22 = vand.u32 %v1388_v20, %v1620_v18  ;;  %v1389_v25 = vld [vmem:[#allocation2 + $0x80] sm:$0xff]   ;;  %v1392_v28 = vld [vmem:[#allocation2 + $0xc8] sm:$0xff]   ;;  %v1393_v29 = vld [vmem:[#allocation2 + $0x90] sm:$0xff]  }
  0x40   :  { %1200 = vmatpush3.bf16.msra.mxu0 %v1375_v4  ;;  %1220 = vmatpush3.bf16.msra.mxu1 %v1376_v5  ;;  %v1390_v26 = vld [vmem:[#allocation2 + $0xc0] sm:$0xff]   ;;  %v1394_v30 = vld [vmem:[#allocation2 + $0xd0] sm:$0xff]   ;;  %v1395_v31 = vld [vmem:[#allocation2 + $0x98] sm:$0xff]   ;;  %p1510_p13 = por %p1509_p12, %p1508_p11 }
  0x41   :  { %1201 = vmatprep.subr.bf16.mxu0 %v1540_v0  ;;  %1221 = vmatprep.subr.bf16.mxu1 %v1540_v0  ;;  %v1396_v32 = vld [vmem:[#allocation2 + $0xd8] sm:$0xff]   ;;  %v1397_v33 = vld [vmem:[#allocation2 + $0xa0] sm:$0xff]   ;;  %v1399_v35 = vld [vmem:[#allocation2 + $0xa8] sm:$0xff]  }
  0x42   :  { %v1398_v34 = vld [vmem:[#allocation2 + $0xe0] sm:$0xff]   ;;  %v1400_v36 = vld [vmem:[#allocation2 + $0xe8] sm:$0xff]   ;;  %v1401_v37 = vld [vmem:[#allocation2 + $0xb0] sm:$0xff]   ;;  %p1511_p0 = pnand %p1510_p13, %p1504_p10 }
  0x43   :  { %v1402_v38 = vld [vmem:[#allocation2 + $0xf0] sm:$0xff]   ;;  %v1403_v39 = vld [vmem:[#allocation2 + $0xb8] sm:$0x1f]   ;;  %v74_v43 = vld [vmem:[#allocation7] sm:$0x3] }
  0x44   :  { %1202 = vmatpush3.bf16.msra.mxu0 %v1377_v6  ;;  %1222 = vmatpush3.bf16.msra.mxu1 %v1378_v7  ;;  %v1404_v40 = vld [vmem:[#allocation2 + $0xf8] sm:$0x1f]   ;;  %v380_v41 = vand.u32 %v1403_v39, %v1620_v18  ;;  %v304_v44 = vld [vmem:[#allocation5 + $0x2] sm:$0x1]  ;;  %v426_v45 = vld [vmem:[#allocation5 + $0x3] sm:$0x1] }
  0x45   :  { %1203 = vmatprep.subr.bf16.mxu0 %v1540_v0  ;;  %1223 = vmatprep.subr.bf16.mxu1 %v1540_v0  ;;  %v502_v42 = vand.u32 %v1404_v40, %v1620_v18  ;;  %v201_v46 = vld [vmem:[#allocation7 + $0x2] sm:$0x3]  ;;  %v1405_v47 = vld [vmem:[#allocation2 + $0x100] sm:$0xff]   ;;  %v323_v51 = vld [vmem:[#allocation7 + $0x4] sm:$0x3] }
  0x46   :  { %77 = vperm.xlu0 %1371, %v74_v43   ;;  %v1406_v48 = vld [vmem:[#allocation2 + $0x140] sm:$0xff]   ;;  %v1407_v49 = vld [vmem:[#allocation2 + $0x108] sm:$0xff]   ;;  %v567_v52 = vld [vmem:[#allocation7 + $0x8] sm:$0x3]  ;;  %326 = vperm.xlu1 %1372, %v323_v51  }
  0x47   :  { %v1408_v50 = vld [vmem:[#allocation2 + $0x148] sm:$0xff]   ;;  %v1409_v53 = vld [vmem:[#allocation2 + $0x110] sm:$0xff]   ;;  %v1411_v57 = vld [vmem:[#allocation2 + $0x118] sm:$0xff]  }
  0x48   :  { %1204 = vmatpush3.bf16.msra.mxu0 %v1379_v8  ;;  %1224 = vmatpush3.bf16.msra.mxu1 %v1380_v9  ;;  %v445_v54 = vld [vmem:[#allocation7 + $0x6] sm:$0x3]  ;;  %v1410_v55 = vld [vmem:[#allocation2 + $0x150] sm:$0xff]   ;;  %v1412_v59 = vld [vmem:[#allocation2 + $0x158] sm:$0xff]  }
  0x49   :  { %1205 = vmatprep.subr.bf16.mxu0 %v1540_v0  ;;  %1225 = vmatprep.subr.bf16.mxu1 %v1540_v0  ;;  %v811_v56 = vld [vmem:[#allocation7 + $0xc] sm:$0x3]  ;;  %v689_v58 = vld [vmem:[#allocation7 + $0xa] sm:$0x3]  ;;  %v1413_v60 = vld [vmem:[#allocation2 + $0x120] sm:$0xff]  }
  0x4a   :  { %204 = vperm.xlu0 %1371, %v201_v46   ;;  %448 = vperm.xlu1 %1372, %v445_v54   ;;  %v933_v61 = vld [vmem:[#allocation7 + $0xe] sm:$0x3]  ;;  %v1414_v62 = vld [vmem:[#allocation2 + $0x160] sm:$0xff]   ;;  %v1415_v63 = vld [vmem:[#allocation2 + $0x128] sm:$0xff]  }
  0x4b   :  { %v1416_v1 = vld [vmem:[#allocation2 + $0x168] sm:$0xff]   ;;  %v1417_v2 = vld [vmem:[#allocation2 + $0x130] sm:$0xff]   ;;  %v1419_v3 = vld [vmem:[#allocation2 + $0x138] sm:$0x1f]  }
  0x4c   :  { %1206 = vmatpush3.bf16.msra.mxu0 %v1381_v10  ;;  %1226 = vmatpush3.bf16.msra.mxu1 %v1382_v11  ;;  %v1418_v4 = vld [vmem:[#allocation2 + $0x170] sm:$0xff]   ;;  %v1420_v5 = vld [vmem:[#allocation2 + $0x178] sm:$0x1f]   ;;  %v624_v6 = vand.u32 %v1419_v3, %v1620_v18  ;;  %v548_v8 = vld [vmem:[#allocation5 + $0x4] sm:$0x1] }
  0x4d   :  { %1207 = vmatprep.subr.bf16.mxu0 %v1540_v0  ;;  %1227 = vmatprep.subr.bf16.mxu1 %v1540_v0  ;;  %v746_v7 = vand.u32 %v1420_v5, %v1620_v18  ;;  %v1421_v9 = vld [vmem:[#allocation2 + $0x180] sm:$0xff]   ;;  %v1424_v13 = vld [vmem:[#allocation2 + $0x1c8] sm:$0xff]   ;;  %v1425_v14 = vld [vmem:[#allocation2 + $0x190] sm:$0xff]  }
  0x4e   :  { %570 = vperm.xlu0 %1371, %v567_v52   ;;  %692 = vperm.xlu1 %1372, %v689_v58   ;;  %v670_v10 = vld [vmem:[#allocation5 + $0x5] sm:$0x1] }
  0x4f   :  { %v1422_v11 = vld [vmem:[#allocation2 + $0x1c0] sm:$0xff]  }
  0x50   :  { %1208 = vmatpush3.bf16.msra.mxu0 %v1383_v12  ;;  %1228 = vmatpush3.bf16.msra.mxu1 %v1384_v15  ;;  %v1423_v12 = vld [vmem:[#allocation2 + $0x188] sm:$0xff]   ;;  %v1426_v15 = vld [vmem:[#allocation2 + $0x1d0] sm:$0xff]   ;;  %v1430_v19 = vld [vmem:[#allocation2 + $0x1a0] sm:$0xff]  }
  0x51   :  { %1209 = vmatprep.subr.bf16.mxu0 %v1540_v0  ;;  %1229 = vmatprep.subr.bf16.mxu1 %v1540_v0  ;;  %v1429_v20 = vld [vmem:[#allocation2 + $0x1e0] sm:$0xff]  }
  0x52   :  { %814 = vperm.xlu0 %1371, %v811_v56   ;;  %936 = vperm.xlu1 %1372, %v933_v61  }
  0x54   :  { %1210 = vmatpush3.bf16.msra.mxu0 %v1385_v16  ;;  %1230 = vmatpush3.bf16.msra.mxu1 %v1386_v17  ;;  %v1427_v16 = vld [vmem:[#allocation2 + $0x198] sm:$0xff]  }
  0x55   :  { %1211 = vmatprep.subr.bf16.mxu0 %v1540_v0  ;;  %1231 = vmatprep.subr.bf16.mxu1 %v1540_v0  ;;  %v1428_v17 = vld [vmem:[#allocation2 + $0x1d8] sm:$0xff]  }
  0x58   :  { %1212 = vmatpush3.bf16.msra.mxu0 %v136_v21  ;;  %1232 = vmatpush3.bf16.msra.mxu1 %v258_v22  ;;  %v1432_v21 = vld [vmem:[#allocation2 + $0x1a8] sm:$0xff]  }
  0x59   :  { %1237 = vmatprep.subr.bf16.mxu0 %v1540_v0  ;;  %1257 = vmatprep.subr.bf16.mxu1 %v1540_v0  ;;  %v1431_v22 = vld [vmem:[#allocation2 + $0x1e8] sm:$0xff]  }
  0x5b   :  { %1214 = vmatmul.mubr.msk.bf16.vlgmr.msra.gmra.mrb[0].mxu0 %vm127_vm3, %v57_v23  ;;  %1234 = vmatmul.mubr.msk.bf16.vlgmr.msra.gmra.mrb[0].mxu1 %vm127_vm3, %v182_v24  ;;  %v1433_v23 = vld [vmem:[#allocation2 + $0x1b0] sm:$0xff]   ;;  %v1435_v24 = vld [vmem:[#allocation2 + $0x1b8] sm:$0x1f]  }
  0x5c   :  { %1238 = vmatpush3.bf16.msra.mxu0 %v1389_v25  ;;  %1258 = vmatpush3.bf16.msra.mxu1 %v1390_v26  ;;  %v1434_v25 = vld [vmem:[#allocation2 + $0x1f0] sm:$0xff]   ;;  %v1436_v26 = vld [vmem:[#allocation2 + $0x1f8] sm:$0x1f]  }
  0x5d   :  { %1239 = vmatprep.subr.bf16.mxu0 %v1540_v0  ;;  %1259 = vmatprep.subr.bf16.mxu1 %v1540_v0 }
  0x5e   :  { %1253 = vmatprep.mubr.msk.bf16.mxu0 %vm1541_vm0, %v1540_v0  ;;  %1273 = vmatprep.mubr.msk.bf16.mxu1 %vm1541_vm0, %v1540_v0 }
  0x60   :  { %1240 = vmatpush3.bf16.msra.mxu0 %v1391_v27  ;;  %1260 = vmatpush3.bf16.msra.mxu1 %v1392_v28  ;;  %v868_v27 = vand.u32 %v1435_v24, %v1620_v18  ;;  %v990_v28 = vand.u32 %v1436_v26, %v1620_v18 }
  0x61   :  { %1241 = vmatprep.subr.bf16.mxu0 %v1540_v0  ;;  %1261 = vmatprep.subr.bf16.mxu1 %v1540_v0 }
  0x64   :  { %1242 = vmatpush3.bf16.msra.mxu0 %v1393_v29  ;;  %1262 = vmatpush3.bf16.msra.mxu1 %v1394_v30  ;;  %v792_v29 = vld [vmem:[#allocation5 + $0x6] sm:$0x1]  ;;  %v914_v30 = vld [vmem:[#allocation5 + $0x7] sm:$0x1] }
  0x65   :  { %1243 = vmatprep.subr.bf16.mxu0 %v1540_v0  ;;  %1263 = vmatprep.subr.bf16.mxu1 %v1540_v0 }
  0x68   :  { %1244 = vmatpush3.bf16.msra.mxu0 %v1395_v31  ;;  %1264 = vmatpush3.bf16.msra.mxu1 %v1396_v32 }
  0x69   :  { %1245 = vmatprep.subr.bf16.mxu0 %v1540_v0  ;;  %1265 = vmatprep.subr.bf16.mxu1 %v1540_v0 }
  0x6c   :  { %1246 = vmatpush3.bf16.msra.mxu0 %v1397_v33  ;;  %1266 = vmatpush3.bf16.msra.mxu1 %v1398_v34 }
  0x6d   :  { %1247 = vmatprep.subr.bf16.mxu0 %v1540_v0  ;;  %1267 = vmatprep.subr.bf16.mxu1 %v1540_v0 }
  0x70   :  { %1248 = vmatpush3.bf16.msra.mxu0 %v1399_v35  ;;  %1268 = vmatpush3.bf16.msra.mxu1 %v1400_v36 }
  0x71   :  { %1249 = vmatprep.subr.bf16.mxu0 %v1540_v0  ;;  %1269 = vmatprep.subr.bf16.mxu1 %v1540_v0 }
  0x74   :  { %1250 = vmatpush3.bf16.msra.mxu0 %v1401_v37  ;;  %1270 = vmatpush3.bf16.msra.mxu1 %v1402_v38 }
  0x75   :  { %1251 = vmatprep.subr.bf16.mxu0 %v1540_v0  ;;  %1271 = vmatprep.subr.bf16.mxu1 %v1540_v0 }
  0x78   :  { %1252 = vmatpush3.bf16.msra.mxu0 %v380_v41  ;;  %1272 = vmatpush3.bf16.msra.mxu1 %v502_v42 }
  0x79   :  { %1277 = vmatprep.subr.bf16.mxu0 %v1540_v0  ;;  %1297 = vmatprep.subr.bf16.mxu1 %v1540_v0 }
  0x7b   :  { %1254 = vmatmul.mubr.msk.bf16.vlgmr.msra.gmra.mrb[4].mxu0 %vm127_vm3, %v304_v44  ;;  %1274 = vmatmul.mubr.msk.bf16.vlgmr.msra.gmra.mrb[4].mxu1 %vm127_vm3, %v426_v45 }
  0x7c   :  { %1278 = vmatpush3.bf16.msra.mxu0 %v1405_v47  ;;  %1298 = vmatpush3.bf16.msra.mxu1 %v1406_v48 }
  0x7d   :  { %1279 = vmatprep.subr.bf16.mxu0 %v1540_v0  ;;  %1299 = vmatprep.subr.bf16.mxu1 %v1540_v0 }
  0x7e   :  { %1293 = vmatprep.mubr.msk.bf16.mxu0 %vm1541_vm0, %v1540_v0  ;;  %1313 = vmatprep.mubr.msk.bf16.mxu1 %vm1541_vm0, %v1540_v0 }
  0x80   :  { %1280 = vmatpush3.bf16.msra.mxu0 %v1407_v49  ;;  %1300 = vmatpush3.bf16.msra.mxu1 %v1408_v50 }
  0x81   :  { %1281 = vmatprep.subr.bf16.mxu0 %v1540_v0  ;;  %1301 = vmatprep.subr.bf16.mxu1 %v1540_v0 }
  0x84   :  { %1282 = vmatpush3.bf16.msra.mxu0 %v1409_v53  ;;  %1302 = vmatpush3.bf16.msra.mxu1 %v1410_v55 }
  0x85   :  { %1283 = vmatprep.subr.bf16.mxu0 %v1540_v0  ;;  %1303 = vmatprep.subr.bf16.mxu1 %v1540_v0 }
  0x88   :  { %1284 = vmatpush3.bf16.msra.mxu0 %v1411_v57  ;;  %1304 = vmatpush3.bf16.msra.mxu1 %v1412_v59 }
  0x89   :  { %1285 = vmatprep.subr.bf16.mxu0 %v1540_v0  ;;  %1305 = vmatprep.subr.bf16.mxu1 %v1540_v0 }
  0x8c   :  { %1286 = vmatpush3.bf16.msra.mxu0 %v1413_v60  ;;  %1306 = vmatpush3.bf16.msra.mxu1 %v1414_v62 }
  0x8d   :  { %1287 = vmatprep.subr.bf16.mxu0 %v1540_v0  ;;  %1307 = vmatprep.subr.bf16.mxu1 %v1540_v0 }
  0x90   :  { %1288 = vmatpush3.bf16.msra.mxu0 %v1415_v63  ;;  %1308 = vmatpush3.bf16.msra.mxu1 %v1416_v1 }
  0x91   :  { %1289 = vmatprep.subr.bf16.mxu0 %v1540_v0  ;;  %1309 = vmatprep.subr.bf16.mxu1 %v1540_v0 }
  0x94   :  { %1290 = vmatpush3.bf16.msra.mxu0 %v1417_v2  ;;  %1310 = vmatpush3.bf16.msra.mxu1 %v1418_v4 }
  0x95   :  { %1291 = vmatprep.subr.bf16.mxu0 %v1540_v0  ;;  %1311 = vmatprep.subr.bf16.mxu1 %v1540_v0 }
  0x98   :  { %1292 = vmatpush3.bf16.msra.mxu0 %v624_v6  ;;  %1312 = vmatpush3.bf16.msra.mxu1 %v746_v7 }
  0x99   :  { %1317 = vmatprep.subr.bf16.mxu0 %v1540_v0  ;;  %1337 = vmatprep.subr.bf16.mxu1 %v1540_v0 }
  0x9b   :  { %1294 = vmatmul.mubr.msk.bf16.vlgmr.msra.gmra.mrb[8].mxu0 %vm127_vm3, %v548_v8  ;;  %1314 = vmatmul.mubr.msk.bf16.vlgmr.msra.gmra.mrb[8].mxu1 %vm127_vm3, %v670_v10 }
  0x9c   :  { %1318 = vmatpush3.bf16.msra.mxu0 %v1421_v9  ;;  %1338 = vmatpush3.bf16.msra.mxu1 %v1422_v11 }
  0x9d   :  { %1319 = vmatprep.subr.bf16.mxu0 %v1540_v0  ;;  %1339 = vmatprep.subr.bf16.mxu1 %v1540_v0 }
  0x9e   :  { %1333 = vmatprep.mubr.msk.bf16.mxu0 %vm1541_vm0, %v1540_v0  ;;  %1353 = vmatprep.mubr.msk.bf16.mxu1 %vm1541_vm0, %v1540_v0 }
  0xa0   :  { %1320 = vmatpush3.bf16.msra.mxu0 %v1423_v12  ;;  %1340 = vmatpush3.bf16.msra.mxu1 %v1424_v13 }
  0xa1   :  { %1321 = vmatprep.subr.bf16.mxu0 %v1540_v0  ;;  %1341 = vmatprep.subr.bf16.mxu1 %v1540_v0 }
  0xa4   :  { %1322 = vmatpush3.bf16.msra.mxu0 %v1425_v14  ;;  %1342 = vmatpush3.bf16.msra.mxu1 %v1426_v15 }
  0xa5   :  { %1323 = vmatprep.subr.bf16.mxu0 %v1540_v0  ;;  %1343 = vmatprep.subr.bf16.mxu1 %v1540_v0 }
  0xa8   :  { %1324 = vmatpush3.bf16.msra.mxu0 %v1427_v16  ;;  %1344 = vmatpush3.bf16.msra.mxu1 %v1428_v17 }
  0xa9   :  { %1325 = vmatprep.subr.bf16.mxu0 %v1540_v0  ;;  %1345 = vmatprep.subr.bf16.mxu1 %v1540_v0 }
  0xac   :  { %1326 = vmatpush3.bf16.msra.mxu0 %v1430_v19  ;;  %1346 = vmatpush3.bf16.msra.mxu1 %v1429_v20 }
  0xad   :  { %1327 = vmatprep.subr.bf16.mxu0 %v1540_v0  ;;  %1347 = vmatprep.subr.bf16.mxu1 %v1540_v0 }
  0xb0   :  { %1328 = vmatpush3.bf16.msra.mxu0 %v1432_v21  ;;  %1348 = vmatpush3.bf16.msra.mxu1 %v1431_v22 }
  0xb1   :  { %1329 = vmatprep.subr.bf16.mxu0 %v1540_v0  ;;  %1349 = vmatprep.subr.bf16.mxu1 %v1540_v0 }
  0xb4   :  { %1330 = vmatpush3.bf16.msra.mxu0 %v1433_v23  ;;  %1350 = vmatpush3.bf16.msra.mxu1 %v1434_v25 }
  0xb5   :  { %1331 = vmatprep.subr.bf16.mxu0 %v1540_v0  ;;  %1351 = vmatprep.subr.bf16.mxu1 %v1540_v0 }
  0xb8   :  { %1332 = vmatpush3.bf16.msra.mxu0 %v868_v27  ;;  %1352 = vmatpush3.bf16.msra.mxu1 %v990_v28 }
  0xbb   :  { %1334 = vmatmul.mubr.msk.bf16.vlgmr.msra.gmra.mrb[12].mxu0 %vm127_vm3, %v792_v29  ;;  %1354 = vmatmul.mubr.msk.bf16.vlgmr.msra.gmra.mrb[12].mxu1 %vm127_vm3, %v914_v30 }
  0xc5   :  { %v78_v31 = vpop.permute.xlu0 %77  ;;  %v327_v43 = vpop.permute.xlu1 %326 }
  0xc9   :  { %v205_v32 = vpop.permute.xlu0 %204  ;;  %v449_v44 = vpop.permute.xlu1 %448 }
  0xcd   :  { %v571_v57 = vpop.permute.xlu0 %570  ;;  %v693_v58 = vpop.permute.xlu1 %692 }
  0xd1   :  { %v815_v8 = vpop.permute.xlu0 %814  ;;  %v937_v9 = vpop.permute.xlu1 %936 }
 0x12e   :  { %v172_v33 = vpop.f32.mrb[0].mxu0  ;;  %v294_v35 = vpop.f32.mrb[0].mxu1 }
 0x12f   :  { %v173_v34 = vadd.f32 %v172_v33, %v78_v31  ;;  %v1215_v36 = vpop.f32.mrb[1].mxu0  ;;  %v1235_v37 = vpop.f32.mrb[1].mxu1  ;;  %v295_v38 = vadd.f32 %v294_v35, %v205_v32 }
 0x130   :  { %v175_v18 = vpop.f32.mrb[2].mxu0  ;;  %v297_v0 = vpop.f32.mrb[2].mxu1 }
 0x131   :  { %v178_v39 = vpack.c.bf16 %v173_v34, %v173_v34  ;;  %v1216_v40 = vpop.f32.mrb[3].mxu0  ;;  %v300_v41 = vpack.c.bf16 %v295_v38, %v295_v38  ;;  %v1236_v42 = vpop.f32.mrb[3].mxu1 }
 0x133   :  { %180 = vst.msk [vmem:[#allocation8] sm:$0x1] %vm179_vm4, %v178_v39  ;;  %302 = vst.msk [vmem:[#allocation8 + $0x1] sm:$0x1] %vm179_vm4, %v300_v41 }
 0x14e   :  { %v416_v45 = vpop.f32.mrb[4].mxu0  ;;  %v538_v47 = vpop.f32.mrb[4].mxu1 }
 0x14f   :  { %v417_v46 = vadd.f32 %v416_v45, %v327_v43  ;;  %v1255_v48 = vpop.f32.mrb[5].mxu0  ;;  %v539_v49 = vadd.f32 %v538_v47, %v449_v44  ;;  %v1275_v50 = vpop.f32.mrb[5].mxu1 }
 0x150   :  { %v419_v51 = vpop.f32.mrb[6].mxu0  ;;  %v541_v53 = vpop.f32.mrb[6].mxu1 }
 0x151   :  { %v422_v52 = vpack.c.bf16 %v417_v46, %v417_v46  ;;  %v1256_v54 = vpop.f32.mrb[7].mxu0  ;;  %v544_v55 = vpack.c.bf16 %v539_v49, %v539_v49  ;;  %v1276_v56 = vpop.f32.mrb[7].mxu1 }
 0x153   :  { %424 = vst.msk [vmem:[#allocation8 + $0x2] sm:$0x1] %vm179_vm4, %v422_v52  ;;  %546 = vst.msk [vmem:[#allocation8 + $0x3] sm:$0x1] %vm179_vm4, %v544_v55 }
 0x16e   :  { %v660_v59 = vpop.f32.mrb[8].mxu0  ;;  %v782_v60 = vpop.f32.mrb[8].mxu1 }
 0x16f   :  { %v661_v61 = vadd.f32 %v660_v59, %v571_v57  ;;  %v1295_v62 = vpop.f32.mrb[9].mxu0  ;;  %v783_v63 = vadd.f32 %v782_v60, %v693_v58  ;;  %v1315_v1 = vpop.f32.mrb[9].mxu1 }
 0x170   :  { %v663_v2 = vpop.f32.mrb[10].mxu0  ;;  %v785_v4 = vpop.f32.mrb[10].mxu1 }
 0x171   :  { %v666_v3 = vpack.c.bf16 %v661_v61, %v661_v61  ;;  %v1296_v5 = vpop.f32.mrb[11].mxu0  ;;  %v788_v6 = vpack.c.bf16 %v783_v63, %v783_v63  ;;  %v1316_v7 = vpop.f32.mrb[11].mxu1 }
 0x173   :  { %668 = vst.msk [vmem:[#allocation8 + $0x4] sm:$0x1] %vm179_vm4, %v666_v3  ;;  %790 = vst.msk [vmem:[#allocation8 + $0x5] sm:$0x1] %vm179_vm4, %v788_v6 }
 0x18e   :  { %v904_v10 = vpop.f32.mrb[12].mxu0  ;;  %v1026_v12 = vpop.f32.mrb[12].mxu1 }
 0x18f   :  { %v905_v11 = vadd.f32 %v904_v10, %v815_v8  ;;  %v1335_v13 = vpop.f32.mrb[13].mxu0  ;;  %v1027_v14 = vadd.f32 %v1026_v12, %v937_v9  ;;  %v1355_v15 = vpop.f32.mrb[13].mxu1 }
 0x190   :  { %v907_v16 = vpop.f32.mrb[14].mxu0  ;;  %v1029_v19 = vpop.f32.mrb[14].mxu1 }
 0x191   :  { %v910_v17 = vpack.c.bf16 %v905_v11, %v905_v11  ;;  %v1336_v20 = vpop.f32.mrb[15].mxu0  ;;  %v1032_v21 = vpack.c.bf16 %v1027_v14, %v1027_v14  ;;  %v1356_v22 = vpop.f32.mrb[15].mxu1 }
 0x193   :  { %912 = vst.msk [vmem:[#allocation8 + $0x6] sm:$0x1] %vm179_vm4, %v910_v17  ;;  %1034 = vst.msk [vmem:[#allocation8 + $0x7] sm:$0x1] %vm179_vm4, %v1032_v21 }
 0x194   :  { %1514 = shalt.err (!%p1511_p0)
}
 0x195   :  { %s1515_s4 = scalar_lea.hbm %s1728_s3, 128 }
 0x196   :  { %p1516_p1 = scmp.ne.s32.totalorder %s1728_s3, %s1515_s4  ;;  %p1519_p2 = scmp.lt.u32.totalorder %s1515_s4, %s1728_s3 }
 0x198   :  { %p1521_p3 = pnand %p1519_p2, %p1516_p1 }
 0x19a   :  { %1524 = shalt.err (!%p1521_p3)
}
 0x19b   :  { %1046 = dma.vmem_to_hbm [thread:$0]  %s1041_s27, 128, %s1728_s3, [#allocation4], %s1532_s22, %s1532_s22, %s1533_s23  }
 0x19c   :  { %1529 = dma.done.wait [#allocation4], 128  }
 0x19d   :  { %1530 = vsyncadd [#allocation4], 4294967168 }
 0x19e   :  { %1050 = vsyncpa [#allocation3], 1 }
 0x19f   :  { %1051 = vsyncpa [#allocation6], 1 }
 0x1a0   :  { %1052 = vsyncpa [#allocation4], 1 }

// kernel: simvp_aug_forward.101
= control target key start
LH: loop header
LB: loop body
LE: loop exit
PB: predicated region body
PF: predicated region fallthrough
CT: control target
= control target key end

     0   :  { %8 = vsyncpa [#allocation3], 0  ;;  %s541_s0 = inlined_call_operand.hbm [shape: bf16[1,72,512], index: 0, kind: input, shape index: {}]   ;;  %s542_s1 = inlined_call_operand.hbm [shape: bf16[1,8,72], index: 1, kind: input, shape index: {}]   ;;  %s543_s2 = inlined_call_operand.hbm [shape: f32[1,8,1], index: 2, kind: input, shape index: {}]   ;;  %s544_s3 = inlined_call_operand.hbm [shape: bf16[1,8,512], index: 3, kind: output, shape index: {}]  }
   0x1   :  { %9 = vsyncpa [#allocation6], 0 }
   0x2   :  { %10 = vsyncpa [#allocation4], 0  ;;  %s459_s12 = smov [#allocation5]   ;;  %s460_s14 = smov [#allocation2]  }
   0x3   :  { %s29_s13 = sshll.u32 %s459_s12, 4  ;;  %s16_s15 = sshll.u32 %s460_s14, 4  ;;  %s30_s13 = int_to_ptr.vmem [resolvable:$true] %s29_s13  ;;  %s486_s15 = int_to_ptr.vmem [resolvable:$true] %s16_s15 }
   0x4   :  { %s365_s18 = scalar_lea.hbm %s542_s1, 64 }
   0x5   :  { %p366_p0 = scmp.ne.s32.totalorder %s542_s1, %s365_s18  ;;  %p369_p1 = scmp.lt.u32.totalorder %s365_s18, %s542_s1 }
   0x7   :  { %p371_p2 = pnand %p369_p1, %p366_p0 }
   0x9   :  { %374 = shalt.err (!%p371_p2)
}
   0xa   :  { %s375_s23 = scalar_lea.vmem %s30_s13, 64  ;;  %p380_p4 = scmp.lt.s32.totalorder %s30_s13, %s30_s13 }
   0xb   :  { %p376_p3 = scmp.ne.s32.totalorder %s30_s13, %s375_s23  ;;  %p381_p5 = scmp.lt.s32.totalorder %s375_s23, %s375_s23 }
   0xd   :  { %p382_p6 = por %p381_p5, %p380_p4 }
   0xf   :  { %p383_p7 = pnand %p382_p6, %p376_p3 }
  0x11   :  { %386 = shalt.err (!%p383_p7)
}
  0x12   :  { %32 = dma.hbm_to_vmem [thread:$0]  %s542_s1, 64, %s30_s13, [#allocation6]  }
  0x13   :  { %s387_s28 = scalar_lea.hbm %s541_s0, 2304 }
  0x14   :  { %p388_p8 = scmp.ne.s32.totalorder %s541_s0, %s387_s28  ;;  %p391_p9 = scmp.lt.u32.totalorder %s387_s28, %s541_s0 }
  0x16   :  { %p393_p10 = pnand %p391_p9, %p388_p8 }
  0x18   :  { %396 = shalt.err (!%p393_p10)
}
  0x19   :  { %s397_s6 = scalar_lea.vmem %s486_s15, 2304  ;;  %p402_p12 = scmp.lt.s32.totalorder %s486_s15, %s486_s15 }
  0x1a   :  { %p398_p11 = scmp.ne.s32.totalorder %s486_s15, %s397_s6  ;;  %p403_p13 = scmp.lt.s32.totalorder %s397_s6, %s397_s6 }
  0x1c   :  { %p404_p0 = por %p403_p13, %p402_p12 }
  0x1e   :  { %p405_p1 = pnand %p404_p0, %p398_p11 }
  0x20   :  { %408 = shalt.err (!%p405_p1)
}
  0x21   :  { %s461_s1 = smov 256   ;;  %s462_s7 = smov 16  }
  0x22   :  { %22 = dma.hbm_to_vmem [thread:$0]  %s541_s0, 2304, %s486_s15, [#allocation3], %s461_s1, %s461_s1, %s462_s7  }
  0x23   :  { %s463_s10 = smov [#allocation7]   ;;  %s409_s14 = scalar_lea.hbm %s543_s2, 128 }
  0x24   :  { %s39_s11 = sshll.u32 %s463_s10, 4  ;;  %p410_p2 = scmp.ne.s32.totalorder %s543_s2, %s409_s14  ;;  %s40_s11 = int_to_ptr.vmem [resolvable:$true] %s39_s11 }
  0x25   :  { %p413_p3 = scmp.lt.u32.totalorder %s409_s14, %s543_s2 }
  0x27   :  { %p415_p4 = pnand %p413_p3, %p410_p2 }
  0x29   :  { %418 = shalt.err (!%p415_p4)
}
  0x2a   :  { %s419_s20 = scalar_lea.vmem %s40_s11, 128  ;;  %p424_p6 = scmp.lt.s32.totalorder %s40_s11, %s40_s11 }
  0x2b   :  { %p420_p5 = scmp.ne.s32.totalorder %s40_s11, %s419_s20  ;;  %p425_p7 = scmp.lt.s32.totalorder %s419_s20, %s419_s20 }
  0x2d   :  { %p426_p8 = por %p425_p7, %p424_p6 }
  0x2f   :  { %p427_p9 = pnand %p426_p8, %p420_p5 }
  0x31   :  { %430 = shalt.err (!%p427_p9)
}
  0x32   :  { %42 = dma.hbm_to_vmem [thread:$0]  %s543_s2, 128, %s40_s11, [#allocation6]  }
  0x33   :  { %453 = dma.done.wait [#allocation3], 2304  }
  0x34   :  { %454 = vsyncadd [#allocation3], 4294964992 }
  0x35   :  { %455 = dma.done.wait [#allocation6], 192  }
  0x36   :  { %456 = vsyncadd [#allocation6], 4294967104  ;;  %v464_v0 = vmov 0   ;;  %v337_v1 = vld [vmem:[#allocation2 + $0x4] ss:$16 sps:$4 sm:$0xff]   ;;  %v71_v16 = vld [vmem:[#allocation2 + $0x88] sm:$0xff] }
  0x37   :  { %217 = vmatprep.mubr.bf16.mxu0 %v464_v0  ;;  %258 = vmatprep.mubr.bf16.mxu1 %v464_v0  ;;  %v339_v2 = vld [vmem:[#allocation2 + $0xc] ss:$16 sps:$4 sm:$0xff]   ;;  %v341_v3 = vld [vmem:[#allocation2] ss:$16 sps:$4 sm:$0xff]   ;;  %v342_v4 = vld [vmem:[#allocation2 + $0x8] ss:$16 sps:$4 sm:$0xff]   ;;  %v320_v21 = vcombine.high %v71_v16, %v71_v16  ;;  %v319_v23 = vcombine.low %v71_v16, %v71_v16 }
  0x38   :  { %336 = vset.pattern.permute.xlu0 %v464_v0  ;;  %185 = vmatprep.subr.bf16.mxu0 %v337_v1  ;;  %v343_v5 = vld [vmem:[#allocation2 + $0x24] ss:$16 sps:$4 sm:$0xff]   ;;  %v345_v6 = vld [vmem:[#allocation2 + $0x2c] ss:$16 sps:$4 sm:$0xff]   ;;  %v347_v7 = vld [vmem:[#allocation2 + $0x20] ss:$16 sps:$4 sm:$0xff]  }
  0x39   :  { %226 = vmatprep.subr.bf16.mxu1 %v339_v2  ;;  %186 = vmatpush1.bf16.msra.mxu0 %v341_v3  ;;  %v348_v8 = vld [vmem:[#allocation2 + $0x28] ss:$16 sps:$4 sm:$0xff]   ;;  %v349_v9 = vld [vmem:[#allocation2 + $0x44] ss:$16 sps:$4 sm:$0xff]   ;;  %v351_v10 = vld [vmem:[#allocation2 + $0x4c] ss:$16 sps:$4 sm:$0xff]  }
  0x3a   :  { %227 = vmatpush1.bf16.msra.mxu1 %v342_v4  ;;  %187 = vmatprep.subr.bf16.mxu0 %v343_v5  ;;  %v353_v11 = vld [vmem:[#allocation2 + $0x40] ss:$16 sps:$4 sm:$0xff]   ;;  %v354_v12 = vld [vmem:[#allocation2 + $0x48] ss:$16 sps:$4 sm:$0xff]   ;;  %v355_v13 = vld [vmem:[#allocation2 + $0x64] ss:$16 sps:$4 sm:$0xff]  }
  0x3b   :  { %228 = vmatprep.subr.bf16.mxu1 %v345_v6  ;;  %v357_v14 = vld [vmem:[#allocation2 + $0x6c] ss:$16 sps:$4 sm:$0xff]   ;;  %v70_v15 = vld [vmem:[#allocation2 + $0x80] sm:$0xff]  ;;  %v72_v17 = vld [vmem:[#allocation7] sm:$0xff]  ;;  %vm172_vm0 = vcmask 1043456   ;;  %vm168_vm1 = vcmask 588800  }
  0x3c   :  { %v359_v18 = vld [vmem:[#allocation2 + $0x60] ss:$16 sps:$4 sm:$0xff]   ;;  %v360_v19 = vld [vmem:[#allocation2 + $0x68] ss:$16 sps:$4 sm:$0xff]   ;;  %v318_v20 = vcombine.high %v70_v15, %v70_v15  ;;  %v317_v22 = vcombine.low %v70_v15, %v70_v15  ;;  %75 = vperm.xlu0 %336, %v72_v17   ;;  %v180_v25 = vsel %vm172_vm0, %v319_v23, 0  ;;  %s465_s2 = smov [#allocation8]  }
  0x3d   :  { %188 = vmatpush1.bf16.msra.mxu0 %v347_v7  ;;  %v53_v26 = vld [vmem:[#allocation5] sm:$0xf]  ;;  %s291_s21 = sshll.u32 %s465_s2, 4  ;;  %s292_s21 = int_to_ptr.vmem [resolvable:$true] %s291_s21 }
  0x3e   :  { %229 = vmatpush1.bf16.msra.mxu1 %v348_v8  ;;  %189 = vmatprep.subr.bf16.mxu0 %v349_v9  ;;  %v174_v24 = vsel %vm172_vm0, %v317_v22, 0  ;;  %s431_s22 = scalar_lea.vmem %s292_s21, 256  ;;  %p436_p11 = scmp.lt.s32.totalorder %s292_s21, %s292_s21 }
  0x3f   :  { %230 = vmatprep.subr.bf16.mxu1 %v351_v10  ;;  %p432_p10 = scmp.ne.s32.totalorder %s292_s21, %s431_s22  ;;  %p437_p12 = scmp.lt.s32.totalorder %s431_s22, %s431_s22 }
  0x41   :  { %190 = vmatpush1.bf16.msra.mxu0 %v353_v11  ;;  %p438_p13 = por %p437_p12, %p436_p11 }
  0x42   :  { %231 = vmatpush1.bf16.msra.mxu1 %v354_v12  ;;  %191 = vmatprep.subr.bf16.mxu0 %v355_v13 }
  0x43   :  { %232 = vmatprep.subr.bf16.mxu1 %v357_v14  ;;  %p439_p0 = pnand %p438_p13, %p432_p10 }
  0x45   :  { %192 = vmatpush1.bf16.msra.mxu0 %v359_v18 }
  0x46   :  { %233 = vmatpush1.bf16.msra.mxu1 %v360_v19  ;;  %321 = vmatprep.subr.msk.bf16.mxu0 %vm172_vm0, %v318_v20 }
  0x47   :  { %323 = vmatprep.subr.msk.bf16.mxu1 %vm172_vm0, %v320_v21 }
  0x49   :  { %194 = vmatpush1.bf16.msra.mxu0 %v174_v24 }
  0x4a   :  { %235 = vmatpush1.bf16.msra.mxu1 %v180_v25 }
  0x4c   :  { %322 = vmatmul.mubr.msk.bf16.vlgmr.msra.gmra.mrb[0].mxu0 %vm168_vm1, %v53_v26 }
  0x4d   :  { %324 = vmatmul.mubr.msk.bf16.vlgmr.msra.gmra.mrb[0].mxu1 %vm168_vm1, %v53_v26 }
  0xbb   :  { %v76_v27 = vpop.permute.xlu0 %75 }
 0x11f   :  { %v219_v28 = vpop.f32.mrb[0].mxu0 }
 0x120   :  { %v260_v29 = vpop.f32.mrb[0].mxu1  ;;  %v220_v30 = vadd.f32 %v219_v28, %v76_v27  ;;  %v221_v32 = vpop.f32.mrb[1].mxu0 }
 0x121   :  { %v261_v31 = vadd.f32 %v260_v29, %v76_v27  ;;  %v262_v33 = vpop.f32.mrb[1].mxu1  ;;  %v222_v34 = vadd.f32 %v221_v32, %v76_v27  ;;  %v223_v36 = vpop.f32.mrb[2].mxu0 }
 0x122   :  { %v263_v35 = vadd.f32 %v262_v33, %v76_v27  ;;  %v264_v37 = vpop.f32.mrb[2].mxu1  ;;  %v224_v38 = vpop.f32.mrb[3].mxu0 }
 0x123   :  { %v265_v39 = vpop.f32.mrb[3].mxu1  ;;  %v327_v40 = vpack.c.bf16 %v222_v34, %v220_v30 }
 0x124   :  { %v328_v41 = vpack.c.bf16 %v263_v35, %v261_v31 }
 0x125   :  { %283 = vst [vmem:[#allocation8] sm:$0xff] %v327_v40 }
 0x126   :  { %284 = vst [vmem:[#allocation8 + $0x8] sm:$0xff] %v328_v41 }
 0x127   :  { %442 = shalt.err (!%p439_p0)
}
 0x128   :  { %s443_s25 = scalar_lea.hbm %s544_s3, 256 }
 0x129   :  { %p444_p1 = scmp.ne.s32.totalorder %s544_s3, %s443_s25  ;;  %p447_p2 = scmp.lt.u32.totalorder %s443_s25, %s544_s3 }
 0x12b   :  { %p449_p3 = pnand %p447_p2, %p444_p1 }
 0x12d   :  { %452 = shalt.err (!%p449_p3)
}
 0x12e   :  { %294 = dma.vmem_to_hbm [thread:$0]  %s292_s21, 256, %s544_s3, [#allocation4]  }
 0x12f   :  { %457 = dma.done.wait [#allocation4], 256  }
 0x130   :  { %458 = vsyncadd [#allocation4], 4294967040 }
 0x131   :  { %298 = vsyncpa [#allocation3], 1 }
 0x132   :  { %299 = vsyncpa [#allocation6], 1 }
 0x133   :  { %300 = vsyncpa [#allocation4], 1 }

// kernel: simvp_aug_forward.105
= control target key start
LH: loop header
LB: loop body
LE: loop exit
PB: predicated region body
PF: predicated region fallthrough
CT: control target
= control target key end

     0   :  { %s368_s0 = inlined_call_operand.hbm [shape: bf16[1,8,512], index: 0, kind: input, shape index: {}]   ;;  %s369_s1 = inlined_call_operand.hbm [shape: bf16[1,1,8], index: 1, kind: input, shape index: {}]   ;;  %s370_s2 = inlined_call_operand.<no memory space> [shape: f32[1,1,1], index: 2, kind: input, shape index: {}]   ;;  %s371_s3 = inlined_call_operand.hbm [shape: f32[1,1,512], index: 3, kind: output, shape index: {}]  }
   0x1   :  { %v8_v0 = vstv %s370_s2 }
   0x2   :  { %9 = vst [vmem:[#allocation2] sm:$0x1] %v8_v0 }
   0x3   :  { %10 = vsyncpa [#allocation4], 0 }
   0x4   :  { %11 = vsyncpa [#allocation7], 0 }
   0x5   :  { %12 = vsyncpa [#allocation5], 0  ;;  %s304_s14 = smov [#allocation3]   ;;  %s305_s16 = smov [#allocation6]  }
   0x6   :  { %s19_s15 = sshll.u32 %s304_s14, 4  ;;  %s29_s17 = sshll.u32 %s305_s16, 4  ;;  %s20_s15 = int_to_ptr.vmem [resolvable:$true] %s19_s15  ;;  %s30_s17 = int_to_ptr.vmem [resolvable:$true] %s29_s17 }
   0x7   :  { %s232_s20 = scalar_lea.hbm %s368_s0, 256 }
   0x8   :  { %p233_p0 = scmp.ne.s32.totalorder %s368_s0, %s232_s20  ;;  %p236_p1 = scmp.lt.u32.totalorder %s232_s20, %s368_s0 }
   0xa   :  { %p238_p2 = pnand %p236_p1, %p233_p0 }
   0xc   :  { %241 = shalt.err (!%p238_p2)
}
   0xd   :  { %s242_s24 = scalar_lea.vmem %s20_s15, 256  ;;  %p247_p4 = scmp.lt.s32.totalorder %s20_s15, %s20_s15 }
   0xe   :  { %p243_p3 = scmp.ne.s32.totalorder %s20_s15, %s242_s24  ;;  %p248_p5 = scmp.lt.s32.totalorder %s242_s24, %s242_s24 }
  0x10   :  { %p249_p6 = por %p248_p5, %p247_p4 }
  0x12   :  { %p250_p7 = pnand %p249_p6, %p243_p3 }
  0x14   :  { %253 = shalt.err (!%p250_p7)
}
  0x15   :  { %22 = dma.hbm_to_vmem [thread:$0]  %s368_s0, 256, %s20_s15, [#allocation4]  }
  0x16   :  { %s254_s29 = scalar_lea.hbm %s369_s1, 16 }
  0x17   :  { %p255_p8 = scmp.ne.s32.totalorder %s369_s1, %s254_s29  ;;  %p258_p9 = scmp.lt.u32.totalorder %s254_s29, %s369_s1 }
  0x19   :  { %p260_p10 = pnand %p258_p9, %p255_p8 }
  0x1b   :  { %263 = shalt.err (!%p260_p10)
}
  0x1c   :  { %s264_s7 = scalar_lea.vmem %s30_s17, 16  ;;  %s268_s8 = scalar_lea.vmem %s30_s17, 32 }
  0x1d   :  { %p265_p11 = scmp.ne.s32.totalorder %s30_s17, %s264_s7  ;;  %p269_p12 = scmp.lt.s32.totalorder %s30_s17, %s30_s17 }
  0x1e   :  { %p270_p13 = scmp.lt.s32.totalorder %s268_s8, %s264_s7 }
  0x20   :  { %p271_p0 = por %p270_p13, %p269_p12 }
  0x22   :  { %p272_p1 = pnand %p271_p0, %p265_p11 }
  0x24   :  { %275 = shalt.err (!%p272_p1)
}
  0x25   :  { %32 = dma.hbm_to_vmem [thread:$0]  %s369_s1, 16, %s30_s17, [#allocation7]  }
  0x26   :  { %298 = dma.done.wait [#allocation4], 256  }
  0x27   :  { %299 = vsyncadd [#allocation4], 4294967040 }
  0x28   :  { %300 = dma.done.wait [#allocation7], 16  }
  0x29   :  { %301 = vsyncadd [#allocation7], 4294967280  ;;  %v306_v1 = vmov 0   ;;  %v43_v2 = vld [vmem:[#allocation3] sm:$0xff]  ;;  %vm69_vm0 = vcmask 1043456   ;;  %v44_v3 = vld [vmem:[#allocation3 + $0x8] sm:$0xff]  ;;  %v51_v12 = vlaneseq }
  0x2a   :  { %114 = vmatprep.mubr.bf16.mxu0 %v306_v1  ;;  %155 = vmatprep.mubr.bf16.mxu1 %v306_v1  ;;  %v215_v4 = vcombine.high %v43_v2, %v43_v2  ;;  %v217_v5 = vcombine.high %v44_v3, %v44_v3  ;;  %v214_v6 = vcombine.low %v43_v2, %v43_v2  ;;  %v45_v8 = vld [vmem:[#allocation2] sm:$0x1]  ;;  %v42_v11 = vld [vmem:[#allocation6] sm:$0x1]  ;;  %vm65_vm1 = vcmask 64512   ;;  %s308_s1 = smov [#allocation8]  }
  0x2b   :  { %227 = vset.pattern.permute.xlu0 %v306_v1  ;;  %v216_v7 = vcombine.low %v44_v3, %v44_v3  ;;  %v52_v13 = vshrl.u32 %v51_v12, 7  ;;  %v307_v15 = vmov 1966171168   ;;  %s204_s10 = sshll.u32 %s308_s1, 4  ;;  %vm195_vm2 = vcmp.lt.s32.totalorder %v51_v12, 512  ;;  %s205_s10 = int_to_ptr.vmem [resolvable:$true] %s204_s10 }
  0x2c   :  { %48 = vperm.xlu0 %227, %v45_v8   ;;  %218 = vmatprep.subr.msk.bf16.mxu0 %vm69_vm0, %v215_v4  ;;  %v71_v9 = vsel %vm69_vm0, %v214_v6, 0  ;;  %v171_v16 = vunpack.c.l.s4 %v307_v15  ;;  %s276_s11 = scalar_lea.vmem %s205_s10, 64  ;;  %p281_p3 = scmp.lt.s32.totalorder %s205_s10, %s205_s10 }
  0x2d   :  { %220 = vmatprep.subr.msk.bf16.mxu1 %vm69_vm0, %v217_v5  ;;  %v77_v10 = vsel %vm69_vm0, %v216_v7, 0  ;;  %83 = vmatpush1.bf16.msra.mxu0 %v71_v9  ;;  %v53_v14 = vsub.s32 0, %v52_v13  ;;  %p277_p2 = scmp.ne.s32.totalorder %s205_s10, %s276_s11  ;;  %p282_p4 = scmp.lt.s32.totalorder %s276_s11, %s276_s11 }
  0x2e   :  { %124 = vmatpush1.bf16.msra.mxu1 %v77_v10  ;;  %v172_v19 = vunpack.c.0.s8 %v171_v16 }
  0x2f   :  { %p283_p5 = por %p282_p4, %p281_p3 }
  0x30   :  { %219 = vmatmul.mubr.msk.bf16.vlgmr.msra.gmra.mrb[0].mxu0 %vm65_vm1, %v42_v11  ;;  %v175_v26 = vsub.s32 %v172_v19, %v52_v13 }
  0x31   :  { %221 = vmatmul.mubr.msk.bf16.vlgmr.msra.gmra.mrb[0].mxu1 %vm65_vm1, %v42_v11  ;;  %p284_p6 = pnand %p283_p5, %p277_p2 }
  0xab   :  { %v49_v17 = vpop.permute.xlu0 %48 }
  0xac   :  { %v54_v18 = vrot.slane %v49_v17, %v53_v14 }
 0x103   :  { %v116_v20 = vpop.f32.mrb[0].mxu0 }
 0x104   :  { %v157_v21 = vpop.f32.mrb[0].mxu1  ;;  %v117_v22 = vadd.f32 %v116_v20, %v54_v18  ;;  %v118_v24 = vpop.f32.mrb[1].mxu0 }
 0x105   :  { %v158_v23 = vadd.f32 %v157_v21, %v54_v18  ;;  %v159_v25 = vpop.f32.mrb[1].mxu1  ;;  %v119_v27 = vadd.f32 %v118_v24, %v54_v18  ;;  %v120_v29 = vpop.f32.mrb[2].mxu0 }
 0x106   :  { %v160_v28 = vadd.f32 %v159_v25, %v54_v18  ;;  %v161_v30 = vpop.f32.mrb[2].mxu1  ;;  %v121_v31 = vpop.f32.mrb[3].mxu0 }
 0x107   :  { %v162_v32 = vpop.f32.mrb[3].mxu1  ;;  %v168_v33 = vcombine.low %v117_v22, %v119_v27 }
 0x108   :  { %v169_v34 = vcombine.low %v158_v23, %v160_v28 }
 0x109   :  { %v176_v35 = vrot.slane %v168_v33, %v175_v26 }
 0x10a   :  { %v183_v36 = vrot.slane %v169_v34, %v175_v26 }
 0x10c   :  { %v184_v37 = vcombine.low %v176_v35, %v183_v36 }
 0x10e   :  { %v191_v38 = vrot.slane %v184_v37, %v175_v26 }
 0x110   :  { %197 = vst.msk [vmem:[#allocation8] sm:$0xf] %vm195_vm2, %v191_v38 }
 0x111   :  { %287 = shalt.err (!%p284_p6)
}
 0x112   :  { %s288_s14 = scalar_lea.hbm %s371_s3, 64 }
 0x113   :  { %p289_p7 = scmp.ne.s32.totalorder %s371_s3, %s288_s14  ;;  %p292_p8 = scmp.lt.u32.totalorder %s288_s14, %s371_s3 }
 0x115   :  { %p294_p9 = pnand %p292_p8, %p289_p7 }
 0x117   :  { %297 = shalt.err (!%p294_p9)
}
 0x118   :  { %207 = dma.vmem_to_hbm [thread:$0]  %s205_s10, 64, %s371_s3, [#allocation5]  }
 0x119   :  { %302 = dma.done.wait [#allocation5], 64  }
 0x11a   :  { %303 = vsyncadd [#allocation5], 4294967232 }
 0x11b   :  { %211 = vsyncpa [#allocation4], 1 }
 0x11c   :  { %212 = vsyncpa [#allocation7], 1 }
 0x11d   :  { %213 = vsyncpa [#allocation5], 1 }

// kernel: simvp_aug_forward.103
= control target key start
LH: loop header
LB: loop body
LE: loop exit
PB: predicated region body
PF: predicated region fallthrough
CT: control target
= control target key end

     0   :  { %8 = vsyncpa [#allocation3], 0  ;;  %s686_s0 = inlined_call_operand.hbm [shape: bf16[1,144,512], index: 0, kind: input, shape index: {}]   ;;  %s687_s1 = inlined_call_operand.hbm [shape: bf16[1,8,144], index: 1, kind: input, shape index: {}]   ;;  %s688_s2 = inlined_call_operand.hbm [shape: f32[1,8,1], index: 2, kind: input, shape index: {}]   ;;  %s689_s3 = inlined_call_operand.hbm [shape: bf16[1,8,512], index: 3, kind: output, shape index: {}]  }
   0x1   :  { %9 = vsyncpa [#allocation6], 0 }
   0x2   :  { %10 = vsyncpa [#allocation4], 0  ;;  %s604_s12 = smov [#allocation5]   ;;  %s605_s14 = smov [#allocation2]  }
   0x3   :  { %s29_s13 = sshll.u32 %s604_s12, 4  ;;  %s16_s15 = sshll.u32 %s605_s14, 4  ;;  %s30_s13 = int_to_ptr.vmem [resolvable:$true] %s29_s13  ;;  %s631_s15 = int_to_ptr.vmem [resolvable:$true] %s16_s15 }
   0x4   :  { %s510_s18 = scalar_lea.hbm %s687_s1, 128 }
   0x5   :  { %p511_p0 = scmp.ne.s32.totalorder %s687_s1, %s510_s18  ;;  %p514_p1 = scmp.lt.u32.totalorder %s510_s18, %s687_s1 }
   0x7   :  { %p516_p2 = pnand %p514_p1, %p511_p0 }
   0x9   :  { %519 = shalt.err (!%p516_p2)
}
   0xa   :  { %s520_s23 = scalar_lea.vmem %s30_s13, 128  ;;  %p525_p4 = scmp.lt.s32.totalorder %s30_s13, %s30_s13 }
   0xb   :  { %p521_p3 = scmp.ne.s32.totalorder %s30_s13, %s520_s23  ;;  %p526_p5 = scmp.lt.s32.totalorder %s520_s23, %s520_s23 }
   0xd   :  { %p527_p6 = por %p526_p5, %p525_p4 }
   0xf   :  { %p528_p7 = pnand %p527_p6, %p521_p3 }
  0x11   :  { %531 = shalt.err (!%p528_p7)
}
  0x12   :  { %32 = dma.hbm_to_vmem [thread:$0]  %s687_s1, 128, %s30_s13, [#allocation6]  }
  0x13   :  { %s532_s28 = scalar_lea.hbm %s686_s0, 4608 }
  0x14   :  { %p533_p8 = scmp.ne.s32.totalorder %s686_s0, %s532_s28  ;;  %p536_p9 = scmp.lt.u32.totalorder %s532_s28, %s686_s0 }
  0x16   :  { %p538_p10 = pnand %p536_p9, %p533_p8 }
  0x18   :  { %541 = shalt.err (!%p538_p10)
}
  0x19   :  { %s542_s6 = scalar_lea.vmem %s631_s15, 4608  ;;  %p547_p12 = scmp.lt.s32.totalorder %s631_s15, %s631_s15 }
  0x1a   :  { %p543_p11 = scmp.ne.s32.totalorder %s631_s15, %s542_s6  ;;  %p548_p13 = scmp.lt.s32.totalorder %s542_s6, %s542_s6 }
  0x1c   :  { %p549_p0 = por %p548_p13, %p547_p12 }
  0x1e   :  { %p550_p1 = pnand %p549_p0, %p543_p11 }
  0x20   :  { %553 = shalt.err (!%p550_p1)
}
  0x21   :  { %s606_s1 = smov 256   ;;  %s607_s7 = smov 16  }
  0x22   :  { %22 = dma.hbm_to_vmem [thread:$0]  %s686_s0, 4608, %s631_s15, [#allocation3], %s606_s1, %s606_s1, %s607_s7  }
  0x23   :  { %s608_s10 = smov [#allocation7]   ;;  %s554_s14 = scalar_lea.hbm %s688_s2, 128 }
  0x24   :  { %s39_s11 = sshll.u32 %s608_s10, 4  ;;  %p555_p2 = scmp.ne.s32.totalorder %s688_s2, %s554_s14  ;;  %s40_s11 = int_to_ptr.vmem [resolvable:$true] %s39_s11 }
  0x25   :  { %p558_p3 = scmp.lt.u32.totalorder %s554_s14, %s688_s2 }
  0x27   :  { %p560_p4 = pnand %p558_p3, %p555_p2 }
  0x29   :  { %563 = shalt.err (!%p560_p4)
}
  0x2a   :  { %s564_s20 = scalar_lea.vmem %s40_s11, 128  ;;  %p569_p6 = scmp.lt.s32.totalorder %s40_s11, %s40_s11 }
  0x2b   :  { %p565_p5 = scmp.ne.s32.totalorder %s40_s11, %s564_s20  ;;  %p570_p7 = scmp.lt.s32.totalorder %s564_s20, %s564_s20 }
  0x2d   :  { %p571_p8 = por %p570_p7, %p569_p6 }
  0x2f   :  { %p572_p9 = pnand %p571_p8, %p565_p5 }
  0x31   :  { %575 = shalt.err (!%p572_p9)
}
  0x32   :  { %42 = dma.hbm_to_vmem [thread:$0]  %s688_s2, 128, %s40_s11, [#allocation6]  }
  0x33   :  { %598 = dma.done.wait [#allocation3], 4608  }
  0x34   :  { %599 = vsyncadd [#allocation3], 4294962688 }
  0x35   :  { %600 = dma.done.wait [#allocation6], 256  }
  0x36   :  { %601 = vsyncadd [#allocation6], 4294967040  ;;  %v609_v0 = vmov 0   ;;  %v454_v1 = vld [vmem:[#allocation2 + $0x4] ss:$16 sps:$4 sm:$0xff]   ;;  %vm282_vm0 = vcmask 130048  }
  0x37   :  { %453 = vset.pattern.permute.xlu0 %v609_v0  ;;  %v456_v2 = vld [vmem:[#allocation2 + $0xc] ss:$16 sps:$4 sm:$0xff]   ;;  %286 = vmatprep.subr.bf16.mxu0 %v454_v1  ;;  %v458_v3 = vld [vmem:[#allocation2] ss:$16 sps:$4 sm:$0xff]   ;;  %v459_v4 = vld [vmem:[#allocation2 + $0x8] ss:$16 sps:$4 sm:$0xff]  }
  0x38   :  { %327 = vmatprep.subr.bf16.mxu1 %v456_v2  ;;  %v460_v5 = vld [vmem:[#allocation2 + $0x24] ss:$16 sps:$4 sm:$0xff]   ;;  %287 = vmatpush1.bf16.msra.mxu0 %v458_v3  ;;  %v462_v6 = vld [vmem:[#allocation2 + $0x2c] ss:$16 sps:$4 sm:$0xff]   ;;  %v464_v7 = vld [vmem:[#allocation2 + $0x20] ss:$16 sps:$4 sm:$0xff]  }
  0x39   :  { %328 = vmatpush1.bf16.msra.mxu1 %v459_v4  ;;  %288 = vmatprep.subr.bf16.mxu0 %v460_v5  ;;  %v465_v8 = vld [vmem:[#allocation2 + $0x28] ss:$16 sps:$4 sm:$0xff]   ;;  %v466_v9 = vld [vmem:[#allocation2 + $0x44] ss:$16 sps:$4 sm:$0xff]   ;;  %v468_v10 = vld [vmem:[#allocation2 + $0x4c] ss:$16 sps:$4 sm:$0xff]  }
  0x3a   :  { %329 = vmatprep.subr.bf16.mxu1 %v462_v6  ;;  %v470_v11 = vld [vmem:[#allocation2 + $0x40] ss:$16 sps:$4 sm:$0xff]   ;;  %v471_v12 = vld [vmem:[#allocation2 + $0x48] ss:$16 sps:$4 sm:$0xff]   ;;  %v472_v13 = vld [vmem:[#allocation2 + $0x64] ss:$16 sps:$4 sm:$0xff]  }
  0x3b   :  { %v474_v14 = vld [vmem:[#allocation2 + $0x6c] ss:$16 sps:$4 sm:$0xff]   ;;  %v476_v15 = vld [vmem:[#allocation2 + $0x60] ss:$16 sps:$4 sm:$0xff]   ;;  %v477_v16 = vld [vmem:[#allocation2 + $0x68] ss:$16 sps:$4 sm:$0xff]  }
  0x3c   :  { %289 = vmatpush1.bf16.msra.mxu0 %v464_v7  ;;  %v478_v17 = vld [vmem:[#allocation2 + $0x84] ss:$16 sps:$4 sm:$0xff]   ;;  %v480_v18 = vld [vmem:[#allocation2 + $0x8c] ss:$16 sps:$4 sm:$0xff]   ;;  %v482_v19 = vld [vmem:[#allocation2 + $0x80] ss:$16 sps:$4 sm:$0xff]  }
  0x3d   :  { %330 = vmatpush1.bf16.msra.mxu1 %v465_v8  ;;  %290 = vmatprep.subr.bf16.mxu0 %v466_v9  ;;  %v483_v20 = vld [vmem:[#allocation2 + $0x88] ss:$16 sps:$4 sm:$0xff]   ;;  %v484_v21 = vld [vmem:[#allocation2 + $0xa4] ss:$16 sps:$4 sm:$0xff]   ;;  %v486_v22 = vld [vmem:[#allocation2 + $0xac] ss:$16 sps:$4 sm:$0xff]  }
  0x3e   :  { %331 = vmatprep.subr.bf16.mxu1 %v468_v10  ;;  %v488_v23 = vld [vmem:[#allocation2 + $0xa0] ss:$16 sps:$4 sm:$0xff]   ;;  %v489_v24 = vld [vmem:[#allocation2 + $0xa8] ss:$16 sps:$4 sm:$0xff]   ;;  %v490_v25 = vld [vmem:[#allocation2 + $0xc4] ss:$16 sps:$4 sm:$0xff]  }
  0x3f   :  { %v492_v26 = vld [vmem:[#allocation2 + $0xcc] ss:$16 sps:$4 sm:$0xff]   ;;  %v494_v27 = vld [vmem:[#allocation2 + $0xc0] ss:$16 sps:$4 sm:$0xff]   ;;  %v495_v28 = vld [vmem:[#allocation2 + $0xc8] ss:$16 sps:$4 sm:$0xff]  }
  0x40   :  { %291 = vmatpush1.bf16.msra.mxu0 %v470_v11  ;;  %v53_v29 = vld [vmem:[#allocation5] sm:$0xff]  ;;  %v90_v30 = vld [vmem:[#allocation7] sm:$0xff]  ;;  %s610_s2 = smov [#allocation8]  }
  0x41   :  { %332 = vmatpush1.bf16.msra.mxu1 %v471_v12  ;;  %292 = vmatprep.subr.bf16.mxu0 %v472_v13  ;;  %v496_v31 = vld [vmem:[#allocation2 + $0xe4] ss:$16 sps:$4 sm:$0xff]   ;;  %v498_v32 = vld [vmem:[#allocation2 + $0xec] ss:$16 sps:$4 sm:$0xff]   ;;  %v403_v33 = vcombine.high %v53_v29, %v53_v29  ;;  %v500_v34 = vld [vmem:[#allocation2 + $0xe0] ss:$16 sps:$4 sm:$0xff]   ;;  %v402_v40 = vcombine.low %v53_v29, %v53_v29 }
  0x42   :  { %333 = vmatprep.subr.bf16.mxu1 %v474_v14  ;;  %93 = vperm.xlu0 %453, %v90_v30   ;;  %v501_v35 = vld [vmem:[#allocation2 + $0xe8] ss:$16 sps:$4 sm:$0xff]   ;;  %v502_v36 = vld [vmem:[#allocation2 + $0x104] ss:$16 sps:$4 sm:$0xff]   ;;  %v504_v37 = vld [vmem:[#allocation2 + $0x10c] ss:$16 sps:$4 sm:$0xff]  }
  0x43   :  { %440 = vmatprep.mubr.msk.bf16.mxu0 %vm282_vm0, %v403_v33  ;;  %441 = vmatprep.mubr.msk.bf16.mxu1 %vm282_vm0, %v403_v33  ;;  %v506_v38 = vld [vmem:[#allocation2 + $0x100] ss:$16 sps:$4 sm:$0xff]   ;;  %v507_v39 = vld [vmem:[#allocation2 + $0x108] ss:$16 sps:$4 sm:$0xff]   ;;  %s392_s21 = sshll.u32 %s610_s2, 4  ;;  %s393_s21 = int_to_ptr.vmem [resolvable:$true] %s392_s21 }
  0x44   :  { %293 = vmatpush1.bf16.msra.mxu0 %v476_v15  ;;  %s576_s22 = scalar_lea.vmem %s393_s21, 256  ;;  %p581_p11 = scmp.lt.s32.totalorder %s393_s21, %s393_s21 }
  0x45   :  { %334 = vmatpush1.bf16.msra.mxu1 %v477_v16  ;;  %294 = vmatprep.subr.bf16.mxu0 %v478_v17  ;;  %p577_p10 = scmp.ne.s32.totalorder %s393_s21, %s576_s22  ;;  %p582_p12 = scmp.lt.s32.totalorder %s576_s22, %s576_s22 }
  0x46   :  { %335 = vmatprep.subr.bf16.mxu1 %v480_v18 }
  0x47   :  { %p583_p13 = por %p582_p12, %p581_p11 }
  0x48   :  { %295 = vmatpush1.bf16.msra.mxu0 %v482_v19 }
  0x49   :  { %336 = vmatpush1.bf16.msra.mxu1 %v483_v20  ;;  %296 = vmatprep.subr.bf16.mxu0 %v484_v21  ;;  %p584_p0 = pnand %p583_p13, %p577_p10 }
  0x4a   :  { %337 = vmatprep.subr.bf16.mxu1 %v486_v22 }
  0x4c   :  { %297 = vmatpush1.bf16.msra.mxu0 %v488_v23 }
  0x4d   :  { %338 = vmatpush1.bf16.msra.mxu1 %v489_v24  ;;  %298 = vmatprep.subr.bf16.mxu0 %v490_v25 }
  0x4e   :  { %339 = vmatprep.subr.bf16.mxu1 %v492_v26 }
  0x50   :  { %299 = vmatpush1.bf16.msra.mxu0 %v494_v27 }
  0x51   :  { %340 = vmatpush1.bf16.msra.mxu1 %v495_v28  ;;  %300 = vmatprep.subr.bf16.mxu0 %v496_v31 }
  0x52   :  { %341 = vmatprep.subr.bf16.mxu1 %v498_v32 }
  0x54   :  { %301 = vmatpush1.bf16.msra.mxu0 %v500_v34 }
  0x55   :  { %342 = vmatpush1.bf16.msra.mxu1 %v501_v35  ;;  %302 = vmatprep.subr.bf16.mxu0 %v502_v36 }
  0x56   :  { %343 = vmatprep.subr.bf16.mxu1 %v504_v37 }
  0x58   :  { %303 = vmatpush1.bf16.msra.mxu0 %v506_v38 }
  0x59   :  { %344 = vmatpush1.bf16.msra.mxu1 %v507_v39 }
  0x5b   :  { %319 = vmatmul.mubr.bf16.vlgmr.msra.gmra.mrb[0].mxu0 %v402_v40 }
  0x5c   :  { %360 = vmatmul.mubr.bf16.vlgmr.msra.gmra.mrb[0].mxu1 %v402_v40 }
  0xc1   :  { %v94_v41 = vpop.permute.xlu0 %93 }
 0x12e   :  { %v320_v42 = vpop.f32.mrb[0].mxu0 }
 0x12f   :  { %v361_v43 = vpop.f32.mrb[0].mxu1  ;;  %v321_v44 = vadd.f32 %v320_v42, %v94_v41  ;;  %v322_v46 = vpop.f32.mrb[1].mxu0 }
 0x130   :  { %v362_v45 = vadd.f32 %v361_v43, %v94_v41  ;;  %v363_v47 = vpop.f32.mrb[1].mxu1  ;;  %v323_v48 = vadd.f32 %v322_v46, %v94_v41  ;;  %v324_v50 = vpop.f32.mrb[2].mxu0 }
 0x131   :  { %v364_v49 = vadd.f32 %v363_v47, %v94_v41  ;;  %v365_v51 = vpop.f32.mrb[2].mxu1  ;;  %v325_v52 = vpop.f32.mrb[3].mxu0 }
 0x132   :  { %v366_v53 = vpop.f32.mrb[3].mxu1  ;;  %v444_v54 = vpack.c.bf16 %v323_v48, %v321_v44 }
 0x133   :  { %v445_v55 = vpack.c.bf16 %v364_v49, %v362_v45 }
 0x134   :  { %384 = vst [vmem:[#allocation8] sm:$0xff] %v444_v54 }
 0x135   :  { %385 = vst [vmem:[#allocation8 + $0x8] sm:$0xff] %v445_v55 }
 0x136   :  { %587 = shalt.err (!%p584_p0)
}
 0x137   :  { %s588_s25 = scalar_lea.hbm %s689_s3, 256 }
 0x138   :  { %p589_p1 = scmp.ne.s32.totalorder %s689_s3, %s588_s25  ;;  %p592_p2 = scmp.lt.u32.totalorder %s588_s25, %s689_s3 }
 0x13a   :  { %p594_p3 = pnand %p592_p2, %p589_p1 }
 0x13c   :  { %597 = shalt.err (!%p594_p3)
}
 0x13d   :  { %395 = dma.vmem_to_hbm [thread:$0]  %s393_s21, 256, %s689_s3, [#allocation4]  }
 0x13e   :  { %602 = dma.done.wait [#allocation4], 256  }
 0x13f   :  { %603 = vsyncadd [#allocation4], 4294967040 }
 0x140   :  { %399 = vsyncpa [#allocation3], 1 }
 0x141   :  { %400 = vsyncpa [#allocation6], 1 }
 0x142   :  { %401 = vsyncpa [#allocation4], 1 }

</bundles_post_ra>
